<compile_context>
chip_gen: v5e
topology: v5e:2x2
jax: 0.10.0
libtpu: 0.0.40
codegen_flags: <defaults>
</compile_context>

<pallas_src>
import jax
import jax.numpy as jnp
from jax.experimental import pallas as pl
from jax.experimental.pallas import tpu as pltpu


# ---------------------------------------------------------------------------
# positional encoding (matches torch poc_fre).  Dead in the no_grid path of
# forward_dynamic (only [:, :3] / [:, :4] raw channels are consumed), so the
# wrapper below does not call it.
# ---------------------------------------------------------------------------
def poc_fre(x, poc):
    emb = (x[..., None] * poc).reshape(x.shape[:-1] + (-1,))
    return jnp.concatenate([x, jnp.sin(emb), jnp.cos(emb)], axis=-1)


# ---------------------------------------------------------------------------
# per-point slab layout (64 lanes)
#   0:3   point xyz   (rows 0:3 of the embedded first-layer weight)
#   3:4   time        (row 3 of the embedded first-layer weight)
#   4:7   scales
#   7:11  rotations
#   11:12 opacity
#   12:60 shs (48)
#   60:64 zero pad
# PACK points are stored per kernel row -> lanes = PACK*64 (row-major
# reinterpret of the per-point slab, no data movement).
# ---------------------------------------------------------------------------
SLAB = 64
HEADS = ("pos", "scl", "rot", "opa", "shs")
_HEAD_LAYOUT = (("pos", 0, 3), ("scl", 4, 3), ("rot", 7, 4),
                ("opa", 11, 1), ("shs", 12, 48))


# ---------------------------------------------------------------------------
# Pallas kernel: feature_out MLP + fused 5-head deformation + residual add.
# All shapes are already PACK-replicated (block-diagonal weights), so per-point
# semantics are identical to the torch module.
# ---------------------------------------------------------------------------
def _deform_kernel(x_ref,                       # (tn, P*64) f32 slab
                   fw0_ref, fb0_ref,            # (P*64, P*W) f32, (1, P*W) f32
                   fwh_ref, fbh_ref,            # (D-1, P*W, P*W) cd, (D-1, 1, P*W) f32
                   w1_ref, b1_ref,              # (P*W, P*5W) cd, (1, P*5W) f32
                   w2_ref, b2_ref,              # (P*5W, P*64) cd, (1, P*64) f32
                   out_ref):                    # (tn, P*64) f32
    f32 = jnp.float32
    cd = w1_ref.dtype                            # compute dtype (bf16 or f32)

    x = x_ref[...]                               # (tn, P*64) f32

    # feature_out: Linear(4, W) embedded as Linear(64, W) with zero rows.
    # Kept in f32 (tiny K) so raw coordinates are never rounded to bf16.
    h = jnp.dot(x, fw0_ref[...], preferred_element_type=f32) + fb0_ref[...]
    # (D-1) x [ReLU, Linear(W, W)]  (static unroll, D-1 is small)
    for l in range(fwh_ref.shape[0]):
        h = jnp.maximum(h, 0.0)
        h = jnp.dot(h.astype(cd), fwh_ref[l], preferred_element_type=f32) + fbh_ref[l]

    # fused heads: (tn, P*W) @ (P*W, P*5W), ReLU, (tn, P*5W) @ (P*5W, P*64).
    # The block-diagonal second layer maps each head's output to its slab
    # columns; padding / time columns have zero weight & bias.
    h = jnp.maximum(h, 0.0)
    h = jnp.dot(h.astype(cd), w1_ref[...], preferred_element_type=f32) + b1_ref[...]
    h = jnp.maximum(h, 0.0)
    delta = jnp.dot(h.astype(cd), w2_ref[...], preferred_element_type=f32) + b2_ref[...]

    # mask == ones (static_mlp=False, empty_voxel=False) -> base * 1 + delta
    out_ref[...] = x + delta


# ---------------------------------------------------------------------------
# parameter packing: fuse the 5 heads, embed the (4, W) first layer, and
# replicate everything block-diagonally `pack` times (2 for v5e, 4 for
# v6e/v7x so K fills the 256-deep MXU).
# ---------------------------------------------------------------------------
def pack_params(params, W, pack=2, compute_dtype=jnp.bfloat16):
    f32 = jnp.float32
    H5 = 5 * W

    # per-point building blocks ------------------------------------------------
    fw0_blk = jnp.zeros((SLAB, W), f32).at[0:4, :].set(params["f_w0"])
    w1_blk = jnp.concatenate([params[f"{h}_w1"] for h, _, _ in _HEAD_LAYOUT], axis=1)
    b1_blk = jnp.concatenate([params[f"{h}_b1"] for h, _, _ in _HEAD_LAYOUT], axis=1)
    w2_blk = jnp.zeros((H5, SLAB), f32)
    b2_blk = jnp.zeros((1, SLAB), f32)
    for i, (h, off, width) in enumerate(_HEAD_LAYOUT):
        w2_blk = w2_blk.at[i * W:(i + 1) * W, off:off + width].set(params[f"{h}_w2"])
        b2_blk = b2_blk.at[:, off:off + width].set(params[f"{h}_b2"])

    # pack-way block-diagonal / column-tiled replication -----------------------
    def block_diag(blk, n):
        r, c = blk.shape[-2:]
        out = jnp.zeros(blk.shape[:-2] + (n * r, n * c), blk.dtype)
        for p in range(n):
            out = out.at[..., p * r:(p + 1) * r, p * c:(p + 1) * c].set(blk)
        return out

    def tile_cols(b, n):
        return jnp.tile(b, (1,) * (b.ndim - 1) + (n,))

    packed = {
        "fw0": block_diag(fw0_blk, pack).astype(f32),            # stays f32
        "fb0": tile_cols(params["f_b0"], pack).astype(f32),
        "fwh": block_diag(params["f_wh"], pack).astype(compute_dtype),
        "fbh": tile_cols(params["f_bh"], pack).astype(f32),
        "w1":  block_diag(w1_blk, pack).astype(compute_dtype),
        "b1":  tile_cols(b1_blk, pack).astype(f32),
        "w2":  block_diag(w2_blk, pack).astype(compute_dtype),
        "b2":  tile_cols(b2_blk, pack).astype(f32),
        "pack": int(pack),
    }
    return packed


_WEIGHT_KEYS = ("fw0", "fb0", "fwh", "fbh", "w1", "b1", "w2", "b2")


# ---------------------------------------------------------------------------
# slab-level entry point: callers that keep gaussians persistently in slab
# layout between frames call this directly and skip the concat/split passes.
# slab: (rows, pack*64) f32, rows a multiple of 8.  Returns updated slab.
# ---------------------------------------------------------------------------
def deform_slab(packed, slab, *, max_tile_rows=2048):
    rows, lanes = slab.shape
    pack = packed["pack"]
    assert lanes == pack * SLAB and rows % 8 == 0

    # tile choice: >=512 rows to amortize the ~0.35us per-step overhead, but
    # keep >=8 grid steps on large inputs so v7x's 2 TensorCores both get work.
    tile_rows = min(max_tile_rows, max(512, pl.cdiv(rows, 8)))
    tile_rows = pl.cdiv(tile_rows, 8) * 8
    tile_rows = min(tile_rows, rows)
    rows_pad = pl.cdiv(rows, tile_rows) * tile_rows
    if rows_pad != rows:
        slab = jnp.pad(slab, ((0, rows_pad - rows), (0, 0)))

    weights = [packed[k] for k in _WEIGHT_KEYS]

    in_specs = [pl.BlockSpec((tile_rows, lanes), lambda i: (i, 0))]
    # Weight index maps are constant across the grid, so Pallas fetches each
    # weight once and keeps it resident; pipeline_mode=pl.Buffered(1) would
    # only trim ~0.1 MiB of double-buffer VMEM and is skipped for portability.
    in_specs += [pl.BlockSpec(w.shape, lambda i, nd=w.ndim: (0,) * nd)
                 for w in weights]
    out_specs = pl.BlockSpec((tile_rows, lanes), lambda i: (i, 0))

    out = pl.pallas_call(
        _deform_kernel,
        grid=(rows_pad // tile_rows,),
        in_specs=in_specs,
        out_specs=out_specs,
        out_shape=jax.ShapeDtypeStruct((rows_pad, lanes), jnp.float32),
        input_output_aliases={0: 0},            # update slab in place
        compiler_params=pltpu.CompilerParams(
            dimension_semantics=("parallel",),
            # ~15 MiB needed at 2048 rows x 128 lanes (in/out double-buffered
            # + (tn, 5W*pack) intermediates); 48 MiB leaves headroom and still
            # fits v7x's 64 MiB/TC physical VMEM.
            vmem_limit_bytes=48 * 1024 * 1024),
    )(slab, *weights)

    return out[:rows]


# ---------------------------------------------------------------------------
# torch-like wrapper: build slab from separate attribute tensors, run kernel,
# split back.  (The concat/split are wrapper-side XLA passes; persistent-slab
# callers should use deform_slab directly.)
# ---------------------------------------------------------------------------
def deform_network_forward(packed, point, scales, rotations, opacity, shs,
                           times_sel, *, max_tile_rows=2048):
    N = point.shape[0]
    pack = packed["pack"]

    slab = jnp.concatenate(
        [point[:, :3], times_sel[:, :1], scales[:, :3], rotations[:, :4],
         opacity[:, :1], shs.reshape(N, -1)], axis=1).astype(jnp.float32)
    slab = jnp.pad(slab, ((0, 0), (0, SLAB - slab.shape[1])))

    rows = pl.cdiv(N, pack)
    rows8 = pl.cdiv(rows, 8) * 8
    n_pts_pad = rows8 * pack
    if n_pts_pad != N:
        slab = jnp.pad(slab, ((0, n_pts_pad - N), (0, 0)))
    slab = slab.reshape(rows8, pack * SLAB)       # free row-major reinterpret

    out = deform_slab(packed, slab, max_tile_rows=max_tile_rows)

    out = out.reshape(n_pts_pad, SLAB)[:N]
    pts = out[:, 0:3]
    scl = out[:, 4:7]
    rot = out[:, 7:11]
    opa = out[:, 11:12]
    shs_out = out[:, 12:60].reshape(N, 16, 3)
    return pts, scl, rot, opa, shs_out


# ---------------------------------------------------------------------------
# deterministic parameter init (xavier-uniform weights, small uniform biases)
# ---------------------------------------------------------------------------
def _xavier(key, shape):
    fan_in, fan_out = shape
    bound = (6.0 / (fan_in + fan_out)) ** 0.5
    return jax.random.uniform(key, shape, jnp.float32, -bound, bound)


def _bias(key, fan_in, out):
    bound = 1.0 / (fan_in ** 0.5)
    return jax.random.uniform(key, (1, out), jnp.float32, -bound, bound)


def init_params(key, W, D):
    params = {}
    ks = iter(jax.random.split(key, 128))
    params["f_w0"] = _xavier(next(ks), (4, W))
    params["f_b0"] = _bias(next(ks), 4, W)
    params["f_wh"] = jnp.stack([_xavier(next(ks), (W, W)) for _ in range(D - 1)])
    params["f_bh"] = jnp.stack([_bias(next(ks), W, W) for _ in range(D - 1)])
    for name, out in zip(HEADS, (3, 3, 4, 1, 48)):
        params[f"{name}_w1"] = _xavier(next(ks), (W, W))
        params[f"{name}_b1"] = _bias(next(ks), W, W)
        params[f"{name}_w2"] = _xavier(next(ks), (W, out))
        params[f"{name}_b2"] = _bias(next(ks), W, out)
    return params


# ---------------------------------------------------------------------------
# pure-JAX f32 reference for correctness
# ---------------------------------------------------------------------------
def reference(params, point, scales, rotations, opacity, shs, times_sel):
    x = jnp.concatenate([point[:, :3], times_sel[:, :1]], axis=-1)
    h = x @ params["f_w0"] + params["f_b0"]
    for l in range(params["f_wh"].shape[0]):
        h = jnp.maximum(h, 0.0) @ params["f_wh"][l] + params["f_bh"][l]

    def head(n):
        a = jnp.maximum(h, 0.0) @ params[f"{n}_w1"] + params[f"{n}_b1"]
        return jnp.maximum(a, 0.0) @ params[f"{n}_w2"] + params[f"{n}_b2"]

    pts = point[:, :3] + head("pos")
    scl = scales[:, :3] + head("scl")
    rot = rotations[:, :4] + head("rot")
    opa = opacity[:, :1] + head("opa")
    shs_o = shs + head("shs").reshape(shs.shape[0], 16, 3)
    return pts, scl, rot, opa, shs_o


# ---------------------------------------------------------------------------
if __name__ == "__main__":
    N = 1000           # number of gaussians / points (ragged vs tile on purpose)
    W = 64             # args.net_width
    D = 3              # args.defor_depth

    key = jax.random.PRNGKey(0)
    kp, kx = jax.random.split(key)
    params = init_params(kp, W, D)

    kpt, ksc, kro, kop, ksh, kt = jax.random.split(kx, 6)
    point = jax.random.normal(kpt, (N, 3), jnp.float32)
    scales = jax.random.normal(ksc, (N, 3), jnp.float32)
    rotations = jax.random.normal(kro, (N, 4), jnp.float32)
    opacity = jax.random.uniform(kop, (N, 1), jnp.float32)
    shs = jax.random.normal(ksh, (N, 16, 3), jnp.float32)
    times_sel = jax.random.uniform(kt, (N, 1), jnp.float32)

    refs = reference(params, point, scales, rotations, opacity, shs, times_sel)

    def check(outs, atol, rtol, tag):
        for o, r in zip(outs, refs):
            assert o.shape == r.shape and o.dtype == r.dtype, tag
            assert jnp.allclose(o, r, atol=atol, rtol=rtol), f"{tag} mismatch vs reference"

    # 1) f32 compute, 2-point pack (128 lanes): exact structural check
    packed = pack_params(params, W, pack=2, compute_dtype=jnp.float32)
    outs = jax.block_until_ready(deform_network_forward(
        packed, point, scales, rotations, opacity, shs, times_sel))
    check(outs, 1e-4, 1e-4, "f32 pack=2")

    # 2) bf16 compute, 2-point pack (v5e production config): looser tolerance
    packed = pack_params(params, W, pack=2, compute_dtype=jnp.bfloat16)
    outs = jax.block_until_ready(deform_network_forward(
        packed, point, scales, rotations, opacity, shs, times_sel))
    check(outs, 5e-2, 5e-2, "bf16 pack=2")

    # 3) f32 compute, 4-point pack (256 lanes = v6e/v7x MXU depth): exact again
    packed = pack_params(params, W, pack=4, compute_dtype=jnp.float32)
    outs = jax.block_until_ready(deform_network_forward(
        packed, point, scales, rotations, opacity, shs, times_sel))
    check(outs, 1e-4, 1e-4, "f32 pack=4")

    # TODO(synk): HexPlaneField grid / static_mlp / empty_voxel / apply_rotation
    # branches are not exercised (config uses no_grid=True, plain ones mask,
    # additive rotation), matching the stated args.
    print("KERNEL_OK")
</pallas_src>

<mosaic_0001>
module attributes {stable_mosaic.version = 11 : i64} {
  func.func @_deform_kernel(%arg0: i32, %arg1: memref<504x128xf32, #tpu.memory_space<vmem>>, %arg2: memref<128x128xf32, #tpu.memory_space<vmem>>, %arg3: memref<1x128xf32, #tpu.memory_space<vmem>>, %arg4: memref<2x128x128xf32, #tpu.memory_space<vmem>>, %arg5: memref<2x1x128xf32, #tpu.memory_space<vmem>>, %arg6: memref<128x640xf32, #tpu.memory_space<vmem>>, %arg7: memref<1x640xf32, #tpu.memory_space<vmem>>, %arg8: memref<640x128xf32, #tpu.memory_space<vmem>>, %arg9: memref<1x128xf32, #tpu.memory_space<vmem>>, %arg10: memref<504x128xf32, #tpu.memory_space<vmem>>) attributes {dimension_semantics = [#tpu.dimension_semantics<parallel>], iteration_bounds = array<i64: 1>, scalar_prefetch = 0 : i64, scratch_operands = 0 : i64, tpu.core_type = #tpu.core_type<tc>, window_params = [{transform_indices = @transform_0, window_bounds = array<i64: 504, 128>}, {pipeline_mode = #tpu.pipeline_mode<synchronous>, transform_indices = @transform_1, window_bounds = array<i64: 128, 128>}, {pipeline_mode = #tpu.pipeline_mode<synchronous>, transform_indices = @transform_2, window_bounds = array<i64: 1, 128>}, {pipeline_mode = #tpu.pipeline_mode<synchronous>, transform_indices = @transform_3, window_bounds = array<i64: 2, 128, 128>}, {pipeline_mode = #tpu.pipeline_mode<synchronous>, transform_indices = @transform_4, window_bounds = array<i64: 2, 1, 128>}, {pipeline_mode = #tpu.pipeline_mode<synchronous>, transform_indices = @transform_5, window_bounds = array<i64: 128, 640>}, {pipeline_mode = #tpu.pipeline_mode<synchronous>, transform_indices = @transform_6, window_bounds = array<i64: 1, 640>}, {pipeline_mode = #tpu.pipeline_mode<synchronous>, transform_indices = @transform_7, window_bounds = array<i64: 640, 128>}, {pipeline_mode = #tpu.pipeline_mode<synchronous>, transform_indices = @transform_8, window_bounds = array<i64: 1, 128>}, {transform_indices = @transform_9, window_bounds = array<i64: 504, 128>}]} {
    %c0 = arith.constant 0 : index
    %c0_0 = arith.constant 0 : index
    %0 = vector.load %arg1[%c0, %c0_0] : memref<504x128xf32, #tpu.memory_space<vmem>>, vector<504x128xf32>
    %c0_1 = arith.constant 0 : index
    %c0_2 = arith.constant 0 : index
    %1 = vector.load %arg2[%c0_1, %c0_2] : memref<128x128xf32, #tpu.memory_space<vmem>>, vector<128x128xf32>
    %cst = arith.constant dense<0.000000e+00> : vector<504x128xf32>
    %2 = tpu.matmul %0, %1, %cst {dimension_numbers = #tpu.dot_dimension_numbers<[1], [0], [0], [1], [0, 0, 1, 1], [], []>} : vector<504x128xf32>, vector<128x128xf32>, vector<504x128xf32> -> vector<504x128xf32>
    %c0_3 = arith.constant 0 : index
    %c0_4 = arith.constant 0 : index
    %3 = vector.load %arg3[%c0_3, %c0_4] : memref<1x128xf32, #tpu.memory_space<vmem>>, vector<1x128xf32>
    %4 = vector.broadcast %3 : vector<1x128xf32> to vector<504x128xf32>
    %5 = arith.addf %2, %4 : vector<504x128xf32>
    %cst_5 = arith.constant 0.000000e+00 : f32
    %6 = vector.broadcast %cst_5 : f32 to vector<504x128xf32>
    %7 = arith.maximumf %5, %6 : vector<504x128xf32>
    %c0_6 = arith.constant 0 : index
    %c0_7 = arith.constant 0 : index
    %c0_8 = arith.constant 0 : index
    %8 = vector.load %arg4[%c0_6, %c0_7, %c0_8] : memref<2x128x128xf32, #tpu.memory_space<vmem>>, vector<1x128x128xf32>
    %9 = vector.shape_cast %8 : vector<1x128x128xf32> to vector<128x128xf32>
    %cst_9 = arith.constant dense<0.000000e+00> : vector<504x128xf32>
    %10 = tpu.matmul %7, %9, %cst_9 {dimension_numbers = #tpu.dot_dimension_numbers<[1], [0], [0], [1], [0, 0, 1, 1], [], []>} : vector<504x128xf32>, vector<128x128xf32>, vector<504x128xf32> -> vector<504x128xf32>
    %c0_10 = arith.constant 0 : index
    %c0_11 = arith.constant 0 : index
    %c0_12 = arith.constant 0 : index
    %11 = vector.load %arg5[%c0_10, %c0_11, %c0_12] : memref<2x1x128xf32, #tpu.memory_space<vmem>>, vector<1x1x128xf32>
    %12 = vector.shape_cast %11 : vector<1x1x128xf32> to vector<1x128xf32>
    %13 = vector.broadcast %12 : vector<1x128xf32> to vector<504x128xf32>
    %14 = arith.addf %10, %13 : vector<504x128xf32>
    %cst_13 = arith.constant 0.000000e+00 : f32
    %15 = vector.broadcast %cst_13 : f32 to vector<504x128xf32>
    %16 = arith.maximumf %14, %15 : vector<504x128xf32>
    %c1 = arith.constant 1 : index
    %c0_14 = arith.constant 0 : index
    %c0_15 = arith.constant 0 : index
    %17 = vector.load %arg4[%c1, %c0_14, %c0_15] : memref<2x128x128xf32, #tpu.memory_space<vmem>>, vector<1x128x128xf32>
    %18 = vector.shape_cast %17 : vector<1x128x128xf32> to vector<128x128xf32>
    %cst_16 = arith.constant dense<0.000000e+00> : vector<504x128xf32>
    %19 = tpu.matmul %16, %18, %cst_16 {dimension_numbers = #tpu.dot_dimension_numbers<[1], [0], [0], [1], [0, 0, 1, 1], [], []>} : vector<504x128xf32>, vector<128x128xf32>, vector<504x128xf32> -> vector<504x128xf32>
    %c1_17 = arith.constant 1 : index
    %c0_18 = arith.constant 0 : index
    %c0_19 = arith.constant 0 : index
    %20 = vector.load %arg5[%c1_17, %c0_18, %c0_19] : memref<2x1x128xf32, #tpu.memory_space<vmem>>, vector<1x1x128xf32>
    %21 = vector.shape_cast %20 : vector<1x1x128xf32> to vector<1x128xf32>
    %22 = vector.broadcast %21 : vector<1x128xf32> to vector<504x128xf32>
    %23 = arith.addf %19, %22 : vector<504x128xf32>
    %cst_20 = arith.constant 0.000000e+00 : f32
    %24 = vector.broadcast %cst_20 : f32 to vector<504x128xf32>
    %25 = arith.maximumf %23, %24 : vector<504x128xf32>
    %c0_21 = arith.constant 0 : index
    %c0_22 = arith.constant 0 : index
    %26 = vector.load %arg6[%c0_21, %c0_22] : memref<128x640xf32, #tpu.memory_space<vmem>>, vector<128x640xf32>
    %cst_23 = arith.constant dense<0.000000e+00> : vector<504x640xf32>
    %27 = tpu.matmul %25, %26, %cst_23 {dimension_numbers = #tpu.dot_dimension_numbers<[1], [0], [0], [1], [0, 0, 1, 1], [], []>} : vector<504x128xf32>, vector<128x640xf32>, vector<504x640xf32> -> vector<504x640xf32>
    %c0_24 = arith.constant 0 : index
    %c0_25 = arith.constant 0 : index
    %28 = vector.load %arg7[%c0_24, %c0_25] : memref<1x640xf32, #tpu.memory_space<vmem>>, vector<1x640xf32>
    %29 = vector.broadcast %28 : vector<1x640xf32> to vector<504x640xf32>
    %30 = arith.addf %27, %29 : vector<504x640xf32>
    %cst_26 = arith.constant 0.000000e+00 : f32
    %31 = vector.broadcast %cst_26 : f32 to vector<504x640xf32>
    %32 = arith.maximumf %30, %31 : vector<504x640xf32>
    %c0_27 = arith.constant 0 : index
    %c0_28 = arith.constant 0 : index
    %33 = vector.load %arg8[%c0_27, %c0_28] : memref<640x128xf32, #tpu.memory_space<vmem>>, vector<640x128xf32>
    %cst_29 = arith.constant dense<0.000000e+00> : vector<504x128xf32>
    %34 = tpu.matmul %32, %33, %cst_29 {dimension_numbers = #tpu.dot_dimension_numbers<[1], [0], [0], [1], [0, 0, 1, 1], [], []>} : vector<504x640xf32>, vector<640x128xf32>, vector<504x128xf32> -> vector<504x128xf32>
    %c0_30 = arith.constant 0 : index
    %c0_31 = arith.constant 0 : index
    %35 = vector.load %arg9[%c0_30, %c0_31] : memref<1x128xf32, #tpu.memory_space<vmem>>, vector<1x128xf32>
    %36 = vector.broadcast %35 : vector<1x128xf32> to vector<504x128xf32>
    %37 = arith.addf %34, %36 : vector<504x128xf32>
    %38 = arith.addf %0, %37 : vector<504x128xf32>
    %c0_32 = arith.constant 0 : index
    %c0_33 = arith.constant 0 : index
    %39 = vector.load %arg10[%c0_32, %c0_33] : memref<504x128xf32, #tpu.memory_space<vmem>>, vector<504x128xf32>
    tpu.vector_store %arg10[%c0_32, %c0_33], %38 {strides = array<i32>} : memref<504x128xf32, #tpu.memory_space<vmem>>, vector<504x128xf32>,
    return
  }
  func.func @transform_0(%arg0: i32) -> (i32, i32) {
    %c0_i32 = arith.constant 0 : i32
    %c0_i32_0 = arith.constant 0 : i32
    return %arg0, %c0_i32 : i32, i32
  }
  func.func @transform_1(%arg0: i32) -> (i32, i32) {
    %c0_i32 = arith.constant 0 : i32
    %c0_i32_0 = arith.constant 0 : i32
    %c0_i32_1 = arith.constant 0 : i32
    return %c0_i32, %c0_i32_0 : i32, i32
  }
  func.func @transform_2(%arg0: i32) -> (i32, i32) {
    %c0_i32 = arith.constant 0 : i32
    %c0_i32_0 = arith.constant 0 : i32
    %c0_i32_1 = arith.constant 0 : i32
    return %c0_i32, %c0_i32_0 : i32, i32
  }
  func.func @transform_3(%arg0: i32) -> (i32, i32, i32) {
    %c0_i32 = arith.constant 0 : i32
    %c0_i32_0 = arith.constant 0 : i32
    %c0_i32_1 = arith.constant 0 : i32
    %c0_i32_2 = arith.constant 0 : i32
    return %c0_i32, %c0_i32_0, %c0_i32_1 : i32, i32, i32
  }
  func.func @transform_4(%arg0: i32) -> (i32, i32, i32) {
    %c0_i32 = arith.constant 0 : i32
    %c0_i32_0 = arith.constant 0 : i32
    %c0_i32_1 = arith.constant 0 : i32
    %c0_i32_2 = arith.constant 0 : i32
    return %c0_i32, %c0_i32_0, %c0_i32_1 : i32, i32, i32
  }
  func.func @transform_5(%arg0: i32) -> (i32, i32) {
    %c0_i32 = arith.constant 0 : i32
    %c0_i32_0 = arith.constant 0 : i32
    %c0_i32_1 = arith.constant 0 : i32
    return %c0_i32, %c0_i32_0 : i32, i32
  }
  func.func @transform_6(%arg0: i32) -> (i32, i32) {
    %c0_i32 = arith.constant 0 : i32
    %c0_i32_0 = arith.constant 0 : i32
    %c0_i32_1 = arith.constant 0 : i32
    return %c0_i32, %c0_i32_0 : i32, i32
  }
  func.func @transform_7(%arg0: i32) -> (i32, i32) {
    %c0_i32 = arith.constant 0 : i32
    %c0_i32_0 = arith.constant 0 : i32
    %c0_i32_1 = arith.constant 0 : i32
    return %c0_i32, %c0_i32_0 : i32, i32
  }
  func.func @transform_8(%arg0: i32) -> (i32, i32) {
    %c0_i32 = arith.constant 0 : i32
    %c0_i32_0 = arith.constant 0 : i32
    %c0_i32_1 = arith.constant 0 : i32
    return %c0_i32, %c0_i32_0 : i32, i32
  }
  func.func @transform_9(%arg0: i32) -> (i32, i32) {
    %c0_i32 = arith.constant 0 : i32
    %c0_i32_0 = arith.constant 0 : i32
    return %arg0, %c0_i32 : i32, i32
  }
}

</mosaic_0001>

<bundles_post_ra>
// kernel: tpu_custom_call.1
= control target key start
LH: loop header
LB: loop body
LE: loop exit
PB: predicated region body
PF: predicated region fallthrough
CT: control target
= control target key end

     0   :  { %14 = vsyncpa [#allocation3], 0  ;;  %s7008_s0 = inlined_call_operand.hbm [shape: f32[504,128], index: 0, kind: input, shape index: {}, may-alias: {0,9}]   ;;  %s7009_s1 = inlined_call_operand.hbm [shape: f32[128,128], index: 1, kind: input, shape index: {}]   ;;  %s7010_s2 = inlined_call_operand.vmem [shape: f32[1,128], index: 2, kind: input, shape index: {}]   ;;  %s7011_s3 = inlined_call_operand.vmem [shape: f32[2,128,128], index: 3, kind: input, shape index: {}]   ;;  %s7012_s4 = inlined_call_operand.vmem [shape: f32[2,1,128], index: 4, kind: input, shape index: {}]   ;;  %s7013_s5 = inlined_call_operand.vmem [shape: f32[128,640], index: 5, kind: input, shape index: {}]   ;;  %s7014_s6 = inlined_call_operand.vmem [shape: f32[1,640], index: 6, kind: input, shape index: {}]   ;;  %s7015_s7 = inlined_call_operand.hbm [shape: f32[640,128], index: 7, kind: input, shape index: {}]   ;;  %s7016_s8 = inlined_call_operand.vmem [shape: f32[1,128], index: 8, kind: input, shape index: {}]   ;;  %s7017_s9 = inlined_call_operand.hbm [shape: f32[504,128], index: 9, kind: output, shape index: {}, may-alias: {0,9}]  }
   0x1   :  { %15 = vsyncpa [#allocation6], 0 }
   0x2   :  { %16 = vsyncpa [#allocation4], 0  ;;  %s34_s11 = sshll.u32 %s7009_s1, 4  ;;  %s3955_s12 = smov [#allocation5]   ;;  %s35_s11 = int_to_ptr.hbm [resolvable:$true] %s34_s11 }
   0x3   :  { %s36_s13 = sshll.u32 %s3955_s12, 4  ;;  %s21_s16 = sshll.u32 %s7008_s0, 4  ;;  %s37_s13 = int_to_ptr.vmem [resolvable:$true] %s36_s13  ;;  %s22_s16 = int_to_ptr.hbm [resolvable:$true] %s21_s16 }
   0x4   :  { %s3956_s17 = smov 128   ;;  %s3957_s18 = smov 8  }
   0x5   :  { %42 = dma.hbm_to_vmem [thread:$0]  %s35_s11, 2048, %s37_s13, [#allocation6], %s3956_s17, %s3956_s17, %s3957_s18  }
   0x6   :  { %s3958_s19 = smov [#allocation2]   ;;  %s57_s1 = sshll.u32 %s7015_s7, 4  ;;  %s58_s1 = int_to_ptr.hbm [resolvable:$true] %s57_s1 }
   0x7   :  { %s23_s20 = sshll.u32 %s3958_s19, 4  ;;  %s3959_s0 = smov [#allocation7]   ;;  %s24_s20 = int_to_ptr.vmem [resolvable:$true] %s23_s20 }
   0x8   :  { %29 = dma.hbm_to_vmem [thread:$0]  %s22_s16, 8064, %s24_s20, [#allocation3], %s3956_s17, %s3956_s17, %s3957_s18  }
   0x9   :  { %s59_s23 = sshll.u32 %s3959_s0, 4  ;;  %s60_s23 = int_to_ptr.vmem [resolvable:$true] %s59_s23 }
   0xa   :  { %65 = dma.hbm_to_vmem [thread:$0]  %s58_s1, 10240, %s60_s23, [#allocation6], %s3956_s17, %s3956_s17, %s3957_s18  }
   0xb   :  { %3949 = dma.done.wait [#allocation3], 8064  }
   0xc   :  { %3950 = vsyncadd [#allocation3], 4294959232 }
   0xd   :  { %3951 = dma.done.wait [#allocation6], 12288  }
   0xe   :  { %3952 = vsyncadd [#allocation6], 4294955008  ;;  %v158_v0 = vld [vmem:[#allocation5 + $0x78] sm:$0xff]  ;;  %v157_v1 = vld [vmem:[#allocation5 + $0x70] sm:$0xff]  ;;  %s3695_s15 = sshll.u32 %s7017_s9, 4  ;;  %s3696_s15 = int_to_ptr.hbm [resolvable:$true] %s3695_s15 }
   0xf   :  { %163 = vmatpush.msra.mxu0 %v158_v0  ;;  %3726 = vmatpush.msra.mxu1 %v158_v0  ;;  %v156_v2 = vld [vmem:[#allocation5 + $0x68] sm:$0xff]  ;;  %v155_v3 = vld [vmem:[#allocation5 + $0x60] sm:$0xff]  ;;  %v154_v4 = vld [vmem:[#allocation5 + $0x58] sm:$0xff] }
  0x10   :  { %3727 = vmatpush.msra.mxu2 %v158_v0  ;;  %3728 = vmatpush.msra.mxu3 %v158_v0  ;;  %v153_v5 = vld [vmem:[#allocation5 + $0x50] sm:$0xff]  ;;  %v152_v6 = vld [vmem:[#allocation5 + $0x48] sm:$0xff]  ;;  %v151_v7 = vld [vmem:[#allocation5 + $0x40] sm:$0xff] }
  0x11   :  { %164 = vmatpush.msra.mxu0 %v157_v1  ;;  %3729 = vmatpush.msra.mxu1 %v157_v1  ;;  %v150_v8 = vld [vmem:[#allocation5 + $0x38] sm:$0xff]  ;;  %v149_v9 = vld [vmem:[#allocation5 + $0x30] sm:$0xff]  ;;  %v148_v10 = vld [vmem:[#allocation5 + $0x28] sm:$0xff] }
  0x12   :  { %3730 = vmatpush.msra.mxu2 %v157_v1  ;;  %3731 = vmatpush.msra.mxu3 %v157_v1  ;;  %v147_v11 = vld [vmem:[#allocation5 + $0x20] sm:$0xff]  ;;  %v146_v12 = vld [vmem:[#allocation5 + $0x18] sm:$0xff]  ;;  %v145_v13 = vld [vmem:[#allocation5 + $0x10] sm:$0xff] }
  0x13   :  { %165 = vmatpush.msra.mxu0 %v156_v2  ;;  %3732 = vmatpush.msra.mxu1 %v156_v2  ;;  %v144_v14 = vld [vmem:[#allocation5 + $0x8] sm:$0xff]  ;;  %v143_v15 = vld [vmem:[#allocation5] sm:$0xff]  ;;  %v446_v19 = vld [vmem:[%s7011_s3 + $0x70] sm:$0xff] }
  0x14   :  { %3733 = vmatpush.msra.mxu2 %v156_v2  ;;  %3734 = vmatpush.msra.mxu3 %v156_v2  ;;  %v80_v16 = vld [vmem:[#allocation2] sm:$0xff]  ;;  %v447_v18 = vld [vmem:[%s7011_s3 + $0x78] sm:$0xff]  ;;  %v445_v20 = vld [vmem:[%s7011_s3 + $0x68] sm:$0xff] }
  0x15   :  { %166 = vmatpush.msra.mxu0 %v155_v3  ;;  %3735 = vmatpush.msra.mxu1 %v155_v3  ;;  %v96_v17 = vld [vmem:[#allocation2 + $0x80] sm:$0xff]  ;;  %v81_v22 = vld [vmem:[#allocation2 + $0x8] sm:$0xff]  ;;  %v443_v24 = vld [vmem:[%s7011_s3 + $0x58] sm:$0xff] }
  0x16   :  { %3736 = vmatpush.msra.mxu2 %v155_v3  ;;  %3737 = vmatpush.msra.mxu3 %v155_v3  ;;  %v444_v21 = vld [vmem:[%s7011_s3 + $0x60] sm:$0xff]  ;;  %v97_v23 = vld [vmem:[#allocation2 + $0x88] sm:$0xff]  ;;  %v442_v25 = vld [vmem:[%s7011_s3 + $0x50] sm:$0xff] }
  0x17   :  { %167 = vmatpush.msra.mxu0 %v154_v4  ;;  %3738 = vmatpush.msra.mxu1 %v154_v4  ;;  %v82_v26 = vld [vmem:[#allocation2 + $0x10] sm:$0xff]  ;;  %v441_v28 = vld [vmem:[%s7011_s3 + $0x48] sm:$0xff]  ;;  %v83_v29 = vld [vmem:[#allocation2 + $0x18] sm:$0xff] }
  0x18   :  { %3739 = vmatpush.msra.mxu2 %v154_v4  ;;  %3740 = vmatpush.msra.mxu3 %v154_v4  ;;  %v98_v27 = vld [vmem:[#allocation2 + $0x90] sm:$0xff]  ;;  %v99_v30 = vld [vmem:[#allocation2 + $0x98] sm:$0xff]  ;;  %v440_v31 = vld [vmem:[%s7011_s3 + $0x40] sm:$0xff] }
  0x19   :  { %168 = vmatpush.msra.mxu0 %v153_v5  ;;  %3741 = vmatpush.msra.mxu1 %v153_v5  ;;  %v84_v32 = vld [vmem:[#allocation2 + $0x20] sm:$0xff]  ;;  %v439_v34 = vld [vmem:[%s7011_s3 + $0x38] sm:$0xff]  ;;  %v85_v35 = vld [vmem:[#allocation2 + $0x28] sm:$0xff] }
  0x1a   :  { %3742 = vmatpush.msra.mxu2 %v153_v5  ;;  %3743 = vmatpush.msra.mxu3 %v153_v5  ;;  %v100_v33 = vld [vmem:[#allocation2 + $0xa0] sm:$0xff]  ;;  %v101_v36 = vld [vmem:[#allocation2 + $0xa8] sm:$0xff]  ;;  %v438_v37 = vld [vmem:[%s7011_s3 + $0x30] sm:$0xff] }
  0x1b   :  { %169 = vmatpush.msra.mxu0 %v152_v6  ;;  %3744 = vmatpush.msra.mxu1 %v152_v6  ;;  %v86_v38 = vld [vmem:[#allocation2 + $0x30] sm:$0xff]  ;;  %v437_v40 = vld [vmem:[%s7011_s3 + $0x28] sm:$0xff]  ;;  %v87_v41 = vld [vmem:[#allocation2 + $0x38] sm:$0xff] }
  0x1c   :  { %3745 = vmatpush.msra.mxu2 %v152_v6  ;;  %3746 = vmatpush.msra.mxu3 %v152_v6  ;;  %v102_v39 = vld [vmem:[#allocation2 + $0xb0] sm:$0xff]  ;;  %v103_v42 = vld [vmem:[#allocation2 + $0xb8] sm:$0xff]  ;;  %v436_v43 = vld [vmem:[%s7011_s3 + $0x20] sm:$0xff] }
  0x1d   :  { %170 = vmatpush.msra.mxu0 %v151_v7  ;;  %3747 = vmatpush.msra.mxu1 %v151_v7  ;;  %v88_v44 = vld [vmem:[#allocation2 + $0x40] sm:$0xff]  ;;  %v435_v46 = vld [vmem:[%s7011_s3 + $0x18] sm:$0xff]  ;;  %v89_v47 = vld [vmem:[#allocation2 + $0x48] sm:$0xff] }
  0x1e   :  { %3748 = vmatpush.msra.mxu2 %v151_v7  ;;  %3749 = vmatpush.msra.mxu3 %v151_v7  ;;  %v104_v45 = vld [vmem:[#allocation2 + $0xc0] sm:$0xff]  ;;  %v105_v48 = vld [vmem:[#allocation2 + $0xc8] sm:$0xff]  ;;  %v434_v49 = vld [vmem:[%s7011_s3 + $0x10] sm:$0xff] }
  0x1f   :  { %171 = vmatpush.msra.mxu0 %v150_v8  ;;  %3750 = vmatpush.msra.mxu1 %v150_v8  ;;  %v90_v50 = vld [vmem:[#allocation2 + $0x50] sm:$0xff]  ;;  %v433_v52 = vld [vmem:[%s7011_s3 + $0x8] sm:$0xff]  ;;  %v91_v53 = vld [vmem:[#allocation2 + $0x58] sm:$0xff] }
  0x20   :  { %3751 = vmatpush.msra.mxu2 %v150_v8  ;;  %3752 = vmatpush.msra.mxu3 %v150_v8  ;;  %v106_v51 = vld [vmem:[#allocation2 + $0xd0] sm:$0xff]  ;;  %v107_v54 = vld [vmem:[#allocation2 + $0xd8] sm:$0xff]  ;;  %v432_v55 = vld [vmem:[%s7011_s3] sm:$0xff] }
  0x21   :  { %172 = vmatpush.msra.mxu0 %v149_v9  ;;  %3753 = vmatpush.msra.mxu1 %v149_v9  ;;  %v92_v56 = vld [vmem:[#allocation2 + $0x60] sm:$0xff]  ;;  %v3724_v59 = vld [vmem:[%s7011_s3 + $0xf8] sm:$0xff]  ;;  %v93_v60 = vld [vmem:[#allocation2 + $0x68] sm:$0xff] }
  0x22   :  { %3754 = vmatpush.msra.mxu2 %v149_v9  ;;  %3755 = vmatpush.msra.mxu3 %v149_v9  ;;  %v108_v57 = vld [vmem:[#allocation2 + $0xe0] sm:$0xff]  ;;  %v109_v61 = vld [vmem:[#allocation2 + $0xe8] sm:$0xff]  ;;  %v3723_v63 = vld [vmem:[%s7011_s3 + $0xf0] sm:$0xff] }
  0x23   :  { %173 = vmatpush.msra.mxu0 %v148_v10  ;;  %3756 = vmatpush.msra.mxu1 %v148_v10  ;;  %v112_v58 = vld [vmem:[#allocation2 + $0x100] sm:$0xff]  ;;  %v113_v62 = vld [vmem:[#allocation2 + $0x108] sm:$0xff]  ;;  %v94_v0 = vld [vmem:[#allocation2 + $0x70] sm:$0xff] }
  0x24   :  { %3757 = vmatpush.msra.mxu2 %v148_v10  ;;  %3758 = vmatpush.msra.mxu3 %v148_v10  ;;  %v110_v1 = vld [vmem:[#allocation2 + $0xf0] sm:$0xff]  ;;  %v3722_v3 = vld [vmem:[%s7011_s3 + $0xe8] sm:$0xff]  ;;  %v95_v4 = vld [vmem:[#allocation2 + $0x78] sm:$0xff] }
  0x25   :  { %174 = vmatpush.msra.mxu0 %v147_v11  ;;  %3759 = vmatpush.msra.mxu1 %v147_v11  ;;  %v114_v2 = vld [vmem:[#allocation2 + $0x110] sm:$0xff]  ;;  %v111_v5 = vld [vmem:[#allocation2 + $0xf8] sm:$0xff]  ;;  %v4089_v6 = vld [vmem:[%s7010_s2] ss:$0 sm:$0xff] }
  0x26   :  { %3760 = vmatpush.msra.mxu2 %v147_v11  ;;  %3761 = vmatpush.msra.mxu3 %v147_v11  ;;  %v115_v7 = vld [vmem:[#allocation2 + $0x118] sm:$0xff]  ;;  %v3721_v8 = vld [vmem:[%s7011_s3 + $0xe0] sm:$0xff] }
  0x27   :  { %175 = vmatpush.msra.mxu0 %v146_v12  ;;  %3762 = vmatpush.msra.mxu1 %v146_v12 }
  0x28   :  { %3763 = vmatpush.msra.mxu2 %v146_v12  ;;  %3764 = vmatpush.msra.mxu3 %v146_v12 }
  0x29   :  { %176 = vmatpush.msra.mxu0 %v145_v13  ;;  %3765 = vmatpush.msra.mxu1 %v145_v13 }
  0x2a   :  { %3766 = vmatpush.msra.mxu2 %v145_v13  ;;  %3767 = vmatpush.msra.mxu3 %v145_v13  ;;  %v116_v13 = vld [vmem:[#allocation2 + $0x120] sm:$0xff] }
  0x2b   :  { %177 = vmatpush.msra.mxu0 %v144_v14  ;;  %3768 = vmatpush.msra.mxu1 %v144_v14 }
  0x2c   :  { %3769 = vmatpush.msra.mxu2 %v144_v14  ;;  %3770 = vmatpush.msra.mxu3 %v144_v14  ;;  %v3720_v14 = vld [vmem:[%s7011_s3 + $0xd8] sm:$0xff] }
  0x2d   :  { %178 = vmatpush.msra.mxu0 %v143_v15  ;;  %3771 = vmatpush.msra.mxu1 %v143_v15 }
  0x2e   :  { %179 = vmatmul.f32.vlgmr.msra.gmra.mxu0 %v80_v16  ;;  %227 = vmatmul.f32.vlgmr.msra.gmra.mxu1 %v96_v17 }
  0x2f   :  { %452 = vmatpush.msrb.mxu1 %v447_v18  ;;  %3772 = vmatpush.msra.mxu2 %v143_v15 }
  0x30   :  { %3773 = vmatpush.msra.mxu3 %v143_v15  ;;  %275 = vmatmul.f32.vlgmr.msra.gmra.mxu2 %v112_v58 }
  0x31   :  { %453 = vmatpush.msrb.mxu1 %v446_v19  ;;  %743 = vmatpush.msrb.mxu2 %v3724_v59  ;;  %v117_v19 = vld [vmem:[#allocation2 + $0x128] sm:$0xff] }
  0x33   :  { %454 = vmatpush.msrb.mxu1 %v445_v20  ;;  %744 = vmatpush.msrb.mxu2 %v3723_v63  ;;  %v3719_v20 = vld [vmem:[%s7011_s3 + $0xd0] sm:$0xff] }
  0x35   :  { %455 = vmatpush.msrb.mxu1 %v444_v21  ;;  %745 = vmatpush.msrb.mxu2 %v3722_v3  ;;  %v125_v3 = vld [vmem:[#allocation2 + $0x168] sm:$0xff] }
  0x36   :  { %182 = vmatmul.f32.gmra.mxu0 %v81_v22  ;;  %230 = vmatmul.f32.gmra.mxu1 %v97_v23 }
  0x37   :  { %456 = vmatpush.msrb.mxu1 %v443_v24  ;;  %746 = vmatpush.msrb.mxu2 %v3721_v8 }
  0x38   :  { %278 = vmatmul.f32.gmra.mxu2 %v113_v62  ;;  %v3712_v62 = vld [vmem:[%s7011_s3 + $0x98] sm:$0xff] }
  0x39   :  { %457 = vmatpush.msrb.mxu1 %v442_v25  ;;  %747 = vmatpush.msrb.mxu2 %v3720_v14  ;;  %v118_v25 = vld [vmem:[#allocation2 + $0x130] sm:$0xff] }
  0x3b   :  { %458 = vmatpush.msrb.mxu1 %v441_v28  ;;  %748 = vmatpush.msrb.mxu2 %v3719_v20 }
  0x3d   :  { %459 = vmatpush.msrb.mxu1 %v440_v31  ;;  %v119_v31 = vld [vmem:[#allocation2 + $0x138] sm:$0xff] }
  0x3e   :  { %185 = vmatmul.f32.gmra.mxu0 %v82_v26  ;;  %233 = vmatmul.f32.gmra.mxu1 %v98_v27  ;;  %v3718_v26 = vld [vmem:[%s7011_s3 + $0xc8] sm:$0xff] }
  0x3f   :  { %460 = vmatpush.msrb.mxu1 %v439_v34  ;;  %749 = vmatpush.msrb.mxu2 %v3718_v26 }
  0x40   :  { %281 = vmatmul.f32.gmra.mxu2 %v114_v2 }
  0x41   :  { %461 = vmatpush.msrb.mxu1 %v438_v37  ;;  %v120_v37 = vld [vmem:[#allocation2 + $0x140] sm:$0xff] }
  0x43   :  { %462 = vmatpush.msrb.mxu1 %v437_v40 }
  0x45   :  { %463 = vmatpush.msrb.mxu1 %v436_v43  ;;  %v121_v43 = vld [vmem:[#allocation2 + $0x148] sm:$0xff] }
  0x46   :  { %188 = vmatmul.f32.gmra.mxu0 %v83_v29  ;;  %236 = vmatmul.f32.gmra.mxu1 %v99_v30 }
  0x47   :  { %464 = vmatpush.msrb.mxu1 %v435_v46 }
  0x48   :  { %284 = vmatmul.f32.gmra.mxu2 %v115_v7 }
  0x49   :  { %465 = vmatpush.msrb.mxu1 %v434_v49  ;;  %v122_v49 = vld [vmem:[#allocation2 + $0x150] sm:$0xff] }
  0x4b   :  { %466 = vmatpush.msrb.mxu1 %v433_v52 }
  0x4d   :  { %467 = vmatpush.msrb.mxu1 %v432_v55  ;;  %v123_v55 = vld [vmem:[#allocation2 + $0x158] sm:$0xff] }
  0x4e   :  { %191 = vmatmul.f32.gmra.mxu0 %v84_v32  ;;  %239 = vmatmul.f32.gmra.mxu1 %v100_v33  ;;  %v3717_v32 = vld [vmem:[%s7011_s3 + $0xc0] sm:$0xff] }
  0x4f   :  { %750 = vmatpush.msrb.mxu2 %v3717_v32 }
  0x50   :  { %287 = vmatmul.f32.gmra.mxu2 %v116_v13 }
  0x56   :  { %194 = vmatmul.f32.gmra.mxu0 %v85_v35  ;;  %242 = vmatmul.f32.gmra.mxu1 %v101_v36 }
  0x58   :  { %290 = vmatmul.f32.gmra.mxu2 %v117_v19  ;;  %v3709_v19 = vld [vmem:[%s7011_s3 + $0x80] sm:$0xff] }
  0x5e   :  { %197 = vmatmul.f32.gmra.mxu0 %v86_v38  ;;  %245 = vmatmul.f32.gmra.mxu1 %v102_v39  ;;  %v3716_v38 = vld [vmem:[%s7011_s3 + $0xb8] sm:$0xff] }
  0x5f   :  { %751 = vmatpush.msrb.mxu2 %v3716_v38  ;;  %v1087_v38 = vld [vmem:[%s7013_s5 + $0x258] sm:$0xff] }
  0x60   :  { %293 = vmatmul.f32.gmra.mxu2 %v118_v25  ;;  %1104 = vmatpush.msrb.mxu3 %v1087_v38 }
  0x66   :  { %200 = vmatmul.f32.gmra.mxu0 %v87_v41  ;;  %248 = vmatmul.f32.gmra.mxu1 %v103_v42 }
  0x68   :  { %296 = vmatmul.f32.gmra.mxu2 %v119_v31 }
  0x6e   :  { %203 = vmatmul.f32.gmra.mxu0 %v88_v44  ;;  %251 = vmatmul.f32.gmra.mxu1 %v104_v45  ;;  %v3715_v44 = vld [vmem:[%s7011_s3 + $0xb0] sm:$0xff] }
  0x6f   :  { %752 = vmatpush.msrb.mxu2 %v3715_v44 }
  0x70   :  { %299 = vmatmul.f32.gmra.mxu2 %v120_v37  ;;  %v128_v37 = vld [vmem:[#allocation2 + $0x180] sm:$0xff] }
  0x71   :  { %323 = vmatmul.f32.vlgmr.msra.gmra.mxu3 %v128_v37 }
  0x76   :  { %206 = vmatmul.f32.gmra.mxu0 %v89_v47  ;;  %254 = vmatmul.f32.gmra.mxu1 %v105_v48 }
  0x78   :  { %302 = vmatmul.f32.gmra.mxu2 %v121_v43 }
  0x7e   :  { %209 = vmatmul.f32.gmra.mxu0 %v90_v50  ;;  %257 = vmatmul.f32.gmra.mxu1 %v106_v51  ;;  %v3714_v50 = vld [vmem:[%s7011_s3 + $0xa8] sm:$0xff] }
  0x7f   :  { %753 = vmatpush.msrb.mxu2 %v3714_v50  ;;  %v1082_v50 = vld [vmem:[%s7013_s5 + $0x230] sm:$0xff] }
  0x80   :  { %305 = vmatmul.f32.gmra.mxu2 %v122_v49  ;;  %v4195_v49 = vld [vmem:[%s7012_s4] ss:$0 sm:$0xff]  ;;  %1105 = vmatpush.msrb.mxu3 %v1082_v50 }
  0x86   :  { %212 = vmatmul.f32.gmra.mxu0 %v91_v53  ;;  %260 = vmatmul.f32.gmra.mxu1 %v107_v54 }
  0x88   :  { %308 = vmatmul.f32.gmra.mxu2 %v123_v55 }
  0x8e   :  { %215 = vmatmul.f32.gmra.mxu0 %v92_v56  ;;  %263 = vmatmul.f32.gmra.mxu1 %v108_v57  ;;  %v3713_v56 = vld [vmem:[%s7011_s3 + $0xa0] sm:$0xff] }
  0x8f   :  { %754 = vmatpush.msrb.mxu2 %v3713_v56  ;;  %v1077_v56 = vld [vmem:[%s7013_s5 + $0x208] sm:$0xff] }
  0x90   :  { %1106 = vmatpush.msrb.mxu3 %v1077_v56 }
  0x91   :  { %755 = vmatpush.msrb.mxu2 %v3712_v62 }
  0x96   :  { %218 = vmatmul.f32.gmra.mxu0 %v93_v60  ;;  %266 = vmatmul.f32.gmra.mxu1 %v109_v61  ;;  %v124_v61 = vld [vmem:[#allocation2 + $0x160] sm:$0xff] }
  0x97   :  { %311 = vmatmul.f32.gmra.mxu2 %v124_v61 }
  0x9e   :  { %221 = vmatmul.f32.gmra.mxu0 %v94_v0  ;;  %269 = vmatmul.f32.gmra.mxu1 %v110_v1 }
  0x9f   :  { %314 = vmatmul.f32.gmra.mxu2 %v125_v3  ;;  %v1072_v3 = vld [vmem:[%s7013_s5 + $0x1e0] sm:$0xff] }
  0xa0   :  { %1107 = vmatpush.msrb.mxu3 %v1072_v3 }
  0xa6   :  { %224 = vmatmul.f32.gmra.mxu0 %v95_v4  ;;  %272 = vmatmul.f32.gmra.mxu1 %v111_v5  ;;  %v3711_v4 = vld [vmem:[%s7011_s3 + $0x90] sm:$0xff] }
  0xa7   :  { %756 = vmatpush.msrb.mxu2 %v3711_v4 }
  0xab   :  { %v180_v9 = vpop.f32.mrf.mxu0  ;;  %v4094_v10 = vpop.f32.mrf.mxu1 }
  0xac   :  { %v181_v11 = vadd.f32 %v4089_v6, %v180_v9 }
  0xae   :  { %v369_v12 = vmax.f32 %v181_v11, 0.0  ;;  %v126_v11 = vld [vmem:[#allocation2 + $0x170] sm:$0xff] }
  0xaf   :  { %317 = vmatmul.f32.gmra.mxu2 %v126_v11 }
  0xb0   :  { %468 = vmatmul.f32.vlgmr.msrb.gmra.mxu1 %v369_v12  ;;  %v3710_v12 = vld [vmem:[%s7011_s3 + $0x88] sm:$0xff] }
  0xb1   :  { %757 = vmatpush.msrb.mxu2 %v3710_v12 }
  0xb3   :  { %v183_v15 = vpop.f32.mrf.mxu0  ;;  %v4100_v16 = vpop.f32.mrf.mxu1  ;;  %758 = vmatpush.msrb.mxu2 %v3709_v19 }
  0xb4   :  { %v184_v17 = vadd.f32 %v4089_v6, %v183_v15 }
  0xb6   :  { %v370_v18 = vmax.f32 %v184_v17, 0.0 }
  0xb8   :  { %471 = vmatmul.f32.gmra.mxu1 %v370_v18  ;;  %v127_v18 = vld [vmem:[#allocation2 + $0x178] sm:$0xff] }
  0xb9   :  { %320 = vmatmul.f32.gmra.mxu2 %v127_v18  ;;  %v1068_v18 = vld [vmem:[%s7013_s5 + $0x1c0] sm:$0xff] }
  0xbb   :  { %v186_v21 = vpop.f32.mrf.mxu0  ;;  %v4106_v22 = vpop.f32.mrf.mxu1 }
  0xbc   :  { %v187_v23 = vadd.f32 %v4089_v6, %v186_v21  ;;  %v235_v4 = vadd.f32 %v4089_v6, %v4106_v22  ;;  %v132_v22 = vld [vmem:[#allocation2 + $0x1a0] sm:$0xff] }
  0xbe   :  { %v371_v24 = vmax.f32 %v187_v23, 0.0  ;;  %v387_v11 = vmax.f32 %v235_v4, 0.0 }
  0xc0   :  { %474 = vmatmul.f32.gmra.mxu1 %v371_v24 }
  0xc3   :  { %v189_v27 = vpop.f32.mrf.mxu0  ;;  %v4112_v28 = vpop.f32.mrf.mxu1 }
  0xc4   :  { %v190_v29 = vadd.f32 %v4089_v6, %v189_v27 }
  0xc6   :  { %v372_v30 = vmax.f32 %v190_v29, 0.0  ;;  %v4172_v29 = vpop.f32.mrf.mxu2 }
  0xc8   :  { %477 = vmatmul.f32.gmra.mxu1 %v372_v30 }
  0xcb   :  { %v192_v33 = vpop.f32.mrf.mxu0  ;;  %v4118_v34 = vpop.f32.mrf.mxu1 }
  0xcc   :  { %v193_v35 = vadd.f32 %v4089_v6, %v192_v33 }
  0xce   :  { %v373_v36 = vmax.f32 %v193_v35, 0.0 }
  0xd0   :  { %480 = vmatmul.f32.gmra.mxu1 %v373_v36  ;;  %v4177_v36 = vpop.f32.mrf.mxu2 }
  0xd3   :  { %v195_v39 = vpop.f32.mrf.mxu0  ;;  %v4124_v40 = vpop.f32.mrf.mxu1 }
  0xd4   :  { %v196_v41 = vadd.f32 %v4089_v6, %v195_v39  ;;  %v1088_v39 = vld [vmem:[%s7013_s5 + $0x260] sm:$0xff] }
  0xd5   :  { %1310 = vmatpush.msrb.mxu0 %v1088_v39  ;;  %v1057_v39 = vld [vmem:[%s7013_s5 + $0x168] sm:$0xff] }
  0xd6   :  { %v374_v42 = vmax.f32 %v196_v41, 0.0 }
  0xd8   :  { %483 = vmatmul.f32.gmra.mxu1 %v374_v42 }
  0xdb   :  { %v198_v45 = vpop.f32.mrf.mxu0  ;;  %v4130_v46 = vpop.f32.mrf.mxu1 }
  0xdc   :  { %v199_v47 = vadd.f32 %v4089_v6, %v198_v45  ;;  %v129_v45 = vld [vmem:[#allocation2 + $0x188] sm:$0xff] }
  0xdd   :  { %326 = vmatmul.f32.gmra.mxu3 %v129_v45 }
  0xde   :  { %v375_v48 = vmax.f32 %v199_v47, 0.0  ;;  %v4188_v47 = vpop.f32.mrf.mxu2 }
  0xe0   :  { %486 = vmatmul.f32.gmra.mxu1 %v375_v48  ;;  %v229_v48 = vadd.f32 %v4089_v6, %v4094_v10 }
  0xe3   :  { %v201_v51 = vpop.f32.mrf.mxu0  ;;  %v4136_v52 = vpop.f32.mrf.mxu1 }
  0xe4   :  { %v202_v53 = vadd.f32 %v4089_v6, %v201_v51  ;;  %v1083_v51 = vld [vmem:[%s7013_s5 + $0x238] sm:$0xff] }
  0xe5   :  { %1311 = vmatpush.msrb.mxu0 %v1083_v51 }
  0xe6   :  { %v376_v54 = vmax.f32 %v202_v53, 0.0  ;;  %v4212_v61 = vpop.f32.mrf.mxu2 }
  0xe8   :  { %489 = vmatmul.f32.gmra.mxu1 %v376_v54  ;;  %v385_v54 = vmax.f32 %v229_v48, 0.0 }
  0xeb   :  { %v204_v57 = vpop.f32.mrf.mxu0  ;;  %v4142_v58 = vpop.f32.mrf.mxu1 }
  0xec   :  { %v205_v59 = vadd.f32 %v4089_v6, %v204_v57  ;;  %v130_v57 = vld [vmem:[#allocation2 + $0x190] sm:$0xff] }
  0xed   :  { %329 = vmatmul.f32.gmra.mxu3 %v130_v57 }
  0xee   :  { %v377_v60 = vmax.f32 %v205_v59, 0.0  ;;  %v232_v59 = vadd.f32 %v4089_v6, %v4100_v16  ;;  %v131_v16 = vld [vmem:[#allocation2 + $0x198] sm:$0xff] }
  0xf0   :  { %492 = vmatmul.f32.gmra.mxu1 %v377_v60  ;;  %v1078_v60 = vld [vmem:[%s7013_s5 + $0x210] sm:$0xff] }
  0xf1   :  { %1312 = vmatpush.msrb.mxu0 %v1078_v60 }
  0xf3   :  { %v207_v63 = vpop.f32.mrf.mxu0  ;;  %v4148_v0 = vpop.f32.mrf.mxu1 }
  0xf4   :  { %v208_v1 = vadd.f32 %v4089_v6, %v207_v63  ;;  %v386_v63 = vmax.f32 %v232_v59, 0.0 }
  0xf5   :  { %332 = vmatmul.f32.gmra.mxu3 %v131_v16 }
  0xf6   :  { %v378_v2 = vmax.f32 %v208_v1, 0.0 }
  0xf8   :  { %495 = vmatmul.f32.gmra.mxu1 %v378_v2 }
  0xfb   :  { %v210_v5 = vpop.f32.mrf.mxu0  ;;  %v4154_v7 = vpop.f32.mrf.mxu1 }
  0xfc   :  { %v211_v8 = vadd.f32 %v4089_v6, %v210_v5  ;;  %v1073_v5 = vld [vmem:[%s7013_s5 + $0x1e8] sm:$0xff] }
  0xfd   :  { %1313 = vmatpush.msrb.mxu0 %v1073_v5  ;;  %335 = vmatmul.f32.gmra.mxu3 %v132_v22 }
  0xfe   :  { %v379_v9 = vmax.f32 %v211_v8, 0.0 }
  0xff   :  { %1314 = vmatpush.msrb.mxu0 %v1068_v18 }
 0x100   :  { %498 = vmatmul.f32.gmra.mxu1 %v379_v9  ;;  %v4223_v9 = vpop.f32.mrf.mxu2 }
 0x103   :  { %v213_v13 = vpop.f32.mrf.mxu0  ;;  %v4160_v14 = vpop.f32.mrf.mxu1 }
 0x104   :  { %v214_v15 = vadd.f32 %v4089_v6, %v213_v13 }
 0x106   :  { %v380_v17 = vmax.f32 %v214_v15, 0.0  ;;  %v1067_v15 = vld [vmem:[%s7013_s5 + $0x1b8] sm:$0xff] }
 0x107   :  { %1108 = vmatpush.msrb.mxu3 %v1067_v15 }
 0x108   :  { %501 = vmatmul.f32.gmra.mxu1 %v380_v17  ;;  %v238_v17 = vadd.f32 %v4089_v6, %v4112_v28  ;;  %v133_v28 = vld [vmem:[#allocation2 + $0x1a8] sm:$0xff] }
 0x109   :  { %338 = vmatmul.f32.gmra.mxu3 %v133_v28 }
 0x10b   :  { %v216_v20 = vpop.f32.mrf.mxu0  ;;  %v4166_v21 = vpop.f32.mrf.mxu1 }
 0x10c   :  { %v217_v23 = vadd.f32 %v4089_v6, %v216_v20  ;;  %v388_v20 = vmax.f32 %v238_v17, 0.0 }
 0x10e   :  { %v381_v24 = vmax.f32 %v217_v23, 0.0 }
 0x110   :  { %504 = vmatmul.f32.gmra.mxu1 %v381_v24  ;;  %v4235_v24 = vpop.f32.mrf.mxu2 }
 0x113   :  { %v219_v25 = vpop.f32.mrf.mxu0  ;;  %v4169_v26 = vpop.f32.mrf.mxu1 }
 0x114   :  { %v220_v27 = vadd.f32 %v4089_v6, %v219_v25 }
 0x116   :  { %v382_v30 = vmax.f32 %v220_v27, 0.0  ;;  %v1062_v27 = vld [vmem:[%s7013_s5 + $0x190] sm:$0xff] }
 0x117   :  { %1109 = vmatpush.msrb.mxu3 %v1062_v27 }
 0x118   :  { %507 = vmatmul.f32.gmra.mxu1 %v382_v30  ;;  %v241_v30 = vadd.f32 %v4089_v6, %v4118_v34  ;;  %v244_v34 = vadd.f32 %v4089_v6, %v4124_v40  ;;  %v247_v40 = vadd.f32 %v4089_v6, %v4130_v46  ;;  %v136_v46 = vld [vmem:[#allocation2 + $0x1c0] sm:$0xff] }
 0x119   :  { %1110 = vmatpush.msrb.mxu3 %v1057_v39 }
 0x11a   :  { %v390_v48 = vmax.f32 %v244_v34, 0.0  ;;  %v391_v57 = vmax.f32 %v247_v40, 0.0 }
 0x11b   :  { %v222_v31 = vpop.f32.mrf.mxu0  ;;  %v4174_v32 = vpop.f32.mrf.mxu1 }
 0x11c   :  { %v223_v33 = vadd.f32 %v4089_v6, %v222_v31  ;;  %v1063_v31 = vld [vmem:[%s7013_s5 + $0x198] sm:$0xff] }
 0x11d   :  { %1315 = vmatpush.msrb.mxu0 %v1063_v31  ;;  %v1032_v31 = vld [vmem:[%s7013_s5 + $0xa0] sm:$0xff] }
 0x11e   :  { %v383_v35 = vmax.f32 %v223_v33, 0.0 }
 0x120   :  { %510 = vmatmul.f32.gmra.mxu1 %v383_v35  ;;  %v389_v35 = vmax.f32 %v241_v30, 0.0 }
 0x123   :  { %v225_v41 = vpop.f32.mrf.mxu0  ;;  %v4185_v42 = vpop.f32.mrf.mxu1 }
 0x124   :  { %v226_v43 = vadd.f32 %v4089_v6, %v225_v41  ;;  %v134_v41 = vld [vmem:[#allocation2 + $0x1b0] sm:$0xff] }
 0x125   :  { %341 = vmatmul.f32.gmra.mxu3 %v134_v41 }
 0x126   :  { %v384_v44 = vmax.f32 %v226_v43, 0.0  ;;  %v4249_v43 = vpop.f32.mrf.mxu2 }
 0x128   :  { %513 = vmatmul.f32.gmra.mxu1 %v384_v44  ;;  %v1058_v44 = vld [vmem:[%s7013_s5 + $0x170] sm:$0xff] }
 0x129   :  { %1316 = vmatpush.msrb.mxu0 %v1058_v44 }
 0x12d   :  { %v469_v53 = vpop.f32.mrf.mxu1 }
 0x12e   :  { %v470_v55 = vadd.f32 %v4195_v49, %v469_v53  ;;  %v1052_v53 = vld [vmem:[%s7013_s5 + $0x140] sm:$0xff] }
 0x12f   :  { %1111 = vmatpush.msrb.mxu3 %v1052_v53 }
 0x130   :  { %v658_v10 = vmax.f32 %v470_v55, 0.0  ;;  %516 = vmatmul.f32.gmra.mxu1 %v385_v54  ;;  %v135_v54 = vld [vmem:[#allocation2 + $0x1b8] sm:$0xff]  ;;  %v1053_v55 = vld [vmem:[%s7013_s5 + $0x148] sm:$0xff] }
 0x131   :  { %344 = vmatmul.f32.gmra.mxu3 %v135_v54  ;;  %1317 = vmatpush.msrb.mxu0 %v1053_v55 }
 0x132   :  { %759 = vmatmul.f32.vlgmr.msrb.gmra.mxu2 %v658_v10  ;;  %v4265_v10 = vpop.f32.mrf.mxu2 }
 0x135   :  { %v472_v62 = vpop.f32.mrf.mxu1 }
 0x136   :  { %v473_v1 = vadd.f32 %v4195_v49, %v472_v62  ;;  %v1047_v62 = vld [vmem:[%s7013_s5 + $0x118] sm:$0xff] }
 0x137   :  { %1112 = vmatpush.msrb.mxu3 %v1047_v62 }
 0x138   :  { %519 = vmatmul.f32.gmra.mxu1 %v386_v63  ;;  %v659_v2 = vmax.f32 %v473_v1, 0.0  ;;  %v250_v63 = vadd.f32 %v4089_v6, %v4136_v52  ;;  %v1048_v1 = vld [vmem:[%s7013_s5 + $0x120] sm:$0xff]  ;;  %v137_v52 = vld [vmem:[#allocation2 + $0x1c8] sm:$0xff] }
 0x139   :  { %347 = vmatmul.f32.gmra.mxu3 %v136_v46  ;;  %1318 = vmatpush.msrb.mxu0 %v1048_v1 }
 0x13a   :  { %762 = vmatmul.f32.gmra.mxu2 %v659_v2  ;;  %v4276_v3 = vpop.f32.mrf.mxu2  ;;  %v392_v16 = vmax.f32 %v250_v63, 0.0 }
 0x13d   :  { %v475_v8 = vpop.f32.mrf.mxu1 }
 0x13e   :  { %v476_v12 = vadd.f32 %v4195_v49, %v475_v8  ;;  %v1042_v8 = vld [vmem:[%s7013_s5 + $0xf0] sm:$0xff] }
 0x13f   :  { %1113 = vmatpush.msrb.mxu3 %v1042_v8 }
 0x140   :  { %522 = vmatmul.f32.gmra.mxu1 %v387_v11  ;;  %v660_v13 = vmax.f32 %v476_v12, 0.0  ;;  %v253_v11 = vadd.f32 %v4089_v6, %v4142_v58  ;;  %v1043_v12 = vld [vmem:[%s7013_s5 + $0xf8] sm:$0xff]  ;;  %v138_v58 = vld [vmem:[#allocation2 + $0x1d0] sm:$0xff] }
 0x141   :  { %350 = vmatmul.f32.gmra.mxu3 %v137_v52  ;;  %1319 = vmatpush.msrb.mxu0 %v1043_v12 }
 0x142   :  { %765 = vmatmul.f32.gmra.mxu2 %v660_v13  ;;  %v393_v15 = vmax.f32 %v253_v11, 0.0  ;;  %v4288_v17 = vpop.f32.mrf.mxu2 }
 0x145   :  { %v478_v19 = vpop.f32.mrf.mxu1 }
 0x146   :  { %v479_v23 = vadd.f32 %v4195_v49, %v478_v19  ;;  %v1037_v19 = vld [vmem:[%s7013_s5 + $0xc8] sm:$0xff] }
 0x147   :  { %1114 = vmatpush.msrb.mxu3 %v1037_v19 }
 0x148   :  { %525 = vmatmul.f32.gmra.mxu1 %v388_v20  ;;  %v661_v25 = vmax.f32 %v479_v23, 0.0  ;;  %v256_v20 = vadd.f32 %v4089_v6, %v4148_v0  ;;  %v1038_v23 = vld [vmem:[%s7013_s5 + $0xd0] sm:$0xff]  ;;  %v259_v0 = vadd.f32 %v4089_v6, %v4154_v7  ;;  %v262_v7 = vadd.f32 %v4089_v6, %v4160_v14  ;;  %v141_v14 = vld [vmem:[#allocation2 + $0x1e8] sm:$0xff] }
 0x149   :  { %353 = vmatmul.f32.gmra.mxu3 %v138_v58  ;;  %1320 = vmatpush.msrb.mxu0 %v1038_v23 }
 0x14a   :  { %768 = vmatmul.f32.gmra.mxu2 %v661_v25  ;;  %v394_v27 = vmax.f32 %v256_v20, 0.0  ;;  %1115 = vmatpush.msrb.mxu3 %v1032_v31  ;;  %v395_v41 = vmax.f32 %v259_v0, 0.0  ;;  %v396_v54 = vmax.f32 %v262_v7, 0.0  ;;  %v4366_v0 = vpop.f32.mrf.mxu3 }
 0x14d   :  { %v481_v33 = vpop.f32.mrf.mxu1 }
 0x14e   :  { %v482_v37 = vadd.f32 %v4195_v49, %v481_v33  ;;  %v139_v33 = vld [vmem:[#allocation2 + $0x1d8] sm:$0xff] }
 0x150   :  { %528 = vmatmul.f32.gmra.mxu1 %v389_v35  ;;  %v662_v38 = vmax.f32 %v482_v37, 0.0  ;;  %v4302_v35 = vpop.f32.mrf.mxu2  ;;  %v1033_v37 = vld [vmem:[%s7013_s5 + $0xa8] sm:$0xff] }
 0x151   :  { %356 = vmatmul.f32.gmra.mxu3 %v139_v33  ;;  %1321 = vmatpush.msrb.mxu0 %v1033_v37  ;;  %v277_v37 = vadd.f32 %v4089_v6, %v4172_v29 }
 0x152   :  { %771 = vmatmul.f32.gmra.mxu2 %v662_v38  ;;  %v1027_v38 = vld [vmem:[%s7013_s5 + $0x78] sm:$0xff] }
 0x153   :  { %1116 = vmatpush.msrb.mxu3 %v1027_v38 }
 0x155   :  { %v484_v45 = vpop.f32.mrf.mxu1 }
 0x156   :  { %v485_v50 = vadd.f32 %v4195_v49, %v484_v45  ;;  %v140_v45 = vld [vmem:[#allocation2 + $0x1e0] sm:$0xff] }
 0x158   :  { %531 = vmatmul.f32.gmra.mxu1 %v390_v48  ;;  %v663_v51 = vmax.f32 %v485_v50, 0.0  ;;  %v1028_v48 = vld [vmem:[%s7013_s5 + $0x80] sm:$0xff]  ;;  %v1022_v50 = vld [vmem:[%s7013_s5 + $0x50] sm:$0xff] }
 0x159   :  { %359 = vmatmul.f32.gmra.mxu3 %v140_v45  ;;  %1322 = vmatpush.msrb.mxu0 %v1028_v48  ;;  %v4378_v45 = vld [vmem:[%s7012_s4 + $0x1] ss:$0 sm:$0xff] }
 0x15a   :  { %774 = vmatmul.f32.gmra.mxu2 %v663_v51  ;;  %v4321_v51 = vpop.f32.mrf.mxu2  ;;  %1117 = vmatpush.msrb.mxu3 %v1022_v50 }
 0x15d   :  { %v487_v56 = vpop.f32.mrf.mxu1 }
 0x15e   :  { %v488_v59 = vadd.f32 %v4195_v49, %v487_v56  ;;  %v265_v56 = vadd.f32 %v4089_v6, %v4166_v21  ;;  %v142_v21 = vld [vmem:[#allocation2 + $0x1f0] sm:$0xff] }
 0x160   :  { %534 = vmatmul.f32.gmra.mxu1 %v391_v57  ;;  %v664_v60 = vmax.f32 %v488_v59, 0.0  ;;  %v1023_v57 = vld [vmem:[%s7013_s5 + $0x58] sm:$0xff]  ;;  %v1017_v59 = vld [vmem:[%s7013_s5 + $0x28] sm:$0xff]  ;;  %v397_v46 = vmax.f32 %v265_v56, 0.0  ;;  %v4380_v7 = vpop.f32.mrf.mxu3  ;;  %v1086_v56 = vld [vmem:[%s7013_s5 + $0x250] sm:$0xff] }
 0x161   :  { %362 = vmatmul.f32.gmra.mxu3 %v141_v14  ;;  %1323 = vmatpush.msrb.mxu0 %v1023_v57  ;;  %v283_v14 = vadd.f32 %v4089_v6, %v4188_v47  ;;  %v1084_v57 = vld [vmem:[%s7013_s5 + $0x240] sm:$0xff] }
 0x162   :  { %777 = vmatmul.f32.gmra.mxu2 %v664_v60  ;;  %1118 = vmatpush.msrb.mxu3 %v1017_v59  ;;  %v4332_v62 = vpop.f32.mrf.mxu2 }
 0x163   :  { %v403_v47 = vmax.f32 %v283_v14, 0.0 }
 0x165   :  { %v490_v2 = vpop.f32.mrf.mxu1 }
 0x166   :  { %v491_v4 = vadd.f32 %v4195_v49, %v490_v2  ;;  %v268_v2 = vadd.f32 %v4089_v6, %v4169_v26  ;;  %v1090_v26 = vld [vmem:[%s7013_s5 + $0x270] sm:$0xff] }
 0x167   :  { %1722 = vmatpush.msra.mxu2 %v1090_v26 }
 0x168   :  { %537 = vmatmul.f32.gmra.mxu1 %v392_v16  ;;  %v665_v5 = vmax.f32 %v491_v4, 0.0  ;;  %v1018_v16 = vld [vmem:[%s7013_s5 + $0x30] sm:$0xff]  ;;  %v1012_v4 = vld [vmem:[%s7013_s5] sm:$0xff]  ;;  %v398_v8 = vmax.f32 %v268_v2, 0.0 }
 0x169   :  { %365 = vmatmul.f32.gmra.mxu3 %v142_v21  ;;  %1324 = vmatpush.msrb.mxu0 %v1018_v16  ;;  %v286_v16 = vadd.f32 %v4089_v6, %v4212_v61  ;;  %v289_v61 = vadd.f32 %v4089_v6, %v4223_v9  ;;  %v292_v9 = vadd.f32 %v4089_v6, %v4235_v24  ;;  %v1080_v24 = vld [vmem:[%s7013_s5 + $0x220] sm:$0xff] }
 0x16a   :  { %780 = vmatmul.f32.gmra.mxu2 %v665_v5  ;;  %1119 = vmatpush.msrb.mxu3 %v1012_v4  ;;  %v4344_v11 = vpop.f32.mrf.mxu2  ;;  %v2463_v4 = vld [vmem:[#allocation7 + $0x70] sm:$0xff] }
 0x16d   :  { %v493_v13 = vpop.f32.mrf.mxu1 }
 0x16e   :  { %v494_v22 = vadd.f32 %v4195_v49, %v493_v13  ;;  %v1013_v13 = vld [vmem:[%s7013_s5 + $0x8] sm:$0xff] }
 0x16f   :  { %1325 = vmatpush.msrb.mxu0 %v1013_v13 }
 0x170   :  { %v666_v18 = vmax.f32 %v494_v22, 0.0  ;;  %540 = vmatmul.f32.gmra.mxu1 %v393_v15  ;;  %v271_v15 = vadd.f32 %v4089_v6, %v4174_v32  ;;  %v1091_v22 = vld [vmem:[%s7013_s5 + $0x278] sm:$0xff]  ;;  %v274_v32 = vadd.f32 %v4089_v6, %v4185_v42  ;;  %v4399_v59 = vpop.f32.mrf.mxu3 }
 0x171   :  { %1928 = vmatpush.msra.mxu3 %v1091_v22 }
 0x172   :  { %783 = vmatmul.f32.gmra.mxu2 %v666_v18  ;;  %v1089_v18 = vld [vmem:[%s7013_s5 + $0x268] sm:$0xff]  ;;  %v399_v58 = vmax.f32 %v271_v15, 0.0 }
 0x173   :  { %1516 = vmatpush.msra.mxu1 %v1089_v18  ;;  %1929 = vmatpush.msra.mxu3 %v1086_v56  ;;  %v2462_v56 = vld [vmem:[#allocation7 + $0x68] sm:$0xff] }
 0x175   :  { %v496_v25 = vpop.f32.mrf.mxu1  ;;  %1517 = vmatpush.msra.mxu1 %v1084_v57  ;;  %v298_v57 = vadd.f32 %v4089_v6, %v4265_v10  ;;  %v301_v10 = vadd.f32 %v4089_v6, %v4276_v3  ;;  %v304_v3 = vadd.f32 %v4089_v6, %v4288_v17  ;;  %v1075_v17 = vld [vmem:[%s7013_s5 + $0x1f8] sm:$0xff] }
 0x176   :  { %v497_v28 = vadd.f32 %v4195_v49, %v496_v25  ;;  %v4361_v25 = vpop.f32.mrf.mxu2 }
 0x178   :  { %v667_v30 = vmax.f32 %v497_v28, 0.0  ;;  %543 = vmatmul.f32.gmra.mxu1 %v394_v27  ;;  %v2464_v27 = vld [vmem:[#allocation7 + $0x78] sm:$0xff]  ;;  %v4411_v13 = vpop.f32.mrf.mxu3 }
 0x179   :  { %2533 = vmatpush.msra.mxu0 %v2464_v27 }
 0x17a   :  { %786 = vmatmul.f32.gmra.mxu2 %v667_v30  ;;  %v400_v30 = vmax.f32 %v274_v32, 0.0 }
 0x17b   :  { %2534 = vmatpush.msra.mxu0 %v2463_v4 }
 0x17d   :  { %v499_v39 = vpop.f32.mrf.mxu1  ;;  %2535 = vmatpush.msra.mxu0 %v2462_v56 }
 0x17e   :  { %v500_v34 = vadd.f32 %v4195_v49, %v499_v39  ;;  %v4370_v38 = vpop.f32.mrf.mxu2 }
 0x180   :  { %v668_v44 = vmax.f32 %v500_v34, 0.0  ;;  %546 = vmatmul.f32.gmra.mxu1 %v395_v41  ;;  %v401_v41 = vmax.f32 %v277_v37, 0.0 }
 0x182   :  { %789 = vmatmul.f32.gmra.mxu2 %v668_v44  ;;  %v280_v44 = vadd.f32 %v4089_v6, %v4177_v36  ;;  %v1085_v36 = vld [vmem:[%s7013_s5 + $0x248] sm:$0xff] }
 0x183   :  { %1723 = vmatpush.msra.mxu2 %v1085_v36 }
 0x184   :  { %v402_v50 = vmax.f32 %v280_v44, 0.0  ;;  %v295_v44 = vadd.f32 %v4089_v6, %v4249_v43 }
 0x185   :  { %v502_v53 = vpop.f32.mrf.mxu1  ;;  %1724 = vmatpush.msra.mxu2 %v1080_v24 }
 0x186   :  { %v503_v40 = vadd.f32 %v4195_v49, %v502_v53 }
 0x187   :  { %1725 = vmatpush.msra.mxu2 %v1075_v17  ;;  %v1071_v17 = vld [vmem:[%s7013_s5 + $0x1d8] sm:$0xff] }
 0x188   :  { %v669_v55 = vmax.f32 %v503_v40, 0.0  ;;  %549 = vmatmul.f32.gmra.mxu1 %v396_v54 }
 0x18a   :  { %792 = vmatmul.f32.gmra.mxu2 %v669_v55 }
 0x18d   :  { %v505_v60 = vpop.f32.mrf.mxu1 }
 0x18e   :  { %v506_v63 = vadd.f32 %v4195_v49, %v505_v60 }
 0x190   :  { %v670_v1 = vmax.f32 %v506_v63, 0.0  ;;  %552 = vmatmul.f32.gmra.mxu1 %v397_v46 }
 0x192   :  { %795 = vmatmul.f32.gmra.mxu2 %v670_v1 }
 0x195   :  { %v508_v5 = vpop.f32.mrf.mxu1 }
 0x196   :  { %v509_v52 = vadd.f32 %v4195_v49, %v508_v5 }
 0x198   :  { %v671_v12 = vmax.f32 %v509_v52, 0.0  ;;  %555 = vmatmul.f32.gmra.mxu1 %v398_v8  ;;  %v404_v52 = vmax.f32 %v286_v16, 0.0 }
 0x19a   :  { %798 = vmatmul.f32.gmra.mxu2 %v671_v12 }
 0x19d   :  { %v511_v19 = vpop.f32.mrf.mxu1 }
 0x19e   :  { %v512_v20 = vadd.f32 %v4195_v49, %v511_v19 }
 0x1a0   :  { %v672_v23 = vmax.f32 %v512_v20, 0.0  ;;  %558 = vmatmul.f32.gmra.mxu1 %v399_v58  ;;  %v405_v58 = vmax.f32 %v289_v61, 0.0 }
 0x1a2   :  { %801 = vmatmul.f32.gmra.mxu2 %v672_v23 }
 0x1a5   :  { %v514_v28 = vpop.f32.mrf.mxu1 }
 0x1a6   :  { %v515_v31 = vadd.f32 %v4195_v49, %v514_v28  ;;  %v4423_v28 = vpop.f32.mrf.mxu3 }
 0x1a8   :  { %v673_v33 = vmax.f32 %v515_v31, 0.0  ;;  %561 = vmatmul.f32.gmra.mxu1 %v400_v30 }
 0x1aa   :  { %804 = vmatmul.f32.gmra.mxu2 %v673_v33  ;;  %v406_v33 = vmax.f32 %v292_v9, 0.0 }
 0x1ad   :  { %v517_v39 = vpop.f32.mrf.mxu1 }
 0x1ae   :  { %v518_v42 = vadd.f32 %v4195_v49, %v517_v39 }
 0x1b0   :  { %v674_v34 = vmax.f32 %v518_v42, 0.0  ;;  %564 = vmatmul.f32.gmra.mxu1 %v401_v41 }
 0x1b2   :  { %807 = vmatmul.f32.gmra.mxu2 %v674_v34  ;;  %v1081_v34 = vld [vmem:[%s7013_s5 + $0x228] sm:$0xff] }
 0x1b3   :  { %1930 = vmatpush.msra.mxu3 %v1081_v34 }
 0x1b5   :  { %v520_v29 = vpop.f32.mrf.mxu1  ;;  %v760_v48 = vpop.f32.mrf.mxu2 }
 0x1b6   :  { %v521_v53 = vadd.f32 %v4195_v49, %v520_v29  ;;  %v761_v54 = vadd.f32 %v4378_v45, %v760_v48  ;;  %v4442_v29 = vpop.f32.mrf.mxu3  ;;  %v1079_v48 = vld [vmem:[%s7013_s5 + $0x218] sm:$0xff] }
 0x1b7   :  { %1518 = vmatpush.msra.mxu1 %v1079_v48 }
 0x1b8   :  { %v675_v40 = vmax.f32 %v521_v53, 0.0  ;;  %v4384_v55 = vmax.f32 %v761_v54, 0.0  ;;  %567 = vmatmul.f32.gmra.mxu1 %v402_v50  ;;  %v407_v54 = vmax.f32 %v295_v44, 0.0 }
 0x1ba   :  { %810 = vmatmul.f32.gmra.mxu2 %v675_v40  ;;  %1120 = vmatmul.f32.vlgmr.msrb.gmra.mxu3 %v4384_v55 }
 0x1bb   :  { %1326 = vmatmul.f32.vlgmr.msrb.gmra.mxu0 %v4384_v55 }
 0x1bd   :  { %v523_v60 = vpop.f32.mrf.mxu1  ;;  %v763_v46 = vpop.f32.mrf.mxu2 }
 0x1be   :  { %v524_v63 = vadd.f32 %v4195_v49, %v523_v60  ;;  %v764_v1 = vadd.f32 %v4378_v45, %v763_v46  ;;  %v4456_v60 = vpop.f32.mrf.mxu3 }
 0x1c0   :  { %v676_v21 = vmax.f32 %v524_v63, 0.0  ;;  %v4403_v2 = vmax.f32 %v764_v1, 0.0  ;;  %570 = vmatmul.f32.gmra.mxu1 %v403_v47  ;;  %v408_v63 = vmax.f32 %v298_v57, 0.0 }
 0x1c2   :  { %813 = vmatmul.f32.gmra.mxu2 %v676_v21  ;;  %1123 = vmatmul.f32.gmra.mxu3 %v4403_v2 }
 0x1c3   :  { %1329 = vmatmul.f32.gmra.mxu0 %v4403_v2 }
 0x1c5   :  { %v526_v5 = vpop.f32.mrf.mxu1  ;;  %v766_v8 = vpop.f32.mrf.mxu2 }
 0x1c6   :  { %v527_v12 = vadd.f32 %v4195_v49, %v526_v5  ;;  %v767_v26 = vadd.f32 %v4378_v45, %v766_v8 }
 0x1c8   :  { %v677_v15 = vmax.f32 %v527_v12, 0.0  ;;  %v4413_v22 = vmax.f32 %v767_v26, 0.0  ;;  %573 = vmatmul.f32.gmra.mxu1 %v404_v52  ;;  %v409_v52 = vmax.f32 %v301_v10, 0.0 }
 0x1ca   :  { %816 = vmatmul.f32.gmra.mxu2 %v677_v15  ;;  %1126 = vmatmul.f32.gmra.mxu3 %v4413_v22  ;;  %v4468_v15 = vpop.f32.mrf.mxu3 }
 0x1cb   :  { %1332 = vmatmul.f32.gmra.mxu0 %v4413_v22 }
 0x1cd   :  { %v529_v18 = vpop.f32.mrf.mxu1  ;;  %v769_v19 = vpop.f32.mrf.mxu2 }
 0x1ce   :  { %v530_v20 = vadd.f32 %v4195_v49, %v529_v18  ;;  %v770_v23 = vadd.f32 %v4378_v45, %v769_v19 }
 0x1d0   :  { %v678_v32 = vmax.f32 %v530_v20, 0.0  ;;  %v4421_v27 = vmax.f32 %v770_v23, 0.0  ;;  %576 = vmatmul.f32.gmra.mxu1 %v405_v58  ;;  %v410_v20 = vmax.f32 %v304_v3, 0.0 }
 0x1d2   :  { %819 = vmatmul.f32.gmra.mxu2 %v678_v32  ;;  %1129 = vmatmul.f32.gmra.mxu3 %v4421_v27 }
 0x1d3   :  { %1335 = vmatmul.f32.gmra.mxu0 %v4421_v27 }
 0x1d5   :  { %v532_v30 = vpop.f32.mrf.mxu1  ;;  %v772_v31 = vpop.f32.mrf.mxu2 }
 0x1d6   :  { %v533_v37 = vadd.f32 %v4195_v49, %v532_v30  ;;  %v773_v39 = vadd.f32 %v4378_v45, %v772_v31  ;;  %v4480_v31 = vpop.f32.mrf.mxu3 }
 0x1d8   :  { %v679_v41 = vmax.f32 %v533_v37, 0.0  ;;  %v4431_v42 = vmax.f32 %v773_v39, 0.0  ;;  %579 = vmatmul.f32.gmra.mxu1 %v406_v33  ;;  %v1076_v33 = vld [vmem:[%s7013_s5 + $0x200] sm:$0xff]  ;;  %v307_v37 = vadd.f32 %v4089_v6, %v4302_v35  ;;  %v1074_v39 = vld [vmem:[%s7013_s5 + $0x1f0] sm:$0xff]  ;;  %v2461_v6 = vld [vmem:[#allocation7 + $0x60] sm:$0xff] }
 0x1d9   :  { %1931 = vmatpush.msra.mxu3 %v1076_v33  ;;  %1519 = vmatpush.msra.mxu1 %v1074_v39  ;;  %v4502_v35 = vld [vmem:[%s7010_s2] ss:$0 sm:$0xff]  ;;  %v1069_v33 = vld [vmem:[%s7013_s5 + $0x1c8] sm:$0xff] }
 0x1da   :  { %822 = vmatmul.f32.gmra.mxu2 %v679_v41  ;;  %1132 = vmatmul.f32.gmra.mxu3 %v4431_v42  ;;  %v411_v34 = vmax.f32 %v307_v37, 0.0 }
 0x1db   :  { %1338 = vmatmul.f32.gmra.mxu0 %v4431_v42  ;;  %1932 = vmatpush.msra.mxu3 %v1071_v17 }
 0x1dc   :  { %2536 = vmatpush.msra.mxu0 %v2461_v6  ;;  %1520 = vmatpush.msra.mxu1 %v1069_v33  ;;  %v2460_v6 = vld [vmem:[#allocation7 + $0x58] sm:$0xff]  ;;  %v331_v33 = vadd.f32 %v4502_v35, %v4399_v59 }
 0x1dd   :  { %v535_v50 = vpop.f32.mrf.mxu1  ;;  %v775_v53 = vpop.f32.mrf.mxu2 }
 0x1de   :  { %v536_v40 = vadd.f32 %v4195_v49, %v535_v50  ;;  %v776_v36 = vadd.f32 %v4378_v45, %v775_v53  ;;  %2537 = vmatpush.msra.mxu0 %v2460_v6 }
 0x1e0   :  { %v680_v43 = vmax.f32 %v536_v40, 0.0  ;;  %v4450_v14 = vmax.f32 %v776_v36, 0.0  ;;  %582 = vmatmul.f32.gmra.mxu1 %v407_v54  ;;  %v310_v54 = vadd.f32 %v4502_v35, %v4321_v51  ;;  %v4507_v40 = vpop.f32.mrf.mxu3  ;;  %v313_v51 = vadd.f32 %v4502_v35, %v4332_v62 }
 0x1e1   :  { %v316_v62 = vadd.f32 %v4502_v35, %v4344_v11  ;;  %v1070_v11 = vld [vmem:[%s7013_s5 + $0x1d0] sm:$0xff] }
 0x1e2   :  { %825 = vmatmul.f32.gmra.mxu2 %v680_v43  ;;  %1135 = vmatmul.f32.gmra.mxu3 %v4450_v14  ;;  %v412_v56 = vmax.f32 %v310_v54, 0.0  ;;  %v413_v10 = vmax.f32 %v313_v51, 0.0 }
 0x1e3   :  { %1341 = vmatmul.f32.gmra.mxu0 %v4450_v14  ;;  %v414_v3 = vmax.f32 %v316_v62, 0.0  ;;  %1726 = vmatpush.msra.mxu2 %v1070_v11 }
 0x1e5   :  { %v538_v46 = vpop.f32.mrf.mxu1  ;;  %v778_v47 = vpop.f32.mrf.mxu2 }
 0x1e6   :  { %v539_v1 = vadd.f32 %v4195_v49, %v538_v46  ;;  %v779_v21 = vadd.f32 %v4378_v45, %v778_v47 }
 0x1e8   :  { %v681_v16 = vmax.f32 %v539_v1, 0.0  ;;  %v4460_v4 = vmax.f32 %v779_v21, 0.0  ;;  %585 = vmatmul.f32.gmra.mxu1 %v408_v63  ;;  %v4518_v1 = vpop.f32.mrf.mxu3 }
 0x1ea   :  { %828 = vmatmul.f32.gmra.mxu2 %v681_v16  ;;  %1138 = vmatmul.f32.gmra.mxu3 %v4460_v4 }
 0x1eb   :  { %1344 = vmatmul.f32.gmra.mxu0 %v4460_v4 }
 0x1ed   :  { %v541_v5 = vpop.f32.mrf.mxu1  ;;  %v781_v8 = vpop.f32.mrf.mxu2 }
 0x1ee   :  { %v542_v12 = vadd.f32 %v4195_v49, %v541_v5  ;;  %v782_v26 = vadd.f32 %v4378_v45, %v781_v8 }
 0x1f0   :  { %v682_v61 = vmax.f32 %v542_v12, 0.0  ;;  %v4470_v18 = vmax.f32 %v782_v26, 0.0  ;;  %588 = vmatmul.f32.gmra.mxu1 %v409_v52 }
 0x1f2   :  { %831 = vmatmul.f32.gmra.mxu2 %v682_v61  ;;  %1141 = vmatmul.f32.gmra.mxu3 %v4470_v18 }
 0x1f3   :  { %1347 = vmatmul.f32.gmra.mxu0 %v4470_v18 }
 0x1f5   :  { %v544_v19 = vpop.f32.mrf.mxu1  ;;  %v784_v58 = vpop.f32.mrf.mxu2 }
 0x1f6   :  { %v545_v23 = vadd.f32 %v4195_v49, %v544_v19  ;;  %v785_v32 = vadd.f32 %v4378_v45, %v784_v58 }
 0x1f8   :  { %v683_v9 = vmax.f32 %v545_v23, 0.0  ;;  %v4478_v30 = vmax.f32 %v785_v32, 0.0  ;;  %591 = vmatmul.f32.gmra.mxu1 %v410_v20  ;;  %v4530_v20 = vpop.f32.mrf.mxu3 }
 0x1fa   :  { %834 = vmatmul.f32.gmra.mxu2 %v683_v9  ;;  %1144 = vmatmul.f32.gmra.mxu3 %v4478_v30  ;;  %v319_v9 = vadd.f32 %v4502_v35, %v4361_v25 }
 0x1fb   :  { %1350 = vmatmul.f32.gmra.mxu0 %v4478_v30 }
 0x1fd   :  { %v547_v41 = vpop.f32.mrf.mxu1  ;;  %v787_v24 = vpop.f32.mrf.mxu2 }
 0x1fe   :  { %v548_v44 = vadd.f32 %v4195_v49, %v547_v41  ;;  %v788_v48 = vadd.f32 %v4378_v45, %v787_v24  ;;  %v415_v41 = vmax.f32 %v319_v9, 0.0 }
 0x200   :  { %v684_v50 = vmax.f32 %v548_v44, 0.0  ;;  %v4497_v53 = vmax.f32 %v788_v48, 0.0  ;;  %594 = vmatmul.f32.gmra.mxu1 %v411_v34  ;;  %v4551_v48 = vpop.f32.mrf.mxu3 }
 0x202   :  { %837 = vmatmul.f32.gmra.mxu2 %v684_v50  ;;  %1147 = vmatmul.f32.gmra.mxu3 %v4497_v53  ;;  %v322_v50 = vadd.f32 %v4502_v35, %v4370_v38  ;;  %v325_v38 = vadd.f32 %v4502_v35, %v4366_v0  ;;  %v328_v0 = vadd.f32 %v4502_v35, %v4380_v7  ;;  %v1065_v7 = vld [vmem:[%s7013_s5 + $0x1a8] sm:$0xff] }
 0x203   :  { %1353 = vmatmul.f32.gmra.mxu0 %v4497_v53  ;;  %1727 = vmatpush.msra.mxu2 %v1065_v7 }
 0x205   :  { %v550_v36 = vpop.f32.mrf.mxu1  ;;  %v790_v43 = vpop.f32.mrf.mxu2 }
 0x206   :  { %v551_v57 = vadd.f32 %v4195_v49, %v550_v36  ;;  %v791_v46 = vadd.f32 %v4378_v45, %v790_v43  ;;  %v416_v43 = vmax.f32 %v322_v50, 0.0 }
 0x208   :  { %v685_v47 = vmax.f32 %v551_v57, 0.0  ;;  %v4512_v63 = vmax.f32 %v791_v46, 0.0  ;;  %597 = vmatmul.f32.gmra.mxu1 %v412_v56  ;;  %v4564_v51 = vpop.f32.mrf.mxu3 }
 0x20a   :  { %840 = vmatmul.f32.gmra.mxu2 %v685_v47  ;;  %1150 = vmatmul.f32.gmra.mxu3 %v4512_v63 }
 0x20b   :  { %1356 = vmatmul.f32.gmra.mxu0 %v4512_v63 }
 0x20d   :  { %v553_v21 = vpop.f32.mrf.mxu1  ;;  %v793_v16 = vpop.f32.mrf.mxu2 }
 0x20e   :  { %v554_v5 = vadd.f32 %v4195_v49, %v553_v21  ;;  %v794_v8 = vadd.f32 %v4378_v45, %v793_v16 }
 0x210   :  { %v686_v52 = vmax.f32 %v554_v5, 0.0  ;;  %v4522_v12 = vmax.f32 %v794_v8, 0.0  ;;  %600 = vmatmul.f32.gmra.mxu1 %v413_v10  ;;  %v417_v10 = vmax.f32 %v325_v38, 0.0 }
 0x212   :  { %843 = vmatmul.f32.gmra.mxu2 %v686_v52  ;;  %1153 = vmatmul.f32.gmra.mxu3 %v4522_v12 }
 0x213   :  { %1359 = vmatmul.f32.gmra.mxu0 %v4522_v12 }
 0x215   :  { %v556_v26 = vpop.f32.mrf.mxu1  ;;  %v796_v61 = vpop.f32.mrf.mxu2 }
 0x216   :  { %v557_v19 = vadd.f32 %v4195_v49, %v556_v26  ;;  %v797_v58 = vadd.f32 %v4378_v45, %v796_v61  ;;  %v4575_v26 = vpop.f32.mrf.mxu3 }
 0x218   :  { %v687_v23 = vmax.f32 %v557_v19, 0.0  ;;  %v4532_v32 = vmax.f32 %v797_v58, 0.0  ;;  %603 = vmatmul.f32.gmra.mxu1 %v414_v3  ;;  %v418_v19 = vmax.f32 %v328_v0, 0.0 }
 0x21a   :  { %846 = vmatmul.f32.gmra.mxu2 %v687_v23  ;;  %1156 = vmatmul.f32.gmra.mxu3 %v4532_v32 }
 0x21b   :  { %1362 = vmatmul.f32.gmra.mxu0 %v4532_v32 }
 0x21d   :  { %v559_v37 = vpop.f32.mrf.mxu1  ;;  %v799_v39 = vpop.f32.mrf.mxu2 }
 0x21e   :  { %v560_v25 = vadd.f32 %v4195_v49, %v559_v37  ;;  %v800_v24 = vadd.f32 %v4378_v45, %v799_v39  ;;  %v1066_v37 = vld [vmem:[%s7013_s5 + $0x1b0] sm:$0xff]  ;;  %v1064_v39 = vld [vmem:[%s7013_s5 + $0x1a0] sm:$0xff] }
 0x21f   :  { %1933 = vmatpush.msra.mxu3 %v1066_v37  ;;  %1521 = vmatpush.msra.mxu1 %v1064_v39 }
 0x220   :  { %v688_v34 = vmax.f32 %v560_v25, 0.0  ;;  %v4549_v44 = vmax.f32 %v800_v24, 0.0  ;;  %606 = vmatmul.f32.gmra.mxu1 %v415_v41  ;;  %v419_v24 = vmax.f32 %v331_v33, 0.0  ;;  %v340_v33 = vadd.f32 %v4502_v35, %v4442_v29  ;;  %v1060_v29 = vld [vmem:[%s7013_s5 + $0x180] sm:$0xff] }
 0x221   :  { %1728 = vmatpush.msra.mxu2 %v1060_v29  ;;  %v349_v29 = vadd.f32 %v4502_v35, %v4480_v31  ;;  %v352_v31 = vadd.f32 %v4502_v35, %v4507_v40 }
 0x222   :  { %849 = vmatmul.f32.gmra.mxu2 %v688_v34  ;;  %1159 = vmatmul.f32.gmra.mxu3 %v4549_v44 }
 0x223   :  { %1365 = vmatmul.f32.gmra.mxu0 %v4549_v44 }
 0x225   :  { %v562_v54 = vpop.f32.mrf.mxu1  ;;  %v802_v36 = vpop.f32.mrf.mxu2 }
 0x226   :  { %v563_v56 = vadd.f32 %v4195_v49, %v562_v54  ;;  %v803_v57 = vadd.f32 %v4378_v45, %v802_v36 }
 0x228   :  { %v689_v46 = vmax.f32 %v563_v56, 0.0  ;;  %v4559_v47 = vmax.f32 %v803_v57, 0.0  ;;  %609 = vmatmul.f32.gmra.mxu1 %v416_v43  ;;  %v334_v43 = vadd.f32 %v4502_v35, %v4411_v13  ;;  %v2459_v56 = vld [vmem:[#allocation7 + $0x50] sm:$0xff] }
 0x229   :  { %2538 = vmatpush.msra.mxu0 %v2459_v56  ;;  %v343_v56 = vadd.f32 %v4502_v35, %v4456_v60 }
 0x22a   :  { %852 = vmatmul.f32.gmra.mxu2 %v689_v46  ;;  %1162 = vmatmul.f32.gmra.mxu3 %v4559_v47  ;;  %v420_v38 = vmax.f32 %v334_v43, 0.0 }
 0x22b   :  { %1368 = vmatmul.f32.gmra.mxu0 %v4559_v47 }
 0x22d   :  { %v565_v21 = vpop.f32.mrf.mxu1  ;;  %v805_v16 = vpop.f32.mrf.mxu2 }
 0x22e   :  { %v566_v5 = vadd.f32 %v4195_v49, %v565_v21  ;;  %v806_v8 = vadd.f32 %v4378_v45, %v805_v16 }
 0x230   :  { %v690_v52 = vmax.f32 %v566_v5, 0.0  ;;  %v4569_v62 = vmax.f32 %v806_v8, 0.0  ;;  %612 = vmatmul.f32.gmra.mxu1 %v417_v10 }
 0x232   :  { %855 = vmatmul.f32.gmra.mxu2 %v690_v52  ;;  %1165 = vmatmul.f32.gmra.mxu3 %v4569_v62  ;;  %v337_v52 = vadd.f32 %v4502_v35, %v4423_v28 }
 0x233   :  { %1371 = vmatmul.f32.gmra.mxu0 %v4569_v62 }
 0x235   :  { %v568_v61 = vpop.f32.mrf.mxu1  ;;  %v808_v3 = vpop.f32.mrf.mxu2 }
 0x236   :  { %v569_v58 = vadd.f32 %v4195_v49, %v568_v61  ;;  %v809_v23 = vadd.f32 %v4378_v45, %v808_v3  ;;  %v421_v61 = vmax.f32 %v337_v52, 0.0  ;;  %v4623_v3 = vld [vmem:[%s7012_s4] ss:$0 sm:$0xff] }
 0x238   :  { %v691_v11 = vmax.f32 %v569_v58, 0.0  ;;  %v4579_v9 = vmax.f32 %v809_v23, 0.0  ;;  %v4581_v17 = vpop.f32.mrf.mxu0  ;;  %615 = vmatmul.f32.gmra.mxu1 %v418_v19 }
 0x239   :  { %7055 = vst [vmem:[#allocation12_spill] sm:$0xff] %v4581_v17 }
 0x23a   :  { %858 = vmatmul.f32.gmra.mxu2 %v691_v11  ;;  %1168 = vmatmul.f32.gmra.mxu3 %v4579_v9 }
 0x23b   :  { %1374 = vmatmul.f32.gmra.mxu0 %v4579_v9 }
 0x23d   :  { %v571_v41 = vpop.f32.mrf.mxu1  ;;  %v811_v25 = vpop.f32.mrf.mxu2 }
 0x23e   :  { %v572_v59 = vadd.f32 %v4195_v49, %v571_v41  ;;  %v812_v34 = vadd.f32 %v4378_v45, %v811_v25  ;;  %v4598_v50 = vpop.f32.mrf.mxu3  ;;  %v422_v41 = vmax.f32 %v340_v33, 0.0 }
 0x240   :  { %v692_v6 = vmax.f32 %v572_v59, 0.0  ;;  %v4600_v54 = vmax.f32 %v812_v34, 0.0  ;;  %v4602_v36 = vpop.f32.mrf.mxu0  ;;  %618 = vmatmul.f32.gmra.mxu1 %v419_v24 }
 0x241   :  { %7056 = vst [vmem:[#allocation13_spill] sm:$0xff] %v4602_v36 }
 0x242   :  { %861 = vmatmul.f32.gmra.mxu2 %v692_v6  ;;  %1171 = vmatmul.f32.gmra.mxu3 %v4600_v54 }
 0x243   :  { %1377 = vmatmul.f32.gmra.mxu0 %v4600_v54 }
 0x245   :  { %v574_v57 = vpop.f32.mrf.mxu1  ;;  %v814_v46 = vpop.f32.mrf.mxu2 }
 0x246   :  { %v575_v21 = vadd.f32 %v4195_v49, %v574_v57  ;;  %v815_v16 = vadd.f32 %v4378_v45, %v814_v46  ;;  %v4610_v10 = vpop.f32.mrf.mxu3  ;;  %v1061_v57 = vld [vmem:[%s7013_s5 + $0x188] sm:$0xff]  ;;  %v1059_v46 = vld [vmem:[%s7013_s5 + $0x178] sm:$0xff] }
 0x247   :  { %1934 = vmatpush.msra.mxu3 %v1061_v57  ;;  %1522 = vmatpush.msra.mxu1 %v1059_v46  ;;  %v425_v46 = vmax.f32 %v349_v29, 0.0 }
 0x248   :  { %v693_v5 = vmax.f32 %v575_v21, 0.0  ;;  %v4612_v8 = vmax.f32 %v815_v16, 0.0  ;;  %v4614_v13 = vpop.f32.mrf.mxu0  ;;  %621 = vmatmul.f32.gmra.mxu1 %v420_v38  ;;  %v423_v16 = vmax.f32 %v343_v56, 0.0 }
 0x249   :  { %7057 = vst [vmem:[#allocation14_spill] sm:$0xff] %v4614_v13 }
 0x24a   :  { %864 = vmatmul.f32.gmra.mxu2 %v693_v5  ;;  %1174 = vmatmul.f32.gmra.mxu3 %v4612_v8 }
 0x24b   :  { %1380 = vmatmul.f32.gmra.mxu0 %v4612_v8 }
 0x24d   :  { %v577_v0 = vpop.f32.mrf.mxu1  ;;  %v817_v49 = vpop.f32.mrf.mxu2 }
 0x24e   :  { %v578_v19 = vadd.f32 %v4623_v3, %v577_v0  ;;  %v818_v58 = vadd.f32 %v4378_v45, %v817_v49  ;;  %v4627_v23 = vpop.f32.mrf.mxu3 }
 0x250   :  { %v694_v28 = vmax.f32 %v578_v19, 0.0  ;;  %v4629_v11 = vmax.f32 %v818_v58, 0.0  ;;  %v4631_v7 = vpop.f32.mrf.mxu0  ;;  %624 = vmatmul.f32.gmra.mxu1 %v421_v61  ;;  %v346_v19 = vadd.f32 %v4502_v35, %v4468_v15  ;;  %v2458_v58 = vld [vmem:[#allocation7 + $0x48] sm:$0xff] }
 0x251   :  { %7058 = vst [vmem:[#allocation15_spill] sm:$0xff] %v4631_v7  ;;  %2539 = vmatpush.msra.mxu0 %v2458_v58 }
 0x252   :  { %867 = vmatmul.f32.gmra.mxu2 %v694_v28  ;;  %1177 = vmatmul.f32.gmra.mxu3 %v4629_v11 }
 0x253   :  { %1383 = vmatmul.f32.gmra.mxu0 %v4629_v11 }
 0x255   :  { %v580_v37 = vpop.f32.mrf.mxu1  ;;  %v820_v39 = vpop.f32.mrf.mxu2 }
 0x256   :  { %v581_v25 = vadd.f32 %v4623_v3, %v580_v37  ;;  %v821_v24 = vadd.f32 %v4378_v45, %v820_v39  ;;  %v4639_v59 = vpop.f32.mrf.mxu3  ;;  %v424_v37 = vmax.f32 %v346_v19, 0.0 }
 0x258   :  { %v695_v34 = vmax.f32 %v581_v25, 0.0  ;;  %v4641_v6 = vmax.f32 %v821_v24, 0.0  ;;  %v4643_v43 = vpop.f32.mrf.mxu0  ;;  %627 = vmatmul.f32.gmra.mxu1 %v422_v41 }
 0x259   :  { %7059 = vst [vmem:[#allocation16_spill] sm:$0xff] %v4643_v43 }
 0x25a   :  { %870 = vmatmul.f32.gmra.mxu2 %v695_v34  ;;  %1180 = vmatmul.f32.gmra.mxu3 %v4641_v6 }
 0x25b   :  { %1386 = vmatmul.f32.gmra.mxu0 %v4641_v6 }
 0x25d   :  { %v583_v38 = vpop.f32.mrf.mxu1  ;;  %v823_v21 = vpop.f32.mrf.mxu2 }
 0x25e   :  { %v584_v60 = vadd.f32 %v4623_v3, %v583_v38  ;;  %v824_v5 = vadd.f32 %v4378_v45, %v823_v21  ;;  %v4660_v52 = vpop.f32.mrf.mxu3 }
 0x260   :  { %v696_v0 = vmax.f32 %v584_v60, 0.0  ;;  %v4662_v49 = vmax.f32 %v824_v5, 0.0  ;;  %v4664_v61 = vpop.f32.mrf.mxu0  ;;  %630 = vmatmul.f32.gmra.mxu1 %v423_v16 }
 0x261   :  { %7060 = vst [vmem:[#allocation17_spill] sm:$0xff] %v4664_v61  ;;  %v1046_v61 = vld [vmem:[%s7013_s5 + $0x110] sm:$0xff] }
 0x262   :  { %873 = vmatmul.f32.gmra.mxu2 %v696_v0  ;;  %1183 = vmatmul.f32.gmra.mxu3 %v4662_v49 }
 0x263   :  { %1389 = vmatmul.f32.gmra.mxu0 %v4662_v49 }
 0x265   :  { %v586_v28 = vpop.f32.mrf.mxu1  ;;  %v826_v33 = vpop.f32.mrf.mxu2 }
 0x266   :  { %v587_v39 = vadd.f32 %v4623_v3, %v586_v28  ;;  %v827_v41 = vadd.f32 %v4378_v45, %v826_v33  ;;  %v4672_v25 = vpop.f32.mrf.mxu3  ;;  %v426_v28 = vmax.f32 %v352_v31, 0.0 }
 0x268   :  { %v697_v24 = vmax.f32 %v587_v39, 0.0  ;;  %v4674_v34 = vmax.f32 %v827_v41, 0.0  ;;  %v4676_v15 = vpop.f32.mrf.mxu0  ;;  %633 = vmatmul.f32.gmra.mxu1 %v424_v37  ;;  %v1054_v41 = vld [vmem:[%s7013_s5 + $0x150] sm:$0xff] }
 0x269   :  { %7061 = vst [vmem:[#allocation18_spill] sm:$0xff] %v4676_v15  ;;  %1523 = vmatpush.msra.mxu1 %v1054_v41 }
 0x26a   :  { %876 = vmatmul.f32.gmra.mxu2 %v697_v24  ;;  %1186 = vmatmul.f32.gmra.mxu3 %v4674_v34 }
 0x26b   :  { %1392 = vmatmul.f32.gmra.mxu0 %v4674_v34 }
 0x26d   :  { %v589_v56 = vpop.f32.mrf.mxu1  ;;  %v829_v57 = vpop.f32.mrf.mxu2 }
 0x26e   :  { %v590_v38 = vadd.f32 %v4623_v3, %v589_v56  ;;  %v830_v21 = vadd.f32 %v4378_v45, %v829_v57  ;;  %v4684_v16 = vpop.f32.mrf.mxu3  ;;  %v1055_v56 = vld [vmem:[%s7013_s5 + $0x158] sm:$0xff]  ;;  %v1049_v57 = vld [vmem:[%s7013_s5 + $0x128] sm:$0xff] }
 0x26f   :  { %1729 = vmatpush.msra.mxu2 %v1055_v56  ;;  %1524 = vmatpush.msra.mxu1 %v1049_v57  ;;  %v1034_v56 = vld [vmem:[%s7013_s5 + $0xb0] sm:$0xff]  ;;  %v358_v57 = vadd.f32 %v4502_v35, %v4530_v20 }
 0x270   :  { %v698_v60 = vmax.f32 %v590_v38, 0.0  ;;  %v4686_v5 = vmax.f32 %v830_v21, 0.0  ;;  %v4688_v0 = vpop.f32.mrf.mxu0  ;;  %636 = vmatmul.f32.gmra.mxu1 %v425_v46  ;;  %v355_v46 = vadd.f32 %v4502_v35, %v4518_v1  ;;  %v1056_v38 = vld [vmem:[%s7013_s5 + $0x160] sm:$0xff] }
 0x271   :  { %7062 = vst [vmem:[#allocation19_spill] sm:$0xff] %v4688_v0  ;;  %v1044_v21 = vld [vmem:[%s7013_s5 + $0x100] sm:$0xff]  ;;  %1935 = vmatpush.msra.mxu3 %v1056_v38  ;;  %v2457_v38 = vld [vmem:[#allocation7 + $0x40] sm:$0xff]  ;;  %v428_v20 = vmax.f32 %v358_v57, 0.0  ;;  %v1014_v57 = vld [vmem:[%s7013_s5 + $0x10] sm:$0xff] }
 0x272   :  { %879 = vmatmul.f32.gmra.mxu2 %v698_v60  ;;  %1189 = vmatmul.f32.gmra.mxu3 %v4686_v5 }
 0x273   :  { %1395 = vmatmul.f32.gmra.mxu0 %v4686_v5  ;;  %1525 = vmatpush.msra.mxu1 %v1044_v21  ;;  %v1024_v21 = vld [vmem:[%s7013_s5 + $0x60] sm:$0xff] }
 0x274   :  { %2540 = vmatpush.msra.mxu0 %v2457_v38 }
 0x275   :  { %v592_v19 = vpop.f32.mrf.mxu1  ;;  %v832_v58 = vpop.f32.mrf.mxu2 }
 0x276   :  { %v593_v33 = vadd.f32 %v4623_v3, %v592_v19  ;;  %v833_v37 = vadd.f32 %v4378_v45, %v832_v58  ;;  %v4696_v39 = vpop.f32.mrf.mxu3  ;;  %v427_v19 = vmax.f32 %v355_v46, 0.0  ;;  %v1029_v46 = vld [vmem:[%s7013_s5 + $0x88] sm:$0xff] }
 0x278   :  { %v699_v24 = vmax.f32 %v593_v33, 0.0  ;;  %v4701_v40 = vmax.f32 %v833_v37, 0.0  ;;  %v4703_v29 = vpop.f32.mrf.mxu0  ;;  %639 = vmatmul.f32.gmra.mxu1 %v426_v28  ;;  %v1039_v33 = vld [vmem:[%s7013_s5 + $0xd8] sm:$0xff] }
 0x279   :  { %7063 = vst [vmem:[#allocation20_spill] sm:$0xff] %v4703_v29  ;;  %1526 = vmatpush.msra.mxu1 %v1039_v33  ;;  %v1019_v33 = vld [vmem:[%s7013_s5 + $0x38] sm:$0xff] }
 0x27a   :  { %882 = vmatmul.f32.gmra.mxu2 %v699_v24  ;;  %1192 = vmatmul.f32.gmra.mxu3 %v4701_v40 }
 0x27b   :  { %1398 = vmatmul.f32.gmra.mxu0 %v4701_v40  ;;  %1527 = vmatpush.msra.mxu1 %v1034_v56 }
 0x27d   :  { %v595_v60 = vpop.f32.mrf.mxu1  ;;  %v835_v31 = vpop.f32.mrf.mxu2  ;;  %1528 = vmatpush.msra.mxu1 %v1029_v46  ;;  %v361_v46 = vadd.f32 %v4502_v35, %v4551_v48  ;;  %v364_v48 = vadd.f32 %v4502_v35, %v4564_v51 }
 0x27e   :  { %v596_v1 = vadd.f32 %v4623_v3, %v595_v60  ;;  %v836_v58 = vadd.f32 %v4378_v45, %v835_v31  ;;  %v4723_v28 = vpop.f32.mrf.mxu3 }
 0x27f   :  { %1529 = vmatpush.msra.mxu1 %v1024_v21 }
 0x280   :  { %v700_v37 = vmax.f32 %v596_v1, 0.0  ;;  %v4728_v41 = vmax.f32 %v836_v58, 0.0  ;;  %v4730_v24 = vpop.f32.mrf.mxu0  ;;  %642 = vmatmul.f32.gmra.mxu1 %v427_v19 }
 0x281   :  { %7064 = vst [vmem:[#allocation21_spill] sm:$0xff] %v4730_v24  ;;  %1530 = vmatpush.msra.mxu1 %v1019_v33 }
 0x282   :  { %885 = vmatmul.f32.gmra.mxu2 %v700_v37  ;;  %1195 = vmatmul.f32.gmra.mxu3 %v4728_v41 }
 0x283   :  { %1401 = vmatmul.f32.gmra.mxu0 %v4728_v41  ;;  %1531 = vmatpush.msra.mxu1 %v1014_v57 }
 0x285   :  { %v598_v60 = vpop.f32.mrf.mxu1  ;;  %v838_v31 = vpop.f32.mrf.mxu2 }
 0x286   :  { %v599_v19 = vadd.f32 %v4623_v3, %v598_v60  ;;  %v839_v1 = vadd.f32 %v4378_v45, %v838_v31  ;;  %v4747_v58 = vpop.f32.mrf.mxu3  ;;  %v429_v31 = vmax.f32 %v361_v46, 0.0 }
 0x287   :  { %7065 = vst [vmem:[#allocation22_spill] sm:$0xff] %v4747_v58 }
 0x288   :  { %v701_v37 = vmax.f32 %v599_v19, 0.0  ;;  %v4752_v56 = vmax.f32 %v839_v1, 0.0  ;;  %v4754_v38 = vpop.f32.mrf.mxu0  ;;  %645 = vmatmul.f32.gmra.mxu1 %v428_v20 }
 0x289   :  { %7066 = vst [vmem:[#allocation23_spill] sm:$0xff] %v4754_v38 }
 0x28a   :  { %888 = vmatmul.f32.gmra.mxu2 %v701_v37  ;;  %1198 = vmatmul.f32.gmra.mxu3 %v4752_v56  ;;  %v1050_v37 = vld [vmem:[%s7013_s5 + $0x130] sm:$0xff] }
 0x28b   :  { %1404 = vmatmul.f32.gmra.mxu0 %v4752_v56  ;;  %1730 = vmatpush.msra.mxu2 %v1050_v37  ;;  %v367_v37 = vadd.f32 %v4502_v35, %v4575_v26  ;;  %v2456_v35 = vld [vmem:[#allocation7 + $0x38] sm:$0xff] }
 0x28c   :  { %2541 = vmatpush.msra.mxu0 %v2456_v35 }
 0x28d   :  { %v601_v21 = vpop.f32.mrf.mxu1  ;;  %v841_v60 = vpop.f32.mrf.mxu2 }
 0x28e   :  { %v602_v19 = vadd.f32 %v4623_v3, %v601_v21  ;;  %v842_v20 = vadd.f32 %v4378_v45, %v841_v60  ;;  %v4765_v1 = vpop.f32.mrf.mxu3  ;;  %v430_v21 = vmax.f32 %v364_v48, 0.0 }
 0x28f   :  { %7067 = vst [vmem:[#allocation24_spill] sm:$0xff] %v4765_v1 }
 0x290   :  { %v702_v38 = vmax.f32 %v602_v19, 0.0  ;;  %v4767_v33 = vmax.f32 %v842_v20, 0.0  ;;  %v4769_v24 = vpop.f32.mrf.mxu0  ;;  %648 = vmatmul.f32.gmra.mxu1 %v429_v31 }
 0x291   :  { %7068 = vst [vmem:[#allocation25_spill] sm:$0xff] %v4769_v24  ;;  %v1051_v24 = vld [vmem:[%s7013_s5 + $0x138] sm:$0xff] }
 0x292   :  { %891 = vmatmul.f32.gmra.mxu2 %v702_v38  ;;  %1201 = vmatmul.f32.gmra.mxu3 %v4767_v33 }
 0x293   :  { %1407 = vmatmul.f32.gmra.mxu0 %v4767_v33  ;;  %1936 = vmatpush.msra.mxu3 %v1051_v24 }
 0x295   :  { %v604_v57 = vpop.f32.mrf.mxu1  ;;  %v844_v46 = vpop.f32.mrf.mxu2  ;;  %1937 = vmatpush.msra.mxu3 %v1046_v61  ;;  %v2455_v61 = vld [vmem:[#allocation7 + $0x30] sm:$0xff] }
 0x296   :  { %v605_v60 = vadd.f32 %v4623_v3, %v604_v57  ;;  %v845_v31 = vadd.f32 %v4378_v45, %v844_v46  ;;  %v4780_v19 = vpop.f32.mrf.mxu3  ;;  %v431_v46 = vmax.f32 %v367_v37, 0.0  ;;  %2542 = vmatpush.msra.mxu0 %v2455_v61 }
 0x297   :  { %7069 = vst [vmem:[#allocation26_spill] sm:$0xff] %v4780_v19 }
 0x298   :  { %v703_v51 = vmax.f32 %v605_v60, 0.0  ;;  %v4782_v38 = vmax.f32 %v845_v31, 0.0  ;;  %v4784_v20 = vpop.f32.mrf.mxu0  ;;  %651 = vmatmul.f32.gmra.mxu1 %v430_v21 }
 0x299   :  { %7070 = vst [vmem:[#allocation27_spill] sm:$0xff] %v4784_v20 }
 0x29a   :  { %894 = vmatmul.f32.gmra.mxu2 %v703_v51  ;;  %1204 = vmatmul.f32.gmra.mxu3 %v4782_v38 }
 0x29b   :  { %1410 = vmatmul.f32.gmra.mxu0 %v4782_v38 }
 0x29d   :  { %v607_v48 = vpop.f32.mrf.mxu1  ;;  %v847_v57 = vpop.f32.mrf.mxu2 }
 0x29e   :  { %v608_v60 = vadd.f32 %v4623_v3, %v607_v48  ;;  %v848_v21 = vadd.f32 %v4378_v45, %v847_v57  ;;  %v4795_v31 = vpop.f32.mrf.mxu3 }
 0x29f   :  { %7071 = vst [vmem:[#allocation28_spill] sm:$0xff] %v4795_v31  ;;  %v1036_v31 = vld [vmem:[%s7013_s5 + $0xc0] sm:$0xff] }
 0x2a0   :  { %v704_v20 = vmax.f32 %v608_v60, 0.0  ;;  %v4797_v29 = vmax.f32 %v848_v21, 0.0  ;;  %v4799_v0 = vpop.f32.mrf.mxu0  ;;  %654 = vmatmul.f32.gmra.mxu1 %v431_v46 }
 0x2a1   :  { %7072 = vst [vmem:[#allocation29_spill] sm:$0xff] %v4799_v0 }
 0x2a2   :  { %897 = vmatmul.f32.gmra.mxu2 %v704_v20  ;;  %1207 = vmatmul.f32.gmra.mxu3 %v4797_v29 }
 0x2a3   :  { %1413 = vmatmul.f32.gmra.mxu0 %v4797_v29 }
 0x2a5   :  { %v610_v26 = vpop.f32.mrf.mxu1  ;;  %v850_v24 = vpop.f32.mrf.mxu2 }
 0x2a6   :  { %v611_v51 = vadd.f32 %v4623_v3, %v610_v26  ;;  %v851_v37 = vadd.f32 %v4378_v45, %v850_v24  ;;  %v4805_v48 = vpop.f32.mrf.mxu3 }
 0x2a7   :  { %7073 = vst [vmem:[#allocation30_spill] sm:$0xff] %v4805_v48 }
 0x2a8   :  { %v705_v57 = vmax.f32 %v611_v51, 0.0  ;;  %v4807_v60 = vmax.f32 %v851_v37, 0.0  ;;  %v4809_v21 = vpop.f32.mrf.mxu0  ;;  %1532 = vmatmul.f32.vlgmr.msra.gmra.mxu1 %v4384_v55 }
 0x2a9   :  { %7074 = vst [vmem:[#allocation31_spill] sm:$0xff] %v4809_v21 }
 0x2aa   :  { %900 = vmatmul.f32.gmra.mxu2 %v705_v57  ;;  %1210 = vmatmul.f32.gmra.mxu3 %v4807_v60  ;;  %v1045_v57 = vld [vmem:[%s7013_s5 + $0x108] sm:$0xff] }
 0x2ab   :  { %1416 = vmatmul.f32.gmra.mxu0 %v4807_v60  ;;  %1731 = vmatpush.msra.mxu2 %v1045_v57 }
 0x2ad   :  { %v613_v20 = vpop.f32.mrf.mxu1  ;;  %v853_v46 = vpop.f32.mrf.mxu2 }
 0x2ae   :  { %v614_v35 = vadd.f32 %v4623_v3, %v613_v20  ;;  %v854_v26 = vadd.f32 %v4378_v45, %v853_v46  ;;  %v4816_v24 = vpop.f32.mrf.mxu3 }
 0x2af   :  { %7075 = vst [vmem:[#allocation32_spill] sm:$0xff] %v4816_v24 }
 0x2b0   :  { %v706_v51 = vmax.f32 %v614_v35, 0.0  ;;  %v4818_v37 = vmax.f32 %v854_v26, 0.0  ;;  %v4820_v0 = vpop.f32.mrf.mxu0  ;;  %1535 = vmatmul.f32.gmra.mxu1 %v4403_v2 }
 0x2b1   :  { %7076 = vst [vmem:[#allocation33_spill] sm:$0xff] %v4820_v0 }
 0x2b2   :  { %903 = vmatmul.f32.gmra.mxu2 %v706_v51  ;;  %1213 = vmatmul.f32.gmra.mxu3 %v4818_v37 }
 0x2b3   :  { %1419 = vmatmul.f32.gmra.mxu0 %v4818_v37 }
 0x2b5   :  { %v616_v20 = vpop.f32.mrf.mxu1  ;;  %v856_v46 = vpop.f32.mrf.mxu2 }
 0x2b6   :  { %v617_v35 = vadd.f32 %v4623_v3, %v616_v20  ;;  %v857_v26 = vadd.f32 %v4378_v45, %v856_v46  ;;  %v4830_v21 = vpop.f32.mrf.mxu3  ;;  %v4846_v46 = vld [vmem:[%s7012_s4 + $0x1] ss:$0 sm:$0xff] }
 0x2b7   :  { %7077 = vst [vmem:[#allocation34_spill] sm:$0xff] %v4830_v21 }
 0x2b8   :  { %v707_v0 = vmax.f32 %v617_v35, 0.0  ;;  %v4832_v15 = vmax.f32 %v857_v26, 0.0  ;;  %v4834_v51 = vpop.f32.mrf.mxu0  ;;  %1538 = vmatmul.f32.gmra.mxu1 %v4413_v22 }
 0x2b9   :  { %7078 = vst [vmem:[#allocation35_spill] sm:$0xff] %v4834_v51 }
 0x2ba   :  { %906 = vmatmul.f32.gmra.mxu2 %v707_v0  ;;  %1216 = vmatmul.f32.gmra.mxu3 %v4832_v15 }
 0x2bb   :  { %1422 = vmatmul.f32.gmra.mxu0 %v4832_v15 }
 0x2bd   :  { %v619_v45 = vpop.f32.mrf.mxu1  ;;  %v859_v57 = vpop.f32.mrf.mxu2 }
 0x2be   :  { %v620_v20 = vadd.f32 %v4623_v3, %v619_v45  ;;  %v860_v35 = vadd.f32 %v4846_v46, %v859_v57  ;;  %v4849_v26 = vpop.f32.mrf.mxu3 }
 0x2bf   :  { %7079 = vst [vmem:[#allocation36_spill] sm:$0xff] %v4849_v26  ;;  %v1041_v26 = vld [vmem:[%s7013_s5 + $0xe8] sm:$0xff] }
 0x2c0   :  { %v708_v51 = vmax.f32 %v620_v20, 0.0  ;;  %v4851_v0 = vmax.f32 %v860_v35, 0.0  ;;  %v4853_v43 = vpop.f32.mrf.mxu0  ;;  %1541 = vmatmul.f32.gmra.mxu1 %v4421_v27  ;;  %1938 = vmatpush.msra.mxu3 %v1041_v26 }
 0x2c1   :  { %7080 = vst [vmem:[#allocation37_spill] sm:$0xff] %v4853_v43 }
 0x2c2   :  { %909 = vmatmul.f32.gmra.mxu2 %v708_v51  ;;  %1219 = vmatmul.f32.gmra.mxu3 %v4851_v0 }
 0x2c3   :  { %1425 = vmatmul.f32.gmra.mxu0 %v4851_v0  ;;  %1939 = vmatpush.msra.mxu3 %v1036_v31  ;;  %v1030_v31 = vld [vmem:[%s7013_s5 + $0x90] sm:$0xff] }
 0x2c5   :  { %v622_v45 = vpop.f32.mrf.mxu1  ;;  %v862_v7 = vpop.f32.mrf.mxu2 }
 0x2c6   :  { %v623_v57 = vadd.f32 %v4623_v3, %v622_v45  ;;  %v863_v13 = vadd.f32 %v4846_v46, %v862_v7  ;;  %v4860_v20 = vpop.f32.mrf.mxu3 }
 0x2c7   :  { %7081 = vst [vmem:[#allocation38_spill] sm:$0xff] %v4860_v20 }
 0x2c8   :  { %v709_v35 = vmax.f32 %v623_v57, 0.0  ;;  %v4862_v36 = vmax.f32 %v863_v13, 0.0  ;;  %v4864_v43 = vpop.f32.mrf.mxu0  ;;  %1544 = vmatmul.f32.gmra.mxu1 %v4431_v42 }
 0x2c9   :  { %7082 = vst [vmem:[#allocation39_spill] sm:$0xff] %v4864_v43 }
 0x2ca   :  { %912 = vmatmul.f32.gmra.mxu2 %v709_v35  ;;  %1222 = vmatmul.f32.gmra.mxu3 %v4862_v36  ;;  %v1040_v35 = vld [vmem:[%s7013_s5 + $0xe0] sm:$0xff] }
 0x2cb   :  { %1428 = vmatmul.f32.gmra.mxu0 %v4862_v36  ;;  %1732 = vmatpush.msra.mxu2 %v1040_v35 }
 0x2cd   :  { %v625_v51 = vpop.f32.mrf.mxu1  ;;  %v865_v61 = vpop.f32.mrf.mxu2 }
 0x2ce   :  { %v626_v45 = vadd.f32 %v4623_v3, %v625_v51  ;;  %v866_v7 = vadd.f32 %v4846_v46, %v865_v61  ;;  %v4871_v17 = vpop.f32.mrf.mxu3 }
 0x2cf   :  { %7083 = vst [vmem:[#allocation40_spill] sm:$0xff] %v4871_v17 }
 0x2d0   :  { %v710_v57 = vmax.f32 %v626_v45, 0.0  ;;  %v4873_v13 = vmax.f32 %v866_v7, 0.0  ;;  %v4875_v20 = vpop.f32.mrf.mxu0  ;;  %1547 = vmatmul.f32.gmra.mxu1 %v4450_v14 }
 0x2d1   :  { %7084 = vst [vmem:[#allocation41_spill] sm:$0xff] %v4875_v20 }
 0x2d2   :  { %915 = vmatmul.f32.gmra.mxu2 %v710_v57  ;;  %1225 = vmatmul.f32.gmra.mxu3 %v4873_v13 }
 0x2d3   :  { %1431 = vmatmul.f32.gmra.mxu0 %v4873_v13 }
 0x2d5   :  { %v628_v51 = vpop.f32.mrf.mxu1  ;;  %v868_v61 = vpop.f32.mrf.mxu2 }
 0x2d6   :  { %v629_v45 = vadd.f32 %v4623_v3, %v628_v51  ;;  %v869_v7 = vadd.f32 %v4846_v46, %v868_v61  ;;  %v4885_v43 = vpop.f32.mrf.mxu3 }
 0x2d7   :  { %7085 = vst [vmem:[#allocation42_spill] sm:$0xff] %v4885_v43 }
 0x2d8   :  { %v711_v20 = vmax.f32 %v629_v45, 0.0  ;;  %v4887_v17 = vmax.f32 %v869_v7, 0.0  ;;  %v4889_v57 = vpop.f32.mrf.mxu0  ;;  %1550 = vmatmul.f32.gmra.mxu1 %v4460_v4 }
 0x2d9   :  { %7086 = vst [vmem:[#allocation43_spill] sm:$0xff] %v4889_v57 }
 0x2da   :  { %918 = vmatmul.f32.gmra.mxu2 %v711_v20  ;;  %1228 = vmatmul.f32.gmra.mxu3 %v4887_v17  ;;  %v2454_v20 = vld [vmem:[#allocation7 + $0x28] sm:$0xff] }
 0x2db   :  { %1434 = vmatmul.f32.gmra.mxu0 %v4887_v17 }
 0x2dc   :  { %2543 = vmatpush.msra.mxu0 %v2454_v20 }
 0x2dd   :  { %v631_v35 = vpop.f32.mrf.mxu1  ;;  %v871_v51 = vpop.f32.mrf.mxu2 }
 0x2de   :  { %v632_v61 = vadd.f32 %v4623_v3, %v631_v35  ;;  %v872_v45 = vadd.f32 %v4846_v46, %v871_v51  ;;  %v4899_v7 = vpop.f32.mrf.mxu3 }
 0x2df   :  { %7087 = vst [vmem:[#allocation44_spill] sm:$0xff] %v4899_v7 }
 0x2e0   :  { %v712_v57 = vmax.f32 %v632_v61, 0.0  ;;  %v4901_v43 = vmax.f32 %v872_v45, 0.0  ;;  %v4903_v21 = vpop.f32.mrf.mxu0  ;;  %1553 = vmatmul.f32.gmra.mxu1 %v4470_v18 }
 0x2e1   :  { %7088 = vst [vmem:[#allocation45_spill] sm:$0xff] %v4903_v21 }
 0x2e2   :  { %921 = vmatmul.f32.gmra.mxu2 %v712_v57  ;;  %1231 = vmatmul.f32.gmra.mxu3 %v4901_v43 }
 0x2e3   :  { %1437 = vmatmul.f32.gmra.mxu0 %v4901_v43 }
 0x2e5   :  { %v634_v26 = vpop.f32.mrf.mxu1  ;;  %v874_v35 = vpop.f32.mrf.mxu2 }
 0x2e6   :  { %v635_v51 = vadd.f32 %v4623_v3, %v634_v26  ;;  %v875_v7 = vadd.f32 %v4846_v46, %v874_v35  ;;  %v4910_v61 = vpop.f32.mrf.mxu3 }
 0x2e7   :  { %7089 = vst [vmem:[#allocation46_spill] sm:$0xff] %v4910_v61 }
 0x2e8   :  { %v713_v45 = vmax.f32 %v635_v51, 0.0  ;;  %v4912_v24 = vmax.f32 %v875_v7, 0.0  ;;  %v4914_v21 = vpop.f32.mrf.mxu0  ;;  %1556 = vmatmul.f32.gmra.mxu1 %v4478_v30 }
 0x2e9   :  { %7090 = vst [vmem:[#allocation47_spill] sm:$0xff] %v4914_v21 }
 0x2ea   :  { %924 = vmatmul.f32.gmra.mxu2 %v713_v45  ;;  %1234 = vmatmul.f32.gmra.mxu3 %v4912_v24  ;;  %v1035_v45 = vld [vmem:[%s7013_s5 + $0xb8] sm:$0xff] }
 0x2eb   :  { %1440 = vmatmul.f32.gmra.mxu0 %v4912_v24  ;;  %1733 = vmatpush.msra.mxu2 %v1035_v45 }
 0x2ed   :  { %v637_v57 = vpop.f32.mrf.mxu1  ;;  %v877_v20 = vpop.f32.mrf.mxu2  ;;  %1734 = vmatpush.msra.mxu2 %v1030_v31 }
 0x2ee   :  { %v638_v26 = vadd.f32 %v4623_v3, %v637_v57  ;;  %v878_v35 = vadd.f32 %v4846_v46, %v877_v20  ;;  %v4921_v48 = vpop.f32.mrf.mxu3 }
 0x2ef   :  { %7091 = vst [vmem:[#allocation48_spill] sm:$0xff] %v4921_v48 }
 0x2f0   :  { %v714_v51 = vmax.f32 %v638_v26, 0.0  ;;  %v4923_v7 = vmax.f32 %v878_v35, 0.0  ;;  %v4925_v61 = vpop.f32.mrf.mxu0  ;;  %1559 = vmatmul.f32.gmra.mxu1 %v4497_v53 }
 0x2f1   :  { %7092 = vst [vmem:[#allocation49_spill] sm:$0xff] %v4925_v61 }
 0x2f2   :  { %927 = vmatmul.f32.gmra.mxu2 %v714_v51  ;;  %1237 = vmatmul.f32.gmra.mxu3 %v4923_v7 }
 0x2f3   :  { %1443 = vmatmul.f32.gmra.mxu0 %v4923_v7 }
 0x2f5   :  { %v640_v57 = vpop.f32.mrf.mxu1  ;;  %v880_v20 = vpop.f32.mrf.mxu2 }
 0x2f6   :  { %v641_v26 = vadd.f32 %v4623_v3, %v640_v57  ;;  %v881_v35 = vadd.f32 %v4846_v46, %v880_v20  ;;  %v4935_v21 = vpop.f32.mrf.mxu3 }
 0x2f7   :  { %7093 = vst [vmem:[#allocation50_spill] sm:$0xff] %v4935_v21 }
 0x2f8   :  { %v715_v61 = vmax.f32 %v641_v26, 0.0  ;;  %v4937_v48 = vmax.f32 %v881_v35, 0.0  ;;  %v4939_v51 = vpop.f32.mrf.mxu0  ;;  %1562 = vmatmul.f32.gmra.mxu1 %v4512_v63 }
 0x2f9   :  { %7094 = vst [vmem:[#allocation51_spill] sm:$0xff] %v4939_v51 }
 0x2fa   :  { %930 = vmatmul.f32.gmra.mxu2 %v715_v61  ;;  %1240 = vmatmul.f32.gmra.mxu3 %v4937_v48  ;;  %v2453_v61 = vld [vmem:[#allocation7 + $0x20] sm:$0xff] }
 0x2fb   :  { %1446 = vmatmul.f32.gmra.mxu0 %v4937_v48 }
 0x2fc   :  { %2544 = vmatpush.msra.mxu0 %v2453_v61 }
 0x2fd   :  { %v643_v45 = vpop.f32.mrf.mxu1  ;;  %v883_v57 = vpop.f32.mrf.mxu2 }
 0x2fe   :  { %v644_v20 = vadd.f32 %v4623_v3, %v643_v45  ;;  %v884_v26 = vadd.f32 %v4846_v46, %v883_v57  ;;  %v4949_v35 = vpop.f32.mrf.mxu3 }
 0x2ff   :  { %7095 = vst [vmem:[#allocation52_spill] sm:$0xff] %v4949_v35  ;;  %v1020_v35 = vld [vmem:[%s7013_s5 + $0x40] sm:$0xff] }
 0x300   :  { %v716_v51 = vmax.f32 %v644_v20, 0.0  ;;  %v4951_v21 = vmax.f32 %v884_v26, 0.0  ;;  %v4953_v19 = vpop.f32.mrf.mxu0  ;;  %1565 = vmatmul.f32.gmra.mxu1 %v4522_v12  ;;  %v1025_v20 = vld [vmem:[%s7013_s5 + $0x68] sm:$0xff] }
 0x301   :  { %7096 = vst [vmem:[#allocation53_spill] sm:$0xff] %v4953_v19  ;;  %1735 = vmatpush.msra.mxu2 %v1025_v20 }
 0x302   :  { %933 = vmatmul.f32.gmra.mxu2 %v716_v51  ;;  %1243 = vmatmul.f32.gmra.mxu3 %v4951_v21 }
 0x303   :  { %1449 = vmatmul.f32.gmra.mxu0 %v4951_v21  ;;  %1736 = vmatpush.msra.mxu2 %v1020_v35 }
 0x305   :  { %v646_v45 = vpop.f32.mrf.mxu1  ;;  %v886_v57 = vpop.f32.mrf.mxu2 }
 0x306   :  { %v647_v26 = vadd.f32 %v4623_v3, %v646_v45  ;;  %v887_v51 = vadd.f32 %v4846_v46, %v886_v57  ;;  %v4966_v19 = vpop.f32.mrf.mxu3  ;;  %v1015_v45 = vld [vmem:[%s7013_s5 + $0x18] sm:$0xff] }
 0x307   :  { %7097 = vst [vmem:[#allocation54_spill] sm:$0xff] %v4966_v19  ;;  %1737 = vmatpush.msra.mxu2 %v1015_v45 }
 0x308   :  { %v717_v1 = vmax.f32 %v647_v26, 0.0  ;;  %v4971_v61 = vmax.f32 %v887_v51, 0.0  ;;  %v4973_v31 = vpop.f32.mrf.mxu0  ;;  %1568 = vmatmul.f32.gmra.mxu1 %v4532_v32 }
 0x309   :  { %7099 = vst [vmem:[#allocation56_spill] sm:$0xff] %v4973_v31 }
 0x30a   :  { %7098 = vst [vmem:[#allocation55_spill] sm:$0xff] %v4971_v61  ;;  %936 = vmatmul.f32.gmra.mxu2 %v717_v1  ;;  %1246 = vmatmul.f32.gmra.mxu3 %v4971_v61  ;;  %v1031_v1 = vld [vmem:[%s7013_s5 + $0x98] sm:$0xff] }
 0x30b   :  { %1452 = vmatmul.f32.gmra.mxu0 %v4971_v61  ;;  %1940 = vmatpush.msra.mxu3 %v1031_v1  ;;  %v2452_v1 = vld [vmem:[#allocation7 + $0x18] sm:$0xff] }
 0x30c   :  { %2545 = vmatpush.msra.mxu0 %v2452_v1 }
 0x30d   :  { %v649_v57 = vpop.f32.mrf.mxu1  ;;  %v889_v20 = vpop.f32.mrf.mxu2 }
 0x30e   :  { %v650_v26 = vadd.f32 %v4623_v3, %v649_v57  ;;  %v890_v51 = vadd.f32 %v4846_v46, %v889_v20  ;;  %v4983_v31 = vpop.f32.mrf.mxu3 }
 0x30f   :  { %7100 = vst [vmem:[#allocation57_spill] sm:$0xff] %v4983_v31 }
 0x310   :  { %v718_v19 = vmax.f32 %v650_v26, 0.0  ;;  %v4985_v35 = vmax.f32 %v890_v51, 0.0  ;;  %v4987_v58 = vpop.f32.mrf.mxu0  ;;  %1571 = vmatmul.f32.gmra.mxu1 %v4549_v44 }
 0x311   :  { %7102 = vst [vmem:[#allocation59_spill] sm:$0xff] %v4987_v58 }
 0x312   :  { %7101 = vst [vmem:[#allocation58_spill] sm:$0xff] %v4985_v35  ;;  %939 = vmatmul.f32.gmra.mxu2 %v718_v19  ;;  %1249 = vmatmul.f32.gmra.mxu3 %v4985_v35 }
 0x313   :  { %1455 = vmatmul.f32.gmra.mxu0 %v4985_v35 }
 0x315   :  { %v652_v45 = vpop.f32.mrf.mxu1  ;;  %v892_v57 = vpop.f32.mrf.mxu2 }
 0x316   :  { %v653_v20 = vadd.f32 %v4623_v3, %v652_v45  ;;  %v893_v26 = vadd.f32 %v4846_v46, %v892_v57  ;;  %v4997_v51 = vpop.f32.mrf.mxu3 }
 0x317   :  { %7103 = vst [vmem:[#allocation60_spill] sm:$0xff] %v4997_v51 }
 0x318   :  { %v719_v58 = vmax.f32 %v653_v20, 0.0  ;;  %v4999_v31 = vmax.f32 %v893_v26, 0.0  ;;  %v5001_v19 = vpop.f32.mrf.mxu0  ;;  %1574 = vmatmul.f32.gmra.mxu1 %v4559_v47 }
 0x319   :  { %7104 = vst [vmem:[#allocation61_spill] sm:$0xff] %v5001_v19 }
 0x31a   :  { %942 = vmatmul.f32.gmra.mxu2 %v719_v58  ;;  %1252 = vmatmul.f32.gmra.mxu3 %v4999_v31 }
 0x31b   :  { %1458 = vmatmul.f32.gmra.mxu0 %v4999_v31 }
 0x31d   :  { %v655_v35 = vpop.f32.mrf.mxu1  ;;  %v895_v45 = vpop.f32.mrf.mxu2 }
 0x31e   :  { %v656_v57 = vadd.f32 %v4623_v3, %v655_v35  ;;  %v896_v51 = vadd.f32 %v4846_v46, %v895_v45  ;;  %v5008_v20 = vpop.f32.mrf.mxu3 }
 0x31f   :  { %7105 = vst [vmem:[#allocation62_spill] sm:$0xff] %v5008_v20 }
 0x320   :  { %v720_v26 = vmax.f32 %v656_v57, 0.0  ;;  %v5010_v61 = vmax.f32 %v896_v51, 0.0  ;;  %v5012_v19 = vpop.f32.mrf.mxu0  ;;  %1577 = vmatmul.f32.gmra.mxu1 %v4569_v62 }
 0x321   :  { %7106 = vst [vmem:[#allocation63_spill] sm:$0xff] %v5012_v19 }
 0x322   :  { %945 = vmatmul.f32.gmra.mxu2 %v720_v26  ;;  %1255 = vmatmul.f32.gmra.mxu3 %v5010_v61 }
 0x323   :  { %1461 = vmatmul.f32.gmra.mxu0 %v5010_v61 }
 0x325   :  { %v898_v58 = vpop.f32.mrf.mxu2  ;;  %v5017_v1 = vpop.f32.mrf.mxu1 }
 0x326   :  { %7107 = vst [vmem:[#allocation64_spill] sm:$0xff] %v5017_v1  ;;  %v899_v3 = vadd.f32 %v4846_v46, %v898_v58  ;;  %v5020_v35 = vpop.f32.mrf.mxu3 }
 0x327   :  { %7108 = vst [vmem:[#allocation65_spill] sm:$0xff] %v5020_v35 }
 0x328   :  { %v5022_v45 = vmax.f32 %v899_v3, 0.0  ;;  %v5024_v51 = vpop.f32.mrf.mxu0  ;;  %1580 = vmatmul.f32.gmra.mxu1 %v4579_v9 }
 0x329   :  { %7110 = vst [vmem:[#allocation67_spill] sm:$0xff] %v5024_v51  ;;  %v1026_v51 = vld [vmem:[%s7013_s5 + $0x70] sm:$0xff] }
 0x32a   :  { %7109 = vst [vmem:[#allocation66_spill] sm:$0xff] %v5022_v45  ;;  %1258 = vmatmul.f32.gmra.mxu3 %v5022_v45  ;;  %1738 = vmatmul.f32.vlgmr.msra.gmra.mxu2 %v4384_v55 }
 0x32b   :  { %1464 = vmatmul.f32.gmra.mxu0 %v5022_v45  ;;  %1941 = vmatpush.msra.mxu3 %v1026_v51  ;;  %v2451_v51 = vld [vmem:[#allocation7 + $0x10] sm:$0xff] }
 0x32c   :  { %2546 = vmatpush.msra.mxu0 %v2451_v51 }
 0x32d   :  { %v901_v57 = vpop.f32.mrf.mxu2  ;;  %v5030_v26 = vpop.f32.mrf.mxu1 }
 0x32e   :  { %7111 = vst [vmem:[#allocation68_spill] sm:$0xff] %v5030_v26  ;;  %v902_v19 = vadd.f32 %v4846_v46, %v901_v57  ;;  %v5033_v58 = vpop.f32.mrf.mxu3 }
 0x32f   :  { %7112 = vst [vmem:[#allocation69_spill] sm:$0xff] %v5033_v58 }
 0x330   :  { %v5035_v1 = vmax.f32 %v902_v19, 0.0  ;;  %v5037_v3 = vpop.f32.mrf.mxu0  ;;  %1583 = vmatmul.f32.gmra.mxu1 %v4600_v54 }
 0x331   :  { %7114 = vst [vmem:[#allocation71_spill] sm:$0xff] %v5037_v3 }
 0x332   :  { %7113 = vst [vmem:[#allocation70_spill] sm:$0xff] %v5035_v1  ;;  %1261 = vmatmul.f32.gmra.mxu3 %v5035_v1  ;;  %1741 = vmatmul.f32.gmra.mxu2 %v4403_v2 }
 0x333   :  { %1467 = vmatmul.f32.gmra.mxu0 %v5035_v1  ;;  %v2480_v1 = vld [vmem:[#allocation7 + $0xf8] sm:$0xff] }
 0x334   :  { %2739 = vmatpush.msrb.mxu1 %v2480_v1 }
 0x335   :  { %v904_v57 = vpop.f32.mrf.mxu2  ;;  %v5046_v26 = vpop.f32.mrf.mxu1 }
 0x336   :  { %7115 = vst [vmem:[#allocation72_spill] sm:$0xff] %v5046_v26  ;;  %v905_v19 = vadd.f32 %v4846_v46, %v904_v57  ;;  %v5049_v58 = vpop.f32.mrf.mxu3 }
 0x337   :  { %7116 = vst [vmem:[#allocation73_spill] sm:$0xff] %v5049_v58 }
 0x338   :  { %v5051_v3 = vmax.f32 %v905_v19, 0.0  ;;  %v5053_v35 = vpop.f32.mrf.mxu0  ;;  %1586 = vmatmul.f32.gmra.mxu1 %v4612_v8 }
 0x339   :  { %7118 = vst [vmem:[#allocation75_spill] sm:$0xff] %v5053_v35 }
 0x33a   :  { %7117 = vst [vmem:[#allocation74_spill] sm:$0xff] %v5051_v3  ;;  %1264 = vmatmul.f32.gmra.mxu3 %v5051_v3  ;;  %1744 = vmatmul.f32.gmra.mxu2 %v4413_v22 }
 0x33b   :  { %1470 = vmatmul.f32.gmra.mxu0 %v5051_v3 }
 0x33d   :  { %v907_v20 = vpop.f32.mrf.mxu2  ;;  %v5059_v26 = vpop.f32.mrf.mxu1 }
 0x33e   :  { %7119 = vst [vmem:[#allocation76_spill] sm:$0xff] %v5059_v26  ;;  %v908_v57 = vadd.f32 %v4846_v46, %v907_v20  ;;  %v5062_v58 = vpop.f32.mrf.mxu3 }
 0x33f   :  { %7120 = vst [vmem:[#allocation77_spill] sm:$0xff] %v5062_v58 }
 0x340   :  { %v5064_v19 = vmax.f32 %v908_v57, 0.0  ;;  %v5066_v35 = vpop.f32.mrf.mxu0  ;;  %1589 = vmatmul.f32.gmra.mxu1 %v4629_v11 }
 0x341   :  { %7122 = vst [vmem:[#allocation79_spill] sm:$0xff] %v5066_v35 }
 0x342   :  { %7121 = vst [vmem:[#allocation78_spill] sm:$0xff] %v5064_v19  ;;  %1267 = vmatmul.f32.gmra.mxu3 %v5064_v19  ;;  %1747 = vmatmul.f32.gmra.mxu2 %v4421_v27 }
 0x343   :  { %1473 = vmatmul.f32.gmra.mxu0 %v5064_v19 }
 0x345   :  { %v910_v51 = vpop.f32.mrf.mxu2  ;;  %v5072_v3 = vpop.f32.mrf.mxu1 }
 0x346   :  { %7123 = vst [vmem:[#allocation80_spill] sm:$0xff] %v5072_v3  ;;  %v911_v26 = vadd.f32 %v4846_v46, %v910_v51  ;;  %v5075_v20 = vpop.f32.mrf.mxu3 }
 0x347   :  { %7124 = vst [vmem:[#allocation81_spill] sm:$0xff] %v5075_v20 }
 0x348   :  { %v5077_v58 = vmax.f32 %v911_v26, 0.0  ;;  %v5079_v57 = vpop.f32.mrf.mxu0  ;;  %1592 = vmatmul.f32.gmra.mxu1 %v4641_v6 }
 0x349   :  { %7126 = vst [vmem:[#allocation83_spill] sm:$0xff] %v5079_v57  ;;  %v1021_v57 = vld [vmem:[%s7013_s5 + $0x48] sm:$0xff] }
 0x34a   :  { %7125 = vst [vmem:[#allocation82_spill] sm:$0xff] %v5077_v58  ;;  %1270 = vmatmul.f32.gmra.mxu3 %v5077_v58  ;;  %1750 = vmatmul.f32.gmra.mxu2 %v4431_v42 }
 0x34b   :  { %1476 = vmatmul.f32.gmra.mxu0 %v5077_v58  ;;  %1942 = vmatpush.msra.mxu3 %v1021_v57  ;;  %v2450_v57 = vld [vmem:[#allocation7 + $0x8] sm:$0xff] }
 0x34c   :  { %2547 = vmatpush.msra.mxu0 %v2450_v57 }
 0x34d   :  { %v913_v35 = vpop.f32.mrf.mxu2  ;;  %v5085_v19 = vpop.f32.mrf.mxu1 }
 0x34e   :  { %7127 = vst [vmem:[#allocation84_spill] sm:$0xff] %v5085_v19  ;;  %v914_v3 = vadd.f32 %v4846_v46, %v913_v35  ;;  %v5088_v51 = vpop.f32.mrf.mxu3 }
 0x34f   :  { %7128 = vst [vmem:[#allocation85_spill] sm:$0xff] %v5088_v51 }
 0x350   :  { %v5090_v20 = vmax.f32 %v914_v3, 0.0  ;;  %v5092_v26 = vpop.f32.mrf.mxu0  ;;  %1595 = vmatmul.f32.gmra.mxu1 %v4662_v49 }
 0x351   :  { %7130 = vst [vmem:[#allocation87_spill] sm:$0xff] %v5092_v26 }
 0x352   :  { %7129 = vst [vmem:[#allocation86_spill] sm:$0xff] %v5090_v20  ;;  %1273 = vmatmul.f32.gmra.mxu3 %v5090_v20  ;;  %1753 = vmatmul.f32.gmra.mxu2 %v4450_v14 }
 0x353   :  { %1479 = vmatmul.f32.gmra.mxu0 %v5090_v20 }
 0x355   :  { %v916_v35 = vpop.f32.mrf.mxu2  ;;  %v5101_v19 = vpop.f32.mrf.mxu1 }
 0x356   :  { %7131 = vst [vmem:[#allocation88_spill] sm:$0xff] %v5101_v19  ;;  %v917_v3 = vadd.f32 %v4846_v46, %v916_v35  ;;  %v5104_v51 = vpop.f32.mrf.mxu3 }
 0x357   :  { %7132 = vst [vmem:[#allocation89_spill] sm:$0xff] %v5104_v51 }
 0x358   :  { %v5106_v26 = vmax.f32 %v917_v3, 0.0  ;;  %v5108_v58 = vpop.f32.mrf.mxu0  ;;  %1598 = vmatmul.f32.gmra.mxu1 %v4674_v34 }
 0x359   :  { %7134 = vst [vmem:[#allocation91_spill] sm:$0xff] %v5108_v58 }
 0x35a   :  { %7133 = vst [vmem:[#allocation90_spill] sm:$0xff] %v5106_v26  ;;  %1276 = vmatmul.f32.gmra.mxu3 %v5106_v26  ;;  %1756 = vmatmul.f32.gmra.mxu2 %v4460_v4 }
 0x35b   :  { %1482 = vmatmul.f32.gmra.mxu0 %v5106_v26 }
 0x35d   :  { %v919_v20 = vpop.f32.mrf.mxu2  ;;  %v5114_v19 = vpop.f32.mrf.mxu1 }
 0x35e   :  { %7135 = vst [vmem:[#allocation92_spill] sm:$0xff] %v5114_v19  ;;  %v920_v35 = vadd.f32 %v4846_v46, %v919_v20  ;;  %v5117_v51 = vpop.f32.mrf.mxu3 }
 0x35f   :  { %7136 = vst [vmem:[#allocation93_spill] sm:$0xff] %v5117_v51 }
 0x360   :  { %v5119_v3 = vmax.f32 %v920_v35, 0.0  ;;  %v5121_v58 = vpop.f32.mrf.mxu0  ;;  %1601 = vmatmul.f32.gmra.mxu1 %v4686_v5 }
 0x361   :  { %7138 = vst [vmem:[#allocation95_spill] sm:$0xff] %v5121_v58 }
 0x362   :  { %7137 = vst [vmem:[#allocation94_spill] sm:$0xff] %v5119_v3  ;;  %1279 = vmatmul.f32.gmra.mxu3 %v5119_v3  ;;  %1759 = vmatmul.f32.gmra.mxu2 %v4470_v18 }
 0x363   :  { %1485 = vmatmul.f32.gmra.mxu0 %v5119_v3 }
 0x365   :  { %v922_v57 = vpop.f32.mrf.mxu2  ;;  %v5127_v26 = vpop.f32.mrf.mxu1 }
 0x366   :  { %7139 = vst [vmem:[#allocation96_spill] sm:$0xff] %v5127_v26  ;;  %v923_v19 = vadd.f32 %v4846_v46, %v922_v57  ;;  %v5130_v20 = vpop.f32.mrf.mxu3 }
 0x367   :  { %7140 = vst [vmem:[#allocation97_spill] sm:$0xff] %v5130_v20 }
 0x368   :  { %v5132_v51 = vmax.f32 %v923_v19, 0.0  ;;  %v5134_v35 = vpop.f32.mrf.mxu0  ;;  %1604 = vmatmul.f32.gmra.mxu1 %v4701_v40 }
 0x369   :  { %7142 = vst [vmem:[#allocation99_spill] sm:$0xff] %v5134_v35  ;;  %v1016_v35 = vld [vmem:[%s7013_s5 + $0x20] sm:$0xff] }
 0x36a   :  { %7141 = vst [vmem:[#allocation98_spill] sm:$0xff] %v5132_v51  ;;  %1282 = vmatmul.f32.gmra.mxu3 %v5132_v51  ;;  %1762 = vmatmul.f32.gmra.mxu2 %v4478_v30 }
 0x36b   :  { %1488 = vmatmul.f32.gmra.mxu0 %v5132_v51  ;;  %1943 = vmatpush.msra.mxu3 %v1016_v35  ;;  %v2449_v35 = vld [vmem:[#allocation7] sm:$0xff] }
 0x36c   :  { %2548 = vmatpush.msra.mxu0 %v2449_v35 }
 0x36d   :  { %v925_v58 = vpop.f32.mrf.mxu2  ;;  %v5140_v3 = vpop.f32.mrf.mxu1 }
 0x36e   :  { %7143 = vst [vmem:[#allocation100_spill] sm:$0xff] %v5140_v3  ;;  %v926_v26 = vadd.f32 %v4846_v46, %v925_v58  ;;  %v5143_v57 = vpop.f32.mrf.mxu3 }
 0x36f   :  { %7144 = vst [vmem:[#allocation101_spill] sm:$0xff] %v5143_v57 }
 0x370   :  { %v5145_v20 = vmax.f32 %v926_v26, 0.0  ;;  %v5147_v19 = vpop.f32.mrf.mxu0  ;;  %1607 = vmatmul.f32.gmra.mxu1 %v4728_v41 }
 0x371   :  { %7146 = vst [vmem:[#allocation103_spill] sm:$0xff] %v5147_v19 }
 0x372   :  { %7145 = vst [vmem:[#allocation102_spill] sm:$0xff] %v5145_v20  ;;  %1285 = vmatmul.f32.gmra.mxu3 %v5145_v20  ;;  %1765 = vmatmul.f32.gmra.mxu2 %v4497_v53 }
 0x373   :  { %1491 = vmatmul.f32.gmra.mxu0 %v5145_v20 }
 0x375   :  { %v928_v58 = vpop.f32.mrf.mxu2  ;;  %v5156_v3 = vpop.f32.mrf.mxu1 }
 0x376   :  { %7147 = vst [vmem:[#allocation104_spill] sm:$0xff] %v5156_v3  ;;  %v929_v26 = vadd.f32 %v4846_v46, %v928_v58  ;;  %v5159_v57 = vpop.f32.mrf.mxu3 }
 0x377   :  { %7148 = vst [vmem:[#allocation105_spill] sm:$0xff] %v5159_v57 }
 0x378   :  { %v5161_v19 = vmax.f32 %v929_v26, 0.0  ;;  %v5163_v51 = vpop.f32.mrf.mxu0  ;;  %1610 = vmatmul.f32.gmra.mxu1 %v4752_v56 }
 0x379   :  { %7150 = vst [vmem:[#allocation107_spill] sm:$0xff] %v5163_v51 }
 0x37a   :  { %7149 = vst [vmem:[#allocation106_spill] sm:$0xff] %v5161_v19  ;;  %1288 = vmatmul.f32.gmra.mxu3 %v5161_v19  ;;  %1768 = vmatmul.f32.gmra.mxu2 %v4512_v63 }
 0x37b   :  { %1494 = vmatmul.f32.gmra.mxu0 %v5161_v19 }
 0x37d   :  { %v931_v20 = vpop.f32.mrf.mxu2  ;;  %v5169_v3 = vpop.f32.mrf.mxu1 }
 0x37e   :  { %7151 = vst [vmem:[#allocation108_spill] sm:$0xff] %v5169_v3  ;;  %v932_v58 = vadd.f32 %v4846_v46, %v931_v20  ;;  %v5172_v57 = vpop.f32.mrf.mxu3 }
 0x37f   :  { %7152 = vst [vmem:[#allocation109_spill] sm:$0xff] %v5172_v57 }
 0x380   :  { %v5174_v26 = vmax.f32 %v932_v58, 0.0  ;;  %v5176_v51 = vpop.f32.mrf.mxu0  ;;  %1613 = vmatmul.f32.gmra.mxu1 %v4767_v33 }
 0x381   :  { %7154 = vst [vmem:[#allocation111_spill] sm:$0xff] %v5176_v51 }
 0x382   :  { %7153 = vst [vmem:[#allocation110_spill] sm:$0xff] %v5174_v26  ;;  %1291 = vmatmul.f32.gmra.mxu3 %v5174_v26  ;;  %1771 = vmatmul.f32.gmra.mxu2 %v4522_v12 }
 0x383   :  { %1497 = vmatmul.f32.gmra.mxu0 %v5174_v26 }
 0x385   :  { %v934_v35 = vpop.f32.mrf.mxu2  ;;  %v5182_v19 = vpop.f32.mrf.mxu1 }
 0x386   :  { %7155 = vst [vmem:[#allocation112_spill] sm:$0xff] %v5182_v19  ;;  %v935_v3 = vadd.f32 %v4846_v46, %v934_v35  ;;  %v5185_v20 = vpop.f32.mrf.mxu3 }
 0x387   :  { %7156 = vst [vmem:[#allocation113_spill] sm:$0xff] %v5185_v20 }
 0x388   :  { %v5187_v57 = vmax.f32 %v935_v3, 0.0  ;;  %v5189_v58 = vpop.f32.mrf.mxu0  ;;  %1616 = vmatmul.f32.gmra.mxu1 %v4782_v38 }
 0x389   :  { %7158 = vst [vmem:[#allocation115_spill] sm:$0xff] %v5189_v58  ;;  %v2496_v58 = vld [vmem:[#allocation7 + $0x178] sm:$0xff] }
 0x38a   :  { %7157 = vst [vmem:[#allocation114_spill] sm:$0xff] %v5187_v57  ;;  %1294 = vmatmul.f32.gmra.mxu3 %v5187_v57  ;;  %1774 = vmatmul.f32.gmra.mxu2 %v4532_v32 }
 0x38b   :  { %1500 = vmatmul.f32.gmra.mxu0 %v5187_v57  ;;  %v2512_v57 = vld [vmem:[#allocation7 + $0x1f8] sm:$0xff]  ;;  %2945 = vmatpush.msrb.mxu2 %v2496_v58 }
 0x38c   :  { %3151 = vmatpush.msrb.mxu3 %v2512_v57  ;;  %v2528_v57 = vld [vmem:[#allocation7 + $0x278] sm:$0xff] }
 0x38d   :  { %v937_v51 = vpop.f32.mrf.mxu2  ;;  %v5195_v26 = vpop.f32.mrf.mxu1  ;;  %3357 = vmatpush.msrb.mxu0 %v2528_v57 }
 0x38e   :  { %7159 = vst [vmem:[#allocation116_spill] sm:$0xff] %v5195_v26  ;;  %v938_v19 = vadd.f32 %v4846_v46, %v937_v51  ;;  %v5198_v35 = vpop.f32.mrf.mxu3 }
 0x38f   :  { %7160 = vst [vmem:[#allocation117_spill] sm:$0xff] %v5198_v35 }
 0x390   :  { %v5200_v20 = vmax.f32 %v938_v19, 0.0  ;;  %v5202_v3 = vpop.f32.mrf.mxu0  ;;  %1619 = vmatmul.f32.gmra.mxu1 %v4797_v29 }
 0x391   :  { %7161 = vst [vmem:[#allocation118_spill] sm:$0xff] %v5202_v3 }
 0x392   :  { %1297 = vmatmul.f32.gmra.mxu3 %v5200_v20  ;;  %1777 = vmatmul.f32.gmra.mxu2 %v4549_v44 }
 0x393   :  { %1503 = vmatmul.f32.gmra.mxu0 %v5200_v20 }
 0x395   :  { %v940_v51 = vpop.f32.mrf.mxu2  ;;  %v5208_v26 = vpop.f32.mrf.mxu1 }
 0x396   :  { %7162 = vst [vmem:[#allocation119_spill] sm:$0xff] %v5208_v26  ;;  %v941_v19 = vadd.f32 %v4846_v46, %v940_v51  ;;  %v5211_v3 = vpop.f32.mrf.mxu3 }
 0x397   :  { %7163 = vst [vmem:[#allocation120_spill] sm:$0xff] %v5211_v3 }
 0x398   :  { %v5213_v35 = vmax.f32 %v941_v19, 0.0  ;;  %v5215_v45 = vpop.f32.mrf.mxu0  ;;  %1622 = vmatmul.f32.gmra.mxu1 %v4807_v60 }
 0x399   :  { %7165 = vst [vmem:[#allocation122_spill] sm:$0xff] %v5215_v45 }
 0x39a   :  { %7164 = vst [vmem:[#allocation121_spill] sm:$0xff] %v5213_v35  ;;  %1300 = vmatmul.f32.gmra.mxu3 %v5213_v35  ;;  %1780 = vmatmul.f32.gmra.mxu2 %v4559_v47 }
 0x39b   :  { %1506 = vmatmul.f32.gmra.mxu0 %v5213_v35  ;;  %v2479_v35 = vld [vmem:[#allocation7 + $0xf0] sm:$0xff] }
 0x39c   :  { %2740 = vmatpush.msrb.mxu1 %v2479_v35 }
 0x39d   :  { %v943_v58 = vpop.f32.mrf.mxu2  ;;  %v5221_v1 = vpop.f32.mrf.mxu1 }
 0x39e   :  { %7166 = vst [vmem:[#allocation123_spill] sm:$0xff] %v5221_v1  ;;  %v944_v51 = vadd.f32 %v4846_v46, %v943_v58  ;;  %v5224_v26 = vpop.f32.mrf.mxu3 }
 0x39f   :  { %7167 = vst [vmem:[#allocation124_spill] sm:$0xff] %v5224_v26 }
 0x3a0   :  { %v5226_v19 = vmax.f32 %v944_v51, 0.0  ;;  %v5228_v45 = vpop.f32.mrf.mxu0  ;;  %1625 = vmatmul.f32.gmra.mxu1 %v4818_v37  ;;  %v5242_v51 = vld [vmem:[%s7014_s6] sm:$0x1f] }
 0x3a1   :  { %7169 = vst [vmem:[#allocation126_spill] sm:$0xff] %v5228_v45 }
 0x3a2   :  { %7168 = vst [vmem:[#allocation125_spill] sm:$0xff] %v5226_v19  ;;  %1303 = vmatmul.f32.gmra.mxu3 %v5226_v19  ;;  %1783 = vmatmul.f32.gmra.mxu2 %v4569_v62 }
 0x3a3   :  { %1509 = vmatmul.f32.gmra.mxu0 %v5226_v19  ;;  %7172 = vst [vmem:[#allocation129_spill] sm:$0xff] %v5242_v51  ;;  %v5250_v19 = vperm.slane %v5242_v51, 0  ;;  %v2511_v51 = vld [vmem:[#allocation7 + $0x1f0] sm:$0xff] }
 0x3a4   :  { %3152 = vmatpush.msrb.mxu3 %v2511_v51 }
 0x3a5   :  { %v946_v57 = vpop.f32.mrf.mxu2  ;;  %v5234_v3 = vpop.f32.mrf.mxu1 }
 0x3a6   :  { %7170 = vst [vmem:[#allocation127_spill] sm:$0xff] %v5234_v3  ;;  %v947_v1 = vadd.f32 %v4846_v46, %v946_v57  ;;  %v5237_v58 = vpop.f32.mrf.mxu3  ;;  %v1122_v46 = vadd.f32 %v4598_v50, %v5250_v19  ;;  %v1125_v50 = vadd.f32 %v4610_v10, %v5250_v19  ;;  %v1128_v10 = vadd.f32 %v4627_v23, %v5250_v19 }
 0x3a7   :  { %7171 = vst [vmem:[#allocation128_spill] sm:$0xff] %v5237_v58 }
 0x3a8   :  { %v5244_v45 = vmax.f32 %v947_v1, 0.0  ;;  %v5246_v26 = vpop.f32.mrf.mxu0  ;;  %1628 = vmatmul.f32.gmra.mxu1 %v4832_v15  ;;  %v2134_v58 = vmax.f32 %v1122_v46, 0.0 }
 0x3a9   :  { %7174 = vst [vmem:[#allocation131_spill] sm:$0xff] %v5246_v26 }
 0x3aa   :  { %7173 = vst [vmem:[#allocation130_spill] sm:$0xff] %v5244_v45  ;;  %1306 = vmatmul.f32.gmra.mxu3 %v5244_v45  ;;  %1786 = vmatmul.f32.gmra.mxu2 %v4579_v9 }
 0x3ab   :  { %1512 = vmatmul.f32.gmra.mxu0 %v5244_v45  ;;  %v2495_v45 = vld [vmem:[#allocation7 + $0x170] sm:$0xff] }
 0x3ac   :  { %2946 = vmatpush.msrb.mxu2 %v2495_v45  ;;  %v2527_v45 = vld [vmem:[#allocation7 + $0x270] sm:$0xff] }
 0x3ad   :  { %v5257_v57 = vpop.f32.mrf.mxu1  ;;  %v5259_v1 = vpop.f32.mrf.mxu2  ;;  %3358 = vmatpush.msrb.mxu0 %v2527_v45 }
 0x3ae   :  { %7175 = vst [vmem:[#allocation132_spill] sm:$0xff] %v5257_v57  ;;  %v5261_v3 = vpop.f32.mrf.mxu3 }
 0x3af   :  { %7176 = vst [vmem:[#allocation133_spill] sm:$0xff] %v5259_v1 }
 0x3b0   :  { %v5263_v26 = vpop.f32.mrf.mxu0  ;;  %1631 = vmatmul.f32.gmra.mxu1 %v4851_v0 }
 0x3b1   :  { %7177 = vst [vmem:[#allocation134_spill] sm:$0xff] %v5263_v26 }
 0x3b2   :  { %1789 = vmatmul.f32.gmra.mxu2 %v4600_v54  ;;  %1944 = vmatmul.f32.vlgmr.msra.gmra.mxu3 %v4384_v55  ;;  %v2139_v55 = vmax.f32 %v1125_v50, 0.0  ;;  %v2144_v50 = vmax.f32 %v1128_v10, 0.0 }
 0x3b3   :  { %2549 = vmatmul.f32.vlgmr.msra.gmra.mxu0 %v2134_v58 }
 0x3b5   :  { %v5270_v1 = vpop.f32.mrf.mxu1  ;;  %v5272_v57 = vpop.f32.mrf.mxu2 }
 0x3b6   :  { %7178 = vst [vmem:[#allocation135_spill] sm:$0xff] %v5270_v1  ;;  %v5274_v26 = vpop.f32.mrf.mxu3  ;;  %v7247_v1 = vld [vmem:[#allocation82_spill] sm:$0xff] }
 0x3b7   :  { %7179 = vst [vmem:[#allocation136_spill] sm:$0xff] %v5272_v57  ;;  %v2507_v57 = vld [vmem:[#allocation7 + $0x1d0] sm:$0xff] }
 0x3b8   :  { %v5276_v46 = vpop.f32.mrf.mxu0  ;;  %1634 = vmatmul.f32.gmra.mxu1 %v4862_v36 }
 0x3b9   :  { %7180 = vst [vmem:[#allocation137_spill] sm:$0xff] %v5276_v46 }
 0x3ba   :  { %1792 = vmatmul.f32.gmra.mxu2 %v4612_v8  ;;  %1947 = vmatmul.f32.gmra.mxu3 %v4403_v2  ;;  %v1131_v2 = vadd.f32 %v4639_v59, %v5250_v19 }
 0x3bb   :  { %2552 = vmatmul.f32.gmra.mxu0 %v2139_v55 }
 0x3bd   :  { %v5283_v58 = vpop.f32.mrf.mxu1  ;;  %v5285_v35 = vpop.f32.mrf.mxu2 }
 0x3be   :  { %7181 = vst [vmem:[#allocation138_spill] sm:$0xff] %v5283_v58  ;;  %v5287_v51 = vpop.f32.mrf.mxu3 }
 0x3bf   :  { %7182 = vst [vmem:[#allocation139_spill] sm:$0xff] %v5285_v35 }
 0x3c0   :  { %v5289_v46 = vpop.f32.mrf.mxu0  ;;  %1637 = vmatmul.f32.gmra.mxu1 %v4873_v13 }
 0x3c1   :  { %7183 = vst [vmem:[#allocation140_spill] sm:$0xff] %v5289_v46  ;;  %v2149_v46 = vmax.f32 %v1131_v2, 0.0  ;;  %v2478_v2 = vld [vmem:[#allocation7 + $0xe8] sm:$0xff] }
 0x3c2   :  { %1795 = vmatmul.f32.gmra.mxu2 %v4629_v11  ;;  %1950 = vmatmul.f32.gmra.mxu3 %v4413_v22  ;;  %v1134_v22 = vadd.f32 %v4660_v52, %v5250_v19  ;;  %v1137_v52 = vadd.f32 %v4672_v25, %v5250_v19  ;;  %v1140_v25 = vadd.f32 %v4684_v16, %v5250_v19 }
 0x3c3   :  { %2555 = vmatmul.f32.gmra.mxu0 %v2144_v50  ;;  %2741 = vmatpush.msrb.mxu1 %v2478_v2 }
 0x3c5   :  { %v5296_v23 = vpop.f32.mrf.mxu1  ;;  %v5298_v55 = vpop.f32.mrf.mxu2 }
 0x3c6   :  { %7184 = vst [vmem:[#allocation141_spill] sm:$0xff] %v5296_v23  ;;  %v5300_v45 = vpop.f32.mrf.mxu3 }
 0x3c7   :  { %7185 = vst [vmem:[#allocation142_spill] sm:$0xff] %v5298_v55 }
 0x3c8   :  { %v5302_v35 = vpop.f32.mrf.mxu0  ;;  %1640 = vmatmul.f32.gmra.mxu1 %v4887_v17 }
 0x3c9   :  { %7186 = vst [vmem:[#allocation143_spill] sm:$0xff] %v5302_v35  ;;  %v2154_v35 = vmax.f32 %v1134_v22, 0.0 }
 0x3ca   :  { %1798 = vmatmul.f32.gmra.mxu2 %v4641_v6  ;;  %1953 = vmatmul.f32.gmra.mxu3 %v4421_v27  ;;  %v2494_v27 = vld [vmem:[#allocation7 + $0x168] sm:$0xff] }
 0x3cb   :  { %2558 = vmatmul.f32.gmra.mxu0 %v2149_v46  ;;  %v2510_v46 = vld [vmem:[#allocation7 + $0x1e8] sm:$0xff]  ;;  %2947 = vmatpush.msrb.mxu2 %v2494_v27 }
 0x3cc   :  { %3153 = vmatpush.msrb.mxu3 %v2510_v46 }
 0x3cd   :  { %v5309_v59 = vpop.f32.mrf.mxu1  ;;  %v5311_v10 = vpop.f32.mrf.mxu2 }
 0x3ce   :  { %7187 = vst [vmem:[#allocation144_spill] sm:$0xff] %v5309_v59  ;;  %v5313_v50 = vpop.f32.mrf.mxu3 }
 0x3cf   :  { %7188 = vst [vmem:[#allocation145_spill] sm:$0xff] %v5311_v10 }
 0x3d0   :  { %v5315_v55 = vpop.f32.mrf.mxu0  ;;  %1643 = vmatmul.f32.gmra.mxu1 %v4901_v43 }
 0x3d1   :  { %7189 = vst [vmem:[#allocation146_spill] sm:$0xff] %v5315_v55 }
 0x3d2   :  { %1801 = vmatmul.f32.gmra.mxu2 %v4662_v49  ;;  %1956 = vmatmul.f32.gmra.mxu3 %v4431_v42  ;;  %v2159_v42 = vmax.f32 %v1137_v52, 0.0  ;;  %v2164_v52 = vmax.f32 %v1140_v25, 0.0 }
 0x3d3   :  { %2561 = vmatmul.f32.gmra.mxu0 %v2154_v35  ;;  %v2526_v35 = vld [vmem:[#allocation7 + $0x268] sm:$0xff] }
 0x3d4   :  { %3359 = vmatpush.msrb.mxu0 %v2526_v35 }
 0x3d5   :  { %v5322_v10 = vpop.f32.mrf.mxu1  ;;  %v5324_v59 = vpop.f32.mrf.mxu2 }
 0x3d6   :  { %7190 = vst [vmem:[#allocation147_spill] sm:$0xff] %v5322_v10  ;;  %v5326_v55 = vpop.f32.mrf.mxu3  ;;  %v7224_v10 = vld [vmem:[#allocation66_spill] sm:$0xff] }
 0x3d7   :  { %7191 = vst [vmem:[#allocation148_spill] sm:$0xff] %v5324_v59  ;;  %v2508_v59 = vld [vmem:[#allocation7 + $0x1d8] sm:$0xff] }
 0x3d8   :  { %v5328_v22 = vpop.f32.mrf.mxu0  ;;  %1646 = vmatmul.f32.gmra.mxu1 %v4912_v24 }
 0x3d9   :  { %7192 = vst [vmem:[#allocation149_spill] sm:$0xff] %v5328_v22 }
 0x3da   :  { %1804 = vmatmul.f32.gmra.mxu2 %v4674_v34  ;;  %1959 = vmatmul.f32.gmra.mxu3 %v4450_v14  ;;  %v1143_v14 = vadd.f32 %v4696_v39, %v5250_v19 }
 0x3db   :  { %2564 = vmatmul.f32.gmra.mxu0 %v2159_v42 }
 0x3dd   :  { %v5335_v27 = vpop.f32.mrf.mxu1  ;;  %v5337_v46 = vpop.f32.mrf.mxu2 }
 0x3de   :  { %7193 = vst [vmem:[#allocation150_spill] sm:$0xff] %v5335_v27  ;;  %v5339_v2 = vpop.f32.mrf.mxu3  ;;  %v7206_v27 = vld [vmem:[#allocation55_spill] sm:$0xff] }
 0x3df   :  { %7194 = vst [vmem:[#allocation151_spill] sm:$0xff] %v5337_v46 }
 0x3e0   :  { %v5341_v22 = vpop.f32.mrf.mxu0  ;;  %1649 = vmatmul.f32.gmra.mxu1 %v4923_v7 }
 0x3e1   :  { %7195 = vst [vmem:[#allocation152_spill] sm:$0xff] %v5341_v22  ;;  %v2169_v22 = vmax.f32 %v1143_v14, 0.0  ;;  %v2477_v14 = vld [vmem:[#allocation7 + $0xe0] sm:$0xff] }
 0x3e2   :  { %1807 = vmatmul.f32.gmra.mxu2 %v4686_v5  ;;  %1962 = vmatmul.f32.gmra.mxu3 %v4460_v4  ;;  %v1146_v4 = vadd.f32 %v4723_v28, %v5250_v19  ;;  %v7202_v28 = vld [vmem:[#allocation22_spill] sm:$0xff] }
 0x3e3   :  { %2567 = vmatmul.f32.gmra.mxu0 %v2164_v52  ;;  %2742 = vmatpush.msrb.mxu1 %v2477_v14 }
 0x3e5   :  { %v5348_v16 = vpop.f32.mrf.mxu1  ;;  %v5350_v42 = vpop.f32.mrf.mxu2 }
 0x3e6   :  { %7196 = vst [vmem:[#allocation153_spill] sm:$0xff] %v5348_v16  ;;  %v5352_v35 = vpop.f32.mrf.mxu3 }
 0x3e7   :  { %7197 = vst [vmem:[#allocation154_spill] sm:$0xff] %v5350_v42 }
 0x3e8   :  { %v5354_v46 = vpop.f32.mrf.mxu0  ;;  %1652 = vmatmul.f32.gmra.mxu1 %v4937_v48 }
 0x3e9   :  { %7198 = vst [vmem:[#allocation155_spill] sm:$0xff] %v5354_v46  ;;  %v2174_v46 = vmax.f32 %v1146_v4, 0.0 }
 0x3ea   :  { %1810 = vmatmul.f32.gmra.mxu2 %v4701_v40  ;;  %1965 = vmatmul.f32.gmra.mxu3 %v4470_v18  ;;  %v2493_v18 = vld [vmem:[#allocation7 + $0x160] sm:$0xff] }
 0x3eb   :  { %2570 = vmatmul.f32.gmra.mxu0 %v2169_v22  ;;  %v2509_v22 = vld [vmem:[#allocation7 + $0x1e0] sm:$0xff]  ;;  %2948 = vmatpush.msrb.mxu2 %v2493_v18  ;;  %v7207_v18 = vld [vmem:[#allocation24_spill] sm:$0xff] }
 0x3ec   :  { %3154 = vmatpush.msrb.mxu3 %v2509_v22  ;;  %v1152_v22 = vadd.f32 %v7207_v18, %v5250_v19 }
 0x3ed   :  { %v5361_v39 = vpop.f32.mrf.mxu1  ;;  %v5363_v25 = vpop.f32.mrf.mxu2 }
 0x3ee   :  { %7199 = vst [vmem:[#allocation156_spill] sm:$0xff] %v5361_v39  ;;  %v5365_v52 = vpop.f32.mrf.mxu3  ;;  %3155 = vmatpush.msrb.mxu3 %v2508_v59  ;;  %v7225_v59 = vld [vmem:[#allocation32_spill] sm:$0xff] }
 0x3ef   :  { %7200 = vst [vmem:[#allocation157_spill] sm:$0xff] %v5363_v25  ;;  %v1149_v25 = vadd.f32 %v7202_v28, %v5250_v19 }
 0x3f0   :  { %v5367_v42 = vpop.f32.mrf.mxu0  ;;  %1655 = vmatmul.f32.gmra.mxu1 %v4951_v21  ;;  %3156 = vmatpush.msrb.mxu3 %v2507_v57  ;;  %v7248_v57 = vld [vmem:[#allocation40_spill] sm:$0xff] }
 0x3f1   :  { %7201 = vst [vmem:[#allocation158_spill] sm:$0xff] %v5367_v42 }
 0x3f2   :  { %1813 = vmatmul.f32.gmra.mxu2 %v4728_v41  ;;  %1968 = vmatmul.f32.gmra.mxu3 %v4478_v30  ;;  %v2179_v30 = vmax.f32 %v1149_v25, 0.0  ;;  %v2184_v25 = vmax.f32 %v1152_v22, 0.0 }
 0x3f3   :  { %2573 = vmatmul.f32.gmra.mxu0 %v2174_v46  ;;  %v2525_v46 = vld [vmem:[#allocation7 + $0x260] sm:$0xff] }
 0x3f4   :  { %3360 = vmatpush.msrb.mxu0 %v2525_v46 }
 0x3f5   :  { %v5374_v39 = vpop.f32.mrf.mxu1  ;;  %v5376_v16 = vpop.f32.mrf.mxu2 }
 0x3f6   :  { %7203 = vst [vmem:[#allocation22_spill] sm:$0xff] %v5374_v39  ;;  %v5378_v42 = vpop.f32.mrf.mxu3  ;;  %v7211_v39 = vld [vmem:[#allocation58_spill] sm:$0xff] }
 0x3f7   :  { %7204 = vst [vmem:[#allocation159_spill] sm:$0xff] %v5376_v16 }
 0x3f8   :  { %v5380_v4 = vpop.f32.mrf.mxu0  ;;  %1658 = vmatmul.f32.gmra.mxu1 %v7206_v27 }
 0x3f9   :  { %7205 = vst [vmem:[#allocation160_spill] sm:$0xff] %v5380_v4 }
 0x3fa   :  { %1816 = vmatmul.f32.gmra.mxu2 %v4752_v56  ;;  %1971 = vmatmul.f32.gmra.mxu3 %v4497_v53  ;;  %v7212_v53 = vld [vmem:[#allocation26_spill] sm:$0xff] }
 0x3fb   :  { %2576 = vmatmul.f32.gmra.mxu0 %v2179_v30  ;;  %v1155_v30 = vadd.f32 %v7212_v53, %v5250_v19 }
 0x3fd   :  { %v5387_v28 = vpop.f32.mrf.mxu1  ;;  %v5389_v14 = vpop.f32.mrf.mxu2 }
 0x3fe   :  { %7208 = vst [vmem:[#allocation55_spill] sm:$0xff] %v5387_v28  ;;  %v5391_v16 = vpop.f32.mrf.mxu3 }
 0x3ff   :  { %7209 = vst [vmem:[#allocation24_spill] sm:$0xff] %v5389_v14 }
 0x400   :  { %v5393_v4 = vpop.f32.mrf.mxu0  ;;  %1661 = vmatmul.f32.gmra.mxu1 %v7211_v39 }
 0x401   :  { %7210 = vst [vmem:[#allocation161_spill] sm:$0xff] %v5393_v4  ;;  %v2189_v4 = vmax.f32 %v1155_v30, 0.0  ;;  %v2492_v30 = vld [vmem:[#allocation7 + $0x158] sm:$0xff] }
 0x402   :  { %1819 = vmatmul.f32.gmra.mxu2 %v4767_v33  ;;  %1974 = vmatmul.f32.gmra.mxu3 %v4512_v63  ;;  %v7216_v63 = vld [vmem:[#allocation28_spill] sm:$0xff] }
 0x403   :  { %2579 = vmatmul.f32.gmra.mxu0 %v2184_v25  ;;  %v1158_v22 = vadd.f32 %v7216_v63, %v5250_v19  ;;  %2949 = vmatpush.msrb.mxu2 %v2492_v30 }
 0x405   :  { %v5400_v46 = vpop.f32.mrf.mxu1  ;;  %v5402_v18 = vpop.f32.mrf.mxu2 }
 0x406   :  { %7213 = vst [vmem:[#allocation58_spill] sm:$0xff] %v5400_v46  ;;  %v5404_v14 = vpop.f32.mrf.mxu3 }
 0x407   :  { %7214 = vst [vmem:[#allocation26_spill] sm:$0xff] %v5402_v18 }
 0x408   :  { %v5406_v28 = vpop.f32.mrf.mxu0  ;;  %1664 = vmatmul.f32.gmra.mxu1 %v4999_v31 }
 0x409   :  { %7215 = vst [vmem:[#allocation162_spill] sm:$0xff] %v5406_v28  ;;  %v2194_v28 = vmax.f32 %v1158_v22, 0.0 }
 0x40a   :  { %1822 = vmatmul.f32.gmra.mxu2 %v4782_v38  ;;  %1977 = vmatmul.f32.gmra.mxu3 %v4522_v12  ;;  %v2476_v12 = vld [vmem:[#allocation7 + $0xd8] sm:$0xff] }
 0x40b   :  { %2582 = vmatmul.f32.gmra.mxu0 %v2189_v4  ;;  %2743 = vmatpush.msrb.mxu1 %v2476_v12  ;;  %v7220_v4 = vld [vmem:[#allocation30_spill] sm:$0xff] }
 0x40c   :  { %v1161_v63 = vadd.f32 %v7220_v4, %v5250_v19 }
 0x40d   :  { %v5413_v25 = vpop.f32.mrf.mxu1  ;;  %v5415_v53 = vpop.f32.mrf.mxu2 }
 0x40e   :  { %7217 = vst [vmem:[#allocation28_spill] sm:$0xff] %v5413_v25  ;;  %v5417_v18 = vpop.f32.mrf.mxu3  ;;  %v2199_v23 = vmax.f32 %v1161_v63, 0.0 }
 0x40f   :  { %7218 = vst [vmem:[#allocation163_spill] sm:$0xff] %v5415_v53 }
 0x410   :  { %v5419_v46 = vpop.f32.mrf.mxu0  ;;  %1667 = vmatmul.f32.gmra.mxu1 %v5010_v61 }
 0x411   :  { %7219 = vst [vmem:[#allocation164_spill] sm:$0xff] %v5419_v46 }
 0x412   :  { %1825 = vmatmul.f32.gmra.mxu2 %v4797_v29  ;;  %1980 = vmatmul.f32.gmra.mxu3 %v4532_v32  ;;  %v2524_v32 = vld [vmem:[#allocation7 + $0x258] sm:$0xff] }
 0x413   :  { %2585 = vmatmul.f32.gmra.mxu0 %v2194_v28  ;;  %v1164_v28 = vadd.f32 %v7225_v59, %v5250_v19 }
 0x414   :  { %3361 = vmatpush.msrb.mxu0 %v2524_v32 }
 0x415   :  { %v5426_v53 = vpop.f32.mrf.mxu1  ;;  %v5428_v46 = vpop.f32.mrf.mxu2  ;;  %v2204_v63 = vmax.f32 %v1164_v28, 0.0 }
 0x416   :  { %7221 = vst [vmem:[#allocation30_spill] sm:$0xff] %v5426_v53  ;;  %v5430_v25 = vpop.f32.mrf.mxu3 }
 0x417   :  { %7222 = vst [vmem:[#allocation165_spill] sm:$0xff] %v5428_v46  ;;  %v7229_v46 = vld [vmem:[#allocation70_spill] sm:$0xff] }
 0x418   :  { %v5432_v22 = vpop.f32.mrf.mxu0  ;;  %1670 = vmatmul.f32.gmra.mxu1 %v7224_v10 }
 0x419   :  { %7223 = vst [vmem:[#allocation166_spill] sm:$0xff] %v5432_v22 }
 0x41a   :  { %1828 = vmatmul.f32.gmra.mxu2 %v4807_v60  ;;  %1983 = vmatmul.f32.gmra.mxu3 %v4549_v44  ;;  %v7230_v44 = vld [vmem:[#allocation34_spill] sm:$0xff] }
 0x41b   :  { %2588 = vmatmul.f32.gmra.mxu0 %v2199_v23  ;;  %v1167_v23 = vadd.f32 %v7230_v44, %v5250_v19 }
 0x41d   :  { %v5439_v30 = vpop.f32.mrf.mxu1  ;;  %v5441_v12 = vpop.f32.mrf.mxu2  ;;  %v2209_v53 = vmax.f32 %v1167_v23, 0.0  ;;  %v2491_v23 = vld [vmem:[#allocation7 + $0x150] sm:$0xff] }
 0x41e   :  { %7226 = vst [vmem:[#allocation66_spill] sm:$0xff] %v5439_v30  ;;  %v5443_v4 = vpop.f32.mrf.mxu3  ;;  %2950 = vmatpush.msrb.mxu2 %v2491_v23 }
 0x41f   :  { %7227 = vst [vmem:[#allocation32_spill] sm:$0xff] %v5441_v12 }
 0x420   :  { %v5445_v22 = vpop.f32.mrf.mxu0  ;;  %1673 = vmatmul.f32.gmra.mxu1 %v7229_v46 }
 0x421   :  { %7228 = vst [vmem:[#allocation167_spill] sm:$0xff] %v5445_v22  ;;  %v7235_v22 = vld [vmem:[#allocation74_spill] sm:$0xff] }
 0x422   :  { %1831 = vmatmul.f32.gmra.mxu2 %v4818_v37  ;;  %1986 = vmatmul.f32.gmra.mxu3 %v4559_v47  ;;  %v7236_v47 = vld [vmem:[#allocation36_spill] sm:$0xff] }
 0x423   :  { %2591 = vmatmul.f32.gmra.mxu0 %v2204_v63  ;;  %v1170_v28 = vadd.f32 %v7236_v47, %v5250_v19 }
 0x425   :  { %v5452_v32 = vpop.f32.mrf.mxu1  ;;  %v5454_v59 = vpop.f32.mrf.mxu2  ;;  %v2214_v58 = vmax.f32 %v1170_v28, 0.0 }
 0x426   :  { %7231 = vst [vmem:[#allocation70_spill] sm:$0xff] %v5452_v32  ;;  %v5456_v12 = vpop.f32.mrf.mxu3 }
 0x427   :  { %7232 = vst [vmem:[#allocation34_spill] sm:$0xff] %v5454_v59 }
 0x428   :  { %7233 = vst [vmem:[#allocation168_spill] sm:$0xff] %v5456_v12  ;;  %v5458_v30 = vpop.f32.mrf.mxu0  ;;  %1676 = vmatmul.f32.gmra.mxu1 %v7235_v22  ;;  %v2522_v12 = vld [vmem:[#allocation7 + $0x248] sm:$0xff] }
 0x429   :  { %7234 = vst [vmem:[#allocation169_spill] sm:$0xff] %v5458_v30  ;;  %v7241_v30 = vld [vmem:[#allocation78_spill] sm:$0xff] }
 0x42a   :  { %1834 = vmatmul.f32.gmra.mxu2 %v4832_v15  ;;  %1989 = vmatmul.f32.gmra.mxu3 %v4569_v62  ;;  %v2475_v62 = vld [vmem:[#allocation7 + $0xd0] sm:$0xff] }
 0x42b   :  { %2594 = vmatmul.f32.gmra.mxu0 %v2209_v53  ;;  %2744 = vmatpush.msrb.mxu1 %v2475_v62  ;;  %v7242_v53 = vld [vmem:[#allocation38_spill] sm:$0xff] }
 0x42c   :  { %v1173_v47 = vadd.f32 %v7242_v53, %v5250_v19 }
 0x42d   :  { %v5465_v63 = vpop.f32.mrf.mxu1  ;;  %v5467_v44 = vpop.f32.mrf.mxu2 }
 0x42e   :  { %7237 = vst [vmem:[#allocation74_spill] sm:$0xff] %v5465_v63  ;;  %v5469_v59 = vpop.f32.mrf.mxu3 }
 0x42f   :  { %7238 = vst [vmem:[#allocation36_spill] sm:$0xff] %v5467_v44 }
 0x430   :  { %7239 = vst [vmem:[#allocation170_spill] sm:$0xff] %v5469_v59  ;;  %v5471_v32 = vpop.f32.mrf.mxu0  ;;  %1679 = vmatmul.f32.gmra.mxu1 %v7241_v30  ;;  %v2219_v59 = vmax.f32 %v1173_v47, 0.0 }
 0x431   :  { %7240 = vst [vmem:[#allocation171_spill] sm:$0xff] %v5471_v32 }
 0x432   :  { %1837 = vmatmul.f32.gmra.mxu2 %v4851_v0  ;;  %1992 = vmatmul.f32.gmra.mxu3 %v4579_v9  ;;  %v2523_v9 = vld [vmem:[#allocation7 + $0x250] sm:$0xff] }
 0x433   :  { %2597 = vmatmul.f32.gmra.mxu0 %v2214_v58  ;;  %v1176_v58 = vadd.f32 %v7248_v57, %v5250_v19 }
 0x434   :  { %3362 = vmatpush.msrb.mxu0 %v2523_v9 }
 0x435   :  { %v5478_v44 = vpop.f32.mrf.mxu1  ;;  %v5480_v32 = vpop.f32.mrf.mxu2  ;;  %v2224_v47 = vmax.f32 %v1176_v58, 0.0 }
 0x436   :  { %7243 = vst [vmem:[#allocation78_spill] sm:$0xff] %v5478_v44  ;;  %v5482_v63 = vpop.f32.mrf.mxu3  ;;  %3363 = vmatpush.msrb.mxu0 %v2522_v12 }
 0x437   :  { %7244 = vst [vmem:[#allocation38_spill] sm:$0xff] %v5480_v32  ;;  %v7253_v32 = vld [vmem:[#allocation86_spill] sm:$0xff] }
 0x438   :  { %7245 = vst [vmem:[#allocation172_spill] sm:$0xff] %v5482_v63  ;;  %v5484_v28 = vpop.f32.mrf.mxu0  ;;  %1682 = vmatmul.f32.gmra.mxu1 %v7247_v1  ;;  %v2474_v63 = vld [vmem:[#allocation7 + $0xc8] sm:$0xff] }
 0x439   :  { %7246 = vst [vmem:[#allocation173_spill] sm:$0xff] %v5484_v28  ;;  %2745 = vmatpush.msrb.mxu1 %v2474_v63 }
 0x43a   :  { %1840 = vmatmul.f32.gmra.mxu2 %v4862_v36  ;;  %1995 = vmatmul.f32.gmra.mxu3 %v4600_v54  ;;  %v7254_v54 = vld [vmem:[#allocation42_spill] sm:$0xff] }
 0x43b   :  { %2600 = vmatmul.f32.gmra.mxu0 %v2219_v59  ;;  %v1179_v59 = vadd.f32 %v7254_v54, %v5250_v19 }
 0x43d   :  { %v5491_v23 = vpop.f32.mrf.mxu1  ;;  %v5493_v62 = vpop.f32.mrf.mxu2  ;;  %v2229_v44 = vmax.f32 %v1179_v59, 0.0  ;;  %v2490_v59 = vld [vmem:[#allocation7 + $0x148] sm:$0xff] }
 0x43e   :  { %7249 = vst [vmem:[#allocation82_spill] sm:$0xff] %v5491_v23  ;;  %v5495_v53 = vpop.f32.mrf.mxu3  ;;  %2951 = vmatpush.msrb.mxu2 %v2490_v59 }
 0x43f   :  { %7250 = vst [vmem:[#allocation40_spill] sm:$0xff] %v5493_v62 }
 0x440   :  { %7251 = vst [vmem:[#allocation174_spill] sm:$0xff] %v5495_v53  ;;  %v5497_v28 = vpop.f32.mrf.mxu0  ;;  %1685 = vmatmul.f32.gmra.mxu1 %v7253_v32  ;;  %v2506_v53 = vld [vmem:[#allocation7 + $0x1c8] sm:$0xff] }
 0x441   :  { %7252 = vst [vmem:[#allocation175_spill] sm:$0xff] %v5497_v28  ;;  %v7259_v28 = vld [vmem:[#allocation90_spill] sm:$0xff]  ;;  %3157 = vmatpush.msrb.mxu3 %v2506_v53 }
 0x442   :  { %1843 = vmatmul.f32.gmra.mxu2 %v4873_v13  ;;  %1998 = vmatmul.f32.gmra.mxu3 %v4612_v8  ;;  %v7260_v8 = vld [vmem:[#allocation44_spill] sm:$0xff] }
 0x443   :  { %2603 = vmatmul.f32.gmra.mxu0 %v2224_v47  ;;  %v1182_v58 = vadd.f32 %v7260_v8, %v5250_v19 }
 0x445   :  { %v5504_v9 = vpop.f32.mrf.mxu1  ;;  %v5506_v57 = vpop.f32.mrf.mxu2 }
 0x446   :  { %7255 = vst [vmem:[#allocation86_spill] sm:$0xff] %v5504_v9  ;;  %v5508_v62 = vpop.f32.mrf.mxu3 }
 0x447   :  { %7256 = vst [vmem:[#allocation42_spill] sm:$0xff] %v5506_v57 }
 0x448   :  { %7257 = vst [vmem:[#allocation176_spill] sm:$0xff] %v5508_v62  ;;  %v5510_v23 = vpop.f32.mrf.mxu0  ;;  %1688 = vmatmul.f32.gmra.mxu1 %v7259_v28  ;;  %v2234_v62 = vmax.f32 %v1182_v58, 0.0 }
 0x449   :  { %7258 = vst [vmem:[#allocation177_spill] sm:$0xff] %v5510_v23  ;;  %v7265_v23 = vld [vmem:[#allocation94_spill] sm:$0xff] }
 0x44a   :  { %1846 = vmatmul.f32.gmra.mxu2 %v4887_v17  ;;  %2001 = vmatmul.f32.gmra.mxu3 %v4629_v11  ;;  %v7266_v11 = vld [vmem:[#allocation46_spill] sm:$0xff] }
 0x44b   :  { %2606 = vmatmul.f32.gmra.mxu0 %v2229_v44  ;;  %v1185_v44 = vadd.f32 %v7266_v11, %v5250_v19 }
 0x44d   :  { %v5517_v47 = vpop.f32.mrf.mxu1  ;;  %v5519_v54 = vpop.f32.mrf.mxu2 }
 0x44e   :  { %7261 = vst [vmem:[#allocation90_spill] sm:$0xff] %v5517_v47  ;;  %v5521_v57 = vpop.f32.mrf.mxu3  ;;  %v7271_v47 = vld [vmem:[#allocation98_spill] sm:$0xff] }
 0x44f   :  { %7262 = vst [vmem:[#allocation44_spill] sm:$0xff] %v5519_v54 }
 0x450   :  { %7263 = vst [vmem:[#allocation178_spill] sm:$0xff] %v5521_v57  ;;  %v5523_v9 = vpop.f32.mrf.mxu0  ;;  %1691 = vmatmul.f32.gmra.mxu1 %v7265_v23  ;;  %v2239_v57 = vmax.f32 %v1185_v44, 0.0 }
 0x451   :  { %7264 = vst [vmem:[#allocation179_spill] sm:$0xff] %v5523_v9 }
 0x452   :  { %1849 = vmatmul.f32.gmra.mxu2 %v4901_v43  ;;  %2004 = vmatmul.f32.gmra.mxu3 %v4641_v6  ;;  %v7272_v6 = vld [vmem:[#allocation48_spill] sm:$0xff] }
 0x453   :  { %2609 = vmatmul.f32.gmra.mxu0 %v2234_v62  ;;  %v1188_v63 = vadd.f32 %v7272_v6, %v5250_v19 }
 0x455   :  { %v5530_v8 = vpop.f32.mrf.mxu1  ;;  %v5532_v9 = vpop.f32.mrf.mxu2  ;;  %v2244_v44 = vmax.f32 %v1188_v63, 0.0 }
 0x456   :  { %7267 = vst [vmem:[#allocation94_spill] sm:$0xff] %v5530_v8  ;;  %v5534_v54 = vpop.f32.mrf.mxu3 }
 0x457   :  { %7268 = vst [vmem:[#allocation46_spill] sm:$0xff] %v5532_v9 }
 0x458   :  { %7269 = vst [vmem:[#allocation180_spill] sm:$0xff] %v5534_v54  ;;  %v5536_v58 = vpop.f32.mrf.mxu0  ;;  %1694 = vmatmul.f32.gmra.mxu1 %v7271_v47  ;;  %v7295_v54 = vld [vmem:[#allocation114_spill] sm:$0xff] }
 0x459   :  { %7270 = vst [vmem:[#allocation181_spill] sm:$0xff] %v5536_v58  ;;  %v7277_v58 = vld [vmem:[#allocation102_spill] sm:$0xff] }
 0x45a   :  { %1852 = vmatmul.f32.gmra.mxu2 %v4912_v24  ;;  %2007 = vmatmul.f32.gmra.mxu3 %v4662_v49  ;;  %v7278_v49 = vld [vmem:[#allocation50_spill] sm:$0xff] }
 0x45b   :  { %2612 = vmatmul.f32.gmra.mxu0 %v2239_v57  ;;  %v1191_v12 = vadd.f32 %v7278_v49, %v5250_v19 }
 0x45d   :  { %v5543_v62 = vpop.f32.mrf.mxu1  ;;  %v5545_v53 = vpop.f32.mrf.mxu2  ;;  %v2249_v9 = vmax.f32 %v1191_v12, 0.0 }
 0x45e   :  { %7273 = vst [vmem:[#allocation98_spill] sm:$0xff] %v5543_v62  ;;  %v5547_v59 = vpop.f32.mrf.mxu3 }
 0x45f   :  { %7274 = vst [vmem:[#allocation48_spill] sm:$0xff] %v5545_v53 }
 0x460   :  { %7275 = vst [vmem:[#allocation182_spill] sm:$0xff] %v5547_v59  ;;  %v5549_v11 = vpop.f32.mrf.mxu0  ;;  %1697 = vmatmul.f32.gmra.mxu1 %v7277_v58  ;;  %v2505_v59 = vld [vmem:[#allocation7 + $0x1c0] sm:$0xff] }
 0x461   :  { %7276 = vst [vmem:[#allocation183_spill] sm:$0xff] %v5549_v11  ;;  %v7283_v11 = vld [vmem:[#allocation106_spill] sm:$0xff]  ;;  %3158 = vmatpush.msrb.mxu3 %v2505_v59  ;;  %v2521_v59 = vld [vmem:[#allocation7 + $0x240] sm:$0xff] }
 0x462   :  { %1855 = vmatmul.f32.gmra.mxu2 %v4923_v7  ;;  %2010 = vmatmul.f32.gmra.mxu3 %v4674_v34  ;;  %v7284_v34 = vld [vmem:[#allocation52_spill] sm:$0xff] }
 0x463   :  { %2615 = vmatmul.f32.gmra.mxu0 %v2244_v44  ;;  %v1194_v63 = vadd.f32 %v7284_v34, %v5250_v19  ;;  %v7290_v34 = vld [vmem:[#allocation54_spill] sm:$0xff] }
 0x464   :  { %3364 = vmatpush.msrb.mxu0 %v2521_v59 }
 0x465   :  { %v5556_v57 = vpop.f32.mrf.mxu1  ;;  %v5558_v6 = vpop.f32.mrf.mxu2  ;;  %v2254_v12 = vmax.f32 %v1194_v63, 0.0 }
 0x466   :  { %7279 = vst [vmem:[#allocation102_spill] sm:$0xff] %v5556_v57  ;;  %v5560_v53 = vpop.f32.mrf.mxu3  ;;  %v2473_v57 = vld [vmem:[#allocation7 + $0xc0] sm:$0xff] }
 0x467   :  { %7280 = vst [vmem:[#allocation50_spill] sm:$0xff] %v5558_v6  ;;  %2746 = vmatpush.msrb.mxu1 %v2473_v57  ;;  %v2470_v57 = vld [vmem:[#allocation7 + $0xa8] sm:$0xff] }
 0x468   :  { %7281 = vst [vmem:[#allocation184_spill] sm:$0xff] %v5560_v53  ;;  %v5562_v62 = vpop.f32.mrf.mxu0  ;;  %1700 = vmatmul.f32.gmra.mxu1 %v7283_v11  ;;  %v2489_v53 = vld [vmem:[#allocation7 + $0x140] sm:$0xff] }
 0x469   :  { %7282 = vst [vmem:[#allocation185_spill] sm:$0xff] %v5562_v62  ;;  %v7289_v62 = vld [vmem:[#allocation110_spill] sm:$0xff]  ;;  %2952 = vmatpush.msrb.mxu2 %v2489_v53 }
 0x46a   :  { %1858 = vmatmul.f32.gmra.mxu2 %v4937_v48  ;;  %2013 = vmatmul.f32.gmra.mxu3 %v4686_v5  ;;  %v2472_v5 = vld [vmem:[#allocation7 + $0xb8] sm:$0xff] }
 0x46b   :  { %2618 = vmatmul.f32.gmra.mxu0 %v2249_v9  ;;  %v2471_v9 = vld [vmem:[#allocation7 + $0xb0] sm:$0xff]  ;;  %2747 = vmatpush.msrb.mxu1 %v2472_v5 }
 0x46c   :  { %v2467_v5 = vld [vmem:[#allocation7 + $0x90] sm:$0xff] }
 0x46d   :  { %v5569_v44 = vpop.f32.mrf.mxu1  ;;  %v5571_v49 = vpop.f32.mrf.mxu2  ;;  %2748 = vmatpush.msrb.mxu1 %v2471_v9  ;;  %v7296_v9 = vld [vmem:[#allocation57_spill] sm:$0xff] }
 0x46e   :  { %7285 = vst [vmem:[#allocation106_spill] sm:$0xff] %v5569_v44  ;;  %v5573_v6 = vpop.f32.mrf.mxu3 }
 0x46f   :  { %7286 = vst [vmem:[#allocation52_spill] sm:$0xff] %v5571_v49  ;;  %v1197_v49 = vadd.f32 %v7290_v34, %v5250_v19  ;;  %2749 = vmatpush.msrb.mxu1 %v2470_v57  ;;  %v1200_v34 = vadd.f32 %v7296_v9, %v5250_v19  ;;  %v2466_v57 = vld [vmem:[#allocation7 + $0x88] sm:$0xff] }
 0x470   :  { %7287 = vst [vmem:[#allocation186_spill] sm:$0xff] %v5573_v6  ;;  %v5575_v8 = vpop.f32.mrf.mxu0  ;;  %1703 = vmatmul.f32.gmra.mxu1 %v7289_v62 }
 0x471   :  { %7288 = vst [vmem:[#allocation187_spill] sm:$0xff] %v5575_v8  ;;  %v2259_v53 = vmax.f32 %v1197_v49, 0.0 }
 0x472   :  { %1861 = vmatmul.f32.gmra.mxu2 %v4951_v21  ;;  %2016 = vmatmul.f32.gmra.mxu3 %v4701_v40  ;;  %v2469_v40 = vld [vmem:[#allocation7 + $0xa0] sm:$0xff] }
 0x473   :  { %2621 = vmatmul.f32.gmra.mxu0 %v2254_v12  ;;  %v2468_v12 = vld [vmem:[#allocation7 + $0x98] sm:$0xff]  ;;  %2750 = vmatpush.msrb.mxu1 %v2469_v40  ;;  %v2264_v40 = vmax.f32 %v1200_v34, 0.0 }
 0x475   :  { %v5582_v8 = vpop.f32.mrf.mxu1  ;;  %v5584_v44 = vpop.f32.mrf.mxu2  ;;  %2751 = vmatpush.msrb.mxu1 %v2468_v12 }
 0x476   :  { %7291 = vst [vmem:[#allocation110_spill] sm:$0xff] %v5582_v8  ;;  %v5586_v63 = vpop.f32.mrf.mxu3 }
 0x477   :  { %7292 = vst [vmem:[#allocation54_spill] sm:$0xff] %v5584_v44  ;;  %2752 = vmatpush.msrb.mxu1 %v2467_v5 }
 0x478   :  { %7293 = vst [vmem:[#allocation188_spill] sm:$0xff] %v5586_v63  ;;  %v5588_v6 = vpop.f32.mrf.mxu0  ;;  %1706 = vmatmul.f32.gmra.mxu1 %v7295_v54 }
 0x479   :  { %7294 = vst [vmem:[#allocation189_spill] sm:$0xff] %v5588_v6  ;;  %2753 = vmatpush.msrb.mxu1 %v2466_v57  ;;  %v7307_v57 = vld [vmem:[#allocation62_spill] sm:$0xff] }
 0x47a   :  { %1864 = vmatmul.f32.gmra.mxu2 %v7206_v27  ;;  %2019 = vmatmul.f32.gmra.mxu3 %v4728_v41  ;;  %v2465_v41 = vld [vmem:[#allocation7 + $0x80] sm:$0xff] }
 0x47b   :  { %2624 = vmatmul.f32.gmra.mxu0 %v2259_v53  ;;  %2754 = vmatpush.msrb.mxu1 %v2465_v41  ;;  %v7301_v53 = vld [vmem:[#allocation60_spill] sm:$0xff]  ;;  %v1206_v41 = vadd.f32 %v7307_v57, %v5250_v19 }
 0x47c   :  { %v1203_v59 = vadd.f32 %v7301_v53, %v5250_v19 }
 0x47d   :  { %v5595_v44 = vpop.f32.mrf.mxu1  ;;  %v5597_v6 = vpop.f32.mrf.mxu2 }
 0x47e   :  { %7297 = vst [vmem:[#allocation114_spill] sm:$0xff] %v5595_v44  ;;  %v5599_v49 = vpop.f32.mrf.mxu3  ;;  %v2269_v34 = vmax.f32 %v1203_v59, 0.0  ;;  %v2274_v59 = vmax.f32 %v1206_v41, 0.0  ;;  %v2504_v44 = vld [vmem:[#allocation7 + $0x1b8] sm:$0xff] }
 0x47f   :  { %7298 = vst [vmem:[#allocation57_spill] sm:$0xff] %v5597_v6  ;;  %v7306_v6 = vld [vmem:[#allocation121_spill] sm:$0xff]  ;;  %3159 = vmatpush.msrb.mxu3 %v2504_v44  ;;  %v7320_v44 = vld [vmem:[#allocation12_spill] sm:$0xff] }
 0x480   :  { %7299 = vst [vmem:[#allocation190_spill] sm:$0xff] %v5599_v49  ;;  %v5601_v8 = vpop.f32.mrf.mxu0  ;;  %1709 = vmatmul.f32.gmra.mxu1 %v5200_v20  ;;  %v7325_v49 = vld [vmem:[#allocation13_spill] sm:$0xff] }
 0x481   :  { %7300 = vst [vmem:[#allocation191_spill] sm:$0xff] %v5601_v8 }
 0x482   :  { %1867 = vmatmul.f32.gmra.mxu2 %v7211_v39  ;;  %2022 = vmatmul.f32.gmra.mxu3 %v4752_v56  ;;  %v2488_v56 = vld [vmem:[#allocation7 + $0x138] sm:$0xff] }
 0x483   :  { %2627 = vmatmul.f32.gmra.mxu0 %v2264_v40  ;;  %2953 = vmatpush.msrb.mxu2 %v2488_v56 }
 0x485   :  { %v5608_v12 = vpop.f32.mrf.mxu1  ;;  %v5610_v9 = vpop.f32.mrf.mxu2 }
 0x486   :  { %7302 = vst [vmem:[#allocation60_spill] sm:$0xff] %v5608_v12  ;;  %v5612_v5 = vpop.f32.mrf.mxu3  ;;  %v7312_v12 = vld [vmem:[#allocation125_spill] sm:$0xff] }
 0x487   :  { %7303 = vst [vmem:[#allocation192_spill] sm:$0xff] %v5610_v9 }
 0x488   :  { %7304 = vst [vmem:[#allocation193_spill] sm:$0xff] %v5612_v5  ;;  %v5614_v8 = vpop.f32.mrf.mxu0  ;;  %1712 = vmatmul.f32.gmra.mxu1 %v7306_v6 }
 0x489   :  { %7305 = vst [vmem:[#allocation194_spill] sm:$0xff] %v5614_v8 }
 0x48a   :  { %1870 = vmatmul.f32.gmra.mxu2 %v4999_v31  ;;  %2025 = vmatmul.f32.gmra.mxu3 %v4767_v33  ;;  %v7313_v33 = vld [vmem:[#allocation65_spill] sm:$0xff] }
 0x48b   :  { %2630 = vmatmul.f32.gmra.mxu0 %v2269_v34  ;;  %v1209_v34 = vadd.f32 %v7313_v33, %v5250_v19 }
 0x48d   :  { %v5621_v40 = vpop.f32.mrf.mxu1  ;;  %v5623_v53 = vpop.f32.mrf.mxu2  ;;  %v2279_v5 = vmax.f32 %v1209_v34, 0.0 }
 0x48e   :  { %7308 = vst [vmem:[#allocation121_spill] sm:$0xff] %v5621_v40  ;;  %v5625_v9 = vpop.f32.mrf.mxu3 }
 0x48f   :  { %7309 = vst [vmem:[#allocation62_spill] sm:$0xff] %v5623_v53  ;;  %v7316_v53 = vld [vmem:[#allocation129_spill] sm:$0xff] }
 0x490   :  { %7310 = vst [vmem:[#allocation195_spill] sm:$0xff] %v5625_v9  ;;  %v5627_v8 = vpop.f32.mrf.mxu0  ;;  %1715 = vmatmul.f32.gmra.mxu1 %v7312_v12  ;;  %v5639_v40 = vperm.slane %v7316_v53, 1  ;;  %v7319_v9 = vld [vmem:[#allocation130_spill] sm:$0xff]  ;;  %v7321_v53 = vld [vmem:[#allocation69_spill] sm:$0xff] }
 0x491   :  { %7311 = vst [vmem:[#allocation196_spill] sm:$0xff] %v5627_v8  ;;  %v1212_v33 = vadd.f32 %v7321_v53, %v5250_v19 }
 0x492   :  { %1873 = vmatmul.f32.gmra.mxu2 %v5010_v61  ;;  %2028 = vmatmul.f32.gmra.mxu3 %v4782_v38  ;;  %v2520_v38 = vld [vmem:[#allocation7 + $0x238] sm:$0xff]  ;;  %v1331_v63 = vadd.f32 %v7325_v49, %v5639_v40  ;;  %v7330_v49 = vld [vmem:[#allocation14_spill] sm:$0xff] }
 0x493   :  { %2633 = vmatmul.f32.gmra.mxu0 %v2274_v59  ;;  %v1328_v59 = vadd.f32 %v7320_v44, %v5639_v40  ;;  %v2284_v44 = vmax.f32 %v1212_v33, 0.0 }
 0x494   :  { %3365 = vmatpush.msrb.mxu0 %v2520_v38  ;;  %v2140_v53 = vmax.f32 %v1331_v63, 0.0 }
 0x495   :  { %v5634_v56 = vpop.f32.mrf.mxu1  ;;  %v5636_v57 = vpop.f32.mrf.mxu2 }
 0x496   :  { %7314 = vst [vmem:[#allocation125_spill] sm:$0xff] %v5634_v56  ;;  %v5641_v8 = vpop.f32.mrf.mxu3 }
 0x497   :  { %7315 = vst [vmem:[#allocation65_spill] sm:$0xff] %v5636_v57 }
 0x498   :  { %7317 = vst [vmem:[#allocation129_spill] sm:$0xff] %v5641_v8  ;;  %v5643_v41 = vpop.f32.mrf.mxu0  ;;  %1718 = vmatmul.f32.gmra.mxu1 %v7319_v9 }
 0x499   :  { %7318 = vst [vmem:[#allocation197_spill] sm:$0xff] %v5643_v41  ;;  %v2135_v41 = vmax.f32 %v1328_v59, 0.0 }
 0x49a   :  { %1876 = vmatmul.f32.gmra.mxu2 %v7224_v10  ;;  %2031 = vmatmul.f32.gmra.mxu3 %v4797_v29  ;;  %v7326_v29 = vld [vmem:[#allocation73_spill] sm:$0xff] }
 0x49b   :  { %2636 = vmatmul.f32.gmra.mxu0 %v2279_v5  ;;  %v1215_v5 = vadd.f32 %v7326_v29, %v5250_v19 }
 0x49d   :  { %v5652_v57 = vpop.f32.mrf.mxu1  ;;  %v5654_v56 = vpop.f32.mrf.mxu2  ;;  %v2289_v33 = vmax.f32 %v1215_v5, 0.0 }
 0x49e   :  { %7322 = vst [vmem:[#allocation130_spill] sm:$0xff] %v5652_v57  ;;  %v5656_v8 = vpop.f32.mrf.mxu3  ;;  %v7340_v57 = vld [vmem:[#allocation16_spill] sm:$0xff] }
 0x49f   :  { %7323 = vst [vmem:[#allocation12_spill] sm:$0xff] %v5654_v56 }
 0x4a0   :  { %v5658_v34 = vpop.f32.mrf.mxu0  ;;  %2755 = vmatmul.f32.vlgmr.msrb.gmra.mxu1 %v2135_v41 }
 0x4a1   :  { %7324 = vst [vmem:[#allocation69_spill] sm:$0xff] %v5658_v34  ;;  %v1334_v34 = vadd.f32 %v7330_v49, %v5639_v40 }
 0x4a2   :  { %1879 = vmatmul.f32.gmra.mxu2 %v7229_v46  ;;  %2034 = vmatmul.f32.gmra.mxu3 %v4807_v60  ;;  %v2487_v60 = vld [vmem:[#allocation7 + $0x130] sm:$0xff] }
 0x4a3   :  { %2639 = vmatmul.f32.gmra.mxu0 %v2284_v44  ;;  %2954 = vmatpush.msrb.mxu2 %v2487_v60  ;;  %v7331_v44 = vld [vmem:[#allocation77_spill] sm:$0xff] }
 0x4a4   :  { %v1218_v29 = vadd.f32 %v7331_v44, %v5250_v19  ;;  %v7336_v60 = vld [vmem:[#allocation81_spill] sm:$0xff] }
 0x4a5   :  { %v5666_v38 = vpop.f32.mrf.mxu1  ;;  %v5668_v59 = vpop.f32.mrf.mxu2  ;;  %v1221_v44 = vadd.f32 %v7336_v60, %v5250_v19 }
 0x4a6   :  { %7327 = vst [vmem:[#allocation13_spill] sm:$0xff] %v5666_v38  ;;  %v5670_v56 = vpop.f32.mrf.mxu3  ;;  %v2294_v49 = vmax.f32 %v1218_v29, 0.0  ;;  %v2503_v38 = vld [vmem:[#allocation7 + $0x1b0] sm:$0xff] }
 0x4a7   :  { %7328 = vst [vmem:[#allocation73_spill] sm:$0xff] %v5668_v59  ;;  %3160 = vmatpush.msrb.mxu3 %v2503_v38  ;;  %v7341_v38 = vld [vmem:[#allocation85_spill] sm:$0xff] }
 0x4a8   :  { %v5672_v41 = vpop.f32.mrf.mxu0  ;;  %2758 = vmatmul.f32.gmra.mxu1 %v2140_v53 }
 0x4a9   :  { %7329 = vst [vmem:[#allocation198_spill] sm:$0xff] %v5672_v41  ;;  %v2145_v41 = vmax.f32 %v1334_v34, 0.0 }
 0x4aa   :  { %1882 = vmatmul.f32.gmra.mxu2 %v7235_v22  ;;  %2037 = vmatmul.f32.gmra.mxu3 %v4818_v37  ;;  %v7335_v37 = vld [vmem:[#allocation15_spill] sm:$0xff] }
 0x4ab   :  { %2642 = vmatmul.f32.gmra.mxu0 %v2289_v33  ;;  %v1337_v33 = vadd.f32 %v7335_v37, %v5639_v40  ;;  %v2299_v37 = vmax.f32 %v1221_v44, 0.0 }
 0x4ad   :  { %v5680_v63 = vpop.f32.mrf.mxu1  ;;  %v5682_v59 = vpop.f32.mrf.mxu2 }
 0x4ae   :  { %7332 = vst [vmem:[#allocation14_spill] sm:$0xff] %v5680_v63  ;;  %v5684_v53 = vpop.f32.mrf.mxu3  ;;  %v2519_v63 = vld [vmem:[#allocation7 + $0x230] sm:$0xff] }
 0x4af   :  { %7333 = vst [vmem:[#allocation77_spill] sm:$0xff] %v5682_v59  ;;  %3366 = vmatpush.msrb.mxu0 %v2519_v63 }
 0x4b0   :  { %v5686_v5 = vpop.f32.mrf.mxu0  ;;  %2761 = vmatmul.f32.gmra.mxu1 %v2145_v41 }
 0x4b1   :  { %7334 = vst [vmem:[#allocation199_spill] sm:$0xff] %v5686_v5  ;;  %v2150_v5 = vmax.f32 %v1337_v33, 0.0 }
 0x4b2   :  { %1885 = vmatmul.f32.gmra.mxu2 %v7241_v30  ;;  %2040 = vmatmul.f32.gmra.mxu3 %v4832_v15  ;;  %v1340_v15 = vadd.f32 %v7340_v57, %v5639_v40 }
 0x4b3   :  { %2645 = vmatmul.f32.gmra.mxu0 %v2294_v49  ;;  %v1224_v49 = vadd.f32 %v7341_v38, %v5250_v19 }
 0x4b5   :  { %v5694_v34 = vpop.f32.mrf.mxu1  ;;  %v5696_v59 = vpop.f32.mrf.mxu2  ;;  %v2304_v57 = vmax.f32 %v1224_v49, 0.0 }
 0x4b6   :  { %7337 = vst [vmem:[#allocation15_spill] sm:$0xff] %v5694_v34  ;;  %v5698_v41 = vpop.f32.mrf.mxu3 }
 0x4b7   :  { %7338 = vst [vmem:[#allocation81_spill] sm:$0xff] %v5696_v59  ;;  %v7345_v59 = vld [vmem:[#allocation17_spill] sm:$0xff] }
 0x4b8   :  { %v5700_v29 = vpop.f32.mrf.mxu0  ;;  %2764 = vmatmul.f32.gmra.mxu1 %v2150_v5  ;;  %v1343_v34 = vadd.f32 %v7345_v59, %v5639_v40  ;;  %v7350_v59 = vld [vmem:[#allocation18_spill] sm:$0xff] }
 0x4b9   :  { %7339 = vst [vmem:[#allocation200_spill] sm:$0xff] %v5700_v29  ;;  %v2155_v29 = vmax.f32 %v1340_v15, 0.0 }
 0x4ba   :  { %1888 = vmatmul.f32.gmra.mxu2 %v7247_v1  ;;  %2043 = vmatmul.f32.gmra.mxu3 %v4851_v0  ;;  %v7346_v0 = vld [vmem:[#allocation89_spill] sm:$0xff]  ;;  %v2160_v38 = vmax.f32 %v1343_v34, 0.0 }
 0x4bb   :  { %2648 = vmatmul.f32.gmra.mxu0 %v2299_v37  ;;  %v1227_v63 = vadd.f32 %v7346_v0, %v5250_v19 }
 0x4bd   :  { %v5708_v33 = vpop.f32.mrf.mxu1  ;;  %v5710_v60 = vpop.f32.mrf.mxu2  ;;  %v2309_v49 = vmax.f32 %v1227_v63, 0.0 }
 0x4be   :  { %7342 = vst [vmem:[#allocation16_spill] sm:$0xff] %v5708_v33  ;;  %v5712_v5 = vpop.f32.mrf.mxu3  ;;  %v7360_v33 = vld [vmem:[#allocation20_spill] sm:$0xff] }
 0x4bf   :  { %7343 = vst [vmem:[#allocation85_spill] sm:$0xff] %v5710_v60 }
 0x4c0   :  { %v5714_v44 = vpop.f32.mrf.mxu0  ;;  %2767 = vmatmul.f32.gmra.mxu1 %v2155_v29 }
 0x4c1   :  { %7344 = vst [vmem:[#allocation201_spill] sm:$0xff] %v5714_v44  ;;  %v1346_v44 = vadd.f32 %v7350_v59, %v5639_v40 }
 0x4c2   :  { %1891 = vmatmul.f32.gmra.mxu2 %v7253_v32  ;;  %2046 = vmatmul.f32.gmra.mxu3 %v4862_v36  ;;  %v2486_v36 = vld [vmem:[#allocation7 + $0x128] sm:$0xff] }
 0x4c3   :  { %2651 = vmatmul.f32.gmra.mxu0 %v2304_v57  ;;  %2955 = vmatpush.msrb.mxu2 %v2486_v36  ;;  %v7351_v57 = vld [vmem:[#allocation93_spill] sm:$0xff] }
 0x4c4   :  { %v1230_v0 = vadd.f32 %v7351_v57, %v5250_v19  ;;  %v7356_v36 = vld [vmem:[#allocation97_spill] sm:$0xff] }
 0x4c5   :  { %v5722_v37 = vpop.f32.mrf.mxu1  ;;  %v5724_v15 = vpop.f32.mrf.mxu2  ;;  %v1233_v57 = vadd.f32 %v7356_v36, %v5250_v19 }
 0x4c6   :  { %7347 = vst [vmem:[#allocation17_spill] sm:$0xff] %v5722_v37  ;;  %v5726_v60 = vpop.f32.mrf.mxu3  ;;  %v2314_v59 = vmax.f32 %v1230_v0, 0.0  ;;  %v2502_v37 = vld [vmem:[#allocation7 + $0x1a8] sm:$0xff] }
 0x4c7   :  { %7348 = vst [vmem:[#allocation89_spill] sm:$0xff] %v5724_v15  ;;  %3161 = vmatpush.msrb.mxu3 %v2502_v37  ;;  %v7361_v37 = vld [vmem:[#allocation101_spill] sm:$0xff] }
 0x4c8   :  { %v5728_v29 = vpop.f32.mrf.mxu0  ;;  %2770 = vmatmul.f32.gmra.mxu1 %v2160_v38 }
 0x4c9   :  { %7349 = vst [vmem:[#allocation202_spill] sm:$0xff] %v5728_v29  ;;  %v2165_v29 = vmax.f32 %v1346_v44, 0.0 }
 0x4ca   :  { %1894 = vmatmul.f32.gmra.mxu2 %v7259_v28  ;;  %2049 = vmatmul.f32.gmra.mxu3 %v4873_v13  ;;  %v7355_v13 = vld [vmem:[#allocation19_spill] sm:$0xff] }
 0x4cb   :  { %2654 = vmatmul.f32.gmra.mxu0 %v2309_v49  ;;  %v1349_v49 = vadd.f32 %v7355_v13, %v5639_v40  ;;  %v2319_v13 = vmax.f32 %v1233_v57, 0.0 }
 0x4cd   :  { %v5736_v34 = vpop.f32.mrf.mxu1  ;;  %v5738_v15 = vpop.f32.mrf.mxu2 }
 0x4ce   :  { %7352 = vst [vmem:[#allocation18_spill] sm:$0xff] %v5736_v34  ;;  %v5740_v38 = vpop.f32.mrf.mxu3  ;;  %v2518_v34 = vld [vmem:[#allocation7 + $0x228] sm:$0xff] }
 0x4cf   :  { %7353 = vst [vmem:[#allocation93_spill] sm:$0xff] %v5738_v15  ;;  %3367 = vmatpush.msrb.mxu0 %v2518_v34 }
 0x4d0   :  { %v5742_v63 = vpop.f32.mrf.mxu0  ;;  %2773 = vmatmul.f32.gmra.mxu1 %v2165_v29 }
 0x4d1   :  { %7354 = vst [vmem:[#allocation203_spill] sm:$0xff] %v5742_v63  ;;  %v2170_v63 = vmax.f32 %v1349_v49, 0.0 }
 0x4d2   :  { %1897 = vmatmul.f32.gmra.mxu2 %v7265_v23  ;;  %2052 = vmatmul.f32.gmra.mxu3 %v4887_v17  ;;  %v1352_v17 = vadd.f32 %v7360_v33, %v5639_v40 }
 0x4d3   :  { %2657 = vmatmul.f32.gmra.mxu0 %v2314_v59  ;;  %v1236_v59 = vadd.f32 %v7361_v37, %v5250_v19 }
 0x4d5   :  { %v5750_v44 = vpop.f32.mrf.mxu1  ;;  %v5752_v15 = vpop.f32.mrf.mxu2  ;;  %v2324_v33 = vmax.f32 %v1236_v59, 0.0 }
 0x4d6   :  { %7357 = vst [vmem:[#allocation19_spill] sm:$0xff] %v5750_v44  ;;  %v5754_v29 = vpop.f32.mrf.mxu3 }
 0x4d7   :  { %7358 = vst [vmem:[#allocation97_spill] sm:$0xff] %v5752_v15  ;;  %v7365_v15 = vld [vmem:[#allocation21_spill] sm:$0xff] }
 0x4d8   :  { %v5756_v0 = vpop.f32.mrf.mxu0  ;;  %2776 = vmatmul.f32.gmra.mxu1 %v2170_v63  ;;  %v1355_v44 = vadd.f32 %v7365_v15, %v5639_v40  ;;  %v7370_v15 = vld [vmem:[#allocation23_spill] sm:$0xff] }
 0x4d9   :  { %7359 = vst [vmem:[#allocation204_spill] sm:$0xff] %v5756_v0  ;;  %v2175_v0 = vmax.f32 %v1352_v17, 0.0 }
 0x4da   :  { %1900 = vmatmul.f32.gmra.mxu2 %v7271_v47  ;;  %2055 = vmatmul.f32.gmra.mxu3 %v4901_v43  ;;  %v7366_v43 = vld [vmem:[#allocation105_spill] sm:$0xff]  ;;  %v2180_v37 = vmax.f32 %v1355_v44, 0.0 }
 0x4db   :  { %2660 = vmatmul.f32.gmra.mxu0 %v2319_v13  ;;  %v1239_v34 = vadd.f32 %v7366_v43, %v5250_v19 }
 0x4dd   :  { %v5764_v49 = vpop.f32.mrf.mxu1  ;;  %v5766_v36 = vpop.f32.mrf.mxu2  ;;  %v2329_v59 = vmax.f32 %v1239_v34, 0.0 }
 0x4de   :  { %7362 = vst [vmem:[#allocation20_spill] sm:$0xff] %v5764_v49  ;;  %v5768_v63 = vpop.f32.mrf.mxu3  ;;  %v7380_v49 = vld [vmem:[#allocation27_spill] sm:$0xff] }
 0x4df   :  { %7363 = vst [vmem:[#allocation101_spill] sm:$0xff] %v5766_v36 }
 0x4e0   :  { %v5770_v57 = vpop.f32.mrf.mxu0  ;;  %2779 = vmatmul.f32.gmra.mxu1 %v2175_v0 }
 0x4e1   :  { %7364 = vst [vmem:[#allocation205_spill] sm:$0xff] %v5770_v57  ;;  %v1358_v57 = vadd.f32 %v7370_v15, %v5639_v40 }
 0x4e2   :  { %1903 = vmatmul.f32.gmra.mxu2 %v7277_v58  ;;  %2058 = vmatmul.f32.gmra.mxu3 %v4912_v24  ;;  %v2485_v24 = vld [vmem:[#allocation7 + $0x120] sm:$0xff] }
 0x4e3   :  { %2663 = vmatmul.f32.gmra.mxu0 %v2324_v33  ;;  %2956 = vmatpush.msrb.mxu2 %v2485_v24  ;;  %v7371_v33 = vld [vmem:[#allocation109_spill] sm:$0xff] }
 0x4e4   :  { %v1242_v43 = vadd.f32 %v7371_v33, %v5250_v19  ;;  %v7376_v24 = vld [vmem:[#allocation113_spill] sm:$0xff] }
 0x4e5   :  { %v5778_v13 = vpop.f32.mrf.mxu1  ;;  %v5780_v17 = vpop.f32.mrf.mxu2  ;;  %v1245_v33 = vadd.f32 %v7376_v24, %v5250_v19 }
 0x4e6   :  { %7367 = vst [vmem:[#allocation21_spill] sm:$0xff] %v5778_v13  ;;  %v5782_v36 = vpop.f32.mrf.mxu3  ;;  %v2334_v15 = vmax.f32 %v1242_v43, 0.0  ;;  %v2501_v13 = vld [vmem:[#allocation7 + $0x1a0] sm:$0xff] }
 0x4e7   :  { %7368 = vst [vmem:[#allocation105_spill] sm:$0xff] %v5780_v17  ;;  %3162 = vmatpush.msrb.mxu3 %v2501_v13  ;;  %v2484_v13 = vld [vmem:[#allocation7 + $0x118] sm:$0xff] }
 0x4e8   :  { %v5784_v0 = vpop.f32.mrf.mxu0  ;;  %2782 = vmatmul.f32.gmra.mxu1 %v2180_v37  ;;  %2957 = vmatpush.msrb.mxu2 %v2484_v13 }
 0x4e9   :  { %7369 = vst [vmem:[#allocation206_spill] sm:$0xff] %v5784_v0  ;;  %v2185_v0 = vmax.f32 %v1358_v57, 0.0 }
 0x4ea   :  { %1906 = vmatmul.f32.gmra.mxu2 %v7283_v11  ;;  %2061 = vmatmul.f32.gmra.mxu3 %v4923_v7  ;;  %v7375_v7 = vld [vmem:[#allocation25_spill] sm:$0xff] }
 0x4eb   :  { %2666 = vmatmul.f32.gmra.mxu0 %v2329_v59  ;;  %v1361_v59 = vadd.f32 %v7375_v7, %v5639_v40  ;;  %v2339_v7 = vmax.f32 %v1245_v33, 0.0 }
 0x4ed   :  { %v5792_v44 = vpop.f32.mrf.mxu1  ;;  %v5794_v17 = vpop.f32.mrf.mxu2 }
 0x4ee   :  { %7372 = vst [vmem:[#allocation23_spill] sm:$0xff] %v5792_v44  ;;  %v5796_v37 = vpop.f32.mrf.mxu3  ;;  %v2517_v44 = vld [vmem:[#allocation7 + $0x220] sm:$0xff] }
 0x4ef   :  { %7373 = vst [vmem:[#allocation109_spill] sm:$0xff] %v5794_v17  ;;  %3368 = vmatpush.msrb.mxu0 %v2517_v44  ;;  %v2481_v44 = vld [vmem:[#allocation7 + $0x100] sm:$0xff] }
 0x4f0   :  { %v5798_v34 = vpop.f32.mrf.mxu0  ;;  %2785 = vmatmul.f32.gmra.mxu1 %v2185_v0 }
 0x4f1   :  { %7374 = vst [vmem:[#allocation207_spill] sm:$0xff] %v5798_v34  ;;  %v2190_v34 = vmax.f32 %v1361_v59, 0.0 }
 0x4f2   :  { %1909 = vmatmul.f32.gmra.mxu2 %v7289_v62  ;;  %2064 = vmatmul.f32.gmra.mxu3 %v4937_v48  ;;  %v1364_v48 = vadd.f32 %v7380_v49, %v5639_v40  ;;  %v2482_v49 = vld [vmem:[#allocation7 + $0x108] sm:$0xff] }
 0x4f3   :  { %2669 = vmatmul.f32.gmra.mxu0 %v2334_v15  ;;  %v7381_v15 = vld [vmem:[#allocation117_spill] sm:$0xff] }
 0x4f4   :  { %v1248_v59 = vadd.f32 %v7381_v15, %v5250_v19  ;;  %v2195_v33 = vmax.f32 %v1364_v48, 0.0  ;;  %v7386_v48 = vld [vmem:[#allocation120_spill] sm:$0xff] }
 0x4f5   :  { %v5806_v57 = vpop.f32.mrf.mxu1  ;;  %v5808_v17 = vpop.f32.mrf.mxu2  ;;  %v1251_v15 = vadd.f32 %v7386_v48, %v5250_v19 }
 0x4f6   :  { %7377 = vst [vmem:[#allocation25_spill] sm:$0xff] %v5806_v57  ;;  %v5810_v0 = vpop.f32.mrf.mxu3 }
 0x4f7   :  { %7378 = vst [vmem:[#allocation113_spill] sm:$0xff] %v5808_v17 }
 0x4f8   :  { %v5812_v43 = vpop.f32.mrf.mxu0  ;;  %2788 = vmatmul.f32.gmra.mxu1 %v2190_v34  ;;  %v2483_v34 = vld [vmem:[#allocation7 + $0x110] sm:$0xff] }
 0x4f9   :  { %7379 = vst [vmem:[#allocation208_spill] sm:$0xff] %v5812_v43  ;;  %2958 = vmatpush.msrb.mxu2 %v2483_v34 }
 0x4fa   :  { %1912 = vmatmul.f32.gmra.mxu2 %v7295_v54  ;;  %2067 = vmatmul.f32.gmra.mxu3 %v4951_v21  ;;  %v2344_v21 = vmax.f32 %v1248_v59, 0.0 }
 0x4fb   :  { %2672 = vmatmul.f32.gmra.mxu0 %v2339_v7  ;;  %2959 = vmatpush.msrb.mxu2 %v2482_v49  ;;  %v7385_v7 = vld [vmem:[#allocation29_spill] sm:$0xff] }
 0x4fc   :  { %v1367_v13 = vadd.f32 %v7385_v7, %v5639_v40  ;;  %v2349_v7 = vmax.f32 %v1251_v15, 0.0 }
 0x4fd   :  { %v5820_v24 = vpop.f32.mrf.mxu1  ;;  %v5822_v43 = vpop.f32.mrf.mxu2  ;;  %2960 = vmatpush.msrb.mxu2 %v2481_v44 }
 0x4fe   :  { %7382 = vst [vmem:[#allocation27_spill] sm:$0xff] %v5820_v24  ;;  %v5824_v17 = vpop.f32.mrf.mxu3 }
 0x4ff   :  { %7383 = vst [vmem:[#allocation117_spill] sm:$0xff] %v5822_v43 }
 0x500   :  { %v5826_v57 = vpop.f32.mrf.mxu0  ;;  %2791 = vmatmul.f32.gmra.mxu1 %v2195_v33  ;;  %v2200_v33 = vmax.f32 %v1367_v13, 0.0 }
 0x501   :  { %7384 = vst [vmem:[#allocation209_spill] sm:$0xff] %v5826_v57  ;;  %v7390_v57 = vld [vmem:[#allocation31_spill] sm:$0xff] }
 0x502   :  { %1915 = vmatmul.f32.gmra.mxu2 %v5200_v20  ;;  %2070 = vmatmul.f32.gmra.mxu3 %v7206_v27  ;;  %v1370_v24 = vadd.f32 %v7390_v57, %v5639_v40  ;;  %v2500_v27 = vld [vmem:[#allocation7 + $0x198] sm:$0xff] }
 0x503   :  { %2675 = vmatmul.f32.gmra.mxu0 %v2344_v21  ;;  %3163 = vmatpush.msrb.mxu3 %v2500_v27  ;;  %v7391_v21 = vld [vmem:[#allocation124_spill] sm:$0xff] }
 0x504   :  { %v1254_v44 = vadd.f32 %v7391_v21, %v5250_v19  ;;  %v7396_v27 = vld [vmem:[#allocation128_spill] sm:$0xff] }
 0x505   :  { %v5834_v34 = vpop.f32.mrf.mxu1  ;;  %v5836_v43 = vpop.f32.mrf.mxu2  ;;  %v1257_v21 = vadd.f32 %v7396_v27, %v5250_v19 }
 0x506   :  { %7387 = vst [vmem:[#allocation29_spill] sm:$0xff] %v5834_v34  ;;  %v5838_v49 = vpop.f32.mrf.mxu3  ;;  %v2354_v57 = vmax.f32 %v1254_v44, 0.0 }
 0x507   :  { %7388 = vst [vmem:[#allocation120_spill] sm:$0xff] %v5836_v43  ;;  %v7395_v43 = vld [vmem:[#allocation33_spill] sm:$0xff] }
 0x508   :  { %v5840_v59 = vpop.f32.mrf.mxu0  ;;  %2794 = vmatmul.f32.gmra.mxu1 %v2200_v33 }
 0x509   :  { %7389 = vst [vmem:[#allocation210_spill] sm:$0xff] %v5840_v59  ;;  %v2205_v59 = vmax.f32 %v1370_v24, 0.0 }
 0x50a   :  { %1918 = vmatmul.f32.gmra.mxu2 %v7306_v6  ;;  %2073 = vmatmul.f32.gmra.mxu3 %v7211_v39  ;;  %v1373_v39 = vadd.f32 %v7395_v43, %v5639_v40  ;;  %v5871_v43 = vld [vmem:[%s7014_s6] sm:$0x1f] }
 0x50b   :  { %2678 = vmatmul.f32.gmra.mxu0 %v2349_v7  ;;  %v2516_v7 = vld [vmem:[#allocation7 + $0x218] sm:$0xff] }
 0x50c   :  { %3369 = vmatpush.msrb.mxu0 %v2516_v7  ;;  %v7401_v7 = vld [vmem:[#allocation35_spill] sm:$0xff] }
 0x50d   :  { %v5848_v13 = vpop.f32.mrf.mxu1  ;;  %v5850_v48 = vpop.f32.mrf.mxu2  ;;  %v1376_v27 = vadd.f32 %v7401_v7, %v5639_v40 }
 0x50e   :  { %7392 = vst [vmem:[#allocation31_spill] sm:$0xff] %v5848_v13  ;;  %v5852_v33 = vpop.f32.mrf.mxu3 }
 0x50f   :  { %7393 = vst [vmem:[#allocation124_spill] sm:$0xff] %v5850_v48 }
 0x510   :  { %v5854_v15 = vpop.f32.mrf.mxu0  ;;  %2797 = vmatmul.f32.gmra.mxu1 %v2205_v59 }
 0x511   :  { %7394 = vst [vmem:[#allocation211_spill] sm:$0xff] %v5854_v15  ;;  %v2210_v15 = vmax.f32 %v1373_v39, 0.0  ;;  %v7402_v39 = vld [vmem:[#allocation64_spill] sm:$0xff] }
 0x512   :  { %1921 = vmatmul.f32.gmra.mxu2 %v7312_v12  ;;  %2076 = vmatmul.f32.gmra.mxu3 %v4999_v31  ;;  %v5874_v31 = vperm.slane %v5871_v43, 2 }
 0x513   :  { %2681 = vmatmul.f32.gmra.mxu0 %v2354_v57  ;;  %v2359_v57 = vmax.f32 %v1257_v21, 0.0 }
 0x515   :  { %v5862_v24 = vpop.f32.mrf.mxu1  ;;  %v5864_v48 = vpop.f32.mrf.mxu2 }
 0x516   :  { %7397 = vst [vmem:[#allocation33_spill] sm:$0xff] %v5862_v24  ;;  %v5866_v59 = vpop.f32.mrf.mxu3  ;;  %v1260_v24 = vadd.f32 %v5261_v3, %v5250_v19  ;;  %v7407_v3 = vld [vmem:[#allocation68_spill] sm:$0xff] }
 0x517   :  { %7398 = vst [vmem:[#allocation128_spill] sm:$0xff] %v5864_v48  ;;  %v1534_v48 = vadd.f32 %v7402_v39, %v5874_v31  ;;  %v1537_v39 = vadd.f32 %v7407_v3, %v5874_v31 }
 0x518   :  { %7399 = vst [vmem:[#allocation212_spill] sm:$0xff] %v5866_v59  ;;  %v5876_v44 = vpop.f32.mrf.mxu0  ;;  %2800 = vmatmul.f32.gmra.mxu1 %v2210_v15  ;;  %v2215_v15 = vmax.f32 %v1376_v27, 0.0  ;;  %v2364_v59 = vmax.f32 %v1260_v24, 0.0  ;;  %v1263_v27 = vadd.f32 %v5274_v26, %v5250_v19  ;;  %v2499_v26 = vld [vmem:[#allocation7 + $0x190] sm:$0xff] }
 0x519   :  { %7400 = vst [vmem:[#allocation213_spill] sm:$0xff] %v5876_v44  ;;  %v2136_v44 = vmax.f32 %v1534_v48, 0.0  ;;  %v2141_v24 = vmax.f32 %v1537_v39, 0.0  ;;  %3164 = vmatpush.msrb.mxu3 %v2499_v26  ;;  %v7416_v26 = vld [vmem:[#allocation76_spill] sm:$0xff] }
 0x51a   :  { %1924 = vmatmul.f32.gmra.mxu2 %v7319_v9  ;;  %2079 = vmatmul.f32.gmra.mxu3 %v5010_v61  ;;  %v7406_v61 = vld [vmem:[#allocation37_spill] sm:$0xff] }
 0x51b   :  { %2684 = vmatmul.f32.gmra.mxu0 %v2359_v57  ;;  %v1379_v57 = vadd.f32 %v7406_v61, %v5639_v40  ;;  %v7411_v61 = vld [vmem:[#allocation72_spill] sm:$0xff] }
 0x51c   :  { %v1540_v3 = vadd.f32 %v7411_v61, %v5874_v31  ;;  %v1543_v61 = vadd.f32 %v7416_v26, %v5874_v31 }
 0x51d   :  { %v5886_v13 = vpop.f32.mrf.mxu2  ;;  %v5888_v34 = vpop.f32.mrf.mxu1 }
 0x51e   :  { %7403 = vst [vmem:[#allocation35_spill] sm:$0xff] %v5886_v13  ;;  %v5890_v21 = vpop.f32.mrf.mxu3 }
 0x51f   :  { %7404 = vst [vmem:[#allocation64_spill] sm:$0xff] %v5890_v21 }
 0x520   :  { %v5892_v7 = vpop.f32.mrf.mxu0  ;;  %2803 = vmatmul.f32.gmra.mxu1 %v2215_v15 }
 0x521   :  { %7405 = vst [vmem:[#allocation214_spill] sm:$0xff] %v5892_v7  ;;  %v2220_v7 = vmax.f32 %v1379_v57, 0.0  ;;  %v1266_v57 = vadd.f32 %v5287_v51, %v5250_v19  ;;  %v2515_v51 = vld [vmem:[#allocation7 + $0x210] sm:$0xff] }
 0x522   :  { %2082 = vmatmul.f32.gmra.mxu3 %v7224_v10  ;;  %2961 = vmatmul.f32.vlgmr.msrb.gmra.mxu2 %v2136_v44  ;;  %v2369_v10 = vmax.f32 %v1263_v27, 0.0 }
 0x523   :  { %2687 = vmatmul.f32.gmra.mxu0 %v2364_v59  ;;  %v7410_v59 = vld [vmem:[#allocation39_spill] sm:$0xff] }
 0x524   :  { %v1382_v44 = vadd.f32 %v7410_v59, %v5639_v40  ;;  %v2146_v59 = vmax.f32 %v1540_v3, 0.0  ;;  %3370 = vmatpush.msrb.mxu0 %v2515_v51 }
 0x525   :  { %v5901_v13 = vpop.f32.mrf.mxu2  ;;  %v5903_v48 = vpop.f32.mrf.mxu1 }
 0x526   :  { %7408 = vst [vmem:[#allocation37_spill] sm:$0xff] %v5901_v13  ;;  %v5905_v15 = vpop.f32.mrf.mxu3 }
 0x528   :  { %v5907_v21 = vpop.f32.mrf.mxu0  ;;  %2806 = vmatmul.f32.gmra.mxu1 %v2220_v7  ;;  %v2225_v7 = vmax.f32 %v1382_v44, 0.0  ;;  %v1269_v44 = vadd.f32 %v5300_v45, %v5250_v19  ;;  %v7421_v45 = vld [vmem:[#allocation80_spill] sm:$0xff] }
 0x529   :  { %7409 = vst [vmem:[#allocation68_spill] sm:$0xff] %v5907_v21  ;;  %v1546_v51 = vadd.f32 %v7421_v45, %v5874_v31 }
 0x52a   :  { %2085 = vmatmul.f32.gmra.mxu3 %v7229_v46  ;;  %2964 = vmatmul.f32.gmra.mxu2 %v2141_v24  ;;  %v2374_v46 = vmax.f32 %v1266_v57, 0.0  ;;  %v7415_v24 = vld [vmem:[#allocation41_spill] sm:$0xff] }
 0x52b   :  { %2690 = vmatmul.f32.gmra.mxu0 %v2369_v10  ;;  %v1385_v10 = vadd.f32 %v7415_v24, %v5639_v40  ;;  %v2151_v24 = vmax.f32 %v1543_v61, 0.0 }
 0x52d   :  { %v5916_v39 = vpop.f32.mrf.mxu2  ;;  %v5918_v21 = vpop.f32.mrf.mxu1  ;;  %v2230_v57 = vmax.f32 %v1385_v10, 0.0  ;;  %v1272_v10 = vadd.f32 %v5313_v50, %v5250_v19  ;;  %v7426_v50 = vld [vmem:[#allocation84_spill] sm:$0xff] }
 0x52e   :  { %7412 = vst [vmem:[#allocation39_spill] sm:$0xff] %v5916_v39  ;;  %v5920_v27 = vpop.f32.mrf.mxu3 }
 0x52f   :  { %7413 = vst [vmem:[#allocation72_spill] sm:$0xff] %v5920_v27 }
 0x530   :  { %v5922_v13 = vpop.f32.mrf.mxu0  ;;  %2809 = vmatmul.f32.gmra.mxu1 %v2225_v7 }
 0x531   :  { %7414 = vst [vmem:[#allocation215_spill] sm:$0xff] %v5922_v13 }
 0x532   :  { %2088 = vmatmul.f32.gmra.mxu3 %v7235_v22  ;;  %2967 = vmatmul.f32.gmra.mxu2 %v2146_v59  ;;  %v2379_v22 = vmax.f32 %v1269_v44, 0.0  ;;  %v7420_v59 = vld [vmem:[#allocation43_spill] sm:$0xff]  ;;  %v2156_v44 = vmax.f32 %v1546_v51, 0.0 }
 0x533   :  { %2693 = vmatmul.f32.gmra.mxu0 %v2374_v46  ;;  %v1388_v46 = vadd.f32 %v7420_v59, %v5639_v40  ;;  %v1549_v59 = vadd.f32 %v7426_v50, %v5874_v31 }
 0x535   :  { %v5931_v3 = vpop.f32.mrf.mxu2  ;;  %v5933_v13 = vpop.f32.mrf.mxu1 }
 0x536   :  { %7417 = vst [vmem:[#allocation41_spill] sm:$0xff] %v5931_v3  ;;  %v5935_v7 = vpop.f32.mrf.mxu3 }
 0x537   :  { %7418 = vst [vmem:[#allocation76_spill] sm:$0xff] %v5935_v7 }
 0x538   :  { %v5937_v39 = vpop.f32.mrf.mxu0  ;;  %2812 = vmatmul.f32.gmra.mxu1 %v2230_v57 }
 0x539   :  { %7419 = vst [vmem:[#allocation216_spill] sm:$0xff] %v5937_v39  ;;  %v2235_v39 = vmax.f32 %v1388_v46, 0.0  ;;  %v1275_v46 = vadd.f32 %v5326_v55, %v5250_v19  ;;  %v2498_v55 = vld [vmem:[#allocation7 + $0x188] sm:$0xff] }
 0x53a   :  { %2091 = vmatmul.f32.gmra.mxu3 %v7241_v30  ;;  %2970 = vmatmul.f32.gmra.mxu2 %v2151_v24  ;;  %v2384_v30 = vmax.f32 %v1272_v10, 0.0  ;;  %v7425_v24 = vld [vmem:[#allocation45_spill] sm:$0xff]  ;;  %v2161_v10 = vmax.f32 %v1549_v59, 0.0 }
 0x53b   :  { %2696 = vmatmul.f32.gmra.mxu0 %v2379_v22  ;;  %v1391_v22 = vadd.f32 %v7425_v24, %v5639_v40  ;;  %v7431_v24 = vld [vmem:[#allocation88_spill] sm:$0xff]  ;;  %3165 = vmatpush.msrb.mxu3 %v2498_v55 }
 0x53c   :  { %v1552_v50 = vadd.f32 %v7431_v24, %v5874_v31  ;;  %v7436_v55 = vld [vmem:[#allocation92_spill] sm:$0xff]  ;;  %v1281_v24 = vadd.f32 %v5352_v35, %v5250_v19 }
 0x53d   :  { %v5946_v26 = vpop.f32.mrf.mxu2  ;;  %v5948_v61 = vpop.f32.mrf.mxu1  ;;  %v7441_v35 = vld [vmem:[#allocation96_spill] sm:$0xff] }
 0x53e   :  { %7422 = vst [vmem:[#allocation43_spill] sm:$0xff] %v5946_v26  ;;  %v5950_v57 = vpop.f32.mrf.mxu3 }
 0x53f   :  { %7423 = vst [vmem:[#allocation80_spill] sm:$0xff] %v5950_v57 }
 0x540   :  { %v5952_v3 = vpop.f32.mrf.mxu0  ;;  %2815 = vmatmul.f32.gmra.mxu1 %v2235_v39 }
 0x541   :  { %7424 = vst [vmem:[#allocation217_spill] sm:$0xff] %v5952_v3  ;;  %v2240_v3 = vmax.f32 %v1391_v22, 0.0  ;;  %v1278_v22 = vadd.f32 %v5339_v2, %v5250_v19  ;;  %v2514_v2 = vld [vmem:[#allocation7 + $0x208] sm:$0xff] }
 0x542   :  { %2094 = vmatmul.f32.gmra.mxu3 %v7247_v1  ;;  %2973 = vmatmul.f32.gmra.mxu2 %v2156_v44  ;;  %v2389_v1 = vmax.f32 %v1275_v46, 0.0  ;;  %v7430_v44 = vld [vmem:[#allocation47_spill] sm:$0xff] }
 0x543   :  { %2699 = vmatmul.f32.gmra.mxu0 %v2384_v30  ;;  %v1394_v30 = vadd.f32 %v7430_v44, %v5639_v40  ;;  %v2166_v44 = vmax.f32 %v1552_v50, 0.0 }
 0x544   :  { %3371 = vmatpush.msrb.mxu0 %v2514_v2  ;;  %v1558_v2 = vadd.f32 %v7441_v35, %v5874_v31 }
 0x545   :  { %v5961_v45 = vpop.f32.mrf.mxu2  ;;  %v5963_v51 = vpop.f32.mrf.mxu1 }
 0x546   :  { %7427 = vst [vmem:[#allocation45_spill] sm:$0xff] %v5961_v45  ;;  %v5965_v39 = vpop.f32.mrf.mxu3 }
 0x547   :  { %7428 = vst [vmem:[#allocation84_spill] sm:$0xff] %v5965_v39  ;;  %v7543_v39 = vld [vmem:[#allocation157_spill] sm:$0xff] }
 0x548   :  { %v5967_v26 = vpop.f32.mrf.mxu0  ;;  %2818 = vmatmul.f32.gmra.mxu1 %v2240_v3 }
 0x549   :  { %7429 = vst [vmem:[#allocation218_spill] sm:$0xff] %v5967_v26  ;;  %v2245_v26 = vmax.f32 %v1394_v30, 0.0  ;;  %v1555_v30 = vadd.f32 %v7436_v55, %v5874_v31 }
 0x54a   :  { %2097 = vmatmul.f32.gmra.mxu3 %v7253_v32  ;;  %2976 = vmatmul.f32.gmra.mxu2 %v2161_v10  ;;  %v2394_v32 = vmax.f32 %v1278_v22, 0.0  ;;  %v7435_v10 = vld [vmem:[#allocation49_spill] sm:$0xff] }
 0x54b   :  { %2702 = vmatmul.f32.gmra.mxu0 %v2389_v1  ;;  %v1397_v1 = vadd.f32 %v7435_v10, %v5639_v40  ;;  %v2171_v22 = vmax.f32 %v1555_v30, 0.0 }
 0x54d   :  { %v5976_v59 = vpop.f32.mrf.mxu2  ;;  %v5980_v46 = vpop.f32.mrf.mxu1 }
 0x54e   :  { %7432 = vst [vmem:[#allocation47_spill] sm:$0xff] %v5976_v59  ;;  %v5978_v3 = vpop.f32.mrf.mxu3 }
 0x54f   :  { %7433 = vst [vmem:[#allocation88_spill] sm:$0xff] %v5978_v3 }
 0x550   :  { %v5982_v45 = vpop.f32.mrf.mxu0  ;;  %2821 = vmatmul.f32.gmra.mxu1 %v2245_v26 }
 0x551   :  { %7434 = vst [vmem:[#allocation219_spill] sm:$0xff] %v5982_v45  ;;  %v2250_v45 = vmax.f32 %v1397_v1, 0.0  ;;  %v1284_v1 = vadd.f32 %v5365_v52, %v5250_v19  ;;  %v7446_v52 = vld [vmem:[#allocation100_spill] sm:$0xff] }
 0x552   :  { %2100 = vmatmul.f32.gmra.mxu3 %v7259_v28  ;;  %2979 = vmatmul.f32.gmra.mxu2 %v2166_v44  ;;  %v2399_v28 = vmax.f32 %v1281_v24, 0.0  ;;  %v2176_v24 = vmax.f32 %v1558_v2, 0.0  ;;  %v1561_v35 = vadd.f32 %v7446_v52, %v5874_v31 }
 0x553   :  { %2705 = vmatmul.f32.gmra.mxu0 %v2394_v32  ;;  %v7440_v32 = vld [vmem:[#allocation51_spill] sm:$0xff] }
 0x554   :  { %v1400_v10 = vadd.f32 %v7440_v32, %v5639_v40  ;;  %v2404_v32 = vmax.f32 %v1284_v1, 0.0  ;;  %v2181_v1 = vmax.f32 %v1561_v35, 0.0 }
 0x555   :  { %v5991_v50 = vpop.f32.mrf.mxu2  ;;  %v5997_v44 = vpop.f32.mrf.mxu1 }
 0x556   :  { %7437 = vst [vmem:[#allocation49_spill] sm:$0xff] %v5991_v50  ;;  %v5993_v26 = vpop.f32.mrf.mxu3  ;;  %v2255_v30 = vmax.f32 %v1400_v10, 0.0  ;;  %v1287_v10 = vadd.f32 %v5378_v42, %v5250_v19  ;;  %v7451_v42 = vld [vmem:[#allocation104_spill] sm:$0xff] }
 0x557   :  { %7438 = vst [vmem:[#allocation92_spill] sm:$0xff] %v5993_v26  ;;  %v1564_v52 = vadd.f32 %v7451_v42, %v5874_v31  ;;  %v7524_v26 = vld [vmem:[#allocation182_spill] sm:$0xff] }
 0x558   :  { %v5995_v59 = vpop.f32.mrf.mxu0  ;;  %2824 = vmatmul.f32.gmra.mxu1 %v2250_v45 }
 0x559   :  { %7439 = vst [vmem:[#allocation220_spill] sm:$0xff] %v5995_v59 }
 0x55a   :  { %2103 = vmatmul.f32.gmra.mxu3 %v7265_v23  ;;  %2982 = vmatmul.f32.gmra.mxu2 %v2171_v22  ;;  %v7445_v23 = vld [vmem:[#allocation53_spill] sm:$0xff] }
 0x55b   :  { %2708 = vmatmul.f32.gmra.mxu0 %v2399_v28  ;;  %v1403_v22 = vadd.f32 %v7445_v23, %v5639_v40 }
 0x55d   :  { %v6006_v55 = vpop.f32.mrf.mxu2  ;;  %v6015_v28 = vpop.f32.mrf.mxu1 }
 0x55e   :  { %7442 = vst [vmem:[#allocation51_spill] sm:$0xff] %v6006_v55  ;;  %v6008_v45 = vpop.f32.mrf.mxu3 }
 0x55f   :  { %7443 = vst [vmem:[#allocation96_spill] sm:$0xff] %v6008_v45 }
 0x560   :  { %v6010_v59 = vpop.f32.mrf.mxu0  ;;  %2827 = vmatmul.f32.gmra.mxu1 %v2255_v30 }
 0x561   :  { %7444 = vst [vmem:[#allocation221_spill] sm:$0xff] %v6010_v59  ;;  %v2260_v59 = vmax.f32 %v1403_v22, 0.0  ;;  %v1290_v22 = vadd.f32 %v5391_v16, %v5250_v19  ;;  %v2513_v16 = vld [vmem:[#allocation7 + $0x200] sm:$0xff] }
 0x562   :  { %2106 = vmatmul.f32.gmra.mxu3 %v7271_v47  ;;  %2985 = vmatmul.f32.gmra.mxu2 %v2176_v24  ;;  %v2409_v47 = vmax.f32 %v1287_v10, 0.0  ;;  %v7450_v24 = vld [vmem:[#allocation56_spill] sm:$0xff] }
 0x563   :  { %2711 = vmatmul.f32.gmra.mxu0 %v2404_v32  ;;  %v1406_v23 = vadd.f32 %v7450_v24, %v5639_v40  ;;  %v2497_v32 = vld [vmem:[#allocation7 + $0x180] sm:$0xff]  ;;  %v2186_v24 = vmax.f32 %v1564_v52, 0.0 }
 0x564   :  { %3166 = vmatpush.msrb.mxu3 %v2497_v32  ;;  %v7456_v32 = vld [vmem:[#allocation108_spill] sm:$0xff]  ;;  %3372 = vmatpush.msrb.mxu0 %v2513_v16 }
 0x565   :  { %v6021_v2 = vpop.f32.mrf.mxu2  ;;  %v6034_v35 = vpop.f32.mrf.mxu1  ;;  %v1567_v42 = vadd.f32 %v7456_v32, %v5874_v31 }
 0x566   :  { %7447 = vst [vmem:[#allocation53_spill] sm:$0xff] %v6021_v2  ;;  %v6023_v30 = vpop.f32.mrf.mxu3 }
 0x567   :  { %7448 = vst [vmem:[#allocation100_spill] sm:$0xff] %v6023_v30  ;;  %v7516_v30 = vld [vmem:[#allocation145_spill] sm:$0xff] }
 0x568   :  { %v6025_v55 = vpop.f32.mrf.mxu0  ;;  %2830 = vmatmul.f32.gmra.mxu1 %v2260_v59  ;;  %v2265_v59 = vmax.f32 %v1406_v23, 0.0  ;;  %v1293_v23 = vadd.f32 %v5404_v14, %v5250_v19  ;;  %v7461_v14 = vld [vmem:[#allocation112_spill] sm:$0xff] }
 0x569   :  { %7449 = vst [vmem:[#allocation222_spill] sm:$0xff] %v6025_v55  ;;  %v1570_v16 = vadd.f32 %v7461_v14, %v5874_v31 }
 0x56a   :  { %2109 = vmatmul.f32.gmra.mxu3 %v7277_v58  ;;  %2988 = vmatmul.f32.gmra.mxu2 %v2181_v1  ;;  %v2414_v58 = vmax.f32 %v1290_v22, 0.0  ;;  %v7455_v1 = vld [vmem:[#allocation59_spill] sm:$0xff] }
 0x56b   :  { %2714 = vmatmul.f32.gmra.mxu0 %v2409_v47  ;;  %v1409_v47 = vadd.f32 %v7455_v1, %v5639_v40  ;;  %v2191_v1 = vmax.f32 %v1567_v42, 0.0 }
 0x56d   :  { %v6036_v55 = vpop.f32.mrf.mxu2  ;;  %v6053_v22 = vpop.f32.mrf.mxu1 }
 0x56e   :  { %7452 = vst [vmem:[#allocation56_spill] sm:$0xff] %v6036_v55  ;;  %v6038_v10 = vpop.f32.mrf.mxu3 }
 0x56f   :  { %7453 = vst [vmem:[#allocation104_spill] sm:$0xff] %v6038_v10 }
 0x570   :  { %v6040_v2 = vpop.f32.mrf.mxu0  ;;  %2833 = vmatmul.f32.gmra.mxu1 %v2265_v59 }
 0x571   :  { %7454 = vst [vmem:[#allocation223_spill] sm:$0xff] %v6040_v2  ;;  %v2270_v2 = vmax.f32 %v1409_v47, 0.0  ;;  %v1296_v47 = vadd.f32 %v5417_v18, %v5250_v19  ;;  %v7466_v18 = vld [vmem:[#allocation116_spill] sm:$0xff] }
 0x572   :  { %2112 = vmatmul.f32.gmra.mxu3 %v7283_v11  ;;  %2991 = vmatmul.f32.gmra.mxu2 %v2186_v24  ;;  %v2419_v11 = vmax.f32 %v1293_v23, 0.0  ;;  %v7460_v24 = vld [vmem:[#allocation61_spill] sm:$0xff] }
 0x573   :  { %2717 = vmatmul.f32.gmra.mxu0 %v2414_v58  ;;  %v1412_v58 = vadd.f32 %v7460_v24, %v5639_v40  ;;  %v2424_v24 = vmax.f32 %v1296_v47, 0.0 }
 0x575   :  { %v6049_v52 = vpop.f32.mrf.mxu2  ;;  %v2275_v42 = vmax.f32 %v1412_v58, 0.0  ;;  %v1299_v58 = vadd.f32 %v5430_v25, %v5250_v19  ;;  %v7471_v25 = vld [vmem:[#allocation119_spill] sm:$0xff] }
 0x576   :  { %7457 = vst [vmem:[#allocation59_spill] sm:$0xff] %v6049_v52  ;;  %v6051_v59 = vpop.f32.mrf.mxu3 }
 0x577   :  { %7458 = vst [vmem:[#allocation108_spill] sm:$0xff] %v6051_v59  ;;  %v7509_v59 = vld [vmem:[#allocation142_spill] sm:$0xff] }
 0x578   :  { %v6055_v55 = vpop.f32.mrf.mxu0  ;;  %2836 = vmatmul.f32.gmra.mxu1 %v2270_v2  ;;  %v2196_v2 = vmax.f32 %v1570_v16, 0.0 }
 0x579   :  { %7459 = vst [vmem:[#allocation224_spill] sm:$0xff] %v6055_v55  ;;  %v6070_v55 = vpop.f32.mrf.mxu1 }
 0x57a   :  { %2115 = vmatmul.f32.gmra.mxu3 %v7289_v62  ;;  %2994 = vmatmul.f32.gmra.mxu2 %v2191_v1  ;;  %v7465_v62 = vld [vmem:[#allocation63_spill] sm:$0xff] }
 0x57b   :  { %2720 = vmatmul.f32.gmra.mxu0 %v2419_v11  ;;  %v1415_v1 = vadd.f32 %v7465_v62, %v5639_v40  ;;  %v1573_v11 = vadd.f32 %v7466_v18, %v5874_v31  ;;  %v2429_v62 = vmax.f32 %v1299_v58, 0.0  ;;  %v1576_v18 = vadd.f32 %v7471_v25, %v5874_v31  ;;  %v7477_v25 = vld [vmem:[#allocation168_spill] sm:$0xff] }
 0x57d   :  { %v6064_v32 = vpop.f32.mrf.mxu2  ;;  %v2280_v16 = vmax.f32 %v1415_v1, 0.0  ;;  %v2201_v47 = vmax.f32 %v1573_v11, 0.0  ;;  %v1302_v1 = vadd.f32 %v5443_v4, %v5250_v19  ;;  %v2206_v58 = vmax.f32 %v1576_v18, 0.0 }
 0x57e   :  { %7462 = vst [vmem:[#allocation61_spill] sm:$0xff] %v6064_v32  ;;  %v6066_v52 = vpop.f32.mrf.mxu3 }
 0x57f   :  { %7463 = vst [vmem:[#allocation112_spill] sm:$0xff] %v6066_v52  ;;  %v7507_v52 = vld [vmem:[#allocation91_spill] sm:$0xff] }
 0x580   :  { %v6068_v23 = vpop.f32.mrf.mxu0  ;;  %2839 = vmatmul.f32.gmra.mxu1 %v2275_v42 }
 0x581   :  { %7464 = vst [vmem:[#allocation225_spill] sm:$0xff] %v6068_v23 }
 0x582   :  { %2118 = vmatmul.f32.gmra.mxu3 %v7295_v54  ;;  %2997 = vmatmul.f32.gmra.mxu2 %v2196_v2  ;;  %v7470_v54 = vld [vmem:[#allocation67_spill] sm:$0xff] }
 0x583   :  { %2723 = vmatmul.f32.gmra.mxu0 %v2424_v24  ;;  %v1418_v2 = vadd.f32 %v7470_v54, %v5639_v40  ;;  %v6088_v24 = vpop.f32.mrf.mxu1 }
 0x585   :  { %v6079_v14 = vpop.f32.mrf.mxu2 }
 0x586   :  { %7467 = vst [vmem:[#allocation63_spill] sm:$0xff] %v6079_v14  ;;  %v6081_v42 = vpop.f32.mrf.mxu3 }
 0x587   :  { %7468 = vst [vmem:[#allocation116_spill] sm:$0xff] %v6081_v42 }
 0x588   :  { %v6083_v23 = vpop.f32.mrf.mxu0  ;;  %2842 = vmatmul.f32.gmra.mxu1 %v2280_v16 }
 0x589   :  { %7469 = vst [vmem:[#allocation226_spill] sm:$0xff] %v6083_v23  ;;  %v2285_v23 = vmax.f32 %v1418_v2, 0.0  ;;  %v1305_v2 = vadd.f32 %v7477_v25, %v5250_v19  ;;  %v7483_v25 = vld [vmem:[#allocation170_spill] sm:$0xff] }
 0x58a   :  { %2121 = vmatmul.f32.gmra.mxu3 %v5200_v20  ;;  %3000 = vmatmul.f32.gmra.mxu2 %v2201_v47  ;;  %v2434_v20 = vmax.f32 %v1302_v1, 0.0  ;;  %v7475_v47 = vld [vmem:[#allocation71_spill] sm:$0xff] }
 0x58b   :  { %2726 = vmatmul.f32.gmra.mxu0 %v2429_v62  ;;  %v1421_v54 = vadd.f32 %v7475_v47, %v5639_v40  ;;  %v7476_v62 = vld [vmem:[#allocation123_spill] sm:$0xff] }
 0x58c   :  { %v1579_v4 = vadd.f32 %v7476_v62, %v5874_v31  ;;  %v7482_v47 = vld [vmem:[#allocation127_spill] sm:$0xff] }
 0x58d   :  { %v6094_v11 = vpop.f32.mrf.mxu2  ;;  %v1582_v62 = vadd.f32 %v7482_v47, %v5874_v31 }
 0x58e   :  { %7472 = vst [vmem:[#allocation67_spill] sm:$0xff] %v6094_v11  ;;  %v6096_v16 = vpop.f32.mrf.mxu3  ;;  %v6107_v11 = vpop.f32.mrf.mxu1  ;;  %v2211_v1 = vmax.f32 %v1579_v4, 0.0 }
 0x58f   :  { %7473 = vst [vmem:[#allocation119_spill] sm:$0xff] %v6096_v16 }
 0x590   :  { %v6098_v14 = vpop.f32.mrf.mxu0  ;;  %2845 = vmatmul.f32.gmra.mxu1 %v2285_v23 }
 0x591   :  { %7474 = vst [vmem:[#allocation227_spill] sm:$0xff] %v6098_v14  ;;  %v2290_v14 = vmax.f32 %v1421_v54, 0.0  ;;  %v1308_v54 = vadd.f32 %v7483_v25, %v5250_v19  ;;  %v7487_v19 = vld [vmem:[#allocation79_spill] sm:$0xff]  ;;  %v7489_v25 = vld [vmem:[#allocation133_spill] sm:$0xff] }
 0x592   :  { %2124 = vmatmul.f32.gmra.mxu3 %v7306_v6  ;;  %3003 = vmatmul.f32.gmra.mxu2 %v2206_v58  ;;  %v2439_v6 = vmax.f32 %v1305_v2, 0.0  ;;  %v7481_v58 = vld [vmem:[#allocation75_spill] sm:$0xff]  ;;  %v2216_v2 = vmax.f32 %v1582_v62, 0.0  ;;  %v1427_v47 = vadd.f32 %v7487_v19, %v5639_v40 }
 0x593   :  { %2729 = vmatmul.f32.gmra.mxu0 %v2434_v20  ;;  %v1424_v20 = vadd.f32 %v7481_v58, %v5639_v40  ;;  %v6129_v58 = vperm.slane %v5871_v43, 3 }
 0x595   :  { %v6109_v18 = vpop.f32.mrf.mxu2  ;;  %v2295_v4 = vmax.f32 %v1424_v20, 0.0  ;;  %v7488_v20 = vld [vmem:[#allocation132_spill] sm:$0xff] }
 0x596   :  { %7478 = vst [vmem:[#allocation71_spill] sm:$0xff] %v6109_v18  ;;  %v6111_v23 = vpop.f32.mrf.mxu3  ;;  %v1585_v62 = vadd.f32 %v7488_v20, %v5874_v31 }
 0x597   :  { %7479 = vst [vmem:[#allocation123_spill] sm:$0xff] %v6111_v23 }
 0x598   :  { %v6113_v32 = vpop.f32.mrf.mxu0  ;;  %2848 = vmatmul.f32.gmra.mxu1 %v2290_v14  ;;  %v6126_v14 = vpop.f32.mrf.mxu1 }
 0x599   :  { %7480 = vst [vmem:[#allocation168_spill] sm:$0xff] %v6113_v32 }
 0x59a   :  { %2127 = vmatmul.f32.gmra.mxu3 %v7312_v12  ;;  %3006 = vmatmul.f32.gmra.mxu2 %v2211_v1  ;;  %v2444_v1 = vmax.f32 %v1308_v54, 0.0 }
 0x59b   :  { %2732 = vmatmul.f32.gmra.mxu0 %v2439_v6  ;;  %v6134_v6 = vperm.slane %v5871_v43, 4  ;;  %v2300_v43 = vmax.f32 %v1427_v47, 0.0  ;;  %v7496_v47 = vld [vmem:[#allocation136_spill] sm:$0xff] }
 0x59d   :  { %v6122_v18 = vpop.f32.mrf.mxu2 }
 0x59e   :  { %7484 = vst [vmem:[#allocation75_spill] sm:$0xff] %v6122_v18  ;;  %v6124_v50 = vpop.f32.mrf.mxu3  ;;  %v1740_v18 = vadd.f32 %v7489_v25, %v6129_v58 }
 0x59f   :  { %7485 = vst [vmem:[#allocation127_spill] sm:$0xff] %v6124_v50  ;;  %v2221_v50 = vmax.f32 %v1585_v62, 0.0 }
 0x5a0   :  { %v6131_v12 = vpop.f32.mrf.mxu0  ;;  %2851 = vmatmul.f32.gmra.mxu1 %v2295_v4  ;;  %v2137_v19 = vmax.f32 %v1740_v18, 0.0  ;;  %v7497_v18 = vld [vmem:[#allocation174_spill] sm:$0xff] }
 0x5a1   :  { %7486 = vst [vmem:[#allocation170_spill] sm:$0xff] %v6131_v12  ;;  %v7490_v12 = vld [vmem:[#allocation172_spill] sm:$0xff]  ;;  %v1949_v62 = vadd.f32 %v7497_v18, %v6134_v6 }
 0x5a2   :  { %2130 = vmatmul.f32.gmra.mxu3 %v7319_v9  ;;  %3009 = vmatmul.f32.gmra.mxu2 %v2216_v2  ;;  %v1946_v4 = vadd.f32 %v7490_v12, %v6134_v6  ;;  %v6151_v2 = vpop.f32.mrf.mxu1  ;;  %v7495_v12 = vld [vmem:[#allocation135_spill] sm:$0xff] }
 0x5a3   :  { %2735 = vmatmul.f32.gmra.mxu0 %v2444_v1  ;;  %7493 = vst [vmem:[#allocation133_spill] sm:$0xff] %v6151_v2  ;;  %v7494_v1 = vld [vmem:[#allocation83_spill] sm:$0xff]  ;;  %v1588_v25 = vadd.f32 %v7495_v12, %v5874_v31 }
 0x5a4   :  { %v2138_v9 = vmax.f32 %v1946_v4, 0.0  ;;  %v1430_v20 = vadd.f32 %v7494_v1, %v5639_v40 }
 0x5a5   :  { %v6145_v54 = vpop.f32.mrf.mxu2  ;;  %v2226_v16 = vmax.f32 %v1588_v25, 0.0 }
 0x5a6   :  { %v6147_v32 = vpop.f32.mrf.mxu3  ;;  %v2305_v4 = vmax.f32 %v1430_v20, 0.0  ;;  %v7503_v20 = vld [vmem:[#allocation139_spill] sm:$0xff] }
 0x5a7   :  { %7491 = vst [vmem:[#allocation79_spill] sm:$0xff] %v6147_v32  ;;  %v1743_v32 = vadd.f32 %v7496_v47, %v6129_v58  ;;  %v7502_v47 = vld [vmem:[#allocation138_spill] sm:$0xff] }
 0x5a8   :  { %v6149_v23 = vpop.f32.mrf.mxu0  ;;  %2854 = vmatmul.f32.gmra.mxu1 %v2300_v43  ;;  %v1591_v18 = vadd.f32 %v7502_v47, %v5874_v31  ;;  %v1436_v47 = vadd.f32 %v7507_v52, %v5639_v40 }
 0x5a9   :  { %7492 = vst [vmem:[#allocation132_spill] sm:$0xff] %v6149_v23  ;;  %v2142_v42 = vmax.f32 %v1743_v32, 0.0  ;;  %v7504_v32 = vld [vmem:[#allocation176_spill] sm:$0xff] }
 0x5aa   :  { %3012 = vmatmul.f32.gmra.mxu2 %v2221_v50  ;;  %3167 = vmatmul.f32.vlgmr.msrb.gmra.mxu3 %v2137_v19  ;;  %v2143_v50 = vmax.f32 %v1949_v62, 0.0  ;;  %v7500_v19 = vld [vmem:[#allocation87_spill] sm:$0xff]  ;;  %v6169_v12 = vpop.f32.mrf.mxu1  ;;  %v1952_v25 = vadd.f32 %v7504_v32, %v6134_v6 }
 0x5ab   :  { %3373 = vmatmul.f32.vlgmr.msrb.gmra.mxu0 %v2138_v9  ;;  %v1433_v9 = vadd.f32 %v7500_v19, %v5639_v40  ;;  %7501 = vst [vmem:[#allocation135_spill] sm:$0xff] %v6169_v12  ;;  %v2231_v19 = vmax.f32 %v1591_v18, 0.0 }
 0x5ad   :  { %v6161_v23 = vpop.f32.mrf.mxu2  ;;  %v2310_v62 = vmax.f32 %v1433_v9, 0.0  ;;  %v1749_v9 = vadd.f32 %v7509_v59, %v6129_v58  ;;  %v7515_v59 = vld [vmem:[#allocation144_spill] sm:$0xff] }
 0x5ae   :  { %v6163_v43 = vpop.f32.mrf.mxu3 }
 0x5af   :  { %7498 = vst [vmem:[#allocation172_spill] sm:$0xff] %v6163_v43  ;;  %v1746_v43 = vadd.f32 %v7503_v20, %v6129_v58  ;;  %v7508_v20 = vld [vmem:[#allocation141_spill] sm:$0xff] }
 0x5b0   :  { %v6165_v1 = vpop.f32.mrf.mxu0  ;;  %2857 = vmatmul.f32.gmra.mxu1 %v2305_v4  ;;  %v1594_v32 = vadd.f32 %v7508_v20, %v5874_v31  ;;  %v7514_v20 = vld [vmem:[#allocation95_spill] sm:$0xff] }
 0x5b1   :  { %7499 = vst [vmem:[#allocation83_spill] sm:$0xff] %v6165_v1  ;;  %v1439_v10 = vadd.f32 %v7514_v20, %v5639_v40 }
 0x5b2   :  { %3015 = vmatmul.f32.gmra.mxu2 %v2226_v16  ;;  %3170 = vmatmul.f32.gmra.mxu3 %v2142_v42  ;;  %v2147_v16 = vmax.f32 %v1746_v43, 0.0  ;;  %v6191_v43 = vpop.f32.mrf.mxu1  ;;  %v2236_v52 = vmax.f32 %v1594_v32, 0.0 }
 0x5b3   :  { %3376 = vmatmul.f32.gmra.mxu0 %v2143_v50  ;;  %v2148_v50 = vmax.f32 %v1952_v25, 0.0  ;;  %7511 = vst [vmem:[#allocation87_spill] sm:$0xff] %v6191_v43  ;;  %v2315_v25 = vmax.f32 %v1436_v47, 0.0  ;;  %v1752_v47 = vadd.f32 %v7516_v30, %v6129_v58  ;;  %v7522_v30 = vld [vmem:[#allocation147_spill] sm:$0xff] }
 0x5b5   :  { %v6177_v1 = vpop.f32.mrf.mxu2 }
 0x5b6   :  { %v6179_v4 = vpop.f32.mrf.mxu3 }
 0x5b7   :  { %7505 = vst [vmem:[#allocation136_spill] sm:$0xff] %v6179_v4  ;;  %v7510_v4 = vld [vmem:[#allocation178_spill] sm:$0xff] }
 0x5b8   :  { %v6181_v42 = vpop.f32.mrf.mxu0  ;;  %2860 = vmatmul.f32.gmra.mxu1 %v2310_v62  ;;  %v1955_v18 = vadd.f32 %v7510_v4, %v6134_v6  ;;  %v1597_v4 = vadd.f32 %v7515_v59, %v5874_v31  ;;  %v7521_v59 = vld [vmem:[#allocation99_spill] sm:$0xff] }
 0x5b9   :  { %7506 = vst [vmem:[#allocation174_spill] sm:$0xff] %v6181_v42  ;;  %v1442_v45 = vadd.f32 %v7521_v59, %v5639_v40 }
 0x5ba   :  { %3018 = vmatmul.f32.gmra.mxu2 %v2231_v19  ;;  %3173 = vmatmul.f32.gmra.mxu3 %v2147_v16  ;;  %v2152_v19 = vmax.f32 %v1749_v9, 0.0  ;;  %v2241_v20 = vmax.f32 %v1597_v4, 0.0  ;;  %v1961_v4 = vadd.f32 %v7524_v26, %v6134_v6  ;;  %v7529_v26 = vld [vmem:[#allocation150_spill] sm:$0xff] }
 0x5bb   :  { %3379 = vmatmul.f32.gmra.mxu0 %v2148_v50  ;;  %v2153_v50 = vmax.f32 %v1955_v18, 0.0  ;;  %v6211_v18 = vpop.f32.mrf.mxu1 }
 0x5bc   :  { %7519 = vst [vmem:[#allocation91_spill] sm:$0xff] %v6211_v18 }
 0x5bd   :  { %v6193_v42 = vpop.f32.mrf.mxu2 }
 0x5be   :  { %v6195_v62 = vpop.f32.mrf.mxu3 }
 0x5bf   :  { %7512 = vst [vmem:[#allocation138_spill] sm:$0xff] %v6195_v62  ;;  %v7517_v62 = vld [vmem:[#allocation180_spill] sm:$0xff] }
 0x5c0   :  { %v6197_v16 = vpop.f32.mrf.mxu0  ;;  %2863 = vmatmul.f32.gmra.mxu1 %v2315_v25  ;;  %v1958_v32 = vadd.f32 %v7517_v62, %v6134_v6  ;;  %v1600_v62 = vadd.f32 %v7522_v30, %v5874_v31 }
 0x5c1   :  { %7513 = vst [vmem:[#allocation139_spill] sm:$0xff] %v6197_v16  ;;  %v2320_v16 = vmax.f32 %v1439_v10, 0.0  ;;  %v7523_v10 = vld [vmem:[#allocation148_spill] sm:$0xff] }
 0x5c2   :  { %3021 = vmatmul.f32.gmra.mxu2 %v2236_v52  ;;  %3176 = vmatmul.f32.gmra.mxu3 %v2152_v19  ;;  %v2157_v52 = vmax.f32 %v1752_v47, 0.0 }
 0x5c3   :  { %3382 = vmatmul.f32.gmra.mxu0 %v2153_v50  ;;  %v2158_v50 = vmax.f32 %v1958_v32, 0.0  ;;  %v2246_v32 = vmax.f32 %v1600_v62, 0.0 }
 0x5c5   :  { %v6207_v9 = vpop.f32.mrf.mxu2 }
 0x5c6   :  { %v6209_v25 = vpop.f32.mrf.mxu3 }
 0x5c7   :  { %7518 = vst [vmem:[#allocation176_spill] sm:$0xff] %v6209_v25  ;;  %v1755_v25 = vadd.f32 %v7523_v10, %v6129_v58  ;;  %v1603_v10 = vadd.f32 %v7529_v26, %v5874_v31 }
 0x5c8   :  { %v6213_v19 = vpop.f32.mrf.mxu0  ;;  %2866 = vmatmul.f32.gmra.mxu1 %v2320_v16 }
 0x5c9   :  { %7520 = vst [vmem:[#allocation141_spill] sm:$0xff] %v6213_v19  ;;  %v2325_v19 = vmax.f32 %v1442_v45, 0.0  ;;  %v2162_v3 = vmax.f32 %v1755_v25, 0.0  ;;  %v7530_v45 = vld [vmem:[#allocation151_spill] sm:$0xff]  ;;  %v7531_v25 = vld [vmem:[#allocation184_spill] sm:$0xff] }
 0x5ca   :  { %3024 = vmatmul.f32.gmra.mxu2 %v2241_v20  ;;  %3179 = vmatmul.f32.gmra.mxu3 %v2157_v52  ;;  %v2163_v20 = vmax.f32 %v1961_v4, 0.0  ;;  %v6229_v52 = vpop.f32.mrf.mxu1  ;;  %v1964_v62 = vadd.f32 %v7531_v25, %v6134_v6 }
 0x5cb   :  { %3385 = vmatmul.f32.gmra.mxu0 %v2158_v50  ;;  %7527 = vst [vmem:[#allocation95_spill] sm:$0xff] %v6229_v52  ;;  %v7528_v50 = vld [vmem:[#allocation103_spill] sm:$0xff]  ;;  %v2251_v52 = vmax.f32 %v1603_v10, 0.0 }
 0x5cc   :  { %v1445_v30 = vadd.f32 %v7528_v50, %v5639_v40 }
 0x5cd   :  { %v6223_v47 = vpop.f32.mrf.mxu2 }
 0x5ce   :  { %v6225_v16 = vpop.f32.mrf.mxu3 }
 0x5cf   :  { %7525 = vst [vmem:[#allocation142_spill] sm:$0xff] %v6225_v16  ;;  %v1758_v16 = vadd.f32 %v7530_v45, %v6129_v58  ;;  %v7536_v45 = vld [vmem:[#allocation153_spill] sm:$0xff] }
 0x5d0   :  { %v6227_v59 = vpop.f32.mrf.mxu0  ;;  %2869 = vmatmul.f32.gmra.mxu1 %v2325_v19  ;;  %v2330_v19 = vmax.f32 %v1445_v30, 0.0  ;;  %v1606_v25 = vadd.f32 %v7536_v45, %v5874_v31  ;;  %v7537_v30 = vld [vmem:[#allocation154_spill] sm:$0xff] }
 0x5d1   :  { %7526 = vst [vmem:[#allocation178_spill] sm:$0xff] %v6227_v59  ;;  %v2167_v18 = vmax.f32 %v1758_v16, 0.0  ;;  %v7538_v16 = vld [vmem:[#allocation186_spill] sm:$0xff] }
 0x5d2   :  { %3027 = vmatmul.f32.gmra.mxu2 %v2246_v32  ;;  %3182 = vmatmul.f32.gmra.mxu3 %v2162_v3  ;;  %v2168_v3 = vmax.f32 %v1964_v62, 0.0  ;;  %v7534_v32 = vld [vmem:[#allocation107_spill] sm:$0xff]  ;;  %v6247_v26 = vpop.f32.mrf.mxu1  ;;  %v1967_v10 = vadd.f32 %v7538_v16, %v6134_v6 }
 0x5d3   :  { %3388 = vmatmul.f32.gmra.mxu0 %v2163_v20  ;;  %v1448_v20 = vadd.f32 %v7534_v32, %v5639_v40  ;;  %7535 = vst [vmem:[#allocation180_spill] sm:$0xff] %v6247_v26  ;;  %v2256_v32 = vmax.f32 %v1606_v25, 0.0  ;;  %v7541_v26 = vld [vmem:[#allocation111_spill] sm:$0xff] }
 0x5d4   :  { %v1451_v45 = vadd.f32 %v7541_v26, %v5639_v40 }
 0x5d5   :  { %v6239_v59 = vpop.f32.mrf.mxu2  ;;  %v2335_v62 = vmax.f32 %v1448_v20, 0.0  ;;  %v1764_v20 = vadd.f32 %v7543_v39, %v6129_v58  ;;  %v7549_v39 = vld [vmem:[#allocation22_spill] sm:$0xff] }
 0x5d6   :  { %v6241_v4 = vpop.f32.mrf.mxu3 }
 0x5d7   :  { %7532 = vst [vmem:[#allocation144_spill] sm:$0xff] %v6241_v4  ;;  %v1761_v4 = vadd.f32 %v7537_v30, %v6129_v58  ;;  %v7542_v30 = vld [vmem:[#allocation156_spill] sm:$0xff] }
 0x5d8   :  { %v6243_v50 = vpop.f32.mrf.mxu0  ;;  %2872 = vmatmul.f32.gmra.mxu1 %v2330_v19  ;;  %v1609_v16 = vadd.f32 %v7542_v30, %v5874_v31  ;;  %v7548_v30 = vld [vmem:[#allocation115_spill] sm:$0xff] }
 0x5d9   :  { %7533 = vst [vmem:[#allocation145_spill] sm:$0xff] %v6243_v50  ;;  %v1454_v43 = vadd.f32 %v7548_v30, %v5639_v40 }
 0x5da   :  { %3030 = vmatmul.f32.gmra.mxu2 %v2251_v52  ;;  %3185 = vmatmul.f32.gmra.mxu3 %v2167_v18  ;;  %v2172_v52 = vmax.f32 %v1761_v4, 0.0  ;;  %v6269_v4 = vpop.f32.mrf.mxu1  ;;  %v2261_v26 = vmax.f32 %v1609_v16, 0.0 }
 0x5db   :  { %3391 = vmatmul.f32.gmra.mxu0 %v2168_v3  ;;  %v2173_v3 = vmax.f32 %v1967_v10, 0.0  ;;  %7545 = vst [vmem:[#allocation148_spill] sm:$0xff] %v6269_v4  ;;  %v7551_v4 = vld [vmem:[#allocation190_spill] sm:$0xff] }
 0x5dc   :  { %v1973_v16 = vadd.f32 %v7551_v4, %v6134_v6 }
 0x5dd   :  { %v6255_v50 = vpop.f32.mrf.mxu2 }
 0x5de   :  { %v6257_v19 = vpop.f32.mrf.mxu3 }
 0x5df   :  { %7539 = vst [vmem:[#allocation99_spill] sm:$0xff] %v6257_v19  ;;  %v7544_v19 = vld [vmem:[#allocation188_spill] sm:$0xff] }
 0x5e0   :  { %v6259_v18 = vpop.f32.mrf.mxu0  ;;  %2875 = vmatmul.f32.gmra.mxu1 %v2335_v62  ;;  %v1970_v25 = vadd.f32 %v7544_v19, %v6134_v6  ;;  %v1612_v19 = vadd.f32 %v7549_v39, %v5874_v31 }
 0x5e1   :  { %7540 = vst [vmem:[#allocation147_spill] sm:$0xff] %v6259_v18  ;;  %v2340_v18 = vmax.f32 %v1451_v45, 0.0  ;;  %v7550_v45 = vld [vmem:[#allocation159_spill] sm:$0xff] }
 0x5e2   :  { %3033 = vmatmul.f32.gmra.mxu2 %v2256_v32  ;;  %3188 = vmatmul.f32.gmra.mxu3 %v2172_v52  ;;  %v2177_v32 = vmax.f32 %v1764_v20, 0.0  ;;  %v2345_v20 = vmax.f32 %v1454_v43, 0.0  ;;  %v7556_v43 = vld [vmem:[#allocation55_spill] sm:$0xff] }
 0x5e3   :  { %3394 = vmatmul.f32.gmra.mxu0 %v2173_v3  ;;  %v2178_v3 = vmax.f32 %v1970_v25, 0.0  ;;  %v2266_v25 = vmax.f32 %v1612_v19, 0.0  ;;  %v1615_v4 = vadd.f32 %v7556_v43, %v5874_v31 }
 0x5e5   :  { %v6273_v10 = vpop.f32.mrf.mxu2 }
 0x5e6   :  { %v6271_v62 = vpop.f32.mrf.mxu3 }
 0x5e7   :  { %7546 = vst [vmem:[#allocation182_spill] sm:$0xff] %v6271_v62  ;;  %v1767_v62 = vadd.f32 %v7550_v45, %v6129_v58  ;;  %v7557_v45 = vld [vmem:[#allocation24_spill] sm:$0xff] }
 0x5e8   :  { %v6275_v52 = vpop.f32.mrf.mxu0  ;;  %2878 = vmatmul.f32.gmra.mxu1 %v2340_v18  ;;  %v6287_v18 = vpop.f32.mrf.mxu1 }
 0x5e9   :  { %7547 = vst [vmem:[#allocation103_spill] sm:$0xff] %v6275_v52  ;;  %v2182_v52 = vmax.f32 %v1767_v62, 0.0  ;;  %v7558_v62 = vld [vmem:[#allocation193_spill] sm:$0xff] }
 0x5ea   :  { %3036 = vmatmul.f32.gmra.mxu2 %v2261_v26  ;;  %3191 = vmatmul.f32.gmra.mxu3 %v2177_v32  ;;  %7553 = vst [vmem:[#allocation151_spill] sm:$0xff] %v6287_v18  ;;  %v2183_v32 = vmax.f32 %v1973_v16, 0.0  ;;  %v1976_v19 = vadd.f32 %v7558_v62, %v6134_v6  ;;  %v7565_v62 = vld [vmem:[#allocation195_spill] sm:$0xff] }
 0x5eb   :  { %3397 = vmatmul.f32.gmra.mxu0 %v2178_v3  ;;  %v7555_v3 = vld [vmem:[#allocation118_spill] sm:$0xff] }
 0x5ec   :  { %v1457_v39 = vadd.f32 %v7555_v3, %v5639_v40 }
 0x5ed   :  { %v6289_v30 = vpop.f32.mrf.mxu2 }
 0x5ee   :  { %v6285_v57 = vpop.f32.mrf.mxu3  ;;  %v2350_v18 = vmax.f32 %v1457_v39, 0.0  ;;  %v7563_v39 = vld [vmem:[#allocation58_spill] sm:$0xff] }
 0x5ef   :  { %7552 = vst [vmem:[#allocation150_spill] sm:$0xff] %v6285_v57  ;;  %v1770_v57 = vadd.f32 %v7557_v45, %v6129_v58  ;;  %v1618_v45 = vadd.f32 %v7563_v39, %v5874_v31 }
 0x5f0   :  { %v6291_v26 = vpop.f32.mrf.mxu0  ;;  %2881 = vmatmul.f32.gmra.mxu1 %v2345_v20  ;;  %v2271_v20 = vmax.f32 %v1615_v4, 0.0  ;;  %v7564_v4 = vld [vmem:[#allocation26_spill] sm:$0xff] }
 0x5f1   :  { %7554 = vst [vmem:[#allocation184_spill] sm:$0xff] %v6291_v26  ;;  %v2187_v16 = vmax.f32 %v1770_v57, 0.0  ;;  %v1773_v57 = vadd.f32 %v7564_v4, %v6129_v58  ;;  %v7570_v4 = vld [vmem:[#allocation28_spill] sm:$0xff] }
 0x5f2   :  { %3039 = vmatmul.f32.gmra.mxu2 %v2266_v25  ;;  %3194 = vmatmul.f32.gmra.mxu3 %v2182_v52  ;;  %v2188_v25 = vmax.f32 %v1976_v19, 0.0  ;;  %v6305_v52 = vpop.f32.mrf.mxu1 }
 0x5f3   :  { %3400 = vmatmul.f32.gmra.mxu0 %v2183_v32  ;;  %7561 = vst [vmem:[#allocation154_spill] sm:$0xff] %v6305_v52  ;;  %v7562_v32 = vld [vmem:[#allocation122_spill] sm:$0xff]  ;;  %v2192_v52 = vmax.f32 %v1773_v57, 0.0  ;;  %v7572_v57 = vld [vmem:[#allocation129_spill] sm:$0xff] }
 0x5f4   :  { %v1460_v3 = vadd.f32 %v7562_v32, %v5639_v40 }
 0x5f5   :  { %v6309_v43 = vpop.f32.mrf.mxu2 }
 0x5f6   :  { %v6301_v12 = vpop.f32.mrf.mxu3  ;;  %v2355_v19 = vmax.f32 %v1460_v3, 0.0  ;;  %v7571_v3 = vld [vmem:[#allocation163_spill] sm:$0xff] }
 0x5f7   :  { %7559 = vst [vmem:[#allocation107_spill] sm:$0xff] %v6301_v12  ;;  %v2276_v12 = vmax.f32 %v1618_v45, 0.0 }
 0x5f8   :  { %v6303_v26 = vpop.f32.mrf.mxu0  ;;  %2884 = vmatmul.f32.gmra.mxu1 %v2350_v18  ;;  %v1979_v18 = vadd.f32 %v7565_v62, %v6134_v6  ;;  %v1621_v62 = vadd.f32 %v7570_v4, %v5874_v31 }
 0x5f9   :  { %7560 = vst [vmem:[#allocation153_spill] sm:$0xff] %v6303_v26 }
 0x5fa   :  { %3042 = vmatmul.f32.gmra.mxu2 %v2271_v20  ;;  %3197 = vmatmul.f32.gmra.mxu3 %v2187_v16  ;;  %v2193_v20 = vmax.f32 %v1979_v18, 0.0  ;;  %v7568_v16 = vld [vmem:[#allocation126_spill] sm:$0xff]  ;;  %v6323_v39 = vpop.f32.mrf.mxu1 }
 0x5fb   :  { %3403 = vmatmul.f32.gmra.mxu0 %v2188_v25  ;;  %v1463_v25 = vadd.f32 %v7568_v16, %v5639_v40  ;;  %7569 = vst [vmem:[#allocation156_spill] sm:$0xff] %v6323_v39  ;;  %v2281_v16 = vmax.f32 %v1621_v62, 0.0  ;;  %v7575_v39 = vld [vmem:[#allocation131_spill] sm:$0xff]  ;;  %v1985_v62 = vadd.f32 %v5656_v8, %v6134_v6  ;;  %v7582_v8 = vld [vmem:[#allocation66_spill] sm:$0xff] }
 0x5fc   :  { %v1466_v4 = vadd.f32 %v7575_v39, %v5639_v40 }
 0x5fd   :  { %v6329_v45 = vpop.f32.mrf.mxu2  ;;  %v2360_v18 = vmax.f32 %v1463_v25, 0.0 }
 0x5fe   :  { %v6317_v26 = vpop.f32.mrf.mxu3 }
 0x5ff   :  { %7566 = vst [vmem:[#allocation186_spill] sm:$0xff] %v6317_v26  ;;  %v1776_v26 = vadd.f32 %v7571_v3, %v6129_v58  ;;  %v7576_v3 = vld [vmem:[#allocation30_spill] sm:$0xff] }
 0x600   :  { %v6319_v32 = vpop.f32.mrf.mxu0  ;;  %2887 = vmatmul.f32.gmra.mxu1 %v2355_v19  ;;  %v1982_v19 = vadd.f32 %v7572_v57, %v6134_v6  ;;  %v1624_v7 = vadd.f32 %v7576_v3, %v5874_v31  ;;  %v7577_v57 = vld [vmem:[#allocation165_spill] sm:$0xff]  ;;  %v7581_v3 = vld [vmem:[#allocation134_spill] sm:$0xff] }
 0x601   :  { %7567 = vst [vmem:[#allocation111_spill] sm:$0xff] %v6319_v32  ;;  %v1779_v25 = vadd.f32 %v7577_v57, %v6129_v58  ;;  %v1627_v57 = vadd.f32 %v7582_v8, %v5874_v31 }
 0x602   :  { %3045 = vmatmul.f32.gmra.mxu2 %v2276_v12  ;;  %3200 = vmatmul.f32.gmra.mxu3 %v2192_v52  ;;  %v2197_v12 = vmax.f32 %v1776_v26, 0.0  ;;  %v6345_v26 = vpop.f32.mrf.mxu1  ;;  %v2286_v39 = vmax.f32 %v1624_v7, 0.0  ;;  %v1988_v7 = vadd.f32 %v5670_v56, %v6134_v6  ;;  %v7588_v56 = vld [vmem:[#allocation70_spill] sm:$0xff] }
 0x603   :  { %3406 = vmatmul.f32.gmra.mxu0 %v2193_v20  ;;  %v2198_v20 = vmax.f32 %v1982_v19, 0.0  ;;  %7578 = vst [vmem:[#allocation115_spill] sm:$0xff] %v6345_v26 }
 0x606   :  { %v6333_v32 = vpop.f32.mrf.mxu3 }
 0x607   :  { %7573 = vst [vmem:[#allocation157_spill] sm:$0xff] %v6333_v32  ;;  %v1469_v32 = vadd.f32 %v7581_v3, %v5639_v40 }
 0x608   :  { %v6335_v52 = vpop.f32.mrf.mxu0  ;;  %2890 = vmatmul.f32.gmra.mxu1 %v2360_v18  ;;  %v6347_v18 = vpop.f32.mrf.mxu2 }
 0x609   :  { %7574 = vst [vmem:[#allocation188_spill] sm:$0xff] %v6335_v52  ;;  %v2365_v52 = vmax.f32 %v1466_v4, 0.0  ;;  %v7583_v4 = vld [vmem:[#allocation32_spill] sm:$0xff] }
 0x60a   :  { %3048 = vmatmul.f32.gmra.mxu2 %v2281_v16  ;;  %3203 = vmatmul.f32.gmra.mxu3 %v2197_v12  ;;  %v2202_v16 = vmax.f32 %v1779_v25, 0.0  ;;  %v1782_v26 = vadd.f32 %v7583_v4, %v6129_v58  ;;  %v2370_v25 = vmax.f32 %v1469_v32, 0.0  ;;  %v1630_v32 = vadd.f32 %v7588_v56, %v5874_v31  ;;  %v7589_v4 = vld [vmem:[#allocation34_spill] sm:$0xff] }
 0x60b   :  { %3409 = vmatmul.f32.gmra.mxu0 %v2198_v20  ;;  %v2203_v20 = vmax.f32 %v1985_v62, 0.0  ;;  %v2291_v62 = vmax.f32 %v1627_v57, 0.0 }
 0x60e   :  { %v6349_v19 = vpop.f32.mrf.mxu3 }
 0x60f   :  { %7579 = vst [vmem:[#allocation22_spill] sm:$0xff] %v6349_v19 }
 0x610   :  { %v6351_v12 = vpop.f32.mrf.mxu0  ;;  %2893 = vmatmul.f32.gmra.mxu1 %v2365_v52  ;;  %v6363_v52 = vpop.f32.mrf.mxu1 }
 0x611   :  { %7580 = vst [vmem:[#allocation159_spill] sm:$0xff] %v6351_v12  ;;  %v2207_v12 = vmax.f32 %v1782_v26, 0.0  ;;  %v6365_v3 = vpop.f32.mrf.mxu2  ;;  %v1991_v26 = vadd.f32 %v5684_v53, %v6134_v6  ;;  %v7595_v53 = vld [vmem:[#allocation74_spill] sm:$0xff] }
 0x612   :  { %3051 = vmatmul.f32.gmra.mxu2 %v2286_v39  ;;  %3206 = vmatmul.f32.gmra.mxu3 %v2202_v16  ;;  %7585 = vst [vmem:[#allocation118_spill] sm:$0xff] %v6363_v52  ;;  %v2208_v16 = vmax.f32 %v1988_v7, 0.0 }
 0x613   :  { %3412 = vmatmul.f32.gmra.mxu0 %v2203_v20  ;;  %v7587_v20 = vld [vmem:[#allocation137_spill] sm:$0xff] }
 0x614   :  { %v1472_v8 = vadd.f32 %v7587_v20, %v5639_v40 }
 0x616   :  { %v6361_v19 = vpop.f32.mrf.mxu3  ;;  %v2375_v57 = vmax.f32 %v1472_v8, 0.0  ;;  %v1633_v8 = vadd.f32 %v7595_v53, %v5874_v31 }
 0x617   :  { %7584 = vst [vmem:[#allocation190_spill] sm:$0xff] %v6361_v19  ;;  %v1785_v19 = vadd.f32 %v7589_v4, %v6129_v58  ;;  %v6394_v4 = vld [vmem:[%s7016_s8] ss:$0 sm:$0xff] }
 0x618   :  { %v6367_v39 = vpop.f32.mrf.mxu0  ;;  %2896 = vmatmul.f32.gmra.mxu1 %v2370_v25  ;;  %v2296_v25 = vmax.f32 %v1630_v32, 0.0  ;;  %v7596_v32 = vld [vmem:[#allocation36_spill] sm:$0xff] }
 0x619   :  { %7586 = vst [vmem:[#allocation55_spill] sm:$0xff] %v6367_v39  ;;  %v2212_v7 = vmax.f32 %v1785_v19, 0.0  ;;  %v6385_v56 = vpop.f32.mrf.mxu2  ;;  %v1788_v19 = vadd.f32 %v7596_v32, %v6129_v58  ;;  %v7599_v32 = vld [vmem:[#allocation143_spill] sm:$0xff] }
 0x61a   :  { %3054 = vmatmul.f32.gmra.mxu2 %v2291_v62  ;;  %3209 = vmatmul.f32.gmra.mxu3 %v2207_v12  ;;  %v2213_v62 = vmax.f32 %v1991_v26, 0.0  ;;  %v6381_v12 = vpop.f32.mrf.mxu1  ;;  %7594 = vst [vmem:[#allocation58_spill] sm:$0xff] %v6385_v56  ;;  %v1994_v26 = vadd.f32 %v5698_v41, %v6134_v6  ;;  %v7601_v41 = vld [vmem:[#allocation78_spill] sm:$0xff] }
 0x61b   :  { %3415 = vmatmul.f32.gmra.mxu0 %v2208_v16  ;;  %7592 = vst [vmem:[#allocation122_spill] sm:$0xff] %v6381_v12  ;;  %v7593_v16 = vld [vmem:[#allocation140_spill] sm:$0xff]  ;;  %v1478_v12 = vadd.f32 %v7599_v32, %v5639_v40 }
 0x61c   :  { %v1475_v20 = vadd.f32 %v7593_v16, %v5639_v40 }
 0x61e   :  { %v6377_v52 = vpop.f32.mrf.mxu3 }
 0x61f   :  { %7590 = vst [vmem:[#allocation24_spill] sm:$0xff] %v6377_v52  ;;  %v2218_v52 = vmax.f32 %v1994_v26, 0.0 }
 0x620   :  { %v6379_v39 = vpop.f32.mrf.mxu0  ;;  %2899 = vmatmul.f32.gmra.mxu1 %v2375_v57  ;;  %v2380_v57 = vmax.f32 %v1475_v20, 0.0  ;;  %v1636_v20 = vadd.f32 %v7601_v41, %v5874_v31 }
 0x621   :  { %7591 = vst [vmem:[#allocation193_spill] sm:$0xff] %v6379_v39  ;;  %v7598_v39 = vld [vmem:[#allocation171_spill] sm:$0xff] }
 0x622   :  { %3057 = vmatmul.f32.gmra.mxu2 %v2296_v25  ;;  %3212 = vmatmul.f32.gmra.mxu3 %v2212_v7  ;;  %v2301_v25 = vmax.f32 %v1633_v8, 0.0  ;;  %v2217_v7 = vmax.f32 %v1788_v19, 0.0  ;;  %v2551_v53 = vadd.f32 %v6394_v4, %v7598_v39  ;;  %v6405_v56 = vpop.f32.mrf.mxu1  ;;  %v7602_v8 = vld [vmem:[#allocation38_spill] sm:$0xff]  ;;  %v1997_v39 = vadd.f32 %v5712_v5, %v6134_v6 }
 0x623   :  { %3418 = vmatmul.f32.gmra.mxu0 %v2213_v62  ;;  %7600 = vst [vmem:[#allocation195_spill] sm:$0xff] %v6405_v56  ;;  %v1791_v19 = vadd.f32 %v7602_v8, %v6129_v58  ;;  %v7605_v8 = vld [vmem:[#allocation146_spill] sm:$0xff] }
 0x624   :  { %v2757_v2 = vadd.f32 %v5888_v34, %v2551_v53  ;;  %v2306_v34 = vmax.f32 %v1636_v20, 0.0  ;;  %v2223_v56 = vmax.f32 %v1997_v39, 0.0  ;;  %v2000_v39 = vadd.f32 %v5726_v60, %v6134_v6  ;;  %v7609_v60 = vld [vmem:[#allocation149_spill] sm:$0xff] }
 0x625   :  { %v2222_v53 = vmax.f32 %v1791_v19, 0.0  ;;  %v7607_v19 = vld [vmem:[#allocation40_spill] sm:$0xff] }
 0x626   :  { %v6398_v16 = vpop.f32.mrf.mxu3  ;;  %v2963_v26 = vadd.f32 %v6145_v54, %v2757_v2  ;;  %v3788_v54 = vld [vmem:[#allocation2] sm:$0xff] }
 0x627   :  { %7597 = vst [vmem:[#allocation26_spill] sm:$0xff] %v6398_v16 }
 0x628   :  { %v3374_v62 = vpop.f32.mrf.mxu0  ;;  %2902 = vmatmul.f32.gmra.mxu1 %v2380_v57  ;;  %v6411_v57 = vpop.f32.mrf.mxu2 }
 0x629   :  { %7603 = vst [vmem:[#allocation126_spill] sm:$0xff] %v6411_v57  ;;  %v1481_v57 = vadd.f32 %v7605_v8, %v5639_v40  ;;  %v2228_v8 = vmax.f32 %v2000_v39, 0.0  ;;  %v2003_v39 = vadd.f32 %v5740_v38, %v6134_v6  ;;  %v7613_v38 = vld [vmem:[#allocation152_spill] sm:$0xff] }
 0x62a   :  { %3060 = vmatmul.f32.gmra.mxu2 %v2301_v25  ;;  %3215 = vmatmul.f32.gmra.mxu3 %v2217_v7  ;;  %v2385_v25 = vmax.f32 %v1478_v12, 0.0  ;;  %v7606_v12 = vld [vmem:[#allocation82_spill] sm:$0xff] }
 0x62b   :  { %3421 = vmatmul.f32.gmra.mxu0 %v2218_v52  ;;  %v7604_v52 = vld [vmem:[#allocation173_spill] sm:$0xff]  ;;  %v1639_v20 = vadd.f32 %v7606_v12, %v5874_v31  ;;  %v7610_v12 = vld [vmem:[#allocation86_spill] sm:$0xff] }
 0x62c   :  { %v2554_v41 = vadd.f32 %v6394_v4, %v7604_v52  ;;  %v7608_v52 = vld [vmem:[#allocation175_spill] sm:$0xff] }
 0x62e   :  { %v3168_v7 = vpop.f32.mrf.mxu3  ;;  %v2760_v5 = vadd.f32 %v5903_v48, %v2554_v41  ;;  %v2557_v41 = vadd.f32 %v6394_v4, %v7608_v52 }
 0x62f   :  { %v3169_v32 = vadd.f32 %v3168_v7, %v2963_v26  ;;  %v1794_v26 = vadd.f32 %v7607_v19, %v6129_v58  ;;  %v2390_v7 = vmax.f32 %v1481_v57, 0.0  ;;  %v7611_v19 = vld [vmem:[#allocation42_spill] sm:$0xff] }
 0x630   :  { %v3377_v16 = vpop.f32.mrf.mxu0  ;;  %2905 = vmatmul.f32.gmra.mxu1 %v2385_v25  ;;  %v6428_v25 = vpop.f32.mrf.mxu1  ;;  %v2763_v57 = vadd.f32 %v5918_v21, %v2557_v41  ;;  %v7612_v41 = vld [vmem:[#allocation177_spill] sm:$0xff] }
 0x631   :  { %v3375_v27 = vadd.f32 %v3374_v62, %v3169_v32  ;;  %v2966_v62 = vadd.f32 %v6161_v23, %v2760_v5  ;;  %v6430_v32 = vpop.f32.mrf.mxu2  ;;  %v1484_v23 = vadd.f32 %v7609_v60, %v5639_v40  ;;  %v3789_v5 = vld [vmem:[#allocation2 + $0x8] sm:$0xff] }
 0x632   :  { %3063 = vmatmul.f32.gmra.mxu2 %v2306_v34  ;;  %3218 = vmatmul.f32.gmra.mxu3 %v2222_v53  ;;  %v2227_v34 = vmax.f32 %v1794_v26, 0.0  ;;  %v1797_v26 = vadd.f32 %v7611_v19, %v6129_v58 }
 0x633   :  { %v3563_v2 = vadd.f32 %v3788_v54, %v3375_v27  ;;  %3424 = vmatmul.f32.gmra.mxu0 %v2223_v56  ;;  %v2311_v56 = vmax.f32 %v1639_v20, 0.0  ;;  %v1642_v20 = vadd.f32 %v7610_v12, %v5874_v31 }
 0x635   :  { %3626 = vst [vmem:[#allocation8] sm:$0xff] %v3563_v2 }
 0x636   :  { %v3171_v48 = vpop.f32.mrf.mxu3 }
 0x637   :  { %v3172_v27 = vadd.f32 %v3171_v48, %v2966_v62  ;;  %v2395_v62 = vmax.f32 %v1484_v23, 0.0 }
 0x638   :  { %v3380_v53 = vpop.f32.mrf.mxu0  ;;  %2908 = vmatmul.f32.gmra.mxu1 %v2390_v7  ;;  %v6444_v48 = vpop.f32.mrf.mxu1 }
 0x639   :  { %v3378_v54 = vadd.f32 %v3377_v16, %v3172_v27  ;;  %v2969_v16 = vadd.f32 %v6177_v1, %v2763_v57  ;;  %v2316_v27 = vmax.f32 %v1642_v20, 0.0  ;;  %v1487_v1 = vadd.f32 %v7613_v38, %v5639_v40  ;;  %v3790_v57 = vld [vmem:[#allocation2 + $0x10] sm:$0xff] }
 0x63a   :  { %3066 = vmatmul.f32.gmra.mxu2 %v2311_v56  ;;  %3221 = vmatmul.f32.gmra.mxu3 %v2227_v34  ;;  %v2232_v56 = vmax.f32 %v1797_v26, 0.0  ;;  %v6446_v34 = vpop.f32.mrf.mxu2  ;;  %v7615_v20 = vld [vmem:[#allocation44_spill] sm:$0xff]  ;;  %v2006_v26 = vadd.f32 %v5754_v29, %v6134_v6 }
 0x63b   :  { %v3564_v2 = vadd.f32 %v3789_v5, %v3378_v54  ;;  %3427 = vmatmul.f32.gmra.mxu0 %v2228_v8  ;;  %v2560_v8 = vadd.f32 %v6394_v4, %v7612_v41  ;;  %v2233_v54 = vmax.f32 %v2003_v39, 0.0  ;;  %v1800_v19 = vadd.f32 %v7615_v20, %v6129_v58 }
 0x63c   :  { %v2400_v39 = vmax.f32 %v1487_v1, 0.0  ;;  %v2238_v41 = vmax.f32 %v2006_v26, 0.0  ;;  %v3791_v1 = vld [vmem:[#allocation2 + $0x18] sm:$0xff] }
 0x63d   :  { %3627 = vst [vmem:[#allocation8 + $0x8] sm:$0xff] %v3564_v2  ;;  %v2766_v23 = vadd.f32 %v5933_v13, %v2560_v8  ;;  %v7614_v2 = vld [vmem:[#allocation90_spill] sm:$0xff]  ;;  %v2237_v13 = vmax.f32 %v1800_v19, 0.0 }
 0x63e   :  { %v3174_v7 = vpop.f32.mrf.mxu3  ;;  %v1645_v12 = vadd.f32 %v7614_v2, %v5874_v31  ;;  %v7619_v2 = vld [vmem:[#allocation46_spill] sm:$0xff] }
 0x63f   :  { %v3175_v21 = vadd.f32 %v3174_v7, %v2969_v16 }
 0x640   :  { %v3383_v52 = vpop.f32.mrf.mxu0  ;;  %2911 = vmatmul.f32.gmra.mxu1 %v2395_v62  ;;  %v2321_v7 = vmax.f32 %v1645_v12, 0.0  ;;  %v6462_v8 = vpop.f32.mrf.mxu1  ;;  %v1803_v12 = vadd.f32 %v7619_v2, %v6129_v58 }
 0x641   :  { %v3381_v60 = vadd.f32 %v3380_v53, %v3175_v21  ;;  %v2972_v53 = vadd.f32 %v6193_v42, %v2766_v23 }
 0x642   :  { %3069 = vmatmul.f32.gmra.mxu2 %v2316_v27  ;;  %3224 = vmatmul.f32.gmra.mxu3 %v2232_v56  ;;  %v7616_v27 = vld [vmem:[#allocation179_spill] sm:$0xff]  ;;  %v6466_v38 = vpop.f32.mrf.mxu2 }
 0x643   :  { %v3565_v5 = vadd.f32 %v3790_v57, %v3381_v60  ;;  %3430 = vmatmul.f32.gmra.mxu0 %v2233_v54  ;;  %v2563_v56 = vadd.f32 %v6394_v4, %v7616_v27  ;;  %v7617_v60 = vld [vmem:[#allocation155_spill] sm:$0xff]  ;;  %v7618_v57 = vld [vmem:[#allocation94_spill] sm:$0xff] }
 0x644   :  { %v1490_v29 = vadd.f32 %v7617_v60, %v5639_v40 }
 0x645   :  { %3628 = vst [vmem:[#allocation8 + $0x10] sm:$0xff] %v3565_v5  ;;  %v2769_v42 = vadd.f32 %v5948_v61, %v2563_v56  ;;  %v1648_v5 = vadd.f32 %v7618_v57, %v5874_v31  ;;  %v2242_v61 = vmax.f32 %v1803_v12, 0.0  ;;  %v7621_v56 = vld [vmem:[#allocation158_spill] sm:$0xff] }
 0x646   :  { %v3177_v16 = vpop.f32.mrf.mxu3  ;;  %v2405_v19 = vmax.f32 %v1490_v29, 0.0  ;;  %v7622_v29 = vld [vmem:[#allocation98_spill] sm:$0xff] }
 0x647   :  { %v3178_v62 = vadd.f32 %v3177_v16, %v2972_v53  ;;  %v2975_v20 = vadd.f32 %v6207_v9, %v2769_v42  ;;  %v1651_v42 = vadd.f32 %v7622_v29, %v5874_v31 }
 0x648   :  { %v3386_v21 = vpop.f32.mrf.mxu0  ;;  %2914 = vmatmul.f32.gmra.mxu1 %v2400_v39  ;;  %v2326_v39 = vmax.f32 %v1648_v5, 0.0  ;;  %v6481_v9 = vpop.f32.mrf.mxu1 }
 0x649   :  { %v3384_v54 = vadd.f32 %v3383_v52, %v3178_v62  ;;  %v2009_v52 = vadd.f32 %v5768_v63, %v6134_v6  ;;  %v7620_v62 = vld [vmem:[#allocation181_spill] sm:$0xff] }
 0x64a   :  { %3072 = vmatmul.f32.gmra.mxu2 %v2321_v7  ;;  %3227 = vmatmul.f32.gmra.mxu3 %v2237_v13  ;;  %v2566_v7 = vadd.f32 %v6394_v4, %v7620_v62  ;;  %v6487_v57 = vpop.f32.mrf.mxu2  ;;  %v7625_v62 = vld [vmem:[#allocation160_spill] sm:$0xff] }
 0x64b   :  { %v3566_v23 = vadd.f32 %v3791_v1, %v3384_v54  ;;  %3433 = vmatmul.f32.gmra.mxu0 %v2238_v41  ;;  %v2243_v13 = vmax.f32 %v2009_v52, 0.0  ;;  %v1493_v41 = vadd.f32 %v7621_v56, %v5639_v40  ;;  %v3792_v54 = vld [vmem:[#allocation2 + $0x20] sm:$0xff]  ;;  %v7623_v1 = vld [vmem:[#allocation48_spill] sm:$0xff]  ;;  %v2331_v52 = vmax.f32 %v1651_v42, 0.0 }
 0x64c   :  { %v2772_v63 = vadd.f32 %v5963_v51, %v2566_v7  ;;  %v1496_v7 = vadd.f32 %v7625_v62, %v5639_v40  ;;  %v7631_v62 = vld [vmem:[#allocation52_spill] sm:$0xff] }
 0x64d   :  { %3629 = vst [vmem:[#allocation8 + $0x18] sm:$0xff] %v3566_v23  ;;  %v1806_v23 = vadd.f32 %v7623_v1, %v6129_v58  ;;  %v2410_v51 = vmax.f32 %v1493_v41, 0.0  ;;  %v7627_v41 = vld [vmem:[#allocation50_spill] sm:$0xff] }
 0x64e   :  { %v3180_v26 = vpop.f32.mrf.mxu3  ;;  %v2978_v5 = vadd.f32 %v6223_v47, %v2772_v63  ;;  %v3793_v47 = vld [vmem:[#allocation2 + $0x28] sm:$0xff]  ;;  %v1809_v63 = vadd.f32 %v7627_v41, %v6129_v58  ;;  %v2415_v29 = vmax.f32 %v1496_v7, 0.0  ;;  %v1812_v7 = vadd.f32 %v7631_v62, %v6129_v58  ;;  %v7636_v62 = vld [vmem:[#allocation189_spill] sm:$0xff] }
 0x64f   :  { %v3181_v53 = vadd.f32 %v3180_v26, %v2975_v20  ;;  %v2247_v20 = vmax.f32 %v1806_v23, 0.0  ;;  %v7624_v26 = vld [vmem:[#allocation183_spill] sm:$0xff] }
 0x650   :  { %v3389_v16 = vpop.f32.mrf.mxu0  ;;  %2917 = vmatmul.f32.gmra.mxu1 %v2405_v19  ;;  %v2257_v41 = vmax.f32 %v1812_v7, 0.0  ;;  %v2578_v7 = vadd.f32 %v6394_v4, %v7636_v62  ;;  %v7643_v62 = vld [vmem:[#allocation192_spill] sm:$0xff] }
 0x651   :  { %v3387_v27 = vadd.f32 %v3386_v21, %v3181_v53  ;;  %v2012_v21 = vadd.f32 %v5782_v36, %v6134_v6  ;;  %v2569_v53 = vadd.f32 %v6394_v4, %v7624_v26  ;;  %v3794_v26 = vld [vmem:[#allocation2 + $0x30] sm:$0xff] }
 0x652   :  { %3075 = vmatmul.f32.gmra.mxu2 %v2326_v39  ;;  %3230 = vmatmul.f32.gmra.mxu3 %v2242_v61  ;;  %v6506_v42 = vpop.f32.mrf.mxu2 }
 0x653   :  { %v3567_v60 = vadd.f32 %v3792_v54, %v3387_v27  ;;  %3436 = vmatmul.f32.gmra.mxu0 %v2243_v13  ;;  %v2248_v39 = vmax.f32 %v2012_v21, 0.0  ;;  %v2775_v36 = vadd.f32 %v5980_v46, %v2569_v53  ;;  %v7626_v27 = vld [vmem:[#allocation102_spill] sm:$0xff]  ;;  %v2015_v54 = vadd.f32 %v5796_v37, %v6134_v6  ;;  %v7629_v37 = vld [vmem:[#allocation161_spill] sm:$0xff] }
 0x654   :  { %v1654_v56 = vadd.f32 %v7626_v27, %v5874_v31  ;;  %v2252_v21 = vmax.f32 %v1809_v63, 0.0 }
 0x655   :  { %3630 = vst [vmem:[#allocation8 + $0x20] sm:$0xff] %v3567_v60  ;;  %v6504_v60 = vpop.f32.mrf.mxu1 }
 0x656   :  { %v3183_v2 = vpop.f32.mrf.mxu3  ;;  %v2336_v23 = vmax.f32 %v1654_v56, 0.0 }
 0x657   :  { %v3184_v12 = vadd.f32 %v3183_v2, %v2978_v5 }
 0x658   :  { %v3392_v19 = vpop.f32.mrf.mxu0  ;;  %2920 = vmatmul.f32.gmra.mxu1 %v2410_v51  ;;  %v7628_v51 = vld [vmem:[#allocation185_spill] sm:$0xff] }
 0x659   :  { %v3390_v61 = vadd.f32 %v3389_v16, %v3184_v12  ;;  %v2981_v16 = vadd.f32 %v6239_v59, %v2775_v36  ;;  %v2572_v2 = vadd.f32 %v6394_v4, %v7628_v51  ;;  %v2253_v12 = vmax.f32 %v2015_v54, 0.0 }
 0x65a   :  { %3078 = vmatmul.f32.gmra.mxu2 %v2331_v52  ;;  %3233 = vmatmul.f32.gmra.mxu3 %v2247_v20  ;;  %v1499_v59 = vadd.f32 %v7629_v37, %v5639_v40  ;;  %v2018_v36 = vadd.f32 %v5810_v0, %v6134_v6  ;;  %v6522_v63 = vpop.f32.mrf.mxu2  ;;  %v7633_v0 = vld [vmem:[#allocation162_spill] sm:$0xff] }
 0x65b   :  { %v3568_v13 = vadd.f32 %v3793_v47, %v3390_v61  ;;  %3439 = vmatmul.f32.gmra.mxu0 %v2248_v39  ;;  %v2778_v20 = vadd.f32 %v5997_v44, %v2572_v2  ;;  %v7630_v39 = vld [vmem:[#allocation106_spill] sm:$0xff] }
 0x65c   :  { %v1657_v61 = vadd.f32 %v7630_v39, %v5874_v31  ;;  %v2420_v47 = vmax.f32 %v1499_v59, 0.0  ;;  %v7634_v2 = vld [vmem:[#allocation110_spill] sm:$0xff]  ;;  %v2021_v59 = vadd.f32 %v5824_v17, %v6134_v6 }
 0x65d   :  { %3631 = vst [vmem:[#allocation8 + $0x28] sm:$0xff] %v3568_v13  ;;  %v6520_v27 = vpop.f32.mrf.mxu1 }
 0x65e   :  { %v3186_v46 = vpop.f32.mrf.mxu3  ;;  %v2341_v56 = vmax.f32 %v1657_v61, 0.0 }
 0x65f   :  { %v3187_v1 = vadd.f32 %v3186_v46, %v2981_v16  ;;  %v7632_v16 = vld [vmem:[#allocation187_spill] sm:$0xff]  ;;  %v2258_v46 = vmax.f32 %v2018_v36, 0.0  ;;  %v2263_v36 = vmax.f32 %v2021_v59, 0.0 }
 0x660   :  { %v3395_v5 = vpop.f32.mrf.mxu0  ;;  %2923 = vmatmul.f32.gmra.mxu1 %v2415_v29  ;;  %v2575_v29 = vadd.f32 %v6394_v4, %v7632_v16  ;;  %v7638_v16 = vld [vmem:[#allocation114_spill] sm:$0xff] }
 0x661   :  { %v3393_v52 = vadd.f32 %v3392_v19, %v3187_v1  ;;  %v2984_v19 = vadd.f32 %v6255_v50, %v2778_v20  ;;  %v1502_v50 = vadd.f32 %v7633_v0, %v5639_v40 }
 0x662   :  { %3081 = vmatmul.f32.gmra.mxu2 %v2336_v23  ;;  %3236 = vmatmul.f32.gmra.mxu3 %v2252_v21  ;;  %v2781_v23 = vadd.f32 %v6015_v28, %v2575_v29  ;;  %v3795_v21 = vld [vmem:[#allocation2 + $0x38] sm:$0xff]  ;;  %v1663_v29 = vadd.f32 %v7638_v16, %v5874_v31  ;;  %v7644_v16 = vld [vmem:[#allocation194_spill] sm:$0xff] }
 0x663   :  { %v3569_v53 = vadd.f32 %v3794_v26, %v3393_v52  ;;  %3442 = vmatmul.f32.gmra.mxu0 %v2253_v12  ;;  %v1660_v12 = vadd.f32 %v7634_v2, %v5874_v31  ;;  %v7635_v52 = vld [vmem:[#allocation54_spill] sm:$0xff]  ;;  %v2425_v20 = vmax.f32 %v1502_v50, 0.0 }
 0x664   :  { %v1815_v37 = vadd.f32 %v7635_v52, %v6129_v58 }
 0x665   :  { %3632 = vst [vmem:[#allocation8 + $0x30] sm:$0xff] %v3569_v53  ;;  %v2346_v39 = vmax.f32 %v1660_v12, 0.0  ;;  %v7640_v12 = vld [vmem:[#allocation191_spill] sm:$0xff] }
 0x666   :  { %v3189_v13 = vpop.f32.mrf.mxu3  ;;  %v2262_v28 = vmax.f32 %v1815_v37, 0.0  ;;  %v2581_v52 = vadd.f32 %v6394_v4, %v7640_v12  ;;  %v7648_v12 = vld [vmem:[#allocation212_spill] sm:$0xff] }
 0x667   :  { %v3190_v44 = vadd.f32 %v3189_v13, %v2984_v19  ;;  %v6538_v19 = vpop.f32.mrf.mxu1  ;;  %v7637_v13 = vld [vmem:[#allocation164_spill] sm:$0xff] }
 0x668   :  { %v3398_v54 = vpop.f32.mrf.mxu0  ;;  %2926 = vmatmul.f32.gmra.mxu1 %v2420_v47  ;;  %v1505_v17 = vadd.f32 %v7637_v13, %v5639_v40 }
 0x669   :  { %v3396_v1 = vadd.f32 %v3395_v5, %v3190_v44  ;;  %v2987_v5 = vadd.f32 %v6273_v10, %v2781_v23  ;;  %v6542_v44 = vpop.f32.mrf.mxu2  ;;  %v2784_v10 = vadd.f32 %v6034_v35, %v2578_v7  ;;  %v1821_v7 = vadd.f32 %v7643_v62, %v6129_v58 }
 0x66a   :  { %3084 = vmatmul.f32.gmra.mxu2 %v2341_v56  ;;  %3239 = vmatmul.f32.gmra.mxu3 %v2257_v41  ;;  %v3796_v56 = vld [vmem:[#allocation2 + $0x40] sm:$0xff]  ;;  %v2430_v50 = vmax.f32 %v1505_v17, 0.0 }
 0x66b   :  { %v3570_v51 = vadd.f32 %v3795_v21, %v3396_v1  ;;  %3445 = vmatmul.f32.gmra.mxu0 %v2258_v46  ;;  %v7639_v46 = vld [vmem:[#allocation57_spill] sm:$0xff]  ;;  %v2990_v0 = vadd.f32 %v6289_v30, %v2784_v10 }
 0x66c   :  { %v1818_v1 = vadd.f32 %v7639_v46, %v6129_v58 }
 0x66d   :  { %3633 = vst [vmem:[#allocation8 + $0x38] sm:$0xff] %v3570_v51  ;;  %v2351_v51 = vmax.f32 %v1663_v29, 0.0  ;;  %v2584_v29 = vadd.f32 %v6394_v4, %v7644_v16 }
 0x66e   :  { %v3192_v26 = vpop.f32.mrf.mxu3  ;;  %v2267_v35 = vmax.f32 %v1818_v1, 0.0 }
 0x66f   :  { %v3193_v53 = vadd.f32 %v3192_v26, %v2987_v5  ;;  %v7641_v5 = vld [vmem:[#allocation166_spill] sm:$0xff]  ;;  %v6557_v30 = vpop.f32.mrf.mxu1  ;;  %v3797_v26 = vld [vmem:[#allocation2 + $0x48] sm:$0xff] }
 0x670   :  { %v3401_v61 = vpop.f32.mrf.mxu0  ;;  %2929 = vmatmul.f32.gmra.mxu1 %v2425_v20  ;;  %v1508_v20 = vadd.f32 %v7641_v5, %v5639_v40 }
 0x671   :  { %v3399_v47 = vadd.f32 %v3398_v54, %v3193_v53  ;;  %v2024_v54 = vadd.f32 %v5838_v49, %v6134_v6  ;;  %v2787_v49 = vadd.f32 %v6053_v22, %v2581_v52  ;;  %v2030_v52 = vadd.f32 %v7648_v12, %v6134_v6  ;;  %v3800_v12 = vld [vmem:[#allocation2 + $0x60] sm:$0xff] }
 0x672   :  { %3087 = vmatmul.f32.gmra.mxu2 %v2346_v39  ;;  %3242 = vmatmul.f32.gmra.mxu3 %v2262_v28  ;;  %v7642_v39 = vld [vmem:[#allocation60_spill] sm:$0xff]  ;;  %v2435_v22 = vmax.f32 %v1508_v20, 0.0 }
 0x673   :  { %v3571_v41 = vadd.f32 %v3796_v56, %v3399_v47  ;;  %3448 = vmatmul.f32.gmra.mxu0 %v2263_v36  ;;  %v2268_v37 = vmax.f32 %v2024_v54, 0.0  ;;  %v1666_v28 = vadd.f32 %v7642_v39, %v5874_v31  ;;  %v6563_v36 = vpop.f32.mrf.mxu2  ;;  %v2993_v47 = vadd.f32 %v6309_v43, %v2787_v49  ;;  %v7645_v54 = vld [vmem:[#allocation167_spill] sm:$0xff]  ;;  %v3798_v43 = vld [vmem:[#allocation2 + $0x50] sm:$0xff] }
 0x674   :  { %v2272_v56 = vmax.f32 %v1821_v7, 0.0  ;;  %v7649_v39 = vld [vmem:[#allocation196_spill] sm:$0xff]  ;;  %v2278_v62 = vmax.f32 %v2030_v52, 0.0 }
 0x675   :  { %3634 = vst [vmem:[#allocation8 + $0x40] sm:$0xff] %v3571_v41  ;;  %v2356_v10 = vmax.f32 %v1666_v28, 0.0  ;;  %v2587_v28 = vadd.f32 %v6394_v4, %v7649_v39 }
 0x676   :  { %v3195_v23 = vpop.f32.mrf.mxu3 }
 0x677   :  { %v3196_v21 = vadd.f32 %v3195_v23, %v2990_v0  ;;  %v1511_v0 = vadd.f32 %v7645_v54, %v5639_v40  ;;  %v7646_v23 = vld [vmem:[#allocation121_spill] sm:$0xff] }
 0x678   :  { %v3404_v2 = vpop.f32.mrf.mxu0  ;;  %2932 = vmatmul.f32.gmra.mxu1 %v2430_v50 }
 0x679   :  { %v3402_v59 = vadd.f32 %v3401_v61, %v3196_v21  ;;  %v2027_v61 = vadd.f32 %v5852_v33, %v6134_v6  ;;  %v2790_v33 = vadd.f32 %v6070_v55, %v2584_v29  ;;  %v1669_v21 = vadd.f32 %v7646_v23, %v5874_v31  ;;  %v7653_v29 = vld [vmem:[#allocation64_spill] sm:$0xff]  ;;  %v7654_v23 = vld [vmem:[#allocation197_spill] sm:$0xff] }
 0x67a   :  { %3090 = vmatmul.f32.gmra.mxu2 %v2351_v51  ;;  %3245 = vmatmul.f32.gmra.mxu3 %v2267_v35  ;;  %v7647_v51 = vld [vmem:[#allocation62_spill] sm:$0xff] }
 0x67b   :  { %v3572_v53 = vadd.f32 %v3797_v26, %v3402_v59  ;;  %3451 = vmatmul.f32.gmra.mxu0 %v2268_v37  ;;  %v2273_v46 = vmax.f32 %v2027_v61, 0.0  ;;  %v1824_v35 = vadd.f32 %v7647_v51, %v6129_v58  ;;  %v6580_v37 = vpop.f32.mrf.mxu1  ;;  %v2440_v59 = vmax.f32 %v1511_v0, 0.0  ;;  %v6582_v5 = vpop.f32.mrf.mxu2  ;;  %v7650_v61 = vld [vmem:[#allocation169_spill] sm:$0xff] }
 0x67c   :  { %v2361_v49 = vmax.f32 %v1669_v21, 0.0  ;;  %v2590_v21 = vadd.f32 %v6394_v4, %v7654_v23 }
 0x67d   :  { %3635 = vst [vmem:[#allocation8 + $0x48] sm:$0xff] %v3572_v53  ;;  %v2277_v26 = vmax.f32 %v1824_v35, 0.0 }
 0x67e   :  { %v3198_v13 = vpop.f32.mrf.mxu3 }
 0x67f   :  { %v3199_v17 = vadd.f32 %v3198_v13, %v2993_v47  ;;  %v2793_v47 = vadd.f32 %v6088_v24, %v2587_v28 }
 0x680   :  { %v3407_v41 = vpop.f32.mrf.mxu0  ;;  %2935 = vmatmul.f32.gmra.mxu1 %v2435_v22  ;;  %v3799_v22 = vld [vmem:[#allocation2 + $0x58] sm:$0xff] }
 0x681   :  { %v3405_v1 = vadd.f32 %v3404_v2, %v3199_v17  ;;  %v2996_v2 = vadd.f32 %v6329_v45, %v2790_v33  ;;  %v1514_v45 = vadd.f32 %v7650_v61, %v5639_v40  ;;  %v7651_v17 = vld [vmem:[#allocation125_spill] sm:$0xff] }
 0x682   :  { %3093 = vmatmul.f32.gmra.mxu2 %v2356_v10  ;;  %3248 = vmatmul.f32.gmra.mxu3 %v2272_v56  ;;  %v1672_v10 = vadd.f32 %v7651_v17, %v5874_v31  ;;  %v7652_v56 = vld [vmem:[#allocation65_spill] sm:$0xff] }
 0x683   :  { %v3573_v50 = vadd.f32 %v3798_v43, %v3405_v1  ;;  %3454 = vmatmul.f32.gmra.mxu0 %v2273_v46  ;;  %v1827_v16 = vadd.f32 %v7652_v56, %v6129_v58  ;;  %v2033_v46 = vadd.f32 %v7653_v29, %v6134_v6  ;;  %v2445_v40 = vmax.f32 %v1514_v45, 0.0  ;;  %v6596_v54 = vpop.f32.mrf.mxu1  ;;  %v6598_v43 = vpop.f32.mrf.mxu2  ;;  %v7659_v56 = vld [vmem:[#allocation73_spill] sm:$0xff]  ;;  %v7660_v29 = vld [vmem:[#allocation72_spill] sm:$0xff] }
 0x684   :  { %v2366_v0 = vmax.f32 %v1672_v10, 0.0 }
 0x685   :  { %3636 = vst [vmem:[#allocation8 + $0x50] sm:$0xff] %v3573_v50  ;;  %v2282_v33 = vmax.f32 %v1827_v16, 0.0  ;;  %v2283_v51 = vmax.f32 %v2033_v46, 0.0  ;;  %v1833_v16 = vadd.f32 %v7659_v56, %v6129_v58  ;;  %v2039_v46 = vadd.f32 %v7660_v29, %v6134_v6  ;;  %v3803_v56 = vld [vmem:[#allocation2 + $0x78] sm:$0xff]  ;;  %v7670_v29 = vld [vmem:[#allocation15_spill] sm:$0xff] }
 0x686   :  { %v3201_v55 = vpop.f32.mrf.mxu3 }
 0x687   :  { %v3202_v20 = vadd.f32 %v3201_v55, %v2996_v2  ;;  %v7655_v2 = vld [vmem:[#allocation130_spill] sm:$0xff]  ;;  %v7656_v55 = vld [vmem:[#allocation12_spill] sm:$0xff] }
 0x688   :  { %v3410_v53 = vpop.f32.mrf.mxu0  ;;  %2938 = vmatmul.f32.gmra.mxu1 %v2440_v59  ;;  %v1675_v59 = vadd.f32 %v7655_v2, %v5874_v31  ;;  %v7664_v2 = vld [vmem:[#allocation14_spill] sm:$0xff] }
 0x689   :  { %v3408_v7 = vadd.f32 %v3407_v41, %v3202_v20  ;;  %v2999_v41 = vadd.f32 %v6347_v18, %v2793_v47  ;;  %v2796_v18 = vadd.f32 %v6107_v11, %v2590_v21  ;;  %v1830_v20 = vadd.f32 %v7656_v55, %v6129_v58  ;;  %v7665_v55 = vld [vmem:[#allocation77_spill] sm:$0xff] }
 0x68a   :  { %3096 = vmatmul.f32.gmra.mxu2 %v2361_v49  ;;  %3251 = vmatmul.f32.gmra.mxu3 %v2277_v26  ;;  %v2036_v49 = vadd.f32 %v5905_v15, %v6134_v6  ;;  %v2371_v28 = vmax.f32 %v1675_v59, 0.0  ;;  %v3801_v15 = vld [vmem:[#allocation2 + $0x68] sm:$0xff]  ;;  %v2293_v21 = vmax.f32 %v2039_v46, 0.0  ;;  %v1681_v59 = vadd.f32 %v7664_v2, %v5874_v31 }
 0x68b   :  { %v3574_v13 = vadd.f32 %v3799_v22, %v3408_v7  ;;  %3457 = vmatmul.f32.gmra.mxu0 %v2278_v62  ;;  %v3002_v26 = vadd.f32 %v6365_v3, %v2796_v18  ;;  %v2287_v62 = vmax.f32 %v1830_v20, 0.0  ;;  %v7657_v7 = vld [vmem:[#allocation69_spill] sm:$0xff]  ;;  %v6612_v22 = vpop.f32.mrf.mxu2  ;;  %v1836_v20 = vadd.f32 %v7665_v55, %v6129_v58  ;;  %v7674_v2 = vld [vmem:[#allocation87_spill] sm:$0xff]  ;;  %v3804_v55 = vld [vmem:[#allocation2 + $0x80] sm:$0xff] }
 0x68c   :  { %v2593_v61 = vadd.f32 %v6394_v4, %v7657_v7  ;;  %v2288_v45 = vmax.f32 %v2036_v49, 0.0  ;;  %v7658_v3 = vld [vmem:[#allocation13_spill] sm:$0xff]  ;;  %v2381_v7 = vmax.f32 %v1681_v59, 0.0  ;;  %v1684_v46 = vadd.f32 %v7670_v29, %v5874_v31 }
 0x68d   :  { %3637 = vst [vmem:[#allocation8 + $0x58] sm:$0xff] %v3574_v13  ;;  %v1678_v10 = vadd.f32 %v7658_v3, %v5874_v31  ;;  %v7669_v3 = vld [vmem:[#allocation135_spill] sm:$0xff] }
 0x68e   :  { %v3204_v1 = vpop.f32.mrf.mxu3  ;;  %v2799_v13 = vadd.f32 %v6126_v14, %v2593_v61  ;;  %v2297_v61 = vmax.f32 %v1836_v20, 0.0 }
 0x68f   :  { %v3205_v24 = vadd.f32 %v3204_v1, %v2999_v41  ;;  %v7661_v41 = vld [vmem:[#allocation58_spill] sm:$0xff] }
 0x690   :  { %v3413_v50 = vpop.f32.mrf.mxu0  ;;  %2941 = vmatmul.f32.gmra.mxu1 %v2445_v40  ;;  %v3005_v40 = vadd.f32 %v7661_v41, %v2799_v13  ;;  %v7671_v41 = vld [vmem:[#allocation81_spill] sm:$0xff] }
 0x691   :  { %v3411_v35 = vadd.f32 %v3410_v53, %v3205_v24 }
 0x692   :  { %3099 = vmatmul.f32.gmra.mxu2 %v2366_v0  ;;  %3254 = vmatmul.f32.gmra.mxu3 %v2282_v33  ;;  %v2376_v0 = vmax.f32 %v1678_v10, 0.0  ;;  %v2292_v33 = vmax.f32 %v1833_v16, 0.0 }
 0x693   :  { %v3575_v52 = vadd.f32 %v3800_v12, %v3411_v35  ;;  %3460 = vmatmul.f32.gmra.mxu0 %v2283_v51  ;;  %v7663_v35 = vld [vmem:[#allocation133_spill] sm:$0xff]  ;;  %v3802_v12 = vld [vmem:[#allocation2 + $0x70] sm:$0xff]  ;;  %v6629_v49 = vpop.f32.mrf.mxu2 }
 0x695   :  { %3638 = vst [vmem:[#allocation8 + $0x60] sm:$0xff] %v3575_v52 }
 0x696   :  { %v3207_v53 = vpop.f32.mrf.mxu3 }
 0x697   :  { %v3208_v39 = vadd.f32 %v3207_v53, %v3002_v26  ;;  %v7666_v26 = vld [vmem:[#allocation76_spill] sm:$0xff] }
 0x698   :  { %v3416_v11 = vpop.f32.mrf.mxu0  ;;  %v2042_v53 = vadd.f32 %v7666_v26, %v6134_v6 }
 0x699   :  { %v3414_v47 = vadd.f32 %v3413_v50, %v3208_v39  ;;  %v7662_v50 = vld [vmem:[#allocation198_spill] sm:$0xff] }
 0x69a   :  { %3102 = vmatmul.f32.gmra.mxu2 %v2371_v28  ;;  %3257 = vmatmul.f32.gmra.mxu3 %v2287_v62  ;;  %v2596_v23 = vadd.f32 %v6394_v4, %v7662_v50  ;;  %v7667_v39 = vld [vmem:[#allocation126_spill] sm:$0xff] }
 0x69b   :  { %v3576_v17 = vadd.f32 %v3801_v15, %v3414_v47  ;;  %3463 = vmatmul.f32.gmra.mxu0 %v2288_v45  ;;  %v7668_v47 = vld [vmem:[#allocation199_spill] sm:$0xff]  ;;  %v2298_v15 = vmax.f32 %v2042_v53, 0.0  ;;  %v7676_v53 = vld [vmem:[#allocation85_spill] sm:$0xff] }
 0x69c   :  { %v2802_v18 = vadd.f32 %v7663_v35, %v2596_v23  ;;  %v2599_v13 = vadd.f32 %v6394_v4, %v7668_v47  ;;  %v2386_v23 = vmax.f32 %v1684_v46, 0.0  ;;  %v7673_v35 = vld [vmem:[#allocation200_spill] sm:$0xff]  ;;  %v3805_v46 = vld [vmem:[#allocation2 + $0x88] sm:$0xff] }
 0x69d   :  { %3639 = vst [vmem:[#allocation8 + $0x68] sm:$0xff] %v3576_v17 }
 0x69e   :  { %v3210_v1 = vpop.f32.mrf.mxu3  ;;  %v3008_v28 = vadd.f32 %v7667_v39, %v2802_v18  ;;  %v2805_v10 = vadd.f32 %v7669_v3, %v2599_v13  ;;  %v2602_v18 = vadd.f32 %v6394_v4, %v7673_v35  ;;  %v1842_v39 = vadd.f32 %v7676_v53, %v6129_v58 }
 0x69f   :  { %v3211_v24 = vadd.f32 %v3210_v1, %v3005_v40  ;;  %v1839_v40 = vadd.f32 %v7671_v41, %v6129_v58  ;;  %v7672_v1 = vld [vmem:[#allocation80_spill] sm:$0xff] }
 0x6a0   :  { %v3419_v14 = vpop.f32.mrf.mxu0  ;;  %v2808_v59 = vadd.f32 %v7674_v2, %v2602_v18  ;;  %v2307_v47 = vmax.f32 %v1842_v39, 0.0 }
 0x6a1   :  { %v3417_v51 = vadd.f32 %v3416_v11, %v3211_v24  ;;  %v2045_v24 = vadd.f32 %v7672_v1, %v6134_v6  ;;  %v7681_v1 = vld [vmem:[#allocation89_spill] sm:$0xff] }
 0x6a2   :  { %3105 = vmatmul.f32.gmra.mxu2 %v2376_v0  ;;  %3260 = vmatmul.f32.gmra.mxu3 %v2292_v33  ;;  %v3011_v0 = vadd.f32 %v6430_v32, %v2805_v10  ;;  %v6644_v33 = vpop.f32.mrf.mxu2  ;;  %v7675_v32 = vld [vmem:[#allocation16_spill] sm:$0xff] }
 0x6a3   :  { %v3577_v52 = vadd.f32 %v3802_v12, %v3417_v51  ;;  %3466 = vmatmul.f32.gmra.mxu0 %v2293_v21  ;;  %v2302_v21 = vmax.f32 %v1839_v40, 0.0  ;;  %v2303_v12 = vmax.f32 %v2045_v24, 0.0  ;;  %v1687_v26 = vadd.f32 %v7675_v32, %v5874_v31 }
 0x6a4   :  { %v1845_v24 = vadd.f32 %v7681_v1, %v6129_v58 }
 0x6a5   :  { %3640 = vst [vmem:[#allocation8 + $0x70] sm:$0xff] %v3577_v52 }
 0x6a6   :  { %v3213_v62 = vpop.f32.mrf.mxu3  ;;  %v2312_v35 = vmax.f32 %v1845_v24, 0.0  ;;  %v7691_v24 = vld [vmem:[#allocation97_spill] sm:$0xff] }
 0x6a7   :  { %v3214_v11 = vadd.f32 %v3213_v62, %v3008_v28  ;;  %v7677_v28 = vld [vmem:[#allocation84_spill] sm:$0xff] }
 0x6a8   :  { %v3422_v45 = vpop.f32.mrf.mxu0  ;;  %v2048_v62 = vadd.f32 %v7677_v28, %v6134_v6  ;;  %v7686_v28 = vld [vmem:[#allocation93_spill] sm:$0xff] }
 0x6a9   :  { %v3420_v17 = vadd.f32 %v3419_v14, %v3214_v11  ;;  %v3014_v11 = vadd.f32 %v6446_v34, %v2808_v59  ;;  %v7680_v34 = vld [vmem:[#allocation17_spill] sm:$0xff] }
 0x6aa   :  { %3108 = vmatmul.f32.gmra.mxu2 %v2381_v7  ;;  %3263 = vmatmul.f32.gmra.mxu3 %v2297_v61  ;;  %v6656_v13 = vpop.f32.mrf.mxu2  ;;  %v2308_v10 = vmax.f32 %v2048_v62, 0.0  ;;  %v1690_v40 = vadd.f32 %v7680_v34, %v5874_v31  ;;  %v1848_v62 = vadd.f32 %v7686_v28, %v6129_v58  ;;  %v3807_v34 = vld [vmem:[#allocation2 + $0x98] sm:$0xff] }
 0x6ab   :  { %v3578_v16 = vadd.f32 %v3803_v56, %v3420_v17  ;;  %3469 = vmatmul.f32.gmra.mxu0 %v2298_v15  ;;  %v7678_v17 = vld [vmem:[#allocation201_spill] sm:$0xff] }
 0x6ac   :  { %v2605_v3 = vadd.f32 %v6394_v4, %v7678_v17  ;;  %v2317_v17 = vmax.f32 %v1848_v62, 0.0  ;;  %v7696_v62 = vld [vmem:[#allocation101_spill] sm:$0xff] }
 0x6ad   :  { %3641 = vst [vmem:[#allocation8 + $0x78] sm:$0xff] %v3578_v16  ;;  %v7679_v16 = vld [vmem:[#allocation91_spill] sm:$0xff] }
 0x6ae   :  { %v3216_v14 = vpop.f32.mrf.mxu3  ;;  %v2811_v29 = vadd.f32 %v7679_v16, %v2605_v3 }
 0x6af   :  { %v3217_v50 = vadd.f32 %v3216_v14, %v3011_v0  ;;  %v7682_v0 = vld [vmem:[#allocation88_spill] sm:$0xff] }
 0x6b0   :  { %v3425_v51 = vpop.f32.mrf.mxu0  ;;  %v2051_v14 = vadd.f32 %v7682_v0, %v6134_v6  ;;  %v1851_v0 = vadd.f32 %v7691_v24, %v6129_v58 }
 0x6b1   :  { %v3423_v52 = vadd.f32 %v3422_v45, %v3217_v50  ;;  %v2391_v45 = vmax.f32 %v1687_v26, 0.0  ;;  %v3017_v50 = vadd.f32 %v6466_v38, %v2811_v29  ;;  %v3806_v26 = vld [vmem:[#allocation2 + $0x90] sm:$0xff]  ;;  %v7685_v38 = vld [vmem:[#allocation18_spill] sm:$0xff] }
 0x6b2   :  { %3111 = vmatmul.f32.gmra.mxu2 %v2386_v23  ;;  %3266 = vmatmul.f32.gmra.mxu3 %v2302_v21  ;;  %v2313_v2 = vmax.f32 %v2051_v14, 0.0  ;;  %v1693_v39 = vadd.f32 %v7685_v38, %v5874_v31  ;;  %v3808_v38 = vld [vmem:[#allocation2 + $0xa0] sm:$0xff] }
 0x6b3   :  { %v3579_v20 = vadd.f32 %v3804_v55, %v3423_v52  ;;  %3472 = vmatmul.f32.gmra.mxu0 %v2303_v12  ;;  %v7683_v12 = vld [vmem:[#allocation202_spill] sm:$0xff]  ;;  %v6670_v55 = vpop.f32.mrf.mxu2 }
 0x6b4   :  { %v2608_v52 = vadd.f32 %v6394_v4, %v7683_v12  ;;  %v2322_v12 = vmax.f32 %v1851_v0, 0.0  ;;  %v7701_v0 = vld [vmem:[#allocation105_spill] sm:$0xff] }
 0x6b5   :  { %3642 = vst [vmem:[#allocation8 + $0x80] sm:$0xff] %v3579_v20  ;;  %v7684_v20 = vld [vmem:[#allocation95_spill] sm:$0xff] }
 0x6b6   :  { %v3219_v7 = vpop.f32.mrf.mxu3  ;;  %v2814_v32 = vadd.f32 %v7684_v20, %v2608_v52 }
 0x6b7   :  { %v3220_v61 = vadd.f32 %v3219_v7, %v3014_v11  ;;  %v7687_v11 = vld [vmem:[#allocation92_spill] sm:$0xff] }
 0x6b8   :  { %v3428_v15 = vpop.f32.mrf.mxu0  ;;  %v2054_v7 = vadd.f32 %v7687_v11, %v6134_v6  ;;  %v1854_v11 = vadd.f32 %v7696_v62, %v6129_v58 }
 0x6b9   :  { %v3426_v56 = vadd.f32 %v3425_v51, %v3220_v61  ;;  %v2396_v51 = vmax.f32 %v1690_v40, 0.0  ;;  %v3020_v61 = vadd.f32 %v6487_v57, %v2814_v32  ;;  %v7690_v57 = vld [vmem:[#allocation19_spill] sm:$0xff] }
 0x6ba   :  { %3114 = vmatmul.f32.gmra.mxu2 %v2391_v45  ;;  %3269 = vmatmul.f32.gmra.mxu3 %v2307_v47  ;;  %v2318_v16 = vmax.f32 %v2054_v7, 0.0  ;;  %v1696_v1 = vadd.f32 %v7690_v57, %v5874_v31  ;;  %v7697_v7 = vld [vmem:[#allocation100_spill] sm:$0xff]  ;;  %v3809_v57 = vld [vmem:[#allocation2 + $0xa8] sm:$0xff] }
 0x6bb   :  { %v3580_v41 = vadd.f32 %v3805_v46, %v3426_v56  ;;  %3475 = vmatmul.f32.gmra.mxu0 %v2308_v10  ;;  %v7688_v10 = vld [vmem:[#allocation203_spill] sm:$0xff]  ;;  %v7689_v46 = vld [vmem:[#allocation180_spill] sm:$0xff]  ;;  %v6687_v14 = vpop.f32.mrf.mxu2 }
 0x6bc   :  { %v2611_v56 = vadd.f32 %v6394_v4, %v7688_v10  ;;  %v2327_v10 = vmax.f32 %v1854_v11, 0.0  ;;  %v7706_v11 = vld [vmem:[#allocation109_spill] sm:$0xff] }
 0x6bd   :  { %3643 = vst [vmem:[#allocation8 + $0x88] sm:$0xff] %v3580_v41 }
 0x6be   :  { %v3222_v23 = vpop.f32.mrf.mxu3  ;;  %v2817_v41 = vadd.f32 %v7689_v46, %v2611_v56 }
 0x6bf   :  { %v3223_v21 = vadd.f32 %v3222_v23, %v3017_v50  ;;  %v7692_v50 = vld [vmem:[#allocation96_spill] sm:$0xff] }
 0x6c0   :  { %v3431_v18 = vpop.f32.mrf.mxu0  ;;  %v2057_v23 = vadd.f32 %v7692_v50, %v6134_v6  ;;  %v1857_v50 = vadd.f32 %v7701_v0, %v6129_v58 }
 0x6c1   :  { %v3429_v59 = vadd.f32 %v3428_v15, %v3223_v21  ;;  %v2401_v15 = vmax.f32 %v1693_v39, 0.0  ;;  %v3023_v21 = vadd.f32 %v6506_v42, %v2817_v41  ;;  %v7695_v42 = vld [vmem:[#allocation20_spill] sm:$0xff] }
 0x6c2   :  { %3117 = vmatmul.f32.gmra.mxu2 %v2396_v51  ;;  %3272 = vmatmul.f32.gmra.mxu3 %v2312_v35  ;;  %v2323_v20 = vmax.f32 %v2057_v23, 0.0  ;;  %v1699_v28 = vadd.f32 %v7695_v42, %v5874_v31  ;;  %v7702_v23 = vld [vmem:[#allocation104_spill] sm:$0xff] }
 0x6c3   :  { %v3581_v53 = vadd.f32 %v3806_v26, %v3429_v59  ;;  %3478 = vmatmul.f32.gmra.mxu0 %v2313_v2  ;;  %v7693_v2 = vld [vmem:[#allocation204_spill] sm:$0xff] }
 0x6c4   :  { %v2614_v59 = vadd.f32 %v6394_v4, %v7693_v2  ;;  %v7694_v26 = vld [vmem:[#allocation148_spill] sm:$0xff] }
 0x6c5   :  { %3644 = vst [vmem:[#allocation8 + $0x90] sm:$0xff] %v3581_v53  ;;  %v3810_v42 = vld [vmem:[#allocation2 + $0xb0] sm:$0xff] }
 0x6c6   :  { %v3225_v45 = vpop.f32.mrf.mxu3  ;;  %v2820_v53 = vadd.f32 %v7694_v26, %v2614_v59 }
 0x6c7   :  { %v3226_v47 = vadd.f32 %v3225_v45, %v3020_v61  ;;  %v2060_v61 = vadd.f32 %v7697_v7, %v6134_v6  ;;  %v1860_v7 = vadd.f32 %v7706_v11, %v6129_v58  ;;  %v7716_v11 = vld [vmem:[#allocation117_spill] sm:$0xff] }
 0x6c8   :  { %v3434_v3 = vpop.f32.mrf.mxu0  ;;  %v3026_v45 = vadd.f32 %v6522_v63, %v2820_v53  ;;  %v7700_v63 = vld [vmem:[#allocation21_spill] sm:$0xff] }
 0x6c9   :  { %v3432_v29 = vadd.f32 %v3431_v18, %v3226_v47  ;;  %v2406_v18 = vmax.f32 %v1696_v1, 0.0  ;;  %v6702_v47 = vpop.f32.mrf.mxu2  ;;  %v2328_v46 = vmax.f32 %v2060_v61, 0.0  ;;  %v1702_v24 = vadd.f32 %v7700_v63, %v5874_v31  ;;  %v7707_v61 = vld [vmem:[#allocation108_spill] sm:$0xff]  ;;  %v3811_v63 = vld [vmem:[#allocation2 + $0xb8] sm:$0xff] }
 0x6ca   :  { %3120 = vmatmul.f32.gmra.mxu2 %v2401_v15  ;;  %3275 = vmatmul.f32.gmra.mxu3 %v2317_v17 }
 0x6cb   :  { %v3582_v40 = vadd.f32 %v3807_v34, %v3432_v29  ;;  %3481 = vmatmul.f32.gmra.mxu0 %v2318_v16  ;;  %v7698_v16 = vld [vmem:[#allocation205_spill] sm:$0xff]  ;;  %v7699_v34 = vld [vmem:[#allocation151_spill] sm:$0xff] }
 0x6cc   :  { %v2617_v29 = vadd.f32 %v6394_v4, %v7698_v16 }
 0x6cd   :  { %3645 = vst [vmem:[#allocation8 + $0x98] sm:$0xff] %v3582_v40 }
 0x6ce   :  { %v3228_v51 = vpop.f32.mrf.mxu3  ;;  %v2823_v40 = vadd.f32 %v7699_v34, %v2617_v29  ;;  %v7708_v29 = vld [vmem:[#allocation207_spill] sm:$0xff] }
 0x6cf   :  { %v3229_v35 = vadd.f32 %v3228_v51, %v3023_v21  ;;  %v2063_v21 = vadd.f32 %v7702_v23, %v6134_v6 }
 0x6d0   :  { %v3437_v52 = vpop.f32.mrf.mxu0  ;;  %v3029_v51 = vadd.f32 %v6542_v44, %v2823_v40  ;;  %v7705_v44 = vld [vmem:[#allocation23_spill] sm:$0xff] }
 0x6d1   :  { %v3435_v32 = vadd.f32 %v3434_v3, %v3229_v35  ;;  %v2411_v3 = vmax.f32 %v1699_v28, 0.0  ;;  %v6714_v2 = vpop.f32.mrf.mxu2  ;;  %v2333_v26 = vmax.f32 %v2063_v21, 0.0  ;;  %v1705_v62 = vadd.f32 %v7705_v44, %v5874_v31  ;;  %v7712_v21 = vld [vmem:[#allocation112_spill] sm:$0xff]  ;;  %v7715_v44 = vld [vmem:[#allocation27_spill] sm:$0xff] }
 0x6d2   :  { %3123 = vmatmul.f32.gmra.mxu2 %v2406_v18  ;;  %3278 = vmatmul.f32.gmra.mxu3 %v2322_v12  ;;  %v2416_v12 = vmax.f32 %v1702_v24, 0.0 }
 0x6d3   :  { %v3583_v39 = vadd.f32 %v3808_v38, %v3435_v32  ;;  %3484 = vmatmul.f32.gmra.mxu0 %v2323_v20  ;;  %v7703_v20 = vld [vmem:[#allocation206_spill] sm:$0xff] }
 0x6d4   :  { %v2620_v32 = vadd.f32 %v6394_v4, %v7703_v20  ;;  %v7704_v38 = vld [vmem:[#allocation154_spill] sm:$0xff] }
 0x6d5   :  { %3646 = vst [vmem:[#allocation8 + $0xa0] sm:$0xff] %v3583_v39  ;;  %v6741_v20 = vld [vmem:[%s7016_s8] ss:$0 sm:$0xff] }
 0x6d6   :  { %v3231_v15 = vpop.f32.mrf.mxu3  ;;  %v2826_v39 = vadd.f32 %v7704_v38, %v2620_v32  ;;  %v7713_v32 = vld [vmem:[#allocation208_spill] sm:$0xff] }
 0x6d7   :  { %v3232_v17 = vadd.f32 %v3231_v15, %v3026_v45  ;;  %v2066_v45 = vadd.f32 %v7707_v61, %v6134_v6 }
 0x6d8   :  { %v3440_v56 = vpop.f32.mrf.mxu0  ;;  %v3032_v15 = vadd.f32 %v6563_v36, %v2826_v39  ;;  %v7710_v36 = vld [vmem:[#allocation25_spill] sm:$0xff]  ;;  %v7714_v39 = vld [vmem:[#allocation115_spill] sm:$0xff] }
 0x6d9   :  { %v3438_v41 = vadd.f32 %v3437_v52, %v3232_v17  ;;  %v2332_v52 = vmax.f32 %v1857_v50, 0.0  ;;  %v6728_v40 = vpop.f32.mrf.mxu2  ;;  %v1708_v0 = vadd.f32 %v7710_v36, %v5874_v31  ;;  %v7711_v50 = vld [vmem:[#allocation113_spill] sm:$0xff] }
 0x6da   :  { %3126 = vmatmul.f32.gmra.mxu2 %v2411_v3  ;;  %3281 = vmatmul.f32.gmra.mxu3 %v2327_v10  ;;  %v2421_v10 = vmax.f32 %v1705_v62, 0.0  ;;  %v1863_v23 = vadd.f32 %v7711_v50, %v6129_v58  ;;  %v1711_v62 = vadd.f32 %v7715_v44, %v5874_v31  ;;  %v7721_v50 = vld [vmem:[#allocation120_spill] sm:$0xff] }
 0x6db   :  { %v3584_v1 = vadd.f32 %v3809_v57, %v3438_v41  ;;  %3487 = vmatmul.f32.gmra.mxu0 %v2328_v46  ;;  %v2623_v46 = vadd.f32 %v6394_v4, %v7708_v29  ;;  %v2338_v41 = vmax.f32 %v2066_v45, 0.0  ;;  %v7709_v57 = vld [vmem:[#allocation156_spill] sm:$0xff]  ;;  %v2069_v4 = vadd.f32 %v7712_v21, %v6134_v6  ;;  %v7722_v21 = vld [vmem:[#allocation119_spill] sm:$0xff] }
 0x6dc   :  { %v7717_v45 = vld [vmem:[#allocation116_spill] sm:$0xff] }
 0x6dd   :  { %3647 = vst [vmem:[#allocation8 + $0xa8] sm:$0xff] %v3584_v1  ;;  %v2829_v1 = vadd.f32 %v7709_v57, %v2623_v46  ;;  %v7718_v46 = vld [vmem:[#allocation209_spill] sm:$0xff] }
 0x6de   :  { %v3234_v35 = vpop.f32.mrf.mxu3 }
 0x6df   :  { %v3235_v18 = vadd.f32 %v3234_v35, %v3029_v51  ;;  %v3035_v51 = vadd.f32 %v6582_v5, %v2829_v1  ;;  %v7719_v1 = vld [vmem:[#allocation118_spill] sm:$0xff] }
 0x6e0   :  { %v3443_v59 = vpop.f32.mrf.mxu0 }
 0x6e1   :  { %v3441_v53 = vadd.f32 %v3440_v56, %v3235_v18  ;;  %v2337_v56 = vmax.f32 %v1860_v7, 0.0  ;;  %v1866_v7 = vadd.f32 %v7716_v11, %v6129_v58  ;;  %v6750_v61 = vpop.f32.mrf.mxu2  ;;  %v7726_v11 = vld [vmem:[#allocation124_spill] sm:$0xff] }
 0x6e2   :  { %3129 = vmatmul.f32.gmra.mxu2 %v2416_v12  ;;  %3284 = vmatmul.f32.gmra.mxu3 %v2332_v52  ;;  %v2426_v12 = vmax.f32 %v1708_v0, 0.0  ;;  %v2342_v52 = vmax.f32 %v1863_v23, 0.0  ;;  %v1869_v23 = vadd.f32 %v7721_v50, %v6129_v58  ;;  %v7731_v50 = vld [vmem:[#allocation128_spill] sm:$0xff] }
 0x6e3   :  { %v3585_v28 = vadd.f32 %v3810_v42, %v3441_v53  ;;  %3490 = vmatmul.f32.gmra.mxu0 %v2333_v26  ;;  %v2626_v26 = vadd.f32 %v6741_v20, %v7713_v32  ;;  %v2343_v53 = vmax.f32 %v2069_v4, 0.0  ;;  %v3813_v42 = vld [vmem:[#allocation2 + $0xc0] sm:$0xff]  ;;  %v2075_v4 = vadd.f32 %v7722_v21, %v6134_v6  ;;  %v7732_v21 = vld [vmem:[#allocation127_spill] sm:$0xff] }
 0x6e5   :  { %3648 = vst [vmem:[#allocation8 + $0xb0] sm:$0xff] %v3585_v28  ;;  %v2832_v5 = vadd.f32 %v7714_v39, %v2626_v26  ;;  %v7723_v26 = vld [vmem:[#allocation210_spill] sm:$0xff] }
 0x6e6   :  { %v3237_v17 = vpop.f32.mrf.mxu3 }
 0x6e7   :  { %v3238_v3 = vadd.f32 %v3237_v17, %v3032_v15  ;;  %v2072_v15 = vadd.f32 %v7717_v45, %v6134_v6  ;;  %v3038_v17 = vadd.f32 %v6598_v43, %v2832_v5  ;;  %v7720_v43 = vld [vmem:[#allocation29_spill] sm:$0xff]  ;;  %v7724_v5 = vld [vmem:[#allocation122_spill] sm:$0xff]  ;;  %v7727_v45 = vld [vmem:[#allocation123_spill] sm:$0xff] }
 0x6e8   :  { %v3446_v16 = vpop.f32.mrf.mxu0  ;;  %v1714_v0 = vadd.f32 %v7720_v43, %v5874_v31 }
 0x6e9   :  { %v3444_v34 = vadd.f32 %v3443_v59, %v3238_v3 }
 0x6ea   :  { %3132 = vmatmul.f32.gmra.mxu2 %v2421_v10  ;;  %3287 = vmatmul.f32.gmra.mxu3 %v2337_v56  ;;  %v2431_v56 = vmax.f32 %v1711_v62, 0.0 }
 0x6eb   :  { %v3586_v24 = vadd.f32 %v3811_v63, %v3444_v34  ;;  %3493 = vmatmul.f32.gmra.mxu0 %v2338_v41  ;;  %v2629_v41 = vadd.f32 %v6741_v20, %v7718_v46  ;;  %v2348_v34 = vmax.f32 %v2072_v15, 0.0  ;;  %v2078_v15 = vadd.f32 %v7727_v45, %v6134_v6 }
 0x6ed   :  { %3649 = vst [vmem:[#allocation8 + $0xb8] sm:$0xff] %v3586_v24  ;;  %v2835_v63 = vadd.f32 %v7719_v1, %v2629_v41  ;;  %v3814_v24 = vld [vmem:[#allocation2 + $0xc8] sm:$0xff] }
 0x6ee   :  { %v3240_v35 = vpop.f32.mrf.mxu3  ;;  %v7728_v41 = vld [vmem:[#allocation211_spill] sm:$0xff] }
 0x6ef   :  { %v3241_v18 = vadd.f32 %v3240_v35, %v3035_v51  ;;  %v3041_v51 = vadd.f32 %v6612_v22, %v2835_v63  ;;  %v6765_v35 = vpop.f32.mrf.mxu2  ;;  %v7725_v22 = vld [vmem:[#allocation31_spill] sm:$0xff] }
 0x6f0   :  { %v3449_v59 = vpop.f32.mrf.mxu0  ;;  %v1717_v62 = vadd.f32 %v7725_v22, %v5874_v31  ;;  %v7729_v63 = vld [vmem:[#allocation195_spill] sm:$0xff] }
 0x6f1   :  { %v3447_v38 = vadd.f32 %v3446_v16, %v3241_v18  ;;  %v2347_v16 = vmax.f32 %v1866_v7, 0.0  ;;  %v1872_v7 = vadd.f32 %v7726_v11, %v6129_v58  ;;  %v7735_v22 = vld [vmem:[#allocation79_spill] sm:$0xff] }
 0x6f2   :  { %3135 = vmatmul.f32.gmra.mxu2 %v2426_v12  ;;  %3290 = vmatmul.f32.gmra.mxu3 %v2342_v52  ;;  %v2436_v52 = vmax.f32 %v1714_v0, 0.0 }
 0x6f3   :  { %v3587_v28 = vadd.f32 %v3813_v42, %v3447_v38  ;;  %3496 = vmatmul.f32.gmra.mxu0 %v2343_v53  ;;  %v2632_v53 = vadd.f32 %v6741_v20, %v7723_v26  ;;  %v2353_v38 = vmax.f32 %v2075_v4, 0.0  ;;  %v2081_v4 = vadd.f32 %v7732_v21, %v6134_v6  ;;  %v7733_v26 = vld [vmem:[#allocation213_spill] sm:$0xff] }
 0x6f5   :  { %3650 = vst [vmem:[#allocation8 + $0xc0] sm:$0xff] %v3587_v28  ;;  %v2838_v42 = vadd.f32 %v7724_v5, %v2632_v53  ;;  %v3815_v28 = vld [vmem:[#allocation2 + $0xd0] sm:$0xff]  ;;  %v2638_v53 = vadd.f32 %v6741_v20, %v7733_v26 }
 0x6f6   :  { %v3243_v3 = vpop.f32.mrf.mxu3 }
 0x6f7   :  { %v3244_v10 = vadd.f32 %v3243_v3, %v3038_v17  ;;  %v3044_v17 = vadd.f32 %v6629_v49, %v2838_v42  ;;  %v7730_v49 = vld [vmem:[#allocation33_spill] sm:$0xff]  ;;  %v2844_v5 = vadd.f32 %v6428_v25, %v2638_v53  ;;  %v3817_v42 = vld [vmem:[#allocation2 + $0xe0] sm:$0xff] }
 0x6f8   :  { %v3452_v29 = vpop.f32.mrf.mxu0  ;;  %v1720_v0 = vadd.f32 %v7730_v49, %v5874_v31 }
 0x6f9   :  { %v3450_v57 = vadd.f32 %v3449_v59, %v3244_v10  ;;  %v2352_v59 = vmax.f32 %v1869_v23, 0.0  ;;  %v1875_v23 = vadd.f32 %v7731_v50, %v6129_v58  ;;  %v3050_v11 = vadd.f32 %v6656_v13, %v2844_v5  ;;  %v7738_v13 = vld [vmem:[#allocation172_spill] sm:$0xff] }
 0x6fa   :  { %3138 = vmatmul.f32.gmra.mxu2 %v2431_v56  ;;  %3293 = vmatmul.f32.gmra.mxu3 %v2347_v16  ;;  %v2441_v56 = vmax.f32 %v1717_v62, 0.0  ;;  %v2357_v16 = vmax.f32 %v1872_v7, 0.0  ;;  %v2084_v62 = vadd.f32 %v7735_v22, %v6134_v6  ;;  %v7743_v22 = vld [vmem:[#allocation41_spill] sm:$0xff] }
 0x6fb   :  { %v3588_v36 = vadd.f32 %v3814_v24, %v3450_v57  ;;  %3499 = vmatmul.f32.gmra.mxu0 %v2348_v34  ;;  %v2635_v34 = vadd.f32 %v6741_v20, %v7728_v41  ;;  %v2358_v57 = vmax.f32 %v2078_v15, 0.0 }
 0x6fc   :  { %v2368_v25 = vmax.f32 %v2084_v62, 0.0  ;;  %v1887_v62 = vadd.f32 %v7743_v22, %v6129_v58 }
 0x6fd   :  { %3651 = vst [vmem:[#allocation8 + $0xc8] sm:$0xff] %v3588_v36  ;;  %v2841_v24 = vadd.f32 %v7729_v63, %v2635_v34  ;;  %v3816_v36 = vld [vmem:[#allocation2 + $0xd8] sm:$0xff] }
 0x6fe   :  { %v3246_v18 = vpop.f32.mrf.mxu3  ;;  %v7737_v34 = vld [vmem:[#allocation37_spill] sm:$0xff] }
 0x6ff   :  { %v3247_v12 = vadd.f32 %v3246_v18, %v3041_v51  ;;  %v3047_v51 = vadd.f32 %v6644_v33, %v2841_v24  ;;  %v7734_v33 = vld [vmem:[#allocation35_spill] sm:$0xff] }
 0x700   :  { %v3455_v32 = vpop.f32.mrf.mxu0 }
 0x701   :  { %v3453_v39 = vadd.f32 %v3452_v29, %v3247_v12  ;;  %v6777_v29 = vpop.f32.mrf.mxu2 }
 0x702   :  { %3141 = vmatmul.f32.gmra.mxu2 %v2436_v52  ;;  %3296 = vmatmul.f32.gmra.mxu3 %v2352_v59  ;;  %v2446_v52 = vmax.f32 %v1720_v0, 0.0  ;;  %v2362_v59 = vmax.f32 %v1875_v23, 0.0  ;;  %v7739_v0 = vld [vmem:[#allocation68_spill] sm:$0xff] }
 0x703   :  { %v3589_v44 = vadd.f32 %v3815_v28, %v3453_v39  ;;  %3502 = vmatmul.f32.gmra.mxu0 %v2353_v38  ;;  %v2363_v38 = vmax.f32 %v2081_v4, 0.0  ;;  %v2644_v50 = vadd.f32 %v6741_v20, %v7739_v0  ;;  %v3819_v4 = vld [vmem:[#allocation2 + $0xf0] sm:$0xff] }
 0x705   :  { %3652 = vst [vmem:[#allocation8 + $0xd0] sm:$0xff] %v3589_v44  ;;  %v1878_v44 = vadd.f32 %v7734_v33, %v6129_v58  ;;  %v2850_v21 = vadd.f32 %v6462_v8, %v2644_v50  ;;  %v3820_v33 = vld [vmem:[#allocation2 + $0xf8] sm:$0xff] }
 0x706   :  { %v3249_v3 = vpop.f32.mrf.mxu3  ;;  %v7748_v50 = vld [vmem:[#allocation217_spill] sm:$0xff] }
 0x707   :  { %v3250_v10 = vadd.f32 %v3249_v3, %v3044_v17  ;;  %v2367_v15 = vmax.f32 %v1878_v44, 0.0  ;;  %v7736_v3 = vld [vmem:[#allocation214_spill] sm:$0xff] }
 0x708   :  { %v3458_v46 = vpop.f32.mrf.mxu0 }
 0x709   :  { %v3456_v1 = vadd.f32 %v3455_v32, %v3250_v10  ;;  %v6791_v31 = vpop.f32.mrf.mxu2  ;;  %v2641_v10 = vadd.f32 %v6741_v20, %v7736_v3 }
 0x70a   :  { %3144 = vmatmul.f32.gmra.mxu2 %v2441_v56  ;;  %3299 = vmatmul.f32.gmra.mxu3 %v2357_v16 }
 0x70b   :  { %v3590_v43 = vadd.f32 %v3816_v36, %v3456_v1  ;;  %3505 = vmatmul.f32.gmra.mxu0 %v2358_v57  ;;  %v2847_v16 = vadd.f32 %v6444_v48, %v2641_v10  ;;  %v1881_v57 = vadd.f32 %v7737_v34, %v6129_v58  ;;  %v2087_v1 = vadd.f32 %v7738_v13, %v6134_v6  ;;  %v7745_v10 = vld [vmem:[#allocation216_spill] sm:$0xff] }
 0x70d   :  { %3653 = vst [vmem:[#allocation8 + $0xd8] sm:$0xff] %v3590_v43  ;;  %v3053_v63 = vadd.f32 %v6670_v55, %v2847_v16  ;;  %v2372_v43 = vmax.f32 %v1881_v57, 0.0  ;;  %v2373_v48 = vmax.f32 %v2087_v1, 0.0  ;;  %v7741_v55 = vld [vmem:[#allocation136_spill] sm:$0xff]  ;;  %v6825_v16 = vpop.f32.mrf.mxu1 }
 0x70e   :  { %v3252_v18 = vpop.f32.mrf.mxu3  ;;  %v7747_v1 = vld [vmem:[#allocation176_spill] sm:$0xff] }
 0x70f   :  { %v3253_v12 = vadd.f32 %v3252_v18, %v3047_v51  ;;  %v7740_v18 = vld [vmem:[#allocation39_spill] sm:$0xff] }
 0x710   :  { %v3461_v32 = vpop.f32.mrf.mxu0 }
 0x711   :  { %v3459_v39 = vadd.f32 %v3458_v46, %v3253_v12  ;;  %v3818_v46 = vld [vmem:[#allocation2 + $0xe8] sm:$0xff]  ;;  %v1884_v12 = vadd.f32 %v7740_v18, %v6129_v58  ;;  %v6830_v13 = vpop.f32.mrf.mxu2  ;;  %v7749_v18 = vld [vmem:[#allocation45_spill] sm:$0xff] }
 0x712   :  { %3147 = vmatmul.f32.gmra.mxu2 %v2446_v52  ;;  %3302 = vmatmul.f32.gmra.mxu3 %v2362_v59  ;;  %v2090_v52 = vadd.f32 %v7741_v55, %v6134_v6  ;;  %v3056_v59 = vadd.f32 %v6687_v14, %v2850_v21  ;;  %v7744_v14 = vld [vmem:[#allocation138_spill] sm:$0xff] }
 0x713   :  { %v3591_v28 = vadd.f32 %v3817_v42, %v3459_v39  ;;  %3508 = vmatmul.f32.gmra.mxu0 %v2363_v38  ;;  %v2377_v53 = vmax.f32 %v1884_v12, 0.0  ;;  %v7742_v39 = vld [vmem:[#allocation215_spill] sm:$0xff]  ;;  %v1893_v12 = vadd.f32 %v7749_v18, %v6129_v58  ;;  %v7750_v55 = vld [vmem:[#allocation142_spill] sm:$0xff] }
 0x714   :  { %v2647_v5 = vadd.f32 %v6741_v20, %v7742_v39  ;;  %v2378_v8 = vmax.f32 %v2090_v52, 0.0  ;;  %v2099_v52 = vadd.f32 %v7750_v55, %v6134_v6  ;;  %v7751_v39 = vld [vmem:[#allocation218_spill] sm:$0xff] }
 0x715   :  { %3654 = vst [vmem:[#allocation8 + $0xe0] sm:$0xff] %v3591_v28 }
 0x716   :  { %v3255_v7 = vpop.f32.mrf.mxu3  ;;  %v2853_v28 = vadd.f32 %v6481_v9, %v2647_v5  ;;  %v2656_v5 = vadd.f32 %v6741_v20, %v7751_v39 }
 0x717   :  { %v3256_v45 = vadd.f32 %v3255_v7, %v3050_v11  ;;  %v2093_v11 = vadd.f32 %v7744_v14, %v6134_v6 }
 0x718   :  { %v3464_v17 = vpop.f32.mrf.mxu0  ;;  %v3059_v7 = vadd.f32 %v6702_v47, %v2853_v28  ;;  %v7746_v47 = vld [vmem:[#allocation43_spill] sm:$0xff]  ;;  %v2862_v28 = vadd.f32 %v6538_v19, %v2656_v5 }
 0x719   :  { %v3462_v56 = vadd.f32 %v3461_v32, %v3256_v45  ;;  %v2383_v9 = vmax.f32 %v2093_v11, 0.0  ;;  %v1890_v57 = vadd.f32 %v7746_v47, %v6129_v58 }
 0x71a   :  { %3305 = vmatmul.f32.gmra.mxu3 %v2367_v15  ;;  %v3068_v11 = vadd.f32 %v6750_v61, %v2862_v28  ;;  %v7755_v61 = vld [vmem:[#allocation49_spill] sm:$0xff]  ;;  %v3826_v28 = vld [vmem:[#allocation2 + $0x128] sm:$0xff] }
 0x71b   :  { %v3592_v41 = vadd.f32 %v3818_v46, %v3462_v56  ;;  %3511 = vmatmul.f32.gmra.mxu0 %v2368_v25  ;;  %v2650_v25 = vadd.f32 %v6741_v20, %v7745_v10  ;;  %v7754_v10 = vld [vmem:[#allocation219_spill] sm:$0xff]  ;;  %v1899_v47 = vadd.f32 %v7755_v61, %v6129_v58 }
 0x71c   :  { %v7765_v61 = vld [vmem:[#allocation107_spill] sm:$0xff] }
 0x71d   :  { %3655 = vst [vmem:[#allocation8 + $0xe8] sm:$0xff] %v3592_v41  ;;  %v2856_v46 = vadd.f32 %v6504_v60, %v2650_v25  ;;  %v3821_v41 = vld [vmem:[#allocation2 + $0x100] sm:$0xff]  ;;  %v2653_v60 = vadd.f32 %v6741_v20, %v7748_v50  ;;  %v2659_v25 = vadd.f32 %v6741_v20, %v7754_v10  ;;  %v7757_v50 = vld [vmem:[#allocation220_spill] sm:$0xff] }
 0x71e   :  { %v3258_v24 = vpop.f32.mrf.mxu3 }
 0x71f   :  { %v3259_v36 = vadd.f32 %v3258_v24, %v3053_v63  ;;  %v2096_v63 = vadd.f32 %v7747_v1, %v6134_v6  ;;  %v3062_v24 = vadd.f32 %v6714_v2, %v2856_v46  ;;  %v2859_v21 = vadd.f32 %v6520_v27, %v2653_v60  ;;  %v6840_v2 = vpop.f32.mrf.mxu1 }
 0x720   :  { %v3467_v49 = vpop.f32.mrf.mxu0  ;;  %v2865_v46 = vadd.f32 %v6557_v30, %v2659_v25  ;;  %v2662_v30 = vadd.f32 %v6741_v20, %v7757_v50 }
 0x721   :  { %v3465_v23 = vadd.f32 %v3464_v17, %v3259_v36  ;;  %v2382_v17 = vmax.f32 %v1887_v62, 0.0  ;;  %v7753_v62 = vld [vmem:[#allocation144_spill] sm:$0xff] }
 0x722   :  { %3308 = vmatmul.f32.gmra.mxu3 %v2372_v43  ;;  %v2102_v14 = vadd.f32 %v7753_v62, %v6134_v6 }
 0x723   :  { %v3593_v51 = vadd.f32 %v3819_v4, %v3465_v23  ;;  %3514 = vmatmul.f32.gmra.mxu0 %v2373_v48  ;;  %v2388_v48 = vmax.f32 %v2096_v63, 0.0  ;;  %v3822_v4 = vld [vmem:[#allocation2 + $0x108] sm:$0xff]  ;;  %v3071_v63 = vadd.f32 %v6765_v35, %v2865_v46 }
 0x724   :  { %v7758_v35 = vld [vmem:[#allocation51_spill] sm:$0xff] }
 0x725   :  { %3656 = vst [vmem:[#allocation8 + $0xf0] sm:$0xff] %v3593_v51  ;;  %v1902_v18 = vadd.f32 %v7758_v35, %v6129_v58 }
 0x726   :  { %v3261_v32 = vpop.f32.mrf.mxu3 }
 0x727   :  { %v3262_v26 = vadd.f32 %v3261_v32, %v3056_v59  ;;  %v3065_v59 = vadd.f32 %v6728_v40, %v2859_v21  ;;  %v6845_v32 = vpop.f32.mrf.mxu2  ;;  %v7752_v40 = vld [vmem:[#allocation47_spill] sm:$0xff]  ;;  %v2868_v21 = vadd.f32 %v6580_v37, %v2662_v30 }
 0x728   :  { %v3470_v38 = vpop.f32.mrf.mxu0  ;;  %v1896_v22 = vadd.f32 %v7752_v40, %v6129_v58 }
 0x729   :  { %v3468_v42 = vadd.f32 %v3467_v49, %v3262_v26  ;;  %v2387_v49 = vmax.f32 %v1890_v57, 0.0  ;;  %v7756_v57 = vld [vmem:[#allocation99_spill] sm:$0xff] }
 0x72a   :  { %3311 = vmatmul.f32.gmra.mxu3 %v2377_v53  ;;  %v2105_v1 = vadd.f32 %v7756_v57, %v6134_v6 }
 0x72b   :  { %v3594_v44 = vadd.f32 %v3820_v33, %v3468_v42  ;;  %3517 = vmatmul.f32.gmra.mxu0 %v2378_v8  ;;  %v2393_v8 = vmax.f32 %v2099_v52, 0.0  ;;  %v3823_v33 = vld [vmem:[#allocation2 + $0x110] sm:$0xff]  ;;  %v3074_v52 = vadd.f32 %v6777_v29, %v2868_v21  ;;  %v7761_v29 = vld [vmem:[#allocation53_spill] sm:$0xff] }
 0x72c   :  { %v2403_v60 = vmax.f32 %v2105_v1, 0.0 }
 0x72d   :  { %3657 = vst [vmem:[#allocation8 + $0xf8] sm:$0xff] %v3594_v44 }
 0x72e   :  { %v3264_v45 = vpop.f32.mrf.mxu3 }
 0x72f   :  { %v3265_v15 = vadd.f32 %v3264_v45, %v3059_v7  ;;  %v6855_v7 = vpop.f32.mrf.mxu1 }
 0x730   :  { %v3473_v3 = vpop.f32.mrf.mxu0 }
 0x731   :  { %v3471_v56 = vadd.f32 %v3470_v38, %v3265_v15  ;;  %v2392_v38 = vmax.f32 %v1893_v12, 0.0  ;;  %v7759_v12 = vld [vmem:[#allocation182_spill] sm:$0xff] }
 0x732   :  { %3314 = vmatmul.f32.gmra.mxu3 %v2382_v17  ;;  %v2397_v17 = vmax.f32 %v1896_v22, 0.0  ;;  %v2108_v55 = vadd.f32 %v7759_v12, %v6134_v6  ;;  %v7762_v22 = vld [vmem:[#allocation150_spill] sm:$0xff] }
 0x733   :  { %v3595_v34 = vadd.f32 %v3821_v41, %v3471_v56  ;;  %3520 = vmatmul.f32.gmra.mxu0 %v2383_v9  ;;  %v2398_v9 = vmax.f32 %v2102_v14, 0.0  ;;  %v3824_v41 = vld [vmem:[#allocation2 + $0x118] sm:$0xff]  ;;  %v2111_v62 = vadd.f32 %v7762_v22, %v6134_v6 }
 0x734   :  { %v2408_v37 = vmax.f32 %v2108_v55, 0.0 }
 0x735   :  { %3658 = vst [vmem:[#allocation8 + $0x100] sm:$0xff] %v3595_v34  ;;  %v2413_v10 = vmax.f32 %v2111_v62, 0.0 }
 0x736   :  { %v3267_v36 = vpop.f32.mrf.mxu3 }
 0x737   :  { %v3268_v43 = vadd.f32 %v3267_v36, %v3062_v24 }
 0x738   :  { %v3476_v0 = vpop.f32.mrf.mxu0 }
 0x739   :  { %v3474_v23 = vadd.f32 %v3473_v3, %v3268_v43  ;;  %v6857_v3 = vpop.f32.mrf.mxu2  ;;  %v2402_v43 = vmax.f32 %v1899_v47, 0.0  ;;  %v2114_v47 = vadd.f32 %v7765_v61, %v6134_v6 }
 0x73a   :  { %3317 = vmatmul.f32.gmra.mxu3 %v2387_v49  ;;  %v6867_v49 = vpop.f32.mrf.mxu1 }
 0x73b   :  { %v3596_v51 = vadd.f32 %v3822_v4, %v3474_v23  ;;  %3523 = vmatmul.f32.gmra.mxu0 %v2388_v48  ;;  %v3825_v4 = vld [vmem:[#allocation2 + $0x120] sm:$0xff]  ;;  %v2418_v50 = vmax.f32 %v2114_v47, 0.0 }
 0x73d   :  { %3659 = vst [vmem:[#allocation8 + $0x108] sm:$0xff] %v3596_v51 }
 0x73e   :  { %v3270_v26 = vpop.f32.mrf.mxu3 }
 0x73f   :  { %v3271_v53 = vadd.f32 %v3270_v26, %v3065_v59 }
 0x740   :  { %v3479_v27 = vpop.f32.mrf.mxu0 }
 0x741   :  { %v3477_v42 = vadd.f32 %v3476_v0, %v3271_v53  ;;  %v6871_v23 = vpop.f32.mrf.mxu2  ;;  %v2407_v53 = vmax.f32 %v1902_v18, 0.0 }
 0x742   :  { %3320 = vmatmul.f32.gmra.mxu3 %v2392_v38 }
 0x743   :  { %v3597_v44 = vadd.f32 %v3823_v33, %v3477_v42  ;;  %3526 = vmatmul.f32.gmra.mxu0 %v2393_v8  ;;  %v6881_v8 = vpop.f32.mrf.mxu1 }
 0x745   :  { %3660 = vst [vmem:[#allocation8 + $0x110] sm:$0xff] %v3597_v44  ;;  %v1905_v44 = vadd.f32 %v7761_v29, %v6129_v58 }
 0x746   :  { %v3273_v45 = vpop.f32.mrf.mxu3 }
 0x747   :  { %v3274_v15 = vadd.f32 %v3273_v45, %v3068_v11 }
 0x748   :  { %v3482_v19 = vpop.f32.mrf.mxu0 }
 0x749   :  { %v3480_v56 = vadd.f32 %v3479_v27, %v3274_v15  ;;  %v7760_v27 = vld [vmem:[#allocation221_spill] sm:$0xff]  ;;  %v6886_v40 = vpop.f32.mrf.mxu2  ;;  %v2412_v15 = vmax.f32 %v1905_v44, 0.0 }
 0x74a   :  { %3323 = vmatmul.f32.gmra.mxu3 %v2397_v17  ;;  %v2665_v39 = vadd.f32 %v6741_v20, %v7760_v27 }
 0x74b   :  { %v3598_v34 = vadd.f32 %v3824_v41, %v3480_v56  ;;  %3529 = vmatmul.f32.gmra.mxu0 %v2398_v9  ;;  %v3827_v56 = vld [vmem:[#allocation2 + $0x130] sm:$0xff] }
 0x74c   :  { %v2871_v42 = vadd.f32 %v6596_v54, %v2665_v39  ;;  %v7764_v41 = vld [vmem:[#allocation56_spill] sm:$0xff] }
 0x74d   :  { %3661 = vst [vmem:[#allocation8 + $0x118] sm:$0xff] %v3598_v34  ;;  %v1908_v34 = vadd.f32 %v7764_v41, %v6129_v58 }
 0x74e   :  { %v3276_v24 = vpop.f32.mrf.mxu3  ;;  %v3077_v14 = vadd.f32 %v6791_v31, %v2871_v42  ;;  %v6896_v31 = vpop.f32.mrf.mxu1 }
 0x74f   :  { %v3277_v36 = vadd.f32 %v3276_v24, %v3071_v63 }
 0x750   :  { %v3485_v0 = vpop.f32.mrf.mxu0 }
 0x751   :  { %v3483_v48 = vadd.f32 %v3482_v19, %v3277_v36  ;;  %v7763_v19 = vld [vmem:[#allocation222_spill] sm:$0xff]  ;;  %v6901_v1 = vpop.f32.mrf.mxu2  ;;  %v2417_v36 = vmax.f32 %v1908_v34, 0.0 }
 0x752   :  { %3326 = vmatmul.f32.gmra.mxu3 %v2402_v43  ;;  %v2668_v54 = vadd.f32 %v6741_v20, %v7763_v19  ;;  %v7766_v43 = vld [vmem:[#allocation223_spill] sm:$0xff] }
 0x753   :  { %v3599_v51 = vadd.f32 %v3825_v4, %v3483_v48  ;;  %3532 = vmatmul.f32.gmra.mxu0 %v2403_v60  ;;  %v3828_v48 = vld [vmem:[#allocation2 + $0x138] sm:$0xff] }
 0x754   :  { %v2874_v9 = vadd.f32 %v6825_v16, %v2668_v54 }
 0x755   :  { %3662 = vst [vmem:[#allocation8 + $0x120] sm:$0xff] %v3599_v51  ;;  %v7768_v51 = vld [vmem:[#allocation186_spill] sm:$0xff] }
 0x756   :  { %v3279_v59 = vpop.f32.mrf.mxu3  ;;  %v3080_v57 = vadd.f32 %v6830_v13, %v2874_v9  ;;  %v7767_v13 = vld [vmem:[#allocation59_spill] sm:$0xff]  ;;  %v2117_v35 = vadd.f32 %v7768_v51, %v6134_v6  ;;  %v6911_v12 = vpop.f32.mrf.mxu1 }
 0x757   :  { %v3280_v26 = vadd.f32 %v3279_v59, %v3074_v52  ;;  %v1911_v4 = vadd.f32 %v7767_v13, %v6129_v58 }
 0x758   :  { %v3488_v38 = vpop.f32.mrf.mxu0  ;;  %v2423_v27 = vmax.f32 %v2117_v35, 0.0 }
 0x759   :  { %v3486_v5 = vadd.f32 %v3485_v0, %v3280_v26  ;;  %v2671_v0 = vadd.f32 %v6741_v20, %v7766_v43  ;;  %v2422_v59 = vmax.f32 %v1911_v4, 0.0  ;;  %v6913_v26 = vpop.f32.mrf.mxu2 }
 0x75a   :  { %3329 = vmatmul.f32.gmra.mxu3 %v2407_v53  ;;  %v7769_v53 = vld [vmem:[#allocation224_spill] sm:$0xff] }
 0x75b   :  { %v3600_v33 = vadd.f32 %v3826_v28, %v3486_v5  ;;  %3535 = vmatmul.f32.gmra.mxu0 %v2408_v37  ;;  %v2877_v60 = vadd.f32 %v6840_v2, %v2671_v0  ;;  %v3829_v5 = vld [vmem:[#allocation2 + $0x140] sm:$0xff] }
 0x75d   :  { %3663 = vst [vmem:[#allocation8 + $0x128] sm:$0xff] %v3600_v33  ;;  %v3083_v18 = vadd.f32 %v6845_v32, %v2877_v60  ;;  %v7770_v32 = vld [vmem:[#allocation61_spill] sm:$0xff] }
 0x75e   :  { %v3282_v11 = vpop.f32.mrf.mxu3  ;;  %v1914_v28 = vadd.f32 %v7770_v32, %v6129_v58  ;;  %v7771_v33 = vld [vmem:[#allocation157_spill] sm:$0xff] }
 0x75f   :  { %v3283_v45 = vadd.f32 %v3282_v11, %v3077_v14  ;;  %v2120_v29 = vadd.f32 %v7771_v33, %v6134_v6  ;;  %v6923_v11 = vpop.f32.mrf.mxu1 }
 0x760   :  { %v3491_v17 = vpop.f32.mrf.mxu0  ;;  %v2427_v14 = vmax.f32 %v1914_v28, 0.0 }
 0x761   :  { %v3489_v25 = vadd.f32 %v3488_v38, %v3283_v45  ;;  %v2674_v38 = vadd.f32 %v6741_v20, %v7769_v53  ;;  %v6927_v54 = vpop.f32.mrf.mxu2 }
 0x762   :  { %3332 = vmatmul.f32.gmra.mxu3 %v2412_v15  ;;  %v7772_v15 = vld [vmem:[#allocation225_spill] sm:$0xff] }
 0x763   :  { %v3601_v46 = vadd.f32 %v3827_v56, %v3489_v25  ;;  %3538 = vmatmul.f32.gmra.mxu0 %v2413_v10  ;;  %v2880_v37 = vadd.f32 %v6855_v7, %v2674_v38  ;;  %v2677_v7 = vadd.f32 %v6741_v20, %v7772_v15  ;;  %v3830_v25 = vld [vmem:[#allocation2 + $0x148] sm:$0xff]  ;;  %v3832_v38 = vld [vmem:[#allocation2 + $0x158] sm:$0xff] }
 0x765   :  { %3664 = vst [vmem:[#allocation8 + $0x130] sm:$0xff] %v3601_v46  ;;  %v3086_v44 = vadd.f32 %v6857_v3, %v2880_v37  ;;  %v2883_v10 = vadd.f32 %v6867_v49, %v2677_v7  ;;  %v7773_v3 = vld [vmem:[#allocation63_spill] sm:$0xff]  ;;  %v7774_v46 = vld [vmem:[#allocation22_spill] sm:$0xff] }
 0x766   :  { %v3285_v63 = vpop.f32.mrf.mxu3  ;;  %v1917_v56 = vadd.f32 %v7773_v3, %v6129_v58  ;;  %v2123_v41 = vadd.f32 %v7774_v46, %v6134_v6  ;;  %v3833_v7 = vld [vmem:[#allocation2 + $0x160] sm:$0xff] }
 0x767   :  { %v3286_v24 = vadd.f32 %v3285_v63, %v3080_v57  ;;  %v3089_v34 = vadd.f32 %v6871_v23, %v2883_v10  ;;  %v6937_v43 = vpop.f32.mrf.mxu1  ;;  %v7776_v23 = vld [vmem:[#allocation67_spill] sm:$0xff]  ;;  %v7783_v10 = vld [vmem:[#allocation26_spill] sm:$0xff] }
 0x768   :  { %v3494_v16 = vpop.f32.mrf.mxu0  ;;  %v2432_v57 = vmax.f32 %v1917_v56, 0.0  ;;  %v2433_v49 = vmax.f32 %v2123_v41, 0.0  ;;  %v1920_v60 = vadd.f32 %v7776_v23, %v6129_v58 }
 0x769   :  { %v3492_v30 = vadd.f32 %v3491_v17, %v3286_v24  ;;  %v2428_v17 = vmax.f32 %v2120_v29, 0.0  ;;  %v7775_v24 = vld [vmem:[#allocation226_spill] sm:$0xff] }
 0x76a   :  { %3335 = vmatmul.f32.gmra.mxu3 %v2417_v36  ;;  %v2680_v36 = vadd.f32 %v6741_v20, %v7775_v24  ;;  %v3834_v24 = vld [vmem:[#allocation2 + $0x168] sm:$0xff] }
 0x76b   :  { %v3602_v21 = vadd.f32 %v3828_v48, %v3492_v30  ;;  %3541 = vmatmul.f32.gmra.mxu0 %v2418_v50  ;;  %v3831_v50 = vld [vmem:[#allocation2 + $0x150] sm:$0xff]  ;;  %v6942_v48 = vpop.f32.mrf.mxu2 }
 0x76c   :  { %v2886_v0 = vadd.f32 %v6881_v8, %v2680_v36 }
 0x76d   :  { %3665 = vst [vmem:[#allocation8 + $0x138] sm:$0xff] %v3602_v21  ;;  %v7777_v21 = vld [vmem:[#allocation190_spill] sm:$0xff] }
 0x76e   :  { %v3288_v55 = vpop.f32.mrf.mxu3  ;;  %v2126_v13 = vadd.f32 %v7777_v21, %v6134_v6  ;;  %v3092_v4 = vadd.f32 %v6886_v40, %v2886_v0 }
 0x76f   :  { %v3289_v52 = vadd.f32 %v3288_v55, %v3083_v18  ;;  %v2437_v18 = vmax.f32 %v1920_v60, 0.0  ;;  %v2900_v40 = vpop.f32.mrf.mxu1 }
 0x770   :  { %v3497_v2 = vpop.f32.mrf.mxu0 }
 0x771   :  { %v3495_v39 = vadd.f32 %v3494_v16, %v3289_v52  ;;  %v7778_v52 = vld [vmem:[#allocation227_spill] sm:$0xff] }
 0x772   :  { %3338 = vmatmul.f32.gmra.mxu3 %v2422_v59  ;;  %v2683_v8 = vadd.f32 %v6741_v20, %v7778_v52  ;;  %v2438_v59 = vmax.f32 %v2126_v13, 0.0  ;;  %v3835_v13 = vld [vmem:[#allocation2 + $0x170] sm:$0xff] }
 0x773   :  { %v3603_v42 = vadd.f32 %v3829_v5, %v3495_v39  ;;  %3544 = vmatmul.f32.gmra.mxu0 %v2423_v27  ;;  %v7779_v39 = vld [vmem:[#allocation71_spill] sm:$0xff]  ;;  %v7780_v5 = vld [vmem:[#allocation24_spill] sm:$0xff]  ;;  %v3106_v28 = vpop.f32.mrf.mxu2 }
 0x774   :  { %v2889_v53 = vadd.f32 %v6896_v31, %v2683_v8  ;;  %v1923_v37 = vadd.f32 %v7779_v39, %v6129_v58 }
 0x775   :  { %3666 = vst [vmem:[#allocation8 + $0x140] sm:$0xff] %v3603_v42  ;;  %v2129_v42 = vadd.f32 %v7780_v5, %v6134_v6  ;;  %v7787_v5 = vld [vmem:[#allocation174_spill] sm:$0xff] }
 0x776   :  { %v3291_v22 = vpop.f32.mrf.mxu3  ;;  %v3095_v32 = vadd.f32 %v6901_v1, %v2889_v53 }
 0x777   :  { %v3292_v62 = vadd.f32 %v3291_v22, %v3086_v44  ;;  %v2442_v44 = vmax.f32 %v1923_v37, 0.0  ;;  %v2903_v3 = vpop.f32.mrf.mxu1 }
 0x778   :  { %v3500_v45 = vpop.f32.mrf.mxu0 }
 0x779   :  { %v3498_v19 = vadd.f32 %v3497_v2, %v3292_v62  ;;  %v7781_v62 = vld [vmem:[#allocation168_spill] sm:$0xff] }
 0x77a   :  { %3341 = vmatmul.f32.gmra.mxu3 %v2427_v14  ;;  %v2686_v31 = vadd.f32 %v6741_v20, %v7781_v62  ;;  %v2443_v14 = vmax.f32 %v2129_v42, 0.0 }
 0x77b   :  { %v3604_v9 = vadd.f32 %v3830_v25, %v3498_v19  ;;  %3547 = vmatmul.f32.gmra.mxu0 %v2428_v17  ;;  %v7782_v19 = vld [vmem:[#allocation75_spill] sm:$0xff]  ;;  %v2132_v25 = vadd.f32 %v7783_v10, %v6134_v6 }
 0x77c   :  { %v2892_v15 = vadd.f32 %v6911_v12, %v2686_v31  ;;  %v1926_v1 = vadd.f32 %v7782_v19, %v6129_v58 }
 0x77d   :  { %3667 = vst [vmem:[#allocation8 + $0x148] sm:$0xff] %v3604_v9 }
 0x77e   :  { %v3294_v61 = vpop.f32.mrf.mxu3  ;;  %v3098_v9 = vadd.f32 %v6913_v26, %v2892_v15  ;;  %v2447_v41 = vmax.f32 %v1926_v1, 0.0 }
 0x77f   :  { %v3295_v47 = vadd.f32 %v3294_v61, %v3089_v34  ;;  %v3109_v34 = vpop.f32.mrf.mxu2 }
 0x780   :  { %v3503_v63 = vpop.f32.mrf.mxu0 }
 0x781   :  { %v3501_v16 = vadd.f32 %v3500_v45, %v3295_v47  ;;  %v7784_v47 = vld [vmem:[#allocation170_spill] sm:$0xff] }
 0x782   :  { %3344 = vmatmul.f32.gmra.mxu3 %v2432_v57  ;;  %v2689_v12 = vadd.f32 %v6741_v20, %v7784_v47  ;;  %v2448_v57 = vmax.f32 %v2132_v25, 0.0  ;;  %v3839_v47 = vld [vmem:[#allocation2 + $0x190] sm:$0xff] }
 0x783   :  { %v3605_v30 = vadd.f32 %v3831_v50, %v3501_v16  ;;  %3550 = vmatmul.f32.gmra.mxu0 %v2433_v49  ;;  %v2906_v16 = vpop.f32.mrf.mxu1  ;;  %v7785_v50 = vld [vmem:[#allocation132_spill] sm:$0xff] }
 0x784   :  { %v2895_v58 = vadd.f32 %v6923_v11, %v2689_v12 }
 0x785   :  { %3668 = vst [vmem:[#allocation8 + $0x150] sm:$0xff] %v3605_v30  ;;  %v2692_v30 = vadd.f32 %v6741_v20, %v7785_v50  ;;  %v3840_v50 = vld [vmem:[#allocation2 + $0x198] sm:$0xff] }
 0x786   :  { %v3297_v51 = vpop.f32.mrf.mxu3  ;;  %v3101_v6 = vadd.f32 %v6927_v54, %v2895_v58 }
 0x787   :  { %v3298_v35 = vadd.f32 %v3297_v51, %v3092_v4  ;;  %v3112_v60 = vpop.f32.mrf.mxu2  ;;  %v2898_v21 = vadd.f32 %v6937_v43, %v2692_v30 }
 0x788   :  { %v3506_v55 = vpop.f32.mrf.mxu0 }
 0x789   :  { %v3504_v2 = vadd.f32 %v3503_v63, %v3298_v35  ;;  %v3104_v11 = vadd.f32 %v6942_v48, %v2898_v21  ;;  %v2698_v48 = vadd.f32 %v6741_v20, %v7787_v5 }
 0x78a   :  { %3347 = vmatmul.f32.gmra.mxu3 %v2437_v18  ;;  %v7786_v18 = vld [vmem:[#allocation83_spill] sm:$0xff] }
 0x78b   :  { %v3606_v27 = vadd.f32 %v3832_v38, %v3504_v2  ;;  %3553 = vmatmul.f32.gmra.mxu0 %v2438_v59  ;;  %v2909_v8 = vpop.f32.mrf.mxu1  ;;  %v3836_v2 = vld [vmem:[#allocation2 + $0x178] sm:$0xff] }
 0x78d   :  { %3669 = vst [vmem:[#allocation8 + $0x158] sm:$0xff] %v3606_v27 }
 0x78e   :  { %v3300_v33 = vpop.f32.mrf.mxu3 }
 0x78f   :  { %v3301_v29 = vadd.f32 %v3300_v33, %v3095_v32  ;;  %v3115_v38 = vpop.f32.mrf.mxu2  ;;  %v2904_v32 = vadd.f32 %v2903_v3, %v2698_v48  ;;  %v3837_v33 = vld [vmem:[#allocation2 + $0x180] sm:$0xff] }
 0x790   :  { %v3509_v22 = vpop.f32.mrf.mxu0 }
 0x791   :  { %v3507_v45 = vadd.f32 %v3506_v55, %v3301_v29  ;;  %v2695_v55 = vadd.f32 %v6741_v20, %v7786_v18  ;;  %v3841_v18 = vld [vmem:[#allocation2 + $0x1a0] sm:$0xff] }
 0x792   :  { %3350 = vmatmul.f32.gmra.mxu3 %v2442_v44 }
 0x793   :  { %v3607_v17 = vadd.f32 %v3833_v7, %v3507_v45  ;;  %3556 = vmatmul.f32.gmra.mxu0 %v2443_v14  ;;  %v2901_v59 = vadd.f32 %v2900_v40, %v2695_v55  ;;  %v2912_v44 = vpop.f32.mrf.mxu1  ;;  %v7788_v45 = vld [vmem:[#allocation139_spill] sm:$0xff] }
 0x795   :  { %3670 = vst [vmem:[#allocation8 + $0x160] sm:$0xff] %v3607_v17  ;;  %v3107_v27 = vadd.f32 %v3106_v28, %v2901_v59  ;;  %v2701_v28 = vadd.f32 %v6741_v20, %v7788_v45  ;;  %v3838_v17 = vld [vmem:[#allocation2 + $0x188] sm:$0xff] }
 0x796   :  { %v3303_v56 = vpop.f32.mrf.mxu3 }
 0x797   :  { %v3304_v46 = vadd.f32 %v3303_v56, %v3098_v9  ;;  %v3118_v62 = vpop.f32.mrf.mxu2  ;;  %v2907_v7 = vadd.f32 %v2906_v16, %v2701_v28 }
 0x798   :  { %v3512_v61 = vpop.f32.mrf.mxu0 }
 0x799   :  { %v3510_v63 = vadd.f32 %v3509_v22, %v3304_v46  ;;  %v3110_v22 = vadd.f32 %v3109_v34, %v2904_v32  ;;  %v3113_v1 = vadd.f32 %v3112_v60, %v2907_v7  ;;  %v7789_v46 = vld [vmem:[#allocation141_spill] sm:$0xff] }
 0x79a   :  { %3353 = vmatmul.f32.gmra.mxu3 %v2447_v41  ;;  %v2704_v41 = vadd.f32 %v6741_v20, %v7789_v46 }
 0x79b   :  { %v3608_v36 = vadd.f32 %v3834_v24, %v3510_v63  ;;  %3559 = vmatmul.f32.gmra.mxu0 %v2448_v57  ;;  %v2915_v10 = vpop.f32.mrf.mxu1 }
 0x79d   :  { %3671 = vst [vmem:[#allocation8 + $0x168] sm:$0xff] %v3608_v36 }
 0x79e   :  { %v3306_v26 = vpop.f32.mrf.mxu3 }
 0x79f   :  { %v3307_v49 = vadd.f32 %v3306_v26, %v3101_v6  ;;  %v3121_v3 = vpop.f32.mrf.mxu2  ;;  %v7790_v6 = vld [vmem:[#allocation178_spill] sm:$0xff] }
 0x7a0   :  { %v3515_v0 = vpop.f32.mrf.mxu0  ;;  %v2707_v26 = vadd.f32 %v6741_v20, %v7790_v6  ;;  %v3845_v6 = vld [vmem:[#allocation2 + $0x1c0] sm:$0xff] }
 0x7a1   :  { %v3513_v23 = vadd.f32 %v3512_v61, %v3307_v49  ;;  %v2910_v61 = vadd.f32 %v2909_v8, %v2704_v41 }
 0x7a3   :  { %v3609_v4 = vadd.f32 %v3835_v13, %v3513_v23  ;;  %v3116_v57 = vadd.f32 %v3115_v38, %v2910_v61  ;;  %v2918_v24 = vpop.f32.mrf.mxu1  ;;  %v7792_v38 = vld [vmem:[#allocation147_spill] sm:$0xff] }
 0x7a5   :  { %3672 = vst [vmem:[#allocation8 + $0x170] sm:$0xff] %v3609_v4  ;;  %v7791_v4 = vld [vmem:[#allocation145_spill] sm:$0xff] }
 0x7a6   :  { %v3309_v51 = vpop.f32.mrf.mxu3 }
 0x7a7   :  { %v3310_v35 = vadd.f32 %v3309_v51, %v3104_v11  ;;  %v3124_v16 = vpop.f32.mrf.mxu2  ;;  %v2710_v11 = vadd.f32 %v6741_v20, %v7791_v4  ;;  %v3846_v4 = vld [vmem:[#allocation2 + $0x1c8] sm:$0xff] }
 0x7a8   :  { %v3518_v54 = vpop.f32.mrf.mxu0 }
 0x7a9   :  { %v3516_v52 = vadd.f32 %v3515_v0, %v3310_v35  ;;  %v2913_v0 = vadd.f32 %v2912_v44, %v2707_v26 }
 0x7ab   :  { %v3610_v53 = vadd.f32 %v3836_v2, %v3516_v52  ;;  %v3119_v23 = vadd.f32 %v3118_v62, %v2913_v0  ;;  %v2921_v35 = vpop.f32.mrf.mxu1 }
 0x7ad   :  { %3673 = vst [vmem:[#allocation8 + $0x178] sm:$0xff] %v3610_v53 }
 0x7ae   :  { %v3312_v43 = vpop.f32.mrf.mxu3 }
 0x7af   :  { %v3313_v39 = vadd.f32 %v3312_v43, %v3107_v27  ;;  %v3127_v52 = vpop.f32.mrf.mxu2  ;;  %v2713_v27 = vadd.f32 %v6741_v20, %v7792_v38 }
 0x7b0   :  { %v3521_v37 = vpop.f32.mrf.mxu0 }
 0x7b1   :  { %v3519_v42 = vadd.f32 %v3518_v54, %v3313_v39  ;;  %v2916_v54 = vadd.f32 %v2915_v10, %v2710_v11  ;;  %v2919_v39 = vadd.f32 %v2918_v24, %v2713_v27  ;;  %v7794_v10 = vld [vmem:[#allocation184_spill] sm:$0xff] }
 0x7b3   :  { %v3611_v29 = vadd.f32 %v3837_v33, %v3519_v42  ;;  %v3122_v8 = vadd.f32 %v3121_v3, %v2916_v54  ;;  %v2924_v48 = vpop.f32.mrf.mxu1  ;;  %v3125_v42 = vadd.f32 %v3124_v16, %v2919_v39 }
 0x7b5   :  { %3674 = vst [vmem:[#allocation8 + $0x180] sm:$0xff] %v3611_v29 }
 0x7b6   :  { %v3315_v40 = vpop.f32.mrf.mxu3 }
 0x7b7   :  { %v3316_v31 = vadd.f32 %v3315_v40, %v3110_v22  ;;  %v3130_v32 = vpop.f32.mrf.mxu2  ;;  %v7793_v22 = vld [vmem:[#allocation103_spill] sm:$0xff] }
 0x7b8   :  { %v3524_v14 = vpop.f32.mrf.mxu0  ;;  %v2716_v62 = vadd.f32 %v6741_v20, %v7793_v22 }
 0x7b9   :  { %v3522_v15 = vadd.f32 %v3521_v37, %v3316_v31  ;;  %v3842_v37 = vld [vmem:[#allocation2 + $0x1a8] sm:$0xff] }
 0x7ba   :  { %v2922_v31 = vadd.f32 %v2921_v35, %v2716_v62 }
 0x7bb   :  { %v3612_v19 = vadd.f32 %v3838_v17, %v3522_v15  ;;  %v2927_v15 = vpop.f32.mrf.mxu1 }
 0x7bc   :  { %v3128_v28 = vadd.f32 %v3127_v52, %v2922_v31 }
 0x7bd   :  { %3675 = vst [vmem:[#allocation8 + $0x188] sm:$0xff] %v3612_v19 }
 0x7be   :  { %v3318_v25 = vpop.f32.mrf.mxu3 }
 0x7bf   :  { %v3319_v9 = vadd.f32 %v3318_v25, %v3113_v1  ;;  %v3133_v19 = vpop.f32.mrf.mxu2  ;;  %v2719_v25 = vadd.f32 %v6741_v20, %v7794_v10 }
 0x7c0   :  { %v3527_v56 = vpop.f32.mrf.mxu0 }
 0x7c1   :  { %v3525_v34 = vadd.f32 %v3524_v14, %v3319_v9  ;;  %v3843_v14 = vld [vmem:[#allocation2 + $0x1b0] sm:$0xff]  ;;  %v2925_v3 = vadd.f32 %v2924_v48, %v2719_v25  ;;  %v7798_v48 = vld [vmem:[#allocation159_spill] sm:$0xff] }
 0x7c3   :  { %v3613_v12 = vadd.f32 %v3839_v47, %v3525_v34  ;;  %v3131_v41 = vadd.f32 %v3130_v32, %v2925_v3  ;;  %v2930_v47 = vpop.f32.mrf.mxu1 }
 0x7c5   :  { %3676 = vst [vmem:[#allocation8 + $0x190] sm:$0xff] %v3613_v12 }
 0x7c6   :  { %v3321_v63 = vpop.f32.mrf.mxu3 }
 0x7c7   :  { %v3322_v58 = vadd.f32 %v3321_v63, %v3116_v57  ;;  %v7795_v57 = vld [vmem:[#allocation153_spill] sm:$0xff]  ;;  %v3136_v24 = vpop.f32.mrf.mxu2 }
 0x7c8   :  { %v3530_v36 = vpop.f32.mrf.mxu0  ;;  %v2722_v63 = vadd.f32 %v6741_v20, %v7795_v57 }
 0x7c9   :  { %v3528_v49 = vadd.f32 %v3527_v56, %v3322_v58  ;;  %v3844_v56 = vld [vmem:[#allocation2 + $0x1b8] sm:$0xff] }
 0x7cb   :  { %v3614_v30 = vadd.f32 %v3840_v50, %v3528_v49 }
 0x7cd   :  { %3677 = vst [vmem:[#allocation8 + $0x198] sm:$0xff] %v3614_v30  ;;  %v7796_v30 = vld [vmem:[#allocation111_spill] sm:$0xff] }
 0x7ce   :  { %v3324_v60 = vpop.f32.mrf.mxu3 }
 0x7cf   :  { %v3325_v21 = vadd.f32 %v3324_v60, %v3119_v23  ;;  %v2725_v23 = vadd.f32 %v6741_v20, %v7796_v30 }
 0x7d0   :  { %v3533_v13 = vpop.f32.mrf.mxu0 }
 0x7d1   :  { %v3531_v51 = vadd.f32 %v3530_v36, %v3325_v21  ;;  %v2928_v36 = vadd.f32 %v2927_v15, %v2722_v63  ;;  %v2933_v21 = vpop.f32.mrf.mxu1  ;;  %v7799_v15 = vld [vmem:[#allocation55_spill] sm:$0xff] }
 0x7d3   :  { %v3615_v55 = vadd.f32 %v3841_v18, %v3531_v51  ;;  %v3134_v49 = vadd.f32 %v3133_v19, %v2928_v36  ;;  %v3139_v51 = vpop.f32.mrf.mxu2 }
 0x7d5   :  { %3678 = vst [vmem:[#allocation8 + $0x1a0] sm:$0xff] %v3615_v55  ;;  %v7797_v55 = vld [vmem:[#allocation188_spill] sm:$0xff] }
 0x7d6   :  { %v3327_v59 = vpop.f32.mrf.mxu3  ;;  %v2728_v52 = vadd.f32 %v6741_v20, %v7797_v55 }
 0x7d7   :  { %v3328_v2 = vadd.f32 %v3327_v59, %v3122_v8 }
 0x7d8   :  { %v3536_v53 = vpop.f32.mrf.mxu0 }
 0x7d9   :  { %v3534_v43 = vadd.f32 %v3533_v13, %v3328_v2  ;;  %v2931_v13 = vadd.f32 %v2930_v47, %v2725_v23  ;;  %v2934_v2 = vadd.f32 %v2933_v21, %v2728_v52  ;;  %v2936_v27 = vpop.f32.mrf.mxu1 }
 0x7db   :  { %v3616_v5 = vadd.f32 %v3842_v37, %v3534_v43  ;;  %v3137_v35 = vadd.f32 %v3136_v24, %v2931_v13  ;;  %v3140_v43 = vadd.f32 %v3139_v51, %v2934_v2  ;;  %v3142_v39 = vpop.f32.mrf.mxu2 }
 0x7dd   :  { %3679 = vst [vmem:[#allocation8 + $0x1a8] sm:$0xff] %v3616_v5 }
 0x7de   :  { %v3330_v33 = vpop.f32.mrf.mxu3 }
 0x7df   :  { %v3331_v29 = vadd.f32 %v3330_v33, %v3125_v42  ;;  %v2731_v42 = vadd.f32 %v6741_v20, %v7798_v48  ;;  %v3850_v20 = vld [vmem:[#allocation2 + $0x1e0] sm:$0xff] }
 0x7e0   :  { %v3539_v44 = vpop.f32.mrf.mxu0 }
 0x7e1   :  { %v3537_v40 = vadd.f32 %v3536_v53, %v3331_v29  ;;  %v3847_v53 = vld [vmem:[#allocation2 + $0x1d0] sm:$0xff]  ;;  %v2937_v33 = vadd.f32 %v2936_v27, %v2731_v42  ;;  %v3848_v29 = vld [vmem:[#allocation2 + $0x1d8] sm:$0xff] }
 0x7e3   :  { %v3617_v45 = vadd.f32 %v3843_v14, %v3537_v40  ;;  %v3143_v62 = vadd.f32 %v3142_v39, %v2937_v33  ;;  %v2939_v40 = vpop.f32.mrf.mxu1 }
 0x7e5   :  { %3680 = vst [vmem:[#allocation8 + $0x1b0] sm:$0xff] %v3617_v45  ;;  %v3145_v45 = vpop.f32.mrf.mxu2 }
 0x7e6   :  { %v3333_v7 = vpop.f32.mrf.mxu3 }
 0x7e7   :  { %v3334_v17 = vadd.f32 %v3333_v7, %v3128_v28  ;;  %v3849_v28 = vld [vmem:[%s7016_s8] ss:$0 sm:$0xff]  ;;  %s3960_s8 = smov [#allocation8]  }
 0x7e8   :  { %v3542_v1 = vpop.f32.mrf.mxu0  ;;  %v2734_v7 = vadd.f32 %v3849_v28, %v7799_v15  ;;  %s3693_s12 = sshll.u32 %s3960_s8, 4  ;;  %s3694_s12 = int_to_ptr.vmem [resolvable:$true] %s3693_s12 }
 0x7e9   :  { %v3540_v9 = vadd.f32 %v3539_v44, %v3334_v17 }
 0x7ea   :  { %v2940_v19 = vadd.f32 %v2939_v40, %v2734_v7 }
 0x7eb   :  { %v3618_v46 = vadd.f32 %v3844_v56, %v3540_v9  ;;  %v2942_v56 = vpop.f32.mrf.mxu1 }
 0x7ec   :  { %v3146_v10 = vadd.f32 %v3145_v45, %v2940_v19 }
 0x7ed   :  { %3681 = vst [vmem:[#allocation8 + $0x1b8] sm:$0xff] %v3618_v46  ;;  %v7800_v46 = vld [vmem:[#allocation193_spill] sm:$0xff] }
 0x7ee   :  { %v3336_v34 = vpop.f32.mrf.mxu3 }
 0x7ef   :  { %v3337_v61 = vadd.f32 %v3336_v34, %v3131_v41  ;;  %v2737_v41 = vadd.f32 %v3849_v28, %v7800_v46 }
 0x7f0   :  { %v3545_v12 = vpop.f32.mrf.mxu0 }
 0x7f1   :  { %v3543_v58 = vadd.f32 %v3542_v1, %v3337_v61  ;;  %v3148_v61 = vpop.f32.mrf.mxu2  ;;  %v2943_v47 = vadd.f32 %v2942_v56, %v2737_v41 }
 0x7f3   :  { %v3619_v26 = vadd.f32 %v3845_v6, %v3543_v58  ;;  %v3149_v63 = vadd.f32 %v3148_v61, %v2943_v47 }
 0x7f5   :  { %3682 = vst [vmem:[#allocation8 + $0x1c0] sm:$0xff] %v3619_v26  ;;  %v3852_v26 = vld [vmem:[#allocation2 + $0x1f0] sm:$0xff] }
 0x7f6   :  { %v3339_v16 = vpop.f32.mrf.mxu3 }
 0x7f7   :  { %v3340_v0 = vadd.f32 %v3339_v16, %v3134_v49 }
 0x7f8   :  { %v3548_v50 = vpop.f32.mrf.mxu0 }
 0x7f9   :  { %v3546_v60 = vadd.f32 %v3545_v12, %v3340_v0  ;;  %v3851_v12 = vld [vmem:[#allocation2 + $0x1e8] sm:$0xff] }
 0x7fb   :  { %v3620_v11 = vadd.f32 %v3846_v4, %v3546_v60 }
 0x7fd   :  { %3683 = vst [vmem:[#allocation8 + $0x1c8] sm:$0xff] %v3620_v11 }
 0x7fe   :  { %v3342_v54 = vpop.f32.mrf.mxu3 }
 0x7ff   :  { %v3343_v18 = vadd.f32 %v3342_v54, %v3137_v35 }
 0x800   :  { %v3551_v59 = vpop.f32.mrf.mxu0 }
 0x801   :  { %v3549_v8 = vadd.f32 %v3548_v50, %v3343_v18 }
 0x803   :  { %v3621_v38 = vadd.f32 %v3847_v53, %v3549_v8 }
 0x805   :  { %3684 = vst [vmem:[#allocation8 + $0x1d0] sm:$0xff] %v3621_v38 }
 0x806   :  { %v3345_v37 = vpop.f32.mrf.mxu3 }
 0x807   :  { %v3346_v5 = vadd.f32 %v3345_v37, %v3140_v43 }
 0x808   :  { %v3554_v22 = vpop.f32.mrf.mxu0 }
 0x809   :  { %v3552_v32 = vadd.f32 %v3551_v59, %v3346_v5 }
 0x80b   :  { %v3622_v44 = vadd.f32 %v3848_v29, %v3552_v32 }
 0x80d   :  { %3685 = vst [vmem:[#allocation8 + $0x1d8] sm:$0xff] %v3622_v44 }
 0x80e   :  { %v3348_v31 = vpop.f32.mrf.mxu3 }
 0x80f   :  { %v3349_v14 = vadd.f32 %v3348_v31, %v3143_v62 }
 0x810   :  { %v3557_v25 = vpop.f32.mrf.mxu0 }
 0x811   :  { %v3555_v17 = vadd.f32 %v3554_v22, %v3349_v14 }
 0x813   :  { %v3623_v1 = vadd.f32 %v3850_v20, %v3555_v17 }
 0x815   :  { %3686 = vst [vmem:[#allocation8 + $0x1e0] sm:$0xff] %v3623_v1 }
 0x816   :  { %v3351_v9 = vpop.f32.mrf.mxu3 }
 0x817   :  { %v3352_v3 = vadd.f32 %v3351_v9, %v3146_v10 }
 0x818   :  { %v3560_v36 = vpop.f32.mrf.mxu0 }
 0x819   :  { %v3558_v34 = vadd.f32 %v3557_v25, %v3352_v3 }
 0x81b   :  { %v3624_v57 = vadd.f32 %v3851_v12, %v3558_v34 }
 0x81d   :  { %3687 = vst [vmem:[#allocation8 + $0x1e8] sm:$0xff] %v3624_v57 }
 0x81e   :  { %v3354_v58 = vpop.f32.mrf.mxu3 }
 0x81f   :  { %v3355_v24 = vadd.f32 %v3354_v58, %v3149_v63 }
 0x821   :  { %v3561_v6 = vadd.f32 %v3560_v36, %v3355_v24 }
 0x823   :  { %v3625_v49 = vadd.f32 %v3852_v26, %v3561_v6 }
 0x825   :  { %3688 = vst [vmem:[#allocation8 + $0x1f0] sm:$0xff] %v3625_v49 }
 0x826   :  { %3701 = dma.vmem_to_hbm [thread:$0]  %s3694_s12, 8064, %s3696_s15, [#allocation4], %s3956_s17, %s3956_s17, %s3957_s18  }
 0x827   :  { %3953 = dma.done.wait [#allocation4], 8064  }
 0x828   :  { %3954 = vsyncadd [#allocation4], 4294959232 }
 0x829   :  { %3706 = vsyncpa [#allocation3], 1 }
 0x82a   :  { %3707 = vsyncpa [#allocation6], 1 }
 0x82b   :  { %3708 = vsyncpa [#allocation4], 1 }

</bundles_post_ra>
